<compile_context>
chip_gen: v7x
topology: tpu7x:2x2x1
jax: 0.10.0
libtpu: 0.0.40
codegen_flags: <defaults>
</compile_context>

<pallas_src>
import functools
from math import floor

import numpy as np
import jax
import jax.numpy as jnp
from jax.experimental import pallas as pl
from jax.experimental.pallas import tpu as pltpu


def _round_up(x, m):
    return (x + m - 1) // m * m


def _conv_output_shape(h_w, kernel_size, stride):
    h = floor((h_w[0] - (kernel_size - 1) - 1) / stride + 1)
    w = floor((h_w[1] - (kernel_size - 1) - 1) / stride + 1)
    return (h, w)


# ---------------------------------------------------------------------------
# Pallas kernels
# ---------------------------------------------------------------------------
def _tower_kernel(x_ref, w1_ref, b1_ref, w2_ref, b2_ref, wht_ref, hpart_ref,
                  *, B, k1, s1, span1, k2, s2, Ho2):
    """One conv tower (conv1+ReLU, conv2+ReLU, flatten) + its share of layer_hidden.

    x_ref    : (1, B, H, W*Cp)      bf16, NHWC with (w, c) folded into lanes
    w1_ref   : (1, k1, W*Cp, P1)    bf16, block-Toeplitz conv1 weight (per kernel row)
    b1_ref   : (1, 1, P1)           f32
    w2_ref   : (1, k2, P1, P2)      bf16, block-Toeplitz conv2 weight
    b2_ref   : (1, 1, P2)           f32
    wht_ref  : (1, Ho2, P2, HID)    bf16, hidden-weight rows for this tower
                                     (PyTorch flatten order folded in)
    hpart_ref: (1, B, HID)          f32, this tower's partial hidden pre-activation
    """
    P1 = w1_ref.shape[3]
    P2 = w2_ref.shape[3]
    HID = wht_ref.shape[3]

    for b in range(B):
        # ---- conv1 (kernel-row loop; kw and wo1 are folded into the weight) ----
        acc1 = jnp.zeros((span1, P1), jnp.float32)
        for kh in range(k1):
            lhs = x_ref[0, b, kh:kh + span1, :]                 # (span1, W*Cp) bf16
            acc1 = acc1 + jnp.dot(lhs, w1_ref[0, kh],
                                  preferred_element_type=jnp.float32)
        # row j of acc1 == conv1 pre-activation at input-row offset j;
        # valid conv1 outputs live at rows j = s1 * ho1.
        h1 = jnp.maximum(acc1 + b1_ref[0], 0.0).astype(jnp.bfloat16)   # (span1, P1)

        # ---- conv2 + ReLU + flatten folded into the hidden matmul ----
        hp = jnp.zeros((1, HID), jnp.float32)
        for ho2 in range(Ho2):
            acc2 = jnp.zeros((1, P2), jnp.float32)
            for kh2 in range(k2):
                r = s1 * (kh2 + s2 * ho2)                        # conv1-output row
                acc2 = acc2 + jnp.dot(h1[r:r + 1, :], w2_ref[0, kh2],
                                      preferred_element_type=jnp.float32)
            y2 = jnp.maximum(acc2 + b2_ref[0], 0.0).astype(jnp.bfloat16)   # (1, P2)
            hp = hp + jnp.dot(y2, wht_ref[0, ho2],
                              preferred_element_type=jnp.float32)
        hpart_ref[0, b:b + 1, :] = hp


def _trunk_kernel(hpart_ref, ns_ref, wns_ref, bns_ref, whn_ref, bh_ref,
                  whd_ref, bhd_ref, valid_ref, out_ref, *, A):
    """Nonspatial dense (tanh) + layer_hidden (ReLU) + all six heads + action mask."""
    # nonspatial dense + tanh (tanh kept in f32)
    n = jnp.tanh(jnp.dot(ns_ref[...], wns_ref[...],
                         preferred_element_type=jnp.float32) + bns_ref[...])
    # hidden layer: tower partial sums + nonspatial part + bias, ReLU
    pre = (hpart_ref[0] + hpart_ref[1] + bh_ref[...]
           + jnp.dot(n.astype(jnp.bfloat16), whn_ref[...],
                     preferred_element_type=jnp.float32))
    state = jnp.maximum(pre, 0.0).astype(jnp.bfloat16)
    # all six heads fused into one lane-dense matmul
    heads = jnp.dot(state, whd_ref[...],
                    preferred_element_type=jnp.float32) + bhd_ref[...]
    out_ref[...] = heads
    # fused _mask_unavailable_actions (policy occupies the first A lanes)
    pol = heads[:, :A] * valid_ref[...]
    denom = jnp.sum(pol, axis=1, keepdims=True)
    # TODO(synk): guard only changes the exactly-zero-denominator case (NaN in PyTorch)
    denom = jnp.where(jnp.abs(denom) < 1e-30, 1e-30, denom)
    out_ref[:, :A] = pol * pl.reciprocal(denom, approx=True)


# ---------------------------------------------------------------------------
# Config, parameters and prep-time weight packing
# ---------------------------------------------------------------------------
def make_config(minimap_channels, screen_channels, screen_resolution,
                nonspatial_obs_dim, num_action):
    H, W = screen_resolution
    k1, s1, k2, s2 = 8, 4, 4, 2
    Ho1, Wo1 = _conv_output_shape((H, W), k1, s1)
    Ho2, Wo2 = _conv_output_shape((Ho1, Wo1), k2, s2)
    N1, N2, HID = 16, 32, 256
    cfg = dict(
        Cm=minimap_channels, Cs=screen_channels,
        Cp=_round_up(max(minimap_channels, screen_channels), 8),
        H=H, W=W, k1=k1, s1=s1, k2=k2, s2=s2,
        Ho1=Ho1, Wo1=Wo1, Ho2=Ho2, Wo2=Wo2,
        span1=(Ho1 - 1) * s1 + 1,
        N1=N1, N2=N2,
        P1=_round_up(Wo1 * N1, 128),
        P2=_round_up(Wo2 * N2, 128),
        D=nonspatial_obs_dim, Dp=_round_up(nonspatial_obs_dim, 128),
        HID=HID, A=num_action, Rx=H, Ry=W,
    )
    cfg["F"] = N2 * Ho2 * Wo2                        # per-tower flattened conv features
    cfg["HIDDEN_IN"] = 2 * cfg["F"] + HID            # see TODO(synk) at top
    cfg["NH"] = num_action + 1 + 2 * H + 2 * W
    cfg["NHp"] = _round_up(cfg["NH"], 128)
    return cfg


def init_params(key, cfg):
    """PyTorch-layout synthetic parameters (f32)."""
    def nrm(k, shape, scale=0.05):
        return (scale * jax.random.normal(k, shape)).astype(jnp.float32)

    keys = jax.random.split(key, 24)
    p = {
        "m_conv1_w": nrm(keys[0], (cfg["N1"], cfg["Cm"], cfg["k1"], cfg["k1"])),
        "m_conv1_b": nrm(keys[1], (cfg["N1"],)),
        "m_conv2_w": nrm(keys[2], (cfg["N2"], cfg["N1"], cfg["k2"], cfg["k2"])),
        "m_conv2_b": nrm(keys[3], (cfg["N2"],)),
        "s_conv1_w": nrm(keys[4], (cfg["N1"], cfg["Cs"], cfg["k1"], cfg["k1"])),
        "s_conv1_b": nrm(keys[5], (cfg["N1"],)),
        "s_conv2_w": nrm(keys[6], (cfg["N2"], cfg["N1"], cfg["k2"], cfg["k2"])),
        "s_conv2_b": nrm(keys[7], (cfg["N2"],)),
        "ns_w": nrm(keys[8], (cfg["D"], cfg["HID"])),
        "ns_b": nrm(keys[9], (cfg["HID"],)),
        "hid_w": nrm(keys[10], (cfg["HIDDEN_IN"], cfg["HID"])),
        "hid_b": nrm(keys[11], (cfg["HID"],)),
        "action_w": nrm(keys[12], (cfg["HID"], cfg["A"])),
        "action_b": nrm(keys[13], (cfg["A"],)),
        "value_w": nrm(keys[14], (cfg["HID"], 1)),
        "value_b": nrm(keys[15], (1,)),
        "s1x_w": nrm(keys[16], (cfg["HID"], cfg["Rx"])), "s1x_b": nrm(keys[17], (cfg["Rx"],)),
        "s1y_w": nrm(keys[18], (cfg["HID"], cfg["Ry"])), "s1y_b": nrm(keys[19], (cfg["Ry"],)),
        "s2x_w": nrm(keys[20], (cfg["HID"], cfg["Rx"])), "s2x_b": nrm(keys[21], (cfg["Rx"],)),
        "s2y_w": nrm(keys[22], (cfg["HID"], cfg["Ry"])), "s2y_b": nrm(keys[23], (cfg["Ry"],)),
    }
    return p


def prepare_kernel_params(p, cfg):
    """Pack PyTorch-layout params into padded, lane-aligned, bf16 kernel weights."""
    f32 = np.float32
    Cp, k1, s1, Wo1, N1, P1 = cfg["Cp"], cfg["k1"], cfg["s1"], cfg["Wo1"], cfg["N1"], cfg["P1"]
    k2, s2, Ho2, Wo2, N2, P2 = cfg["k2"], cfg["s2"], cfg["Ho2"], cfg["Wo2"], cfg["N2"], cfg["P2"]
    W, HID, F = cfg["W"], cfg["HID"], cfg["F"]

    def npy(x):
        return np.asarray(jax.device_get(x), dtype=f32)

    # conv1: block-Toeplitz weight (per kernel row kh).  Column block wo1 holds the
    # taps for output column wo1; row index = w*Cp + c  (NHWC lane layout).
    w1s = np.zeros((2, k1, W * Cp, P1), f32)
    b1f = np.zeros((2, 1, P1), f32)
    for t, (wk, bk, C) in enumerate([("m_conv1_w", "m_conv1_b", cfg["Cm"]),
                                     ("s_conv1_w", "s_conv1_b", cfg["Cs"])]):
        wc, bc = npy(p[wk]), npy(p[bk])
        for kh in range(k1):
            for wo in range(Wo1):
                for kw in range(k1):
                    w = s1 * wo + kw
                    w1s[t, kh, w * Cp:w * Cp + C, wo * N1:(wo + 1) * N1] = wc[:, :, kh, kw].T
        for wo in range(Wo1):
            b1f[t, 0, wo * N1:(wo + 1) * N1] = bc

    # conv2: same trick on the conv1 output rows (lane layout: wo1*N1 + c1).
    w2s = np.zeros((2, k2, P1, P2), f32)
    b2f = np.zeros((2, 1, P2), f32)
    for t, (wk, bk) in enumerate([("m_conv2_w", "m_conv2_b"), ("s_conv2_w", "s_conv2_b")]):
        wc, bc = npy(p[wk]), npy(p[bk])
        for kh2 in range(k2):
            for wo2 in range(Wo2):
                for kw2 in range(k2):
                    w1 = s2 * wo2 + kw2
                    w2s[t, kh2, w1 * N1:(w1 + 1) * N1, wo2 * N2:(wo2 + 1) * N2] = wc[:, :, kh2, kw2].T
        for wo2 in range(Wo2):
            b2f[t, 0, wo2 * N2:(wo2 + 1) * N2] = bc

    # hidden weight: per-tower parts with the PyTorch channel-major flatten folded
    # into a row permutation (review: permute weights instead of transposing acts).
    hid_w = npy(p["hid_w"])
    wht = np.zeros((2, Ho2, P2, HID), f32)
    for t in range(2):
        for h2 in range(Ho2):
            for w2 in range(Wo2):
                rows = t * F + np.arange(N2) * (Ho2 * Wo2) + h2 * Wo2 + w2
                wht[t, h2, w2 * N2:(w2 + 1) * N2, :] = hid_w[rows, :]
    whn = hid_w[2 * F:, :]                                   # nonspatial rows (HID, HID)

    wns = np.zeros((cfg["Dp"], HID), f32)
    wns[:cfg["D"], :] = npy(p["ns_w"])

    # fused heads, order: [action, value, s1x, s1y, s2x, s2y], padded to NHp lanes
    head_w = np.concatenate([npy(p["action_w"]), npy(p["value_w"]),
                             npy(p["s1x_w"]), npy(p["s1y_w"]),
                             npy(p["s2x_w"]), npy(p["s2y_w"])], axis=1)
    head_b = np.concatenate([npy(p["action_b"]), npy(p["value_b"]),
                             npy(p["s1x_b"]), npy(p["s1y_b"]),
                             npy(p["s2x_b"]), npy(p["s2y_b"])], axis=0)
    whd = np.zeros((HID, cfg["NHp"]), f32)
    whd[:, :cfg["NH"]] = head_w
    bhd = np.zeros((1, cfg["NHp"]), f32)
    bhd[0, :cfg["NH"]] = head_b

    bf16 = jnp.bfloat16
    return {
        "w1s": jnp.asarray(w1s, bf16), "b1f": jnp.asarray(b1f),
        "w2s": jnp.asarray(w2s, bf16), "b2f": jnp.asarray(b2f),
        "wht": jnp.asarray(wht, bf16),
        "whn": jnp.asarray(whn, bf16),
        "bh": jnp.asarray(npy(p["hid_b"]).reshape(1, HID)),
        "wns": jnp.asarray(wns, bf16),
        "bns": jnp.asarray(npy(p["ns_b"]).reshape(1, HID)),
        "whd": jnp.asarray(whd, bf16), "bhd": jnp.asarray(bhd),
    }


# ---------------------------------------------------------------------------
# Forward pass (two fused pallas_calls)
# ---------------------------------------------------------------------------
def _forward_impl(cfg, kp, obs_minimap, obs_screen, obs_nonspatial, valid_actions):
    B = obs_minimap.shape[0]
    H, W, Cp = cfg["H"], cfg["W"], cfg["Cp"]
    HID, A = cfg["HID"], cfg["A"]

    # Input-only layout plumbing (NCHW f32 -> lane-folded NHWC bf16).
    def prep(x, C):
        x = jnp.transpose(x, (0, 2, 3, 1))                       # NCHW -> NHWC
        x = jnp.pad(x, ((0, 0), (0, 0), (0, 0), (0, Cp - C)))
        return x.reshape(B, H, W * Cp)

    x_towers = jnp.stack([prep(obs_minimap, cfg["Cm"]),
                          prep(obs_screen, cfg["Cs"])], axis=0).astype(jnp.bfloat16)
    ns = jnp.pad(obs_nonspatial,
                 ((0, 0), (0, cfg["Dp"] - cfg["D"]))).astype(jnp.bfloat16)
    valid = valid_actions.reshape(1, A).astype(jnp.float32)

    tower_kernel = functools.partial(
        _tower_kernel, B=B, k1=cfg["k1"], s1=cfg["s1"], span1=cfg["span1"],
        k2=cfg["k2"], s2=cfg["s2"], Ho2=cfg["Ho2"])

    hpart = pl.pallas_call(
        tower_kernel,
        out_shape=jax.ShapeDtypeStruct((2, B, HID), jnp.float32),
        grid=(2,),
        in_specs=[
            pl.BlockSpec((1, B, H, W * Cp), lambda t: (t, 0, 0, 0)),
            pl.BlockSpec((1, cfg["k1"], W * Cp, cfg["P1"]), lambda t: (t, 0, 0, 0)),
            pl.BlockSpec((1, 1, cfg["P1"]), lambda t: (t, 0, 0)),
            pl.BlockSpec((1, cfg["k2"], cfg["P1"], cfg["P2"]), lambda t: (t, 0, 0, 0)),
            pl.BlockSpec((1, 1, cfg["P2"]), lambda t: (t, 0, 0)),
            pl.BlockSpec((1, cfg["Ho2"], cfg["P2"], HID), lambda t: (t, 0, 0, 0)),
        ],
        out_specs=pl.BlockSpec((1, B, HID), lambda t: (t, 0, 0)),
        compiler_params=pltpu.CompilerParams(dimension_semantics=("parallel",)),
    )(x_towers, kp["w1s"], kp["b1f"], kp["w2s"], kp["b2f"], kp["wht"])

    out = pl.pallas_call(
        functools.partial(_trunk_kernel, A=A),
        out_shape=jax.ShapeDtypeStruct((B, cfg["NHp"]), jnp.float32),
        in_specs=[
            pl.BlockSpec((2, B, HID), lambda: (0, 0, 0)),
            pl.BlockSpec((B, cfg["Dp"]), lambda: (0, 0)),
            pl.BlockSpec((cfg["Dp"], HID), lambda: (0, 0)),
            pl.BlockSpec((1, HID), lambda: (0, 0)),
            pl.BlockSpec((HID, HID), lambda: (0, 0)),
            pl.BlockSpec((1, HID), lambda: (0, 0)),
            pl.BlockSpec((HID, cfg["NHp"]), lambda: (0, 0)),
            pl.BlockSpec((1, cfg["NHp"]), lambda: (0, 0)),
            pl.BlockSpec((1, A), lambda: (0, 0)),
        ],
        out_specs=pl.BlockSpec((B, cfg["NHp"]), lambda: (0, 0)),
    )(hpart, ns, kp["wns"], kp["bns"], kp["whn"], kp["bh"],
      kp["whd"], kp["bhd"], valid)

    # split the fused head block (cheap XLA slices of one small lane-dense array)
    o = 0
    pol = out[:, o:o + A]; o += A
    v = out[:, o:o + 1]; o += 1
    p1x = out[:, o:o + cfg["Rx"]]; o += cfg["Rx"]
    p1y = out[:, o:o + cfg["Ry"]]; o += cfg["Ry"]
    p2x = out[:, o:o + cfg["Rx"]]; o += cfg["Rx"]
    p2y = out[:, o:o + cfg["Ry"]]
    return v, pol, p1x, p1y, p2x, p2y


def make_forward(cfg):
    return jax.jit(functools.partial(_forward_impl, cfg))


# ---------------------------------------------------------------------------
# Pure-JAX reference (mirrors the kernel's bf16-in / f32-accumulate precision)
# ---------------------------------------------------------------------------
def atari_net_reference(p, cfg, obs_m, obs_s, obs_ns, valid_actions):
    bf = jnp.bfloat16

    def conv_relu(x, w, b, stride):
        y = jax.lax.conv_general_dilated(
            x.astype(bf), w.astype(bf), window_strides=(stride, stride),
            padding="VALID", dimension_numbers=("NCHW", "OIHW", "NCHW"),
            preferred_element_type=jnp.float32)
        return jnp.maximum(y + b.reshape(1, -1, 1, 1), 0.0)

    def dense(x, w, b):
        return jnp.dot(x.astype(bf), w.astype(bf),
                       preferred_element_type=jnp.float32) + b

    m = conv_relu(obs_m, p["m_conv1_w"], p["m_conv1_b"], cfg["s1"])
    m = conv_relu(m, p["m_conv2_w"], p["m_conv2_b"], cfg["s2"])
    s = conv_relu(obs_s, p["s_conv1_w"], p["s_conv1_b"], cfg["s1"])
    s = conv_relu(s, p["s_conv2_w"], p["s_conv2_b"], cfg["s2"])
    m = m.reshape(m.shape[0], -1)          # PyTorch NCHW channel-major flatten
    s = s.reshape(s.shape[0], -1)
    n = jnp.tanh(dense(obs_ns, p["ns_w"], p["ns_b"]))
    feat = jnp.concatenate([m, s, n], axis=1)
    state = jnp.maximum(dense(feat, p["hid_w"], p["hid_b"]), 0.0)
    v = dense(state, p["value_w"], p["value_b"])
    pol = dense(state, p["action_w"], p["action_b"]) * valid_actions.reshape(1, -1)
    pol = pol / jnp.sum(pol, axis=1, keepdims=True)
    p1x = dense(state, p["s1x_w"], p["s1x_b"])
    p1y = dense(state, p["s1y_w"], p["s1y_b"])
    p2x = dense(state, p["s2x_w"], p["s2x_b"])
    p2y = dense(state, p["s2y_w"], p["s2y_b"])
    return v, pol, p1x, p1y, p2x, p2y


# ---------------------------------------------------------------------------
if __name__ == "__main__":
    minimap_channels = 7
    screen_channels = 17
    screen_resolution = (32, 32)
    nonspatial_obs_dim = 32
    num_action = 8
    batch = 2

    cfg = make_config(minimap_channels, screen_channels, screen_resolution,
                      nonspatial_obs_dim, num_action)

    key = jax.random.PRNGKey(0)
    kp_key, km, ks, kn = jax.random.split(key, 4)
    params = init_params(kp_key, cfg)
    kparams = prepare_kernel_params(params, cfg)

    obs_minimap = jax.random.normal(
        km, (batch, minimap_channels, *screen_resolution), dtype=jnp.float32)
    obs_screen = jax.random.normal(
        ks, (batch, screen_channels, *screen_resolution), dtype=jnp.float32)
    obs_nonspatial = jax.random.normal(
        kn, (batch, nonspatial_obs_dim), dtype=jnp.float32)
    valid_actions = jnp.array([1, 1, 0, 1, 0, 1, 1, 0], dtype=jnp.float32)

    forward = make_forward(cfg)
    outs = forward(kparams, obs_minimap, obs_screen, obs_nonspatial, valid_actions)
    outs = jax.block_until_ready(outs)
    v, pol, p1x, p1y, p2x, p2y = outs

    # shape checks
    assert v.shape == (batch, 1)
    assert pol.shape == (batch, num_action)
    assert p1x.shape == (batch, screen_resolution[0])
    assert p1y.shape == (batch, screen_resolution[1])
    assert p2x.shape == (batch, screen_resolution[0])
    assert p2y.shape == (batch, screen_resolution[1])

    # numerical check against a pure-JAX reference with matching precision
    v_r, pol_r, p1x_r, p1y_r, p2x_r, p2y_r = atari_net_reference(
        params, cfg, obs_minimap, obs_screen, obs_nonspatial, valid_actions)
    for a, b in [(v, v_r), (p1x, p1x_r), (p1y, p1y_r), (p2x, p2x_r), (p2y, p2y_r)]:
        np.testing.assert_allclose(np.asarray(a), np.asarray(b), rtol=1e-2, atol=1e-2)
    pol_np = np.asarray(pol)
    assert np.all(np.isfinite(pol_np))
    np.testing.assert_allclose(pol_np.sum(axis=1), 1.0, atol=2e-3)

    print("KERNEL_OK")
</pallas_src>

<mosaic_0001>
module attributes {stable_mosaic.version = 11 : i64} {
  func.func @_tower_kernel(%arg0: i32, %arg1: memref<1x2x32x768xbf16, #tpu.memory_space<vmem>>, %arg2: memref<1x8x768x128xbf16, #tpu.memory_space<vmem>>, %arg3: memref<1x1x128xf32, #tpu.memory_space<vmem>>, %arg4: memref<1x4x128x128xbf16, #tpu.memory_space<vmem>>, %arg5: memref<1x1x128xf32, #tpu.memory_space<vmem>>, %arg6: memref<1x2x128x256xbf16, #tpu.memory_space<vmem>>, %arg7: memref<1x2x256xf32, #tpu.memory_space<vmem>>) attributes {dimension_semantics = [#tpu.dimension_semantics<parallel>], iteration_bounds = array<i64: 2>, scalar_prefetch = 0 : i64, scratch_operands = 0 : i64, tpu.core_type = #tpu.core_type<tc>, window_params = [{transform_indices = @transform_0, window_bounds = array<i64: 1, 2, 32, 768>}, {transform_indices = @transform_1, window_bounds = array<i64: 1, 8, 768, 128>}, {transform_indices = @transform_2, window_bounds = array<i64: 1, 1, 128>}, {transform_indices = @transform_3, window_bounds = array<i64: 1, 4, 128, 128>}, {transform_indices = @transform_4, window_bounds = array<i64: 1, 1, 128>}, {transform_indices = @transform_5, window_bounds = array<i64: 1, 2, 128, 256>}, {transform_indices = @transform_6, window_bounds = array<i64: 1, 2, 256>}]} {
    %cst = arith.constant 0.000000e+00 : f32
    %0 = vector.broadcast %cst : f32 to vector<25x128xf32>
    %c0 = arith.constant 0 : index
    %c0_0 = arith.constant 0 : index
    %c0_1 = arith.constant 0 : index
    %c0_2 = arith.constant 0 : index
    %1 = vector.load %arg1[%c0, %c0_0, %c0_1, %c0_2] : memref<1x2x32x768xbf16, #tpu.memory_space<vmem>>, vector<1x1x25x768xbf16>
    %2 = vector.shape_cast %1 : vector<1x1x25x768xbf16> to vector<25x768xbf16>
    %c0_3 = arith.constant 0 : index
    %c0_4 = arith.constant 0 : index
    %c0_5 = arith.constant 0 : index
    %c0_6 = arith.constant 0 : index
    %3 = vector.load %arg2[%c0_3, %c0_4, %c0_5, %c0_6] : memref<1x8x768x128xbf16, #tpu.memory_space<vmem>>, vector<1x1x768x128xbf16>
    %4 = vector.shape_cast %3 : vector<1x1x768x128xbf16> to vector<768x128xbf16>
    %cst_7 = arith.constant dense<0.000000e+00> : vector<25x128xf32>
    %5 = tpu.matmul %2, %4, %cst_7 {dimension_numbers = #tpu.dot_dimension_numbers<[1], [0], [0], [1], [0, 0, 1, 1], [], []>} : vector<25x768xbf16>, vector<768x128xbf16>, vector<25x128xf32> -> vector<25x128xf32>
    %6 = arith.addf %0, %5 : vector<25x128xf32>
    %c0_8 = arith.constant 0 : index
    %c0_9 = arith.constant 0 : index
    %c1 = arith.constant 1 : index
    %c0_10 = arith.constant 0 : index
    %7 = vector.load %arg1[%c0_8, %c0_9, %c1, %c0_10] : memref<1x2x32x768xbf16, #tpu.memory_space<vmem>>, vector<1x1x25x768xbf16>
    %8 = vector.shape_cast %7 : vector<1x1x25x768xbf16> to vector<25x768xbf16>
    %c0_11 = arith.constant 0 : index
    %c1_12 = arith.constant 1 : index
    %c0_13 = arith.constant 0 : index
    %c0_14 = arith.constant 0 : index
    %9 = vector.load %arg2[%c0_11, %c1_12, %c0_13, %c0_14] : memref<1x8x768x128xbf16, #tpu.memory_space<vmem>>, vector<1x1x768x128xbf16>
    %10 = vector.shape_cast %9 : vector<1x1x768x128xbf16> to vector<768x128xbf16>
    %cst_15 = arith.constant dense<0.000000e+00> : vector<25x128xf32>
    %11 = tpu.matmul %8, %10, %cst_15 {dimension_numbers = #tpu.dot_dimension_numbers<[1], [0], [0], [1], [0, 0, 1, 1], [], []>} : vector<25x768xbf16>, vector<768x128xbf16>, vector<25x128xf32> -> vector<25x128xf32>
    %12 = arith.addf %6, %11 : vector<25x128xf32>
    %c0_16 = arith.constant 0 : index
    %c0_17 = arith.constant 0 : index
    %c2 = arith.constant 2 : index
    %c0_18 = arith.constant 0 : index
    %13 = vector.load %arg1[%c0_16, %c0_17, %c2, %c0_18] : memref<1x2x32x768xbf16, #tpu.memory_space<vmem>>, vector<1x1x25x768xbf16>
    %14 = vector.shape_cast %13 : vector<1x1x25x768xbf16> to vector<25x768xbf16>
    %c0_19 = arith.constant 0 : index
    %c2_20 = arith.constant 2 : index
    %c0_21 = arith.constant 0 : index
    %c0_22 = arith.constant 0 : index
    %15 = vector.load %arg2[%c0_19, %c2_20, %c0_21, %c0_22] : memref<1x8x768x128xbf16, #tpu.memory_space<vmem>>, vector<1x1x768x128xbf16>
    %16 = vector.shape_cast %15 : vector<1x1x768x128xbf16> to vector<768x128xbf16>
    %cst_23 = arith.constant dense<0.000000e+00> : vector<25x128xf32>
    %17 = tpu.matmul %14, %16, %cst_23 {dimension_numbers = #tpu.dot_dimension_numbers<[1], [0], [0], [1], [0, 0, 1, 1], [], []>} : vector<25x768xbf16>, vector<768x128xbf16>, vector<25x128xf32> -> vector<25x128xf32>
    %18 = arith.addf %12, %17 : vector<25x128xf32>
    %c0_24 = arith.constant 0 : index
    %c0_25 = arith.constant 0 : index
    %c3 = arith.constant 3 : index
    %c0_26 = arith.constant 0 : index
    %19 = vector.load %arg1[%c0_24, %c0_25, %c3, %c0_26] : memref<1x2x32x768xbf16, #tpu.memory_space<vmem>>, vector<1x1x25x768xbf16>
    %20 = vector.shape_cast %19 : vector<1x1x25x768xbf16> to vector<25x768xbf16>
    %c0_27 = arith.constant 0 : index
    %c3_28 = arith.constant 3 : index
    %c0_29 = arith.constant 0 : index
    %c0_30 = arith.constant 0 : index
    %21 = vector.load %arg2[%c0_27, %c3_28, %c0_29, %c0_30] : memref<1x8x768x128xbf16, #tpu.memory_space<vmem>>, vector<1x1x768x128xbf16>
    %22 = vector.shape_cast %21 : vector<1x1x768x128xbf16> to vector<768x128xbf16>
    %cst_31 = arith.constant dense<0.000000e+00> : vector<25x128xf32>
    %23 = tpu.matmul %20, %22, %cst_31 {dimension_numbers = #tpu.dot_dimension_numbers<[1], [0], [0], [1], [0, 0, 1, 1], [], []>} : vector<25x768xbf16>, vector<768x128xbf16>, vector<25x128xf32> -> vector<25x128xf32>
    %24 = arith.addf %18, %23 : vector<25x128xf32>
    %c0_32 = arith.constant 0 : index
    %c0_33 = arith.constant 0 : index
    %c4 = arith.constant 4 : index
    %c0_34 = arith.constant 0 : index
    %25 = vector.load %arg1[%c0_32, %c0_33, %c4, %c0_34] : memref<1x2x32x768xbf16, #tpu.memory_space<vmem>>, vector<1x1x25x768xbf16>
    %26 = vector.shape_cast %25 : vector<1x1x25x768xbf16> to vector<25x768xbf16>
    %c0_35 = arith.constant 0 : index
    %c4_36 = arith.constant 4 : index
    %c0_37 = arith.constant 0 : index
    %c0_38 = arith.constant 0 : index
    %27 = vector.load %arg2[%c0_35, %c4_36, %c0_37, %c0_38] : memref<1x8x768x128xbf16, #tpu.memory_space<vmem>>, vector<1x1x768x128xbf16>
    %28 = vector.shape_cast %27 : vector<1x1x768x128xbf16> to vector<768x128xbf16>
    %cst_39 = arith.constant dense<0.000000e+00> : vector<25x128xf32>
    %29 = tpu.matmul %26, %28, %cst_39 {dimension_numbers = #tpu.dot_dimension_numbers<[1], [0], [0], [1], [0, 0, 1, 1], [], []>} : vector<25x768xbf16>, vector<768x128xbf16>, vector<25x128xf32> -> vector<25x128xf32>
    %30 = arith.addf %24, %29 : vector<25x128xf32>
    %c0_40 = arith.constant 0 : index
    %c0_41 = arith.constant 0 : index
    %c5 = arith.constant 5 : index
    %c0_42 = arith.constant 0 : index
    %31 = vector.load %arg1[%c0_40, %c0_41, %c5, %c0_42] : memref<1x2x32x768xbf16, #tpu.memory_space<vmem>>, vector<1x1x25x768xbf16>
    %32 = vector.shape_cast %31 : vector<1x1x25x768xbf16> to vector<25x768xbf16>
    %c0_43 = arith.constant 0 : index
    %c5_44 = arith.constant 5 : index
    %c0_45 = arith.constant 0 : index
    %c0_46 = arith.constant 0 : index
    %33 = vector.load %arg2[%c0_43, %c5_44, %c0_45, %c0_46] : memref<1x8x768x128xbf16, #tpu.memory_space<vmem>>, vector<1x1x768x128xbf16>
    %34 = vector.shape_cast %33 : vector<1x1x768x128xbf16> to vector<768x128xbf16>
    %cst_47 = arith.constant dense<0.000000e+00> : vector<25x128xf32>
    %35 = tpu.matmul %32, %34, %cst_47 {dimension_numbers = #tpu.dot_dimension_numbers<[1], [0], [0], [1], [0, 0, 1, 1], [], []>} : vector<25x768xbf16>, vector<768x128xbf16>, vector<25x128xf32> -> vector<25x128xf32>
    %36 = arith.addf %30, %35 : vector<25x128xf32>
    %c0_48 = arith.constant 0 : index
    %c0_49 = arith.constant 0 : index
    %c6 = arith.constant 6 : index
    %c0_50 = arith.constant 0 : index
    %37 = vector.load %arg1[%c0_48, %c0_49, %c6, %c0_50] : memref<1x2x32x768xbf16, #tpu.memory_space<vmem>>, vector<1x1x25x768xbf16>
    %38 = vector.shape_cast %37 : vector<1x1x25x768xbf16> to vector<25x768xbf16>
    %c0_51 = arith.constant 0 : index
    %c6_52 = arith.constant 6 : index
    %c0_53 = arith.constant 0 : index
    %c0_54 = arith.constant 0 : index
    %39 = vector.load %arg2[%c0_51, %c6_52, %c0_53, %c0_54] : memref<1x8x768x128xbf16, #tpu.memory_space<vmem>>, vector<1x1x768x128xbf16>
    %40 = vector.shape_cast %39 : vector<1x1x768x128xbf16> to vector<768x128xbf16>
    %cst_55 = arith.constant dense<0.000000e+00> : vector<25x128xf32>
    %41 = tpu.matmul %38, %40, %cst_55 {dimension_numbers = #tpu.dot_dimension_numbers<[1], [0], [0], [1], [0, 0, 1, 1], [], []>} : vector<25x768xbf16>, vector<768x128xbf16>, vector<25x128xf32> -> vector<25x128xf32>
    %42 = arith.addf %36, %41 : vector<25x128xf32>
    %c0_56 = arith.constant 0 : index
    %c0_57 = arith.constant 0 : index
    %c7 = arith.constant 7 : index
    %c0_58 = arith.constant 0 : index
    %43 = vector.load %arg1[%c0_56, %c0_57, %c7, %c0_58] : memref<1x2x32x768xbf16, #tpu.memory_space<vmem>>, vector<1x1x25x768xbf16>
    %44 = vector.shape_cast %43 : vector<1x1x25x768xbf16> to vector<25x768xbf16>
    %c0_59 = arith.constant 0 : index
    %c7_60 = arith.constant 7 : index
    %c0_61 = arith.constant 0 : index
    %c0_62 = arith.constant 0 : index
    %45 = vector.load %arg2[%c0_59, %c7_60, %c0_61, %c0_62] : memref<1x8x768x128xbf16, #tpu.memory_space<vmem>>, vector<1x1x768x128xbf16>
    %46 = vector.shape_cast %45 : vector<1x1x768x128xbf16> to vector<768x128xbf16>
    %cst_63 = arith.constant dense<0.000000e+00> : vector<25x128xf32>
    %47 = tpu.matmul %44, %46, %cst_63 {dimension_numbers = #tpu.dot_dimension_numbers<[1], [0], [0], [1], [0, 0, 1, 1], [], []>} : vector<25x768xbf16>, vector<768x128xbf16>, vector<25x128xf32> -> vector<25x128xf32>
    %48 = arith.addf %42, %47 : vector<25x128xf32>
    %c0_64 = arith.constant 0 : index
    %c0_65 = arith.constant 0 : index
    %c0_66 = arith.constant 0 : index
    %49 = vector.load %arg3[%c0_64, %c0_65, %c0_66] : memref<1x1x128xf32, #tpu.memory_space<vmem>>, vector<1x1x128xf32>
    %50 = vector.shape_cast %49 : vector<1x1x128xf32> to vector<1x128xf32>
    %51 = vector.broadcast %50 : vector<1x128xf32> to vector<25x128xf32>
    %52 = arith.addf %48, %51 : vector<25x128xf32>
    %cst_67 = arith.constant 0.000000e+00 : f32
    %53 = vector.broadcast %cst_67 : f32 to vector<25x128xf32>
    %54 = arith.maximumf %52, %53 : vector<25x128xf32>
    %55 = arith.truncf %54 : vector<25x128xf32> to vector<25x128xbf16>
    %cst_68 = arith.constant 0.000000e+00 : f32
    %56 = vector.broadcast %cst_68 : f32 to vector<1x256xf32>
    %cst_69 = arith.constant 0.000000e+00 : f32
    %57 = vector.broadcast %cst_69 : f32 to vector<1x128xf32>
    %58 = vector.extract_strided_slice %55 {offsets = [0, 0], sizes = [1, 128], strides = [1, 1]} : vector<25x128xbf16> to vector<1x128xbf16>
    %c0_70 = arith.constant 0 : index
    %c0_71 = arith.constant 0 : index
    %c0_72 = arith.constant 0 : index
    %c0_73 = arith.constant 0 : index
    %59 = vector.load %arg4[%c0_70, %c0_71, %c0_72, %c0_73] : memref<1x4x128x128xbf16, #tpu.memory_space<vmem>>, vector<1x1x128x128xbf16>
    %60 = vector.shape_cast %59 : vector<1x1x128x128xbf16> to vector<128x128xbf16>
    %cst_74 = arith.constant dense<0.000000e+00> : vector<1x128xf32>
    %61 = tpu.matmul %58, %60, %cst_74 {dimension_numbers = #tpu.dot_dimension_numbers<[1], [0], [0], [1], [0, 0, 1, 1], [], []>} : vector<1x128xbf16>, vector<128x128xbf16>, vector<1x128xf32> -> vector<1x128xf32>
    %62 = arith.addf %57, %61 : vector<1x128xf32>
    %63 = vector.extract_strided_slice %55 {offsets = [4, 0], sizes = [1, 128], strides = [1, 1]} : vector<25x128xbf16> to vector<1x128xbf16>
    %c0_75 = arith.constant 0 : index
    %c1_76 = arith.constant 1 : index
    %c0_77 = arith.constant 0 : index
    %c0_78 = arith.constant 0 : index
    %64 = vector.load %arg4[%c0_75, %c1_76, %c0_77, %c0_78] : memref<1x4x128x128xbf16, #tpu.memory_space<vmem>>, vector<1x1x128x128xbf16>
    %65 = vector.shape_cast %64 : vector<1x1x128x128xbf16> to vector<128x128xbf16>
    %cst_79 = arith.constant dense<0.000000e+00> : vector<1x128xf32>
    %66 = tpu.matmul %63, %65, %cst_79 {dimension_numbers = #tpu.dot_dimension_numbers<[1], [0], [0], [1], [0, 0, 1, 1], [], []>} : vector<1x128xbf16>, vector<128x128xbf16>, vector<1x128xf32> -> vector<1x128xf32>
    %67 = arith.addf %62, %66 : vector<1x128xf32>
    %68 = vector.extract_strided_slice %55 {offsets = [8, 0], sizes = [1, 128], strides = [1, 1]} : vector<25x128xbf16> to vector<1x128xbf16>
    %c0_80 = arith.constant 0 : index
    %c2_81 = arith.constant 2 : index
    %c0_82 = arith.constant 0 : index
    %c0_83 = arith.constant 0 : index
    %69 = vector.load %arg4[%c0_80, %c2_81, %c0_82, %c0_83] : memref<1x4x128x128xbf16, #tpu.memory_space<vmem>>, vector<1x1x128x128xbf16>
    %70 = vector.shape_cast %69 : vector<1x1x128x128xbf16> to vector<128x128xbf16>
    %cst_84 = arith.constant dense<0.000000e+00> : vector<1x128xf32>
    %71 = tpu.matmul %68, %70, %cst_84 {dimension_numbers = #tpu.dot_dimension_numbers<[1], [0], [0], [1], [0, 0, 1, 1], [], []>} : vector<1x128xbf16>, vector<128x128xbf16>, vector<1x128xf32> -> vector<1x128xf32>
    %72 = arith.addf %67, %71 : vector<1x128xf32>
    %73 = vector.extract_strided_slice %55 {offsets = [12, 0], sizes = [1, 128], strides = [1, 1]} : vector<25x128xbf16> to vector<1x128xbf16>
    %c0_85 = arith.constant 0 : index
    %c3_86 = arith.constant 3 : index
    %c0_87 = arith.constant 0 : index
    %c0_88 = arith.constant 0 : index
    %74 = vector.load %arg4[%c0_85, %c3_86, %c0_87, %c0_88] : memref<1x4x128x128xbf16, #tpu.memory_space<vmem>>, vector<1x1x128x128xbf16>
    %75 = vector.shape_cast %74 : vector<1x1x128x128xbf16> to vector<128x128xbf16>
    %cst_89 = arith.constant dense<0.000000e+00> : vector<1x128xf32>
    %76 = tpu.matmul %73, %75, %cst_89 {dimension_numbers = #tpu.dot_dimension_numbers<[1], [0], [0], [1], [0, 0, 1, 1], [], []>} : vector<1x128xbf16>, vector<128x128xbf16>, vector<1x128xf32> -> vector<1x128xf32>
    %77 = arith.addf %72, %76 : vector<1x128xf32>
    %c0_90 = arith.constant 0 : index
    %c0_91 = arith.constant 0 : index
    %c0_92 = arith.constant 0 : index
    %78 = vector.load %arg5[%c0_90, %c0_91, %c0_92] : memref<1x1x128xf32, #tpu.memory_space<vmem>>, vector<1x1x128xf32>
    %79 = vector.shape_cast %78 : vector<1x1x128xf32> to vector<1x128xf32>
    %80 = arith.addf %77, %79 : vector<1x128xf32>
    %cst_93 = arith.constant 0.000000e+00 : f32
    %81 = vector.broadcast %cst_93 : f32 to vector<1x128xf32>
    %82 = arith.maximumf %80, %81 : vector<1x128xf32>
    %83 = arith.truncf %82 : vector<1x128xf32> to vector<1x128xbf16>
    %c0_94 = arith.constant 0 : index
    %c0_95 = arith.constant 0 : index
    %c0_96 = arith.constant 0 : index
    %c0_97 = arith.constant 0 : index
    %84 = vector.load %arg6[%c0_94, %c0_95, %c0_96, %c0_97] : memref<1x2x128x256xbf16, #tpu.memory_space<vmem>>, vector<1x1x128x256xbf16>
    %85 = vector.shape_cast %84 : vector<1x1x128x256xbf16> to vector<128x256xbf16>
    %cst_98 = arith.constant dense<0.000000e+00> : vector<1x256xf32>
    %86 = tpu.matmul %83, %85, %cst_98 {dimension_numbers = #tpu.dot_dimension_numbers<[1], [0], [0], [1], [0, 0, 1, 1], [], []>} : vector<1x128xbf16>, vector<128x256xbf16>, vector<1x256xf32> -> vector<1x256xf32>
    %87 = arith.addf %56, %86 : vector<1x256xf32>
    %cst_99 = arith.constant 0.000000e+00 : f32
    %88 = vector.broadcast %cst_99 : f32 to vector<1x128xf32>
    %89 = vector.extract_strided_slice %55 {offsets = [8, 0], sizes = [1, 128], strides = [1, 1]} : vector<25x128xbf16> to vector<1x128xbf16>
    %c0_100 = arith.constant 0 : index
    %c0_101 = arith.constant 0 : index
    %c0_102 = arith.constant 0 : index
    %c0_103 = arith.constant 0 : index
    %90 = vector.load %arg4[%c0_100, %c0_101, %c0_102, %c0_103] : memref<1x4x128x128xbf16, #tpu.memory_space<vmem>>, vector<1x1x128x128xbf16>
    %91 = vector.shape_cast %90 : vector<1x1x128x128xbf16> to vector<128x128xbf16>
    %cst_104 = arith.constant dense<0.000000e+00> : vector<1x128xf32>
    %92 = tpu.matmul %89, %91, %cst_104 {dimension_numbers = #tpu.dot_dimension_numbers<[1], [0], [0], [1], [0, 0, 1, 1], [], []>} : vector<1x128xbf16>, vector<128x128xbf16>, vector<1x128xf32> -> vector<1x128xf32>
    %93 = arith.addf %88, %92 : vector<1x128xf32>
    %94 = vector.extract_strided_slice %55 {offsets = [12, 0], sizes = [1, 128], strides = [1, 1]} : vector<25x128xbf16> to vector<1x128xbf16>
    %c0_105 = arith.constant 0 : index
    %c1_106 = arith.constant 1 : index
    %c0_107 = arith.constant 0 : index
    %c0_108 = arith.constant 0 : index
    %95 = vector.load %arg4[%c0_105, %c1_106, %c0_107, %c0_108] : memref<1x4x128x128xbf16, #tpu.memory_space<vmem>>, vector<1x1x128x128xbf16>
    %96 = vector.shape_cast %95 : vector<1x1x128x128xbf16> to vector<128x128xbf16>
    %cst_109 = arith.constant dense<0.000000e+00> : vector<1x128xf32>
    %97 = tpu.matmul %94, %96, %cst_109 {dimension_numbers = #tpu.dot_dimension_numbers<[1], [0], [0], [1], [0, 0, 1, 1], [], []>} : vector<1x128xbf16>, vector<128x128xbf16>, vector<1x128xf32> -> vector<1x128xf32>
    %98 = arith.addf %93, %97 : vector<1x128xf32>
    %99 = vector.extract_strided_slice %55 {offsets = [16, 0], sizes = [1, 128], strides = [1, 1]} : vector<25x128xbf16> to vector<1x128xbf16>
    %c0_110 = arith.constant 0 : index
    %c2_111 = arith.constant 2 : index
    %c0_112 = arith.constant 0 : index
    %c0_113 = arith.constant 0 : index
    %100 = vector.load %arg4[%c0_110, %c2_111, %c0_112, %c0_113] : memref<1x4x128x128xbf16, #tpu.memory_space<vmem>>, vector<1x1x128x128xbf16>
    %101 = vector.shape_cast %100 : vector<1x1x128x128xbf16> to vector<128x128xbf16>
    %cst_114 = arith.constant dense<0.000000e+00> : vector<1x128xf32>
    %102 = tpu.matmul %99, %101, %cst_114 {dimension_numbers = #tpu.dot_dimension_numbers<[1], [0], [0], [1], [0, 0, 1, 1], [], []>} : vector<1x128xbf16>, vector<128x128xbf16>, vector<1x128xf32> -> vector<1x128xf32>
    %103 = arith.addf %98, %102 : vector<1x128xf32>
    %104 = vector.extract_strided_slice %55 {offsets = [20, 0], sizes = [1, 128], strides = [1, 1]} : vector<25x128xbf16> to vector<1x128xbf16>
    %c0_115 = arith.constant 0 : index
    %c3_116 = arith.constant 3 : index
    %c0_117 = arith.constant 0 : index
    %c0_118 = arith.constant 0 : index
    %105 = vector.load %arg4[%c0_115, %c3_116, %c0_117, %c0_118] : memref<1x4x128x128xbf16, #tpu.memory_space<vmem>>, vector<1x1x128x128xbf16>
    %106 = vector.shape_cast %105 : vector<1x1x128x128xbf16> to vector<128x128xbf16>
    %cst_119 = arith.constant dense<0.000000e+00> : vector<1x128xf32>
    %107 = tpu.matmul %104, %106, %cst_119 {dimension_numbers = #tpu.dot_dimension_numbers<[1], [0], [0], [1], [0, 0, 1, 1], [], []>} : vector<1x128xbf16>, vector<128x128xbf16>, vector<1x128xf32> -> vector<1x128xf32>
    %108 = arith.addf %103, %107 : vector<1x128xf32>
    %c0_120 = arith.constant 0 : index
    %c0_121 = arith.constant 0 : index
    %c0_122 = arith.constant 0 : index
    %109 = vector.load %arg5[%c0_120, %c0_121, %c0_122] : memref<1x1x128xf32, #tpu.memory_space<vmem>>, vector<1x1x128xf32>
    %110 = vector.shape_cast %109 : vector<1x1x128xf32> to vector<1x128xf32>
    %111 = arith.addf %108, %110 : vector<1x128xf32>
    %cst_123 = arith.constant 0.000000e+00 : f32
    %112 = vector.broadcast %cst_123 : f32 to vector<1x128xf32>
    %113 = arith.maximumf %111, %112 : vector<1x128xf32>
    %114 = arith.truncf %113 : vector<1x128xf32> to vector<1x128xbf16>
    %c0_124 = arith.constant 0 : index
    %c1_125 = arith.constant 1 : index
    %c0_126 = arith.constant 0 : index
    %c0_127 = arith.constant 0 : index
    %115 = vector.load %arg6[%c0_124, %c1_125, %c0_126, %c0_127] : memref<1x2x128x256xbf16, #tpu.memory_space<vmem>>, vector<1x1x128x256xbf16>
    %116 = vector.shape_cast %115 : vector<1x1x128x256xbf16> to vector<128x256xbf16>
    %cst_128 = arith.constant dense<0.000000e+00> : vector<1x256xf32>
    %117 = tpu.matmul %114, %116, %cst_128 {dimension_numbers = #tpu.dot_dimension_numbers<[1], [0], [0], [1], [0, 0, 1, 1], [], []>} : vector<1x128xbf16>, vector<128x256xbf16>, vector<1x256xf32> -> vector<1x256xf32>
    %118 = arith.addf %87, %117 : vector<1x256xf32>
    %c0_129 = arith.constant 0 : index
    %c0_130 = arith.constant 0 : index
    %c0_131 = arith.constant 0 : index
    %119 = vector.load %arg7[%c0_129, %c0_130, %c0_131] : memref<1x2x256xf32, #tpu.memory_space<vmem>>, vector<1x1x256xf32>
    %120 = vector.shape_cast %119 : vector<1x1x256xf32> to vector<1x256xf32>
    %121 = vector.shape_cast %118 : vector<1x256xf32> to vector<1x1x256xf32>
    tpu.vector_store %arg7[%c0_129, %c0_130, %c0_131], %121 {strides = array<i32>} : memref<1x2x256xf32, #tpu.memory_space<vmem>>, vector<1x1x256xf32>,
    %cst_132 = arith.constant 0.000000e+00 : f32
    %122 = vector.broadcast %cst_132 : f32 to vector<25x128xf32>
    %c0_133 = arith.constant 0 : index
    %c1_134 = arith.constant 1 : index
    %c0_135 = arith.constant 0 : index
    %c0_136 = arith.constant 0 : index
    %123 = vector.load %arg1[%c0_133, %c1_134, %c0_135, %c0_136] : memref<1x2x32x768xbf16, #tpu.memory_space<vmem>>, vector<1x1x25x768xbf16>
    %124 = vector.shape_cast %123 : vector<1x1x25x768xbf16> to vector<25x768xbf16>
    %c0_137 = arith.constant 0 : index
    %c0_138 = arith.constant 0 : index
    %c0_139 = arith.constant 0 : index
    %c0_140 = arith.constant 0 : index
    %125 = vector.load %arg2[%c0_137, %c0_138, %c0_139, %c0_140] : memref<1x8x768x128xbf16, #tpu.memory_space<vmem>>, vector<1x1x768x128xbf16>
    %126 = vector.shape_cast %125 : vector<1x1x768x128xbf16> to vector<768x128xbf16>
    %cst_141 = arith.constant dense<0.000000e+00> : vector<25x128xf32>
    %127 = tpu.matmul %124, %126, %cst_141 {dimension_numbers = #tpu.dot_dimension_numbers<[1], [0], [0], [1], [0, 0, 1, 1], [], []>} : vector<25x768xbf16>, vector<768x128xbf16>, vector<25x128xf32> -> vector<25x128xf32>
    %128 = arith.addf %122, %127 : vector<25x128xf32>
    %c0_142 = arith.constant 0 : index
    %c1_143 = arith.constant 1 : index
    %c1_144 = arith.constant 1 : index
    %c0_145 = arith.constant 0 : index
    %129 = vector.load %arg1[%c0_142, %c1_143, %c1_144, %c0_145] : memref<1x2x32x768xbf16, #tpu.memory_space<vmem>>, vector<1x1x25x768xbf16>
    %130 = vector.shape_cast %129 : vector<1x1x25x768xbf16> to vector<25x768xbf16>
    %c0_146 = arith.constant 0 : index
    %c1_147 = arith.constant 1 : index
    %c0_148 = arith.constant 0 : index
    %c0_149 = arith.constant 0 : index
    %131 = vector.load %arg2[%c0_146, %c1_147, %c0_148, %c0_149] : memref<1x8x768x128xbf16, #tpu.memory_space<vmem>>, vector<1x1x768x128xbf16>
    %132 = vector.shape_cast %131 : vector<1x1x768x128xbf16> to vector<768x128xbf16>
    %cst_150 = arith.constant dense<0.000000e+00> : vector<25x128xf32>
    %133 = tpu.matmul %130, %132, %cst_150 {dimension_numbers = #tpu.dot_dimension_numbers<[1], [0], [0], [1], [0, 0, 1, 1], [], []>} : vector<25x768xbf16>, vector<768x128xbf16>, vector<25x128xf32> -> vector<25x128xf32>
    %134 = arith.addf %128, %133 : vector<25x128xf32>
    %c0_151 = arith.constant 0 : index
    %c1_152 = arith.constant 1 : index
    %c2_153 = arith.constant 2 : index
    %c0_154 = arith.constant 0 : index
    %135 = vector.load %arg1[%c0_151, %c1_152, %c2_153, %c0_154] : memref<1x2x32x768xbf16, #tpu.memory_space<vmem>>, vector<1x1x25x768xbf16>
    %136 = vector.shape_cast %135 : vector<1x1x25x768xbf16> to vector<25x768xbf16>
    %c0_155 = arith.constant 0 : index
    %c2_156 = arith.constant 2 : index
    %c0_157 = arith.constant 0 : index
    %c0_158 = arith.constant 0 : index
    %137 = vector.load %arg2[%c0_155, %c2_156, %c0_157, %c0_158] : memref<1x8x768x128xbf16, #tpu.memory_space<vmem>>, vector<1x1x768x128xbf16>
    %138 = vector.shape_cast %137 : vector<1x1x768x128xbf16> to vector<768x128xbf16>
    %cst_159 = arith.constant dense<0.000000e+00> : vector<25x128xf32>
    %139 = tpu.matmul %136, %138, %cst_159 {dimension_numbers = #tpu.dot_dimension_numbers<[1], [0], [0], [1], [0, 0, 1, 1], [], []>} : vector<25x768xbf16>, vector<768x128xbf16>, vector<25x128xf32> -> vector<25x128xf32>
    %140 = arith.addf %134, %139 : vector<25x128xf32>
    %c0_160 = arith.constant 0 : index
    %c1_161 = arith.constant 1 : index
    %c3_162 = arith.constant 3 : index
    %c0_163 = arith.constant 0 : index
    %141 = vector.load %arg1[%c0_160, %c1_161, %c3_162, %c0_163] : memref<1x2x32x768xbf16, #tpu.memory_space<vmem>>, vector<1x1x25x768xbf16>
    %142 = vector.shape_cast %141 : vector<1x1x25x768xbf16> to vector<25x768xbf16>
    %c0_164 = arith.constant 0 : index
    %c3_165 = arith.constant 3 : index
    %c0_166 = arith.constant 0 : index
    %c0_167 = arith.constant 0 : index
    %143 = vector.load %arg2[%c0_164, %c3_165, %c0_166, %c0_167] : memref<1x8x768x128xbf16, #tpu.memory_space<vmem>>, vector<1x1x768x128xbf16>
    %144 = vector.shape_cast %143 : vector<1x1x768x128xbf16> to vector<768x128xbf16>
    %cst_168 = arith.constant dense<0.000000e+00> : vector<25x128xf32>
    %145 = tpu.matmul %142, %144, %cst_168 {dimension_numbers = #tpu.dot_dimension_numbers<[1], [0], [0], [1], [0, 0, 1, 1], [], []>} : vector<25x768xbf16>, vector<768x128xbf16>, vector<25x128xf32> -> vector<25x128xf32>
    %146 = arith.addf %140, %145 : vector<25x128xf32>
    %c0_169 = arith.constant 0 : index
    %c1_170 = arith.constant 1 : index
    %c4_171 = arith.constant 4 : index
    %c0_172 = arith.constant 0 : index
    %147 = vector.load %arg1[%c0_169, %c1_170, %c4_171, %c0_172] : memref<1x2x32x768xbf16, #tpu.memory_space<vmem>>, vector<1x1x25x768xbf16>
    %148 = vector.shape_cast %147 : vector<1x1x25x768xbf16> to vector<25x768xbf16>
    %c0_173 = arith.constant 0 : index
    %c4_174 = arith.constant 4 : index
    %c0_175 = arith.constant 0 : index
    %c0_176 = arith.constant 0 : index
    %149 = vector.load %arg2[%c0_173, %c4_174, %c0_175, %c0_176] : memref<1x8x768x128xbf16, #tpu.memory_space<vmem>>, vector<1x1x768x128xbf16>
    %150 = vector.shape_cast %149 : vector<1x1x768x128xbf16> to vector<768x128xbf16>
    %cst_177 = arith.constant dense<0.000000e+00> : vector<25x128xf32>
    %151 = tpu.matmul %148, %150, %cst_177 {dimension_numbers = #tpu.dot_dimension_numbers<[1], [0], [0], [1], [0, 0, 1, 1], [], []>} : vector<25x768xbf16>, vector<768x128xbf16>, vector<25x128xf32> -> vector<25x128xf32>
    %152 = arith.addf %146, %151 : vector<25x128xf32>
    %c0_178 = arith.constant 0 : index
    %c1_179 = arith.constant 1 : index
    %c5_180 = arith.constant 5 : index
    %c0_181 = arith.constant 0 : index
    %153 = vector.load %arg1[%c0_178, %c1_179, %c5_180, %c0_181] : memref<1x2x32x768xbf16, #tpu.memory_space<vmem>>, vector<1x1x25x768xbf16>
    %154 = vector.shape_cast %153 : vector<1x1x25x768xbf16> to vector<25x768xbf16>
    %c0_182 = arith.constant 0 : index
    %c5_183 = arith.constant 5 : index
    %c0_184 = arith.constant 0 : index
    %c0_185 = arith.constant 0 : index
    %155 = vector.load %arg2[%c0_182, %c5_183, %c0_184, %c0_185] : memref<1x8x768x128xbf16, #tpu.memory_space<vmem>>, vector<1x1x768x128xbf16>
    %156 = vector.shape_cast %155 : vector<1x1x768x128xbf16> to vector<768x128xbf16>
    %cst_186 = arith.constant dense<0.000000e+00> : vector<25x128xf32>
    %157 = tpu.matmul %154, %156, %cst_186 {dimension_numbers = #tpu.dot_dimension_numbers<[1], [0], [0], [1], [0, 0, 1, 1], [], []>} : vector<25x768xbf16>, vector<768x128xbf16>, vector<25x128xf32> -> vector<25x128xf32>
    %158 = arith.addf %152, %157 : vector<25x128xf32>
    %c0_187 = arith.constant 0 : index
    %c1_188 = arith.constant 1 : index
    %c6_189 = arith.constant 6 : index
    %c0_190 = arith.constant 0 : index
    %159 = vector.load %arg1[%c0_187, %c1_188, %c6_189, %c0_190] : memref<1x2x32x768xbf16, #tpu.memory_space<vmem>>, vector<1x1x25x768xbf16>
    %160 = vector.shape_cast %159 : vector<1x1x25x768xbf16> to vector<25x768xbf16>
    %c0_191 = arith.constant 0 : index
    %c6_192 = arith.constant 6 : index
    %c0_193 = arith.constant 0 : index
    %c0_194 = arith.constant 0 : index
    %161 = vector.load %arg2[%c0_191, %c6_192, %c0_193, %c0_194] : memref<1x8x768x128xbf16, #tpu.memory_space<vmem>>, vector<1x1x768x128xbf16>
    %162 = vector.shape_cast %161 : vector<1x1x768x128xbf16> to vector<768x128xbf16>
    %cst_195 = arith.constant dense<0.000000e+00> : vector<25x128xf32>
    %163 = tpu.matmul %160, %162, %cst_195 {dimension_numbers = #tpu.dot_dimension_numbers<[1], [0], [0], [1], [0, 0, 1, 1], [], []>} : vector<25x768xbf16>, vector<768x128xbf16>, vector<25x128xf32> -> vector<25x128xf32>
    %164 = arith.addf %158, %163 : vector<25x128xf32>
    %c0_196 = arith.constant 0 : index
    %c1_197 = arith.constant 1 : index
    %c7_198 = arith.constant 7 : index
    %c0_199 = arith.constant 0 : index
    %165 = vector.load %arg1[%c0_196, %c1_197, %c7_198, %c0_199] : memref<1x2x32x768xbf16, #tpu.memory_space<vmem>>, vector<1x1x25x768xbf16>
    %166 = vector.shape_cast %165 : vector<1x1x25x768xbf16> to vector<25x768xbf16>
    %c0_200 = arith.constant 0 : index
    %c7_201 = arith.constant 7 : index
    %c0_202 = arith.constant 0 : index
    %c0_203 = arith.constant 0 : index
    %167 = vector.load %arg2[%c0_200, %c7_201, %c0_202, %c0_203] : memref<1x8x768x128xbf16, #tpu.memory_space<vmem>>, vector<1x1x768x128xbf16>
    %168 = vector.shape_cast %167 : vector<1x1x768x128xbf16> to vector<768x128xbf16>
    %cst_204 = arith.constant dense<0.000000e+00> : vector<25x128xf32>
    %169 = tpu.matmul %166, %168, %cst_204 {dimension_numbers = #tpu.dot_dimension_numbers<[1], [0], [0], [1], [0, 0, 1, 1], [], []>} : vector<25x768xbf16>, vector<768x128xbf16>, vector<25x128xf32> -> vector<25x128xf32>
    %170 = arith.addf %164, %169 : vector<25x128xf32>
    %c0_205 = arith.constant 0 : index
    %c0_206 = arith.constant 0 : index
    %c0_207 = arith.constant 0 : index
    %171 = vector.load %arg3[%c0_205, %c0_206, %c0_207] : memref<1x1x128xf32, #tpu.memory_space<vmem>>, vector<1x1x128xf32>
    %172 = vector.shape_cast %171 : vector<1x1x128xf32> to vector<1x128xf32>
    %173 = vector.broadcast %172 : vector<1x128xf32> to vector<25x128xf32>
    %174 = arith.addf %170, %173 : vector<25x128xf32>
    %cst_208 = arith.constant 0.000000e+00 : f32
    %175 = vector.broadcast %cst_208 : f32 to vector<25x128xf32>
    %176 = arith.maximumf %174, %175 : vector<25x128xf32>
    %177 = arith.truncf %176 : vector<25x128xf32> to vector<25x128xbf16>
    %cst_209 = arith.constant 0.000000e+00 : f32
    %178 = vector.broadcast %cst_209 : f32 to vector<1x256xf32>
    %cst_210 = arith.constant 0.000000e+00 : f32
    %179 = vector.broadcast %cst_210 : f32 to vector<1x128xf32>
    %180 = vector.extract_strided_slice %177 {offsets = [0, 0], sizes = [1, 128], strides = [1, 1]} : vector<25x128xbf16> to vector<1x128xbf16>
    %c0_211 = arith.constant 0 : index
    %c0_212 = arith.constant 0 : index
    %c0_213 = arith.constant 0 : index
    %c0_214 = arith.constant 0 : index
    %181 = vector.load %arg4[%c0_211, %c0_212, %c0_213, %c0_214] : memref<1x4x128x128xbf16, #tpu.memory_space<vmem>>, vector<1x1x128x128xbf16>
    %182 = vector.shape_cast %181 : vector<1x1x128x128xbf16> to vector<128x128xbf16>
    %cst_215 = arith.constant dense<0.000000e+00> : vector<1x128xf32>
    %183 = tpu.matmul %180, %182, %cst_215 {dimension_numbers = #tpu.dot_dimension_numbers<[1], [0], [0], [1], [0, 0, 1, 1], [], []>} : vector<1x128xbf16>, vector<128x128xbf16>, vector<1x128xf32> -> vector<1x128xf32>
    %184 = arith.addf %179, %183 : vector<1x128xf32>
    %185 = vector.extract_strided_slice %177 {offsets = [4, 0], sizes = [1, 128], strides = [1, 1]} : vector<25x128xbf16> to vector<1x128xbf16>
    %c0_216 = arith.constant 0 : index
    %c1_217 = arith.constant 1 : index
    %c0_218 = arith.constant 0 : index
    %c0_219 = arith.constant 0 : index
    %186 = vector.load %arg4[%c0_216, %c1_217, %c0_218, %c0_219] : memref<1x4x128x128xbf16, #tpu.memory_space<vmem>>, vector<1x1x128x128xbf16>
    %187 = vector.shape_cast %186 : vector<1x1x128x128xbf16> to vector<128x128xbf16>
    %cst_220 = arith.constant dense<0.000000e+00> : vector<1x128xf32>
    %188 = tpu.matmul %185, %187, %cst_220 {dimension_numbers = #tpu.dot_dimension_numbers<[1], [0], [0], [1], [0, 0, 1, 1], [], []>} : vector<1x128xbf16>, vector<128x128xbf16>, vector<1x128xf32> -> vector<1x128xf32>
    %189 = arith.addf %184, %188 : vector<1x128xf32>
    %190 = vector.extract_strided_slice %177 {offsets = [8, 0], sizes = [1, 128], strides = [1, 1]} : vector<25x128xbf16> to vector<1x128xbf16>
    %c0_221 = arith.constant 0 : index
    %c2_222 = arith.constant 2 : index
    %c0_223 = arith.constant 0 : index
    %c0_224 = arith.constant 0 : index
    %191 = vector.load %arg4[%c0_221, %c2_222, %c0_223, %c0_224] : memref<1x4x128x128xbf16, #tpu.memory_space<vmem>>, vector<1x1x128x128xbf16>
    %192 = vector.shape_cast %191 : vector<1x1x128x128xbf16> to vector<128x128xbf16>
    %cst_225 = arith.constant dense<0.000000e+00> : vector<1x128xf32>
    %193 = tpu.matmul %190, %192, %cst_225 {dimension_numbers = #tpu.dot_dimension_numbers<[1], [0], [0], [1], [0, 0, 1, 1], [], []>} : vector<1x128xbf16>, vector<128x128xbf16>, vector<1x128xf32> -> vector<1x128xf32>
    %194 = arith.addf %189, %193 : vector<1x128xf32>
    %195 = vector.extract_strided_slice %177 {offsets = [12, 0], sizes = [1, 128], strides = [1, 1]} : vector<25x128xbf16> to vector<1x128xbf16>
    %c0_226 = arith.constant 0 : index
    %c3_227 = arith.constant 3 : index
    %c0_228 = arith.constant 0 : index
    %c0_229 = arith.constant 0 : index
    %196 = vector.load %arg4[%c0_226, %c3_227, %c0_228, %c0_229] : memref<1x4x128x128xbf16, #tpu.memory_space<vmem>>, vector<1x1x128x128xbf16>
    %197 = vector.shape_cast %196 : vector<1x1x128x128xbf16> to vector<128x128xbf16>
    %cst_230 = arith.constant dense<0.000000e+00> : vector<1x128xf32>
    %198 = tpu.matmul %195, %197, %cst_230 {dimension_numbers = #tpu.dot_dimension_numbers<[1], [0], [0], [1], [0, 0, 1, 1], [], []>} : vector<1x128xbf16>, vector<128x128xbf16>, vector<1x128xf32> -> vector<1x128xf32>
    %199 = arith.addf %194, %198 : vector<1x128xf32>
    %c0_231 = arith.constant 0 : index
    %c0_232 = arith.constant 0 : index
    %c0_233 = arith.constant 0 : index
    %200 = vector.load %arg5[%c0_231, %c0_232, %c0_233] : memref<1x1x128xf32, #tpu.memory_space<vmem>>, vector<1x1x128xf32>
    %201 = vector.shape_cast %200 : vector<1x1x128xf32> to vector<1x128xf32>
    %202 = arith.addf %199, %201 : vector<1x128xf32>
    %cst_234 = arith.constant 0.000000e+00 : f32
    %203 = vector.broadcast %cst_234 : f32 to vector<1x128xf32>
    %204 = arith.maximumf %202, %203 : vector<1x128xf32>
    %205 = arith.truncf %204 : vector<1x128xf32> to vector<1x128xbf16>
    %c0_235 = arith.constant 0 : index
    %c0_236 = arith.constant 0 : index
    %c0_237 = arith.constant 0 : index
    %c0_238 = arith.constant 0 : index
    %206 = vector.load %arg6[%c0_235, %c0_236, %c0_237, %c0_238] : memref<1x2x128x256xbf16, #tpu.memory_space<vmem>>, vector<1x1x128x256xbf16>
    %207 = vector.shape_cast %206 : vector<1x1x128x256xbf16> to vector<128x256xbf16>
    %cst_239 = arith.constant dense<0.000000e+00> : vector<1x256xf32>
    %208 = tpu.matmul %205, %207, %cst_239 {dimension_numbers = #tpu.dot_dimension_numbers<[1], [0], [0], [1], [0, 0, 1, 1], [], []>} : vector<1x128xbf16>, vector<128x256xbf16>, vector<1x256xf32> -> vector<1x256xf32>
    %209 = arith.addf %178, %208 : vector<1x256xf32>
    %cst_240 = arith.constant 0.000000e+00 : f32
    %210 = vector.broadcast %cst_240 : f32 to vector<1x128xf32>
    %211 = vector.extract_strided_slice %177 {offsets = [8, 0], sizes = [1, 128], strides = [1, 1]} : vector<25x128xbf16> to vector<1x128xbf16>
    %c0_241 = arith.constant 0 : index
    %c0_242 = arith.constant 0 : index
    %c0_243 = arith.constant 0 : index
    %c0_244 = arith.constant 0 : index
    %212 = vector.load %arg4[%c0_241, %c0_242, %c0_243, %c0_244] : memref<1x4x128x128xbf16, #tpu.memory_space<vmem>>, vector<1x1x128x128xbf16>
    %213 = vector.shape_cast %212 : vector<1x1x128x128xbf16> to vector<128x128xbf16>
    %cst_245 = arith.constant dense<0.000000e+00> : vector<1x128xf32>
    %214 = tpu.matmul %211, %213, %cst_245 {dimension_numbers = #tpu.dot_dimension_numbers<[1], [0], [0], [1], [0, 0, 1, 1], [], []>} : vector<1x128xbf16>, vector<128x128xbf16>, vector<1x128xf32> -> vector<1x128xf32>
    %215 = arith.addf %210, %214 : vector<1x128xf32>
    %216 = vector.extract_strided_slice %177 {offsets = [12, 0], sizes = [1, 128], strides = [1, 1]} : vector<25x128xbf16> to vector<1x128xbf16>
    %c0_246 = arith.constant 0 : index
    %c1_247 = arith.constant 1 : index
    %c0_248 = arith.constant 0 : index
    %c0_249 = arith.constant 0 : index
    %217 = vector.load %arg4[%c0_246, %c1_247, %c0_248, %c0_249] : memref<1x4x128x128xbf16, #tpu.memory_space<vmem>>, vector<1x1x128x128xbf16>
    %218 = vector.shape_cast %217 : vector<1x1x128x128xbf16> to vector<128x128xbf16>
    %cst_250 = arith.constant dense<0.000000e+00> : vector<1x128xf32>
    %219 = tpu.matmul %216, %218, %cst_250 {dimension_numbers = #tpu.dot_dimension_numbers<[1], [0], [0], [1], [0, 0, 1, 1], [], []>} : vector<1x128xbf16>, vector<128x128xbf16>, vector<1x128xf32> -> vector<1x128xf32>
    %220 = arith.addf %215, %219 : vector<1x128xf32>
    %221 = vector.extract_strided_slice %177 {offsets = [16, 0], sizes = [1, 128], strides = [1, 1]} : vector<25x128xbf16> to vector<1x128xbf16>
    %c0_251 = arith.constant 0 : index
    %c2_252 = arith.constant 2 : index
    %c0_253 = arith.constant 0 : index
    %c0_254 = arith.constant 0 : index
    %222 = vector.load %arg4[%c0_251, %c2_252, %c0_253, %c0_254] : memref<1x4x128x128xbf16, #tpu.memory_space<vmem>>, vector<1x1x128x128xbf16>
    %223 = vector.shape_cast %222 : vector<1x1x128x128xbf16> to vector<128x128xbf16>
    %cst_255 = arith.constant dense<0.000000e+00> : vector<1x128xf32>
    %224 = tpu.matmul %221, %223, %cst_255 {dimension_numbers = #tpu.dot_dimension_numbers<[1], [0], [0], [1], [0, 0, 1, 1], [], []>} : vector<1x128xbf16>, vector<128x128xbf16>, vector<1x128xf32> -> vector<1x128xf32>
    %225 = arith.addf %220, %224 : vector<1x128xf32>
    %226 = vector.extract_strided_slice %177 {offsets = [20, 0], sizes = [1, 128], strides = [1, 1]} : vector<25x128xbf16> to vector<1x128xbf16>
    %c0_256 = arith.constant 0 : index
    %c3_257 = arith.constant 3 : index
    %c0_258 = arith.constant 0 : index
    %c0_259 = arith.constant 0 : index
    %227 = vector.load %arg4[%c0_256, %c3_257, %c0_258, %c0_259] : memref<1x4x128x128xbf16, #tpu.memory_space<vmem>>, vector<1x1x128x128xbf16>
    %228 = vector.shape_cast %227 : vector<1x1x128x128xbf16> to vector<128x128xbf16>
    %cst_260 = arith.constant dense<0.000000e+00> : vector<1x128xf32>
    %229 = tpu.matmul %226, %228, %cst_260 {dimension_numbers = #tpu.dot_dimension_numbers<[1], [0], [0], [1], [0, 0, 1, 1], [], []>} : vector<1x128xbf16>, vector<128x128xbf16>, vector<1x128xf32> -> vector<1x128xf32>
    %230 = arith.addf %225, %229 : vector<1x128xf32>
    %c0_261 = arith.constant 0 : index
    %c0_262 = arith.constant 0 : index
    %c0_263 = arith.constant 0 : index
    %231 = vector.load %arg5[%c0_261, %c0_262, %c0_263] : memref<1x1x128xf32, #tpu.memory_space<vmem>>, vector<1x1x128xf32>
    %232 = vector.shape_cast %231 : vector<1x1x128xf32> to vector<1x128xf32>
    %233 = arith.addf %230, %232 : vector<1x128xf32>
    %cst_264 = arith.constant 0.000000e+00 : f32
    %234 = vector.broadcast %cst_264 : f32 to vector<1x128xf32>
    %235 = arith.maximumf %233, %234 : vector<1x128xf32>
    %236 = arith.truncf %235 : vector<1x128xf32> to vector<1x128xbf16>
    %c0_265 = arith.constant 0 : index
    %c1_266 = arith.constant 1 : index
    %c0_267 = arith.constant 0 : index
    %c0_268 = arith.constant 0 : index
    %237 = vector.load %arg6[%c0_265, %c1_266, %c0_267, %c0_268] : memref<1x2x128x256xbf16, #tpu.memory_space<vmem>>, vector<1x1x128x256xbf16>
    %238 = vector.shape_cast %237 : vector<1x1x128x256xbf16> to vector<128x256xbf16>
    %cst_269 = arith.constant dense<0.000000e+00> : vector<1x256xf32>
    %239 = tpu.matmul %236, %238, %cst_269 {dimension_numbers = #tpu.dot_dimension_numbers<[1], [0], [0], [1], [0, 0, 1, 1], [], []>} : vector<1x128xbf16>, vector<128x256xbf16>, vector<1x256xf32> -> vector<1x256xf32>
    %240 = arith.addf %209, %239 : vector<1x256xf32>
    %c0_270 = arith.constant 0 : index
    %c1_271 = arith.constant 1 : index
    %c0_272 = arith.constant 0 : index
    %241 = vector.load %arg7[%c0_270, %c1_271, %c0_272] : memref<1x2x256xf32, #tpu.memory_space<vmem>>, vector<1x1x256xf32>
    %242 = vector.shape_cast %241 : vector<1x1x256xf32> to vector<1x256xf32>
    %243 = vector.shape_cast %240 : vector<1x256xf32> to vector<1x1x256xf32>
    tpu.vector_store %arg7[%c0_270, %c1_271, %c0_272], %243 {strides = array<i32>} : memref<1x2x256xf32, #tpu.memory_space<vmem>>, vector<1x1x256xf32>,
    return
  }
  func.func @transform_0(%arg0: i32) -> (i32, i32, i32, i32) {
    %c0_i32 = arith.constant 0 : i32
    %c0_i32_0 = arith.constant 0 : i32
    %c0_i32_1 = arith.constant 0 : i32
    %c0_i32_2 = arith.constant 0 : i32
    return %arg0, %c0_i32, %c0_i32_0, %c0_i32_1 : i32, i32, i32, i32
  }
  func.func @transform_1(%arg0: i32) -> (i32, i32, i32, i32) {
    %c0_i32 = arith.constant 0 : i32
    %c0_i32_0 = arith.constant 0 : i32
    %c0_i32_1 = arith.constant 0 : i32
    %c0_i32_2 = arith.constant 0 : i32
    return %arg0, %c0_i32, %c0_i32_0, %c0_i32_1 : i32, i32, i32, i32
  }
  func.func @transform_2(%arg0: i32) -> (i32, i32, i32) {
    %c0_i32 = arith.constant 0 : i32
    %c0_i32_0 = arith.constant 0 : i32
    %c0_i32_1 = arith.constant 0 : i32
    return %arg0, %c0_i32, %c0_i32_0 : i32, i32, i32
  }
  func.func @transform_3(%arg0: i32) -> (i32, i32, i32, i32) {
    %c0_i32 = arith.constant 0 : i32
    %c0_i32_0 = arith.constant 0 : i32
    %c0_i32_1 = arith.constant 0 : i32
    %c0_i32_2 = arith.constant 0 : i32
    return %arg0, %c0_i32, %c0_i32_0, %c0_i32_1 : i32, i32, i32, i32
  }
  func.func @transform_4(%arg0: i32) -> (i32, i32, i32) {
    %c0_i32 = arith.constant 0 : i32
    %c0_i32_0 = arith.constant 0 : i32
    %c0_i32_1 = arith.constant 0 : i32
    return %arg0, %c0_i32, %c0_i32_0 : i32, i32, i32
  }
  func.func @transform_5(%arg0: i32) -> (i32, i32, i32, i32) {
    %c0_i32 = arith.constant 0 : i32
    %c0_i32_0 = arith.constant 0 : i32
    %c0_i32_1 = arith.constant 0 : i32
    %c0_i32_2 = arith.constant 0 : i32
    return %arg0, %c0_i32, %c0_i32_0, %c0_i32_1 : i32, i32, i32, i32
  }
  func.func @transform_6(%arg0: i32) -> (i32, i32, i32) {
    %c0_i32 = arith.constant 0 : i32
    %c0_i32_0 = arith.constant 0 : i32
    %c0_i32_1 = arith.constant 0 : i32
    return %arg0, %c0_i32, %c0_i32_0 : i32, i32, i32
  }
}

module attributes {stable_mosaic.version = 11 : i64} {
  func.func @_trunk_kernel(%arg0: memref<2x2x256xf32, #tpu.memory_space<vmem>>, %arg1: memref<2x128xbf16, #tpu.memory_space<vmem>>, %arg2: memref<128x256xbf16, #tpu.memory_space<vmem>>, %arg3: memref<1x256xf32, #tpu.memory_space<vmem>>, %arg4: memref<256x256xbf16, #tpu.memory_space<vmem>>, %arg5: memref<1x256xf32, #tpu.memory_space<vmem>>, %arg6: memref<256x256xbf16, #tpu.memory_space<vmem>>, %arg7: memref<1x256xf32, #tpu.memory_space<vmem>>, %arg8: memref<1x8xf32, #tpu.memory_space<vmem>>, %arg9: memref<2x256xf32, #tpu.memory_space<vmem>>) attributes {dimension_semantics = [], scalar_prefetch = 0 : i64, scratch_operands = 0 : i64, tpu.core_type = #tpu.core_type<tc>} {
    %c0 = arith.constant 0 : index
    %c0_0 = arith.constant 0 : index
    %0 = vector.load %arg1[%c0, %c0_0] : memref<2x128xbf16, #tpu.memory_space<vmem>>, vector<2x128xbf16>
    %c0_1 = arith.constant 0 : index
    %c0_2 = arith.constant 0 : index
    %1 = vector.load %arg2[%c0_1, %c0_2] : memref<128x256xbf16, #tpu.memory_space<vmem>>, vector<128x256xbf16>
    %cst = arith.constant dense<0.000000e+00> : vector<2x256xf32>
    %2 = tpu.matmul %0, %1, %cst {dimension_numbers = #tpu.dot_dimension_numbers<[1], [0], [0], [1], [0, 0, 1, 1], [], []>} : vector<2x128xbf16>, vector<128x256xbf16>, vector<2x256xf32> -> vector<2x256xf32>
    %c0_3 = arith.constant 0 : index
    %c0_4 = arith.constant 0 : index
    %3 = vector.load %arg3[%c0_3, %c0_4] : memref<1x256xf32, #tpu.memory_space<vmem>>, vector<1x256xf32>
    %4 = vector.broadcast %3 : vector<1x256xf32> to vector<2x256xf32>
    %5 = arith.addf %2, %4 : vector<2x256xf32>
    %6 = math.tanh %5 : vector<2x256xf32>
    %c0_5 = arith.constant 0 : index
    %c0_6 = arith.constant 0 : index
    %c0_7 = arith.constant 0 : index
    %7 = vector.load %arg0[%c0_5, %c0_6, %c0_7] : memref<2x2x256xf32, #tpu.memory_space<vmem>>, vector<1x2x256xf32>
    %8 = vector.shape_cast %7 : vector<1x2x256xf32> to vector<2x256xf32>
    %c1 = arith.constant 1 : index
    %c0_8 = arith.constant 0 : index
    %c0_9 = arith.constant 0 : index
    %9 = vector.load %arg0[%c1, %c0_8, %c0_9] : memref<2x2x256xf32, #tpu.memory_space<vmem>>, vector<1x2x256xf32>
    %10 = vector.shape_cast %9 : vector<1x2x256xf32> to vector<2x256xf32>
    %11 = arith.addf %8, %10 : vector<2x256xf32>
    %c0_10 = arith.constant 0 : index
    %c0_11 = arith.constant 0 : index
    %12 = vector.load %arg5[%c0_10, %c0_11] : memref<1x256xf32, #tpu.memory_space<vmem>>, vector<1x256xf32>
    %13 = vector.broadcast %12 : vector<1x256xf32> to vector<2x256xf32>
    %14 = arith.addf %11, %13 : vector<2x256xf32>
    %15 = arith.truncf %6 : vector<2x256xf32> to vector<2x256xbf16>
    %c0_12 = arith.constant 0 : index
    %c0_13 = arith.constant 0 : index
    %16 = vector.load %arg4[%c0_12, %c0_13] : memref<256x256xbf16, #tpu.memory_space<vmem>>, vector<256x256xbf16>
    %cst_14 = arith.constant dense<0.000000e+00> : vector<2x256xf32>
    %17 = tpu.matmul %15, %16, %cst_14 {dimension_numbers = #tpu.dot_dimension_numbers<[1], [0], [0], [1], [0, 0, 1, 1], [], []>} : vector<2x256xbf16>, vector<256x256xbf16>, vector<2x256xf32> -> vector<2x256xf32>
    %18 = arith.addf %14, %17 : vector<2x256xf32>
    %cst_15 = arith.constant 0.000000e+00 : f32
    %19 = vector.broadcast %cst_15 : f32 to vector<2x256xf32>
    %20 = arith.maximumf %18, %19 : vector<2x256xf32>
    %21 = arith.truncf %20 : vector<2x256xf32> to vector<2x256xbf16>
    %c0_16 = arith.constant 0 : index
    %c0_17 = arith.constant 0 : index
    %22 = vector.load %arg6[%c0_16, %c0_17] : memref<256x256xbf16, #tpu.memory_space<vmem>>, vector<256x256xbf16>
    %cst_18 = arith.constant dense<0.000000e+00> : vector<2x256xf32>
    %23 = tpu.matmul %21, %22, %cst_18 {dimension_numbers = #tpu.dot_dimension_numbers<[1], [0], [0], [1], [0, 0, 1, 1], [], []>} : vector<2x256xbf16>, vector<256x256xbf16>, vector<2x256xf32> -> vector<2x256xf32>
    %c0_19 = arith.constant 0 : index
    %c0_20 = arith.constant 0 : index
    %24 = vector.load %arg7[%c0_19, %c0_20] : memref<1x256xf32, #tpu.memory_space<vmem>>, vector<1x256xf32>
    %25 = vector.broadcast %24 : vector<1x256xf32> to vector<2x256xf32>
    %26 = arith.addf %23, %25 : vector<2x256xf32>
    %c0_21 = arith.constant 0 : index
    %c0_22 = arith.constant 0 : index
    %27 = vector.load %arg9[%c0_21, %c0_22] : memref<2x256xf32, #tpu.memory_space<vmem>>, vector<2x256xf32>
    tpu.vector_store %arg9[%c0_21, %c0_22], %26 {strides = array<i32>} : memref<2x256xf32, #tpu.memory_space<vmem>>, vector<2x256xf32>,
    %28 = vector.extract_strided_slice %26 {offsets = [0, 0], sizes = [2, 8], strides = [1, 1]} : vector<2x256xf32> to vector<2x8xf32>
    %c0_23 = arith.constant 0 : index
    %c0_24 = arith.constant 0 : index
    %29 = vector.load %arg8[%c0_23, %c0_24] : memref<1x8xf32, #tpu.memory_space<vmem>>, vector<1x8xf32>
    %30 = vector.broadcast %29 : vector<1x8xf32> to vector<2x8xf32>
    %31 = arith.mulf %28, %30 : vector<2x8xf32>
    %cst_25 = arith.constant dense<0.000000e+00> : vector<2xf32>
    %32 = vector.multi_reduction <add>, %31, %cst_25 [1] : vector<2x8xf32> to vector<2xf32>
    %33 = vector.shape_cast %32 : vector<2xf32> to vector<2x1xf32>
    %34 = math.absf %33 : vector<2x1xf32>
    %cst_26 = arith.constant 1.000000e-30 : f32
    %35 = vector.broadcast %cst_26 : f32 to vector<2x1xf32>
    %36 = arith.cmpf olt, %34, %35 : vector<2x1xf32>
    %cst_27 = arith.constant 1.000000e-30 : f32
    %37 = vector.broadcast %cst_27 : f32 to vector<2x1xf32>
    %38 = arith.select %36, %37, %33 : vector<2x1xi1>, vector<2x1xf32>
    %39 = tpu.reciprocal %38 {approx = true} : vector<2x1xf32> -> vector<2x1xf32>
    %40 = vector.broadcast %39 : vector<2x1xf32> to vector<2x8xf32>
    %41 = arith.mulf %31, %40 : vector<2x8xf32>
    %c0_28 = arith.constant 0 : index
    %c0_29 = arith.constant 0 : index
    %42 = vector.load %arg9[%c0_28, %c0_29] : memref<2x256xf32, #tpu.memory_space<vmem>>, vector<2x8xf32>
    tpu.vector_store %arg9[%c0_28, %c0_29], %41 {strides = array<i32>} : memref<2x256xf32, #tpu.memory_space<vmem>>, vector<2x8xf32>,
    return
  }
}

</mosaic_0001>

<bundles_post_ra>
// kernel: _forward_impl.3
= control target key start
LH: loop header
LB: loop body
LE: loop exit
PB: predicated region body
PF: predicated region fallthrough
CT: control target
= control target key end

     0   :  { %v960_v1 = vmov 0   ;;  %vm735_vm0 = vcmask 58368   ;;  %s1289_s2 = inlined_call_operand.vmem [shape: bf16[128,256], index: 2, kind: input, shape index: {}]   ;;  %s1290_s4 = inlined_call_operand.vmem [shape: bf16[256,256], index: 4, kind: input, shape index: {}]   ;;  %s1291_s1 = inlined_call_operand.vmem [shape: bf16[2,128], index: 1, kind: input, shape index: {}]   ;;  %s1292_s6 = inlined_call_operand.vmem [shape: bf16[256,256], index: 6, kind: input, shape index: {}]   ;;  %s1293_s3 = inlined_call_operand.vmem [shape: f32[1,256], index: 3, kind: input, shape index: {}]   ;;  %s1294_s5 = inlined_call_operand.vmem [shape: f32[1,256], index: 5, kind: input, shape index: {}]   ;;  %s1295_s0 = inlined_call_operand.vmem [shape: f32[2,2,256], index: 0, kind: input, shape index: {}]   ;;  %s1296_s7 = inlined_call_operand.vmem [shape: f32[1,256], index: 7, kind: input, shape index: {}]   ;;  %s1297_s8 = inlined_call_operand.vmem [shape: f32[1,8], index: 8, kind: input, shape index: {}]   ;;  %s1298_s9 = inlined_call_operand.vmem [shape: f32[2,256], index: 9, kind: output, shape index: {}]  }
   0x1   :  { %v834_v0 = vld [vmem:[%s1289_s2 + $0x4] ss:$8 sps:$4 sm:$0xff]   ;;  %174 = vmatprep.mubr.bf16.mxu0 %v960_v1  ;;  %v836_v2 = vld [vmem:[%s1289_s2] ss:$8 sps:$4 sm:$0xff]   ;;  %v837_v3 = vld [vmem:[%s1289_s2 + $0x14] ss:$8 sps:$4 sm:$0xff]  }
   0x2   :  { %142 = vmatprep.subr.bf16.mxu0 %v834_v0  ;;  %v839_v4 = vld [vmem:[%s1289_s2 + $0x10] ss:$8 sps:$4 sm:$0xff]   ;;  %v840_v5 = vld [vmem:[%s1289_s2 + $0x24] ss:$8 sps:$4 sm:$0xff]   ;;  %v842_v6 = vld [vmem:[%s1289_s2 + $0x20] ss:$8 sps:$4 sm:$0xff]  }
   0x3   :  { %143 = vmatpush1.bf16.msra.mxu0 %v836_v2  ;;  %v843_v7 = vld [vmem:[%s1289_s2 + $0x34] ss:$8 sps:$4 sm:$0xff]   ;;  %v845_v8 = vld [vmem:[%s1289_s2 + $0x30] ss:$8 sps:$4 sm:$0xff]   ;;  %v846_v9 = vld [vmem:[%s1289_s2 + $0x44] ss:$8 sps:$4 sm:$0xff]  }
   0x4   :  { %144 = vmatprep.subr.bf16.mxu0 %v837_v3  ;;  %v858_v10 = vld [vmem:[%s1290_s4 + $0x4] ss:$8 sps:$4 sm:$0xff]   ;;  %v860_v11 = vld [vmem:[%s1290_s4] ss:$8 sps:$4 sm:$0xff]   ;;  %v861_v12 = vld [vmem:[%s1290_s4 + $0x14] ss:$8 sps:$4 sm:$0xff]  }
   0x5   :  { %403 = vmatprep.subr.bf16.mxu1 %v858_v10  ;;  %v848_v13 = vld [vmem:[%s1289_s2 + $0x40] ss:$8 sps:$4 sm:$0xff]   ;;  %v863_v14 = vld [vmem:[%s1290_s4 + $0x10] ss:$8 sps:$4 sm:$0xff]   ;;  %v864_v15 = vld [vmem:[%s1290_s4 + $0x24] ss:$8 sps:$4 sm:$0xff]   ;;  %v52_v10 = vlaneseq }
   0x6   :  { %404 = vmatpush1.bf16.msra.mxu1 %v860_v11  ;;  %v849_v16 = vld [vmem:[%s1289_s2 + $0x54] ss:$8 sps:$4 sm:$0xff]   ;;  %v851_v17 = vld [vmem:[%s1289_s2 + $0x50] ss:$8 sps:$4 sm:$0xff]   ;;  %v866_v18 = vld [vmem:[%s1290_s4 + $0x20] ss:$8 sps:$4 sm:$0xff]  }
   0x7   :  { %145 = vmatpush1.bf16.msra.mxu0 %v839_v4  ;;  %405 = vmatprep.subr.bf16.mxu1 %v861_v12  ;;  %v867_v19 = vld [vmem:[%s1290_s4 + $0x34] ss:$8 sps:$4 sm:$0xff]   ;;  %v852_v20 = vld [vmem:[%s1289_s2 + $0x64] ss:$8 sps:$4 sm:$0xff]   ;;  %v854_v21 = vld [vmem:[%s1289_s2 + $0x60] ss:$8 sps:$4 sm:$0xff]  }
   0x8   :  { %146 = vmatprep.subr.bf16.mxu0 %v840_v5  ;;  %v869_v22 = vld [vmem:[%s1290_s4 + $0x30] ss:$8 sps:$4 sm:$0xff]   ;;  %v870_v23 = vld [vmem:[%s1290_s4 + $0x44] ss:$8 sps:$4 sm:$0xff]   ;;  %v855_v24 = vld [vmem:[%s1289_s2 + $0x74] ss:$8 sps:$4 sm:$0xff]  }
   0x9   :  { %v857_v25 = vld [vmem:[%s1289_s2 + $0x70] ss:$8 sps:$4 sm:$0xff]   ;;  %v872_v26 = vld [vmem:[%s1290_s4 + $0x40] ss:$8 sps:$4 sm:$0xff]   ;;  %v873_v27 = vld [vmem:[%s1290_s4 + $0x54] ss:$8 sps:$4 sm:$0xff]  }
   0xa   :  { %406 = vmatpush1.bf16.msra.mxu1 %v863_v14  ;;  %v875_v28 = vld [vmem:[%s1290_s4 + $0x50] ss:$8 sps:$4 sm:$0xff]   ;;  %v33_v29 = vld [vmem:[%s1291_s1] sm:$0x1]  ;;  %v876_v30 = vld [vmem:[%s1290_s4 + $0x64] ss:$8 sps:$4 sm:$0xff]  }
   0xb   :  { %147 = vmatpush1.bf16.msra.mxu0 %v842_v6  ;;  %407 = vmatprep.subr.bf16.mxu1 %v864_v15  ;;  %v878_v31 = vld [vmem:[%s1290_s4 + $0x60] ss:$8 sps:$4 sm:$0xff]   ;;  %v879_v32 = vld [vmem:[%s1290_s4 + $0x74] ss:$8 sps:$4 sm:$0xff]   ;;  %v881_v33 = vld [vmem:[%s1290_s4 + $0x70] ss:$8 sps:$4 sm:$0xff]  }
   0xc   :  { %148 = vmatprep.subr.bf16.mxu0 %v843_v7  ;;  %v882_v34 = vld [vmem:[%s1290_s4 + $0x84] ss:$8 sps:$4 sm:$0xff]   ;;  %v884_v35 = vld [vmem:[%s1290_s4 + $0x80] ss:$8 sps:$4 sm:$0xff]   ;;  %v885_v36 = vld [vmem:[%s1290_s4 + $0x94] ss:$8 sps:$4 sm:$0xff]  }
   0xd   :  { %v887_v37 = vld [vmem:[%s1290_s4 + $0x90] ss:$8 sps:$4 sm:$0xff]   ;;  %v888_v38 = vld [vmem:[%s1290_s4 + $0xa4] ss:$8 sps:$4 sm:$0xff]   ;;  %v890_v39 = vld [vmem:[%s1290_s4 + $0xa0] ss:$8 sps:$4 sm:$0xff]  }
   0xe   :  { %408 = vmatpush1.bf16.msra.mxu1 %v866_v18  ;;  %v891_v40 = vld [vmem:[%s1290_s4 + $0xb4] ss:$8 sps:$4 sm:$0xff]   ;;  %v893_v41 = vld [vmem:[%s1290_s4 + $0xb0] ss:$8 sps:$4 sm:$0xff]   ;;  %v894_v42 = vld [vmem:[%s1290_s4 + $0xc4] ss:$8 sps:$4 sm:$0xff]  }
   0xf   :  { %149 = vmatpush1.bf16.msra.mxu0 %v845_v8  ;;  %409 = vmatprep.subr.bf16.mxu1 %v867_v19  ;;  %v896_v43 = vld [vmem:[%s1290_s4 + $0xc0] ss:$8 sps:$4 sm:$0xff]   ;;  %v897_v44 = vld [vmem:[%s1290_s4 + $0xd4] ss:$8 sps:$4 sm:$0xff]   ;;  %v899_v45 = vld [vmem:[%s1290_s4 + $0xd0] ss:$8 sps:$4 sm:$0xff]  }
  0x10   :  { %150 = vmatprep.subr.bf16.mxu0 %v846_v9  ;;  %v900_v46 = vld [vmem:[%s1290_s4 + $0xe4] ss:$8 sps:$4 sm:$0xff]   ;;  %v902_v47 = vld [vmem:[%s1290_s4 + $0xe0] ss:$8 sps:$4 sm:$0xff]   ;;  %v903_v48 = vld [vmem:[%s1290_s4 + $0xf4] ss:$8 sps:$4 sm:$0xff]  }
  0x11   :  { %v905_v49 = vld [vmem:[%s1290_s4 + $0xf0] ss:$8 sps:$4 sm:$0xff]   ;;  %v906_v50 = vld [vmem:[%s1292_s6] ss:$8 sps:$4 sm:$0xff]   ;;  %v908_v51 = vld [vmem:[%s1292_s6 + $0x4] ss:$8 sps:$4 sm:$0xff]  }
  0x12   :  { %410 = vmatpush1.bf16.msra.mxu1 %v869_v22  ;;  %v911_v52 = vld [vmem:[%s1292_s6 + $0x14] ss:$8 sps:$4 sm:$0xff]   ;;  %v909_v53 = vld [vmem:[%s1292_s6 + $0x10] ss:$8 sps:$4 sm:$0xff]   ;;  %v914_v54 = vld [vmem:[%s1292_s6 + $0x24] ss:$8 sps:$4 sm:$0xff]  }
  0x13   :  { %151 = vmatpush1.bf16.msra.mxu0 %v848_v13  ;;  %411 = vmatprep.subr.bf16.mxu1 %v870_v23  ;;  %v912_v55 = vld [vmem:[%s1292_s6 + $0x20] ss:$8 sps:$4 sm:$0xff]   ;;  %v917_v56 = vld [vmem:[%s1292_s6 + $0x34] ss:$8 sps:$4 sm:$0xff]   ;;  %v915_v57 = vld [vmem:[%s1292_s6 + $0x30] ss:$8 sps:$4 sm:$0xff]  }
  0x14   :  { %152 = vmatprep.subr.bf16.mxu0 %v849_v16  ;;  %v920_v58 = vld [vmem:[%s1292_s6 + $0x44] ss:$8 sps:$4 sm:$0xff]   ;;  %v918_v59 = vld [vmem:[%s1292_s6 + $0x40] ss:$8 sps:$4 sm:$0xff]   ;;  %v923_v60 = vld [vmem:[%s1292_s6 + $0x54] ss:$8 sps:$4 sm:$0xff]  }
  0x15   :  { %v921_v61 = vld [vmem:[%s1292_s6 + $0x50] ss:$8 sps:$4 sm:$0xff]   ;;  %v926_v62 = vld [vmem:[%s1292_s6 + $0x64] ss:$8 sps:$4 sm:$0xff]   ;;  %v924_v63 = vld [vmem:[%s1292_s6 + $0x60] ss:$8 sps:$4 sm:$0xff]  }
  0x16   :  { %412 = vmatpush1.bf16.msra.mxu1 %v872_v26  ;;  %v929_v0 = vld [vmem:[%s1292_s6 + $0x74] ss:$8 sps:$4 sm:$0xff]   ;;  %v927_v1 = vld [vmem:[%s1292_s6 + $0x70] ss:$8 sps:$4 sm:$0xff]   ;;  %v932_v2 = vld [vmem:[%s1292_s6 + $0x84] ss:$8 sps:$4 sm:$0xff]  }
  0x17   :  { %153 = vmatpush1.bf16.msra.mxu0 %v851_v17  ;;  %413 = vmatprep.subr.bf16.mxu1 %v873_v27  ;;  %v930_v3 = vld [vmem:[%s1292_s6 + $0x80] ss:$8 sps:$4 sm:$0xff]   ;;  %v935_v4 = vld [vmem:[%s1292_s6 + $0x94] ss:$8 sps:$4 sm:$0xff]   ;;  %v933_v5 = vld [vmem:[%s1292_s6 + $0x90] ss:$8 sps:$4 sm:$0xff]  }
  0x18   :  { %154 = vmatprep.subr.bf16.mxu0 %v852_v20  ;;  %v938_v6 = vld [vmem:[%s1292_s6 + $0xa4] ss:$8 sps:$4 sm:$0xff]   ;;  %v936_v7 = vld [vmem:[%s1292_s6 + $0xa0] ss:$8 sps:$4 sm:$0xff]   ;;  %v941_v8 = vld [vmem:[%s1292_s6 + $0xb4] ss:$8 sps:$4 sm:$0xff]  }
  0x19   :  { %v939_v9 = vld [vmem:[%s1292_s6 + $0xb0] ss:$8 sps:$4 sm:$0xff]   ;;  %v53_v11 = vshrl.u32 %v52_v10, 7  ;;  %v50_v13 = vld [vmem:[%s1293_s3] sm:$0x3] }
  0x1a   :  { %414 = vmatpush1.bf16.msra.mxu1 %v875_v28  ;;  %v944_v27 = vld [vmem:[%s1292_s6 + $0xc4] ss:$8 sps:$4 sm:$0xff]   ;;  %v942_v28 = vld [vmem:[%s1292_s6 + $0xc0] ss:$8 sps:$4 sm:$0xff]  }
  0x1b   :  { %155 = vmatpush1.bf16.msra.mxu0 %v854_v21  ;;  %415 = vmatprep.subr.bf16.mxu1 %v876_v30  ;;  %v1231_v12 = vsub.s32 0, %v53_v11  ;;  %v1236_v14 = vsub.s32 1, %v53_v11  ;;  %v945_v30 = vld [vmem:[%s1292_s6 + $0xd0] ss:$8 sps:$4 sm:$0xff]  }
  0x1c   :  { %156 = vmatprep.subr.bf16.mxu0 %v855_v24 }
  0x1d   :  { %v55_v15 = vrot.slane %v50_v13, %v1231_v12  ;;  %v59_v16 = vrot.slane %v50_v13, %v1236_v14 }
  0x1e   :  { %416 = vmatpush1.bf16.msra.mxu1 %v878_v31  ;;  %v950_v31 = vld [vmem:[%s1292_s6 + $0xe4] ss:$8 sps:$4 sm:$0xff]  }
  0x1f   :  { %157 = vmatpush1.bf16.msra.mxu0 %v857_v25  ;;  %417 = vmatprep.subr.bf16.mxu1 %v879_v32  ;;  %v948_v32 = vld [vmem:[%s1292_s6 + $0xe0] ss:$8 sps:$4 sm:$0xff]  }
  0x20   :  { %674 = vmatprep.subr.bf16.mxu0 %v908_v51 }
  0x22   :  { %175 = vmatmul.mubr.bf16.vlgmr.msra.gmra.mrb[0].mxu0 %v33_v29  ;;  %418 = vmatpush1.bf16.msra.mxu1 %v881_v33  ;;  %v947_v29 = vld [vmem:[%s1292_s6 + $0xd4] ss:$8 sps:$4 sm:$0xff]  }
  0x23   :  { %419 = vmatprep.subr.bf16.mxu1 %v882_v34  ;;  %675 = vmatpush1.bf16.msra.mxu0 %v906_v50  ;;  %v953_v33 = vld [vmem:[%s1292_s6 + $0xf4] ss:$8 sps:$4 sm:$0xff]   ;;  %v951_v34 = vld [vmem:[%s1292_s6 + $0xf0] ss:$8 sps:$4 sm:$0xff]  }
  0x24   :  { %676 = vmatprep.subr.bf16.mxu0 %v911_v52 }
  0x26   :  { %420 = vmatpush1.bf16.msra.mxu1 %v884_v35  ;;  %v961_v35 = vmov 1983009808  }
  0x27   :  { %421 = vmatprep.subr.bf16.mxu1 %v885_v36  ;;  %677 = vmatpush1.bf16.msra.mxu0 %v909_v53  ;;  %v201_v36 = vunpack.c.l.s4 %v961_v35 }
  0x28   :  { %678 = vmatprep.subr.bf16.mxu0 %v914_v54 }
  0x2a   :  { %422 = vmatpush1.bf16.msra.mxu1 %v887_v37  ;;  %v189_v37 = vld [vmem:[%s1294_s5] sm:$0x3] }
  0x2b   :  { %423 = vmatprep.subr.bf16.mxu1 %v888_v38  ;;  %679 = vmatpush1.bf16.msra.mxu0 %v912_v55  ;;  %v194_v38 = vrot.slane %v189_v37, %v1231_v12 }
  0x2c   :  { %680 = vmatprep.subr.bf16.mxu0 %v917_v56 }
  0x2e   :  { %424 = vmatpush1.bf16.msra.mxu1 %v890_v39  ;;  %v198_v39 = vrot.slane %v189_v37, %v1236_v14 }
  0x2f   :  { %425 = vmatprep.subr.bf16.mxu1 %v891_v40  ;;  %681 = vmatpush1.bf16.msra.mxu0 %v915_v57  ;;  %v202_v40 = vunpack.c.0.s8 %v201_v36 }
  0x30   :  { %682 = vmatprep.subr.bf16.mxu0 %v920_v58 }
  0x32   :  { %426 = vmatpush1.bf16.msra.mxu1 %v893_v41  ;;  %v199_v41 = vcombine.low %v194_v38, %v198_v39 }
  0x33   :  { %427 = vmatprep.subr.bf16.mxu1 %v894_v42  ;;  %683 = vmatpush1.bf16.msra.mxu0 %v918_v59  ;;  %v205_v42 = vsub.s32 %v202_v40, %v53_v11 }
  0x34   :  { %684 = vmatprep.subr.bf16.mxu0 %v923_v60  ;;  %v502_v60 = vld [vmem:[%s1296_s7] sm:$0x3] }
  0x36   :  { %428 = vmatpush1.bf16.msra.mxu1 %v896_v43  ;;  %v185_v43 = vld [vmem:[%s1295_s0] sm:$0xf] }
  0x37   :  { %429 = vmatprep.subr.bf16.mxu1 %v897_v44  ;;  %685 = vmatpush1.bf16.msra.mxu0 %v921_v61  ;;  %v765_v44 = vld [vmem:[%s1295_s0 + $0x4] sm:$0xf]  ;;  %v507_v61 = vrot.slane %v502_v60, %v1231_v12 }
  0x38   :  { %686 = vmatprep.subr.bf16.mxu0 %v926_v62  ;;  %v511_v62 = vrot.slane %v502_v60, %v1236_v14 }
  0x3a   :  { %430 = vmatpush1.bf16.msra.mxu1 %v899_v45  ;;  %v188_v45 = vadd.f32 %v765_v44, %v185_v43 }
  0x3b   :  { %431 = vmatprep.subr.bf16.mxu1 %v900_v46  ;;  %687 = vmatpush1.bf16.msra.mxu0 %v924_v63  ;;  %v206_v46 = vrot.slane %v199_v41, %v205_v42 }
  0x3c   :  { %688 = vmatprep.subr.bf16.mxu0 %v929_v0  ;;  %v831_v0 = vld [vmem:[%s1297_s8] ss:$0 sm:$0xff] }
  0x3e   :  { %432 = vmatpush1.bf16.msra.mxu1 %v902_v47 }
  0x3f   :  { %433 = vmatprep.subr.bf16.mxu1 %v903_v48  ;;  %689 = vmatpush1.bf16.msra.mxu0 %v927_v1 }
  0x40   :  { %690 = vmatprep.subr.bf16.mxu0 %v932_v2 }
  0x42   :  { %434 = vmatpush1.bf16.msra.mxu1 %v905_v49  ;;  %v208_v49 = vadd.f32 %v206_v46, %v188_v45 }
  0x43   :  { %691 = vmatpush1.bf16.msra.mxu0 %v930_v3 }
  0x44   :  { %692 = vmatprep.subr.bf16.mxu0 %v935_v4 }
  0x47   :  { %693 = vmatpush1.bf16.msra.mxu0 %v933_v5 }
  0x48   :  { %694 = vmatprep.subr.bf16.mxu0 %v938_v6 }
  0x4b   :  { %695 = vmatpush1.bf16.msra.mxu0 %v936_v7 }
  0x4c   :  { %696 = vmatprep.subr.bf16.mxu0 %v941_v8 }
  0x4f   :  { %697 = vmatpush1.bf16.msra.mxu0 %v939_v9 }
  0x50   :  { %698 = vmatprep.subr.bf16.mxu0 %v944_v27 }
  0x53   :  { %699 = vmatpush1.bf16.msra.mxu0 %v942_v28 }
  0x54   :  { %700 = vmatprep.subr.bf16.mxu0 %v947_v29 }
  0x57   :  { %701 = vmatpush1.bf16.msra.mxu0 %v945_v30 }
  0x58   :  { %702 = vmatprep.subr.bf16.mxu0 %v950_v31 }
  0x5b   :  { %703 = vmatpush1.bf16.msra.mxu0 %v948_v32 }
  0x5c   :  { %704 = vmatprep.subr.bf16.mxu0 %v953_v33 }
  0x5f   :  { %705 = vmatpush1.bf16.msra.mxu0 %v951_v34 }
  0xf5   :  { %v176_v17 = vpop.f32.mrb[0].mxu0 }
  0xf6   :  { %v177_v18 = vadd.f32 %v176_v17, %v55_v15  ;;  %v178_v19 = vpop.f32.mrb[1].mxu0 }
  0xf7   :  { %v179_v20 = vadd.f32 %v178_v19, %v59_v16  ;;  %v180_v21 = vpop.f32.mrb[2].mxu0 }
  0xf8   :  { %954 = vtanh.f32 %v177_v18  ;;  %v181_v22 = vpop.f32.mrb[3].mxu0 }
  0xf9   :  { %956 = vtanh.f32 %v179_v20 }
 0x102   :  { %v955_v23 = vpop.eup %954 }
 0x103   :  { %v957_v24 = vpop.eup %956  ;;  %v209_v26 = vpack.c.bf16 %v955_v23, %v955_v23 }
 0x104   :  { %v210_v25 = vpack.c.bf16 %v957_v24, %v957_v24 }
 0x106   :  { %435 = vmatprep.mubr.bf16.mxu1 %v210_v25 }
 0x107   :  { %436 = vmatmul.mubr.bf16.vlgmr.msra.gmra.mrb[0].mxu1 %v209_v26 }
 0x1da   :  { %v437_v47 = vpop.f32.mrb[0].mxu1 }
 0x1db   :  { %v439_v48 = vpop.f32.mrb[1].mxu1 }
 0x1dc   :  { %v446_v50 = vcombine.low %v437_v47, %v439_v48  ;;  %v441_v51 = vpop.f32.mrb[2].mxu1 }
 0x1dd   :  { %v442_v52 = vpop.f32.mrb[3].mxu1 }
 0x1de   :  { %v453_v53 = vrot.slane %v446_v50, %v205_v42 }
 0x1e0   :  { %v455_v54 = vadd.f32 %v453_v53, %v208_v49 }
 0x1e2   :  { %v456_v55 = vmax.f32 %v455_v54, 0.0 }
 0x1e4   :  { %v464_v56 = vrot.slane %v456_v55, %v205_v42 }
 0x1e6   :  { %v465_v57 = vcombine.high %v464_v56, %v464_v56  ;;  %v468_v59 = vpack.c.bf16 %v464_v56, %v464_v56 }
 0x1e8   :  { %v469_v58 = vpack.c.bf16 %v465_v57, %v465_v57 }
 0x1ea   :  { %706 = vmatprep.mubr.bf16.mxu0 %v469_v58 }
 0x1eb   :  { %707 = vmatmul.mubr.bf16.vlgmr.msra.gmra.mrb[4].mxu0 %v468_v59 }
 0x2be   :  { %v708_v63 = vpop.f32.mrb[4].mxu0 }
 0x2bf   :  { %v709_v1 = vadd.f32 %v708_v63, %v507_v61  ;;  %v710_v2 = vpop.f32.mrb[5].mxu0 }
 0x2c0   :  { %v711_v3 = vadd.f32 %v710_v2, %v511_v62  ;;  %v712_v4 = vpop.f32.mrb[6].mxu0 }
 0x2c1   :  { %v713_v5 = vpop.f32.mrb[7].mxu0  ;;  %v734_v6 = vmul.f32 %v831_v0, %v709_v1 }
 0x2c2   :  { %v717_v7 = vcombine.low %v709_v1, %v711_v3 }
 0x2c3   :  { %v736_v8 = vsel %vm735_vm0, %v734_v6, 0.0 }
 0x2c4   :  { %830 = vst.sshfl [vmem:[%s1298_s9] sm:$0x33 pattern:$0x76325410] %v717_v7  ;;  %737 = vadd.xlane.f32.xlu0 %v736_v8 }
 0x351   :  { %v738_v9 = vpop.xlane.xlu0 %737 }
 0x352   :  { %v739_v10 = vand.u32 2147483647, %v738_v9 }
 0x354   :  { %vm740_vm1 = vcmp.lt.f32.partialorder %v739_v10, 1e-30 }
 0x355   :  { %v741_v11 = vsel %vm740_vm1, 1e-30, %v738_v9 }
 0x356   :  { %958 = vrcp.f32 %v741_v11 }
 0x360   :  { %v959_v12 = vpop.eup %958 }
 0x361   :  { %v743_v13 = vmul.f32 %v959_v12, %v734_v6 }
 0x363   :  { %744 = vst.msk [vmem:[%s1298_s9] sm:$0x3] %vm735_vm0, %v743_v13 }

// kernel: _forward_impl.2
= control target key start
LH: loop header
LB: loop body
LE: loop exit
PB: predicated region body
PF: predicated region fallthrough
CT: control target
= control target key end

     0   :  { %s17694_s21 = smov 0   ;;  %s20334_s0 = inlined_call_operand.vmem [shape: bf16[2,2,32,768], index: 0, kind: input, shape index: {}]   ;;  %s20335_s1 = inlined_call_operand.vmem [shape: bf16[2,8,768,128], index: 1, kind: input, shape index: {}]   ;;  %s20336_s2 = inlined_call_operand.vmem [shape: f32[2,1,128], index: 2, kind: input, shape index: {}]   ;;  %s20337_s3 = inlined_call_operand.vmem [shape: bf16[2,4,128,128], index: 3, kind: input, shape index: {}]   ;;  %s20338_s4 = inlined_call_operand.vmem [shape: f32[2,1,128], index: 4, kind: input, shape index: {}]   ;;  %s20339_s5 = inlined_call_operand.vmem [shape: bf16[2,2,128,256], index: 5, kind: input, shape index: {}]   ;;  %s20340_s6 = inlined_call_operand.vmem [shape: f32[2,2,256], index: 6, kind: output, shape index: {}]  }
   0x1 LB: > { %s12260_s22 = sadd.s32 4294967295, %s17653_s21   ;;  %p12264_p0 = scmp.ge.s32.totalorder %s17653_s21, 1  ;;  %s17653_s21 = sphi %s17694_s21, %s16_s21  }
   0x2   : > { %p258_p1 = scmp.lt.s32.totalorder %s17653_s21, 3 }
   0x4   : > { %p259_p2 = pnand %p12264_p0, %p258_p1 }
   0x5   : > { %p309_p3 = scmp.lt.s32.totalorder (!%p259_p2), %s12260_s22, 1  ;;  %vm594_vm0 = vsmask.f32 (!%p259_p2), 7424  ;;  %vm1712_vm1 = vcmask (!%p259_p2), 1046528   ;;  %vm2279_vm2 = vsmask.f32 (!%p259_p2), 6400 }
   0x6   : > { %262 = sbr.rel (%p259_p2) target bundleno = 2167 (0x877), region = 44  ;;  %vm2966_vm3 = vcmask (!%p259_p2), 1045504   ;;  %vm3533_vm4 = vsmask.f32 (!%p259_p2), 5376  ;;  %vm4220_vm5 = vcmask (!%p259_p2), 1044480   ;;  %vm17656_vm7 = vmmov (!%p259_p2), 0  }
   0x7   : > { %vm4787_vm6 = vsmask.f32 (!%p259_p2), 4352 }
   0xd   : > { %s20360_s22 = smov (!%p309_p3, %s12260_s22), 1 }
   0xe   : > { %s16592_s23 = smul.u32 3072, %s20360_s22  ;;  %s14772_s7 = sshll.u32 %s20360_s22, 8 }
   0xf   : > { %s16591_s27 = smul.u32 192, %s20360_s22  ;;  %s18638_s10 = scalar_lea.vmem %s20337_s3, %s14772_s7 }
  0x10   : > { %s17708_s26 = scalar_lea.vmem %s20335_s1, %s16592_s23  ;;  %s18689_s13 = scalar_lea.vmem %s20336_s2, %s20360_s22 }
  0x11   : > { %v16605_v0 = vld [vmem:[%s17708_s26 + $0x1c0] sm:$0xff]   ;;  %v16607_v2 = vld [vmem:[%s17708_s26 + $0x1c8] sm:$0xff]   ;;  %v16609_v4 = vld [vmem:[%s17708_s26 + $0x1d0] sm:$0xff]   ;;  %s17723_s30 = scalar_lea.vmem %s20334_s0, %s16591_s27  ;;  %s18889_s16 = scalar_lea.vmem %s20339_s5, %s14772_s7 }
  0x12   : > { %v16606_v1 = vld [vmem:[%s17708_s26 + $0x180] sm:$0xff]   ;;  %14775 = vmatprep.subr.bf16.mxu1 %v16605_v0  ;;  %v16608_v3 = vld [vmem:[%s17708_s26 + $0x188] sm:$0xff]   ;;  %v16610_v5 = vld [vmem:[%s17708_s26 + $0x190] sm:$0xff]   ;;  %s19069_s19 = scalar_lea.vmem %s20338_s4, %s20360_s22  ;;  %s14774_s20 = sshll.u32 %s20360_s22, 2 }
  0x13   : > { %14776 = vmatpush3.bf16.msra.mxu1 %v16606_v1  ;;  %v16611_v6 = vld [vmem:[%s17708_s26 + $0x1d8] sm:$0xff]   ;;  %v16613_v8 = vld [vmem:[%s17708_s26 + $0x1e0] sm:$0xff]   ;;  %v16615_v10 = vld [vmem:[%s17708_s26 + $0x1e8] sm:$0xff]   ;;  %s19755_s22 = scalar_lea.vmem %s20340_s6, %s14774_s20 }
  0x14   : > { %14777 = vmatprep.subr.bf16.mxu1 %v16607_v2  ;;  %v16612_v7 = vld [vmem:[%s17708_s26 + $0x198] sm:$0xff]   ;;  %v16614_v9 = vld [vmem:[%s17708_s26 + $0x1a0] sm:$0xff]   ;;  %v17732_v13 = vld [vmem:[%s17723_s30 + $0x30] sm:$0xff] }
  0x15   : > { %v341_v11 = vld [vmem:[%s17723_s30] sm:$0xff]  ;;  %v17729_v12 = vld [vmem:[%s17723_s30 + $0x18] sm:$0xff]  ;;  %v350_v14 = vld [vmem:[%s17723_s30 + $0x48] sm:$0x11] }
  0x16   : > { %v17736_v15 = vcombine.high %v341_v11, %v17729_v12  ;;  %v17739_v16 = vcombine.low %v341_v11, %v17729_v12  ;;  %v17742_v17 = vcombine.high %v17732_v13, %v350_v14  ;;  %v17745_v18 = vcombine.low %v17732_v13, %v350_v14  ;;  %v16616_v19 = vld [vmem:[%s17708_s26 + $0x1a8] sm:$0xff]   ;;  %v16626_v23 = vld [vmem:[%s17708_s26 + $0x2c0] sm:$0xff]   ;;  %v16617_v24 = vld [vmem:[%s17708_s26 + $0x1f0] sm:$0xff]  }
  0x17   : > { %14778 = vmatpush3.bf16.msra.mxu1 %v16608_v3  ;;  %v16618_v26 = vld [vmem:[%s17708_s26 + $0x1b0] sm:$0xff]   ;;  %14831 = vmatprep.subr.bf16.mxu0 %v16626_v23  ;;  %v16619_v29 = vld [vmem:[%s17708_s26 + $0x1f8] sm:$0xff]   ;;  %v16628_v33 = vld [vmem:[%s17708_s26 + $0x280] sm:$0xff]  }
  0x18   : > { %14779 = vmatprep.subr.bf16.mxu1 %v16609_v4  ;;  %v608_v20 = vshrl.u32 %v17736_v15, 16  ;;  %v610_v21 = vshll.u32 %v17736_v15, 16  ;;  %v598_v22 = vshll.u32 %v17739_v16, 16  ;;  %v615_v25 = vshll.u32 %v17742_v17, 16  ;;  %14832 = vmatpush3.bf16.msra.mxu0 %v16628_v33  ;;  %v16630_v35 = vld [vmem:[%s17708_s26 + $0x2c8] sm:$0xff]   ;;  %v16620_v36 = vld [vmem:[%s17708_s26 + $0x1b8] sm:$0xff]  }
  0x19   : > { %v596_v28 = vshrl.u32 %v17739_v16, 16  ;;  %v603_v32 = vshll.u32 %v17745_v18, 16  ;;  %v16625_v38 = vld [vmem:[%s17708_s26 + $0x240] sm:$0xff]   ;;  %14833 = vmatprep.subr.bf16.mxu0 %v16630_v35  ;;  %v16632_v39 = vld [vmem:[%s17708_s26 + $0x288] sm:$0xff]   ;;  %v670_v42 = vshrl.u32 %v17742_v17, 16  ;;  %v16634_v43 = vld [vmem:[%s17708_s26 + $0x2d0] sm:$0xff]  }
  0x1a   : > { %v612_v27 = vrot.slane %v610_v21, 1  ;;  %v617_v30 = vrot.slane %v615_v25, 1  ;;  %v600_v31 = vrot.slane %v598_v22, 1  ;;  %v16627_v44 = vld [vmem:[%s17708_s26 + $0x200] sm:$0xff]   ;;  %v16636_v45 = vld [vmem:[%s17708_s26 + $0x290] sm:$0xff]   ;;  %v16629_v47 = vld [vmem:[%s17708_s26 + $0x248] sm:$0xff]  }
  0x1b   : > { %14780 = vmatpush3.bf16.msra.mxu1 %v16610_v5  ;;  %v605_v41 = vrot.slane %v603_v32, 1  ;;  %v16638_v49 = vld [vmem:[%s17708_s26 + $0x2d8] sm:$0xff]   ;;  %v16631_v50 = vld [vmem:[%s17708_s26 + $0x208] sm:$0xff]   ;;  %v667_v52 = vshrl.u32 %v17745_v18, 16  ;;  %v16633_v53 = vld [vmem:[%s17708_s26 + $0x250] sm:$0xff]  }
  0x1c   : > { %14781 = vmatprep.subr.bf16.mxu1 %v16611_v6  ;;  %v613_v34 = vor.u32 %v612_v27, %v608_v20  ;;  %v601_v40 = vor.u32 %v600_v31, %v596_v28  ;;  %14834 = vmatpush3.bf16.msra.mxu0 %v16632_v39  ;;  %v672_v48 = vor.u32 %v670_v42, %v617_v30  ;;  %v16640_v51 = vld [vmem:[%s17708_s26 + $0x298] sm:$0xff]   ;;  %v16642_v54 = vld [vmem:[%s17708_s26 + $0x2e0] sm:$0xff]   ;;  %v16635_v55 = vld [vmem:[%s17708_s26 + $0x210] sm:$0xff]  }
  0x1d   : > { %14835 = vmatprep.subr.bf16.mxu0 %v16634_v43  ;;  %v16644_v56 = vld [vmem:[%s17708_s26 + $0x2a0] sm:$0xff]   ;;  %v669_v57 = vor.u32 %v667_v52, %v605_v41  ;;  %v16637_v58 = vld [vmem:[%s17708_s26 + $0x258] sm:$0xff]   ;;  %v16646_v59 = vld [vmem:[%s17708_s26 + $0x2e8] sm:$0xff]  }
  0x1e   : > { %v618_v37 = vsel %vm594_vm0, %v613_v34, %v617_v30  ;;  %v606_v46 = vsel %vm594_vm0, %v601_v40, %v605_v41  ;;  %v16639_v60 = vld [vmem:[%s17708_s26 + $0x218] sm:$0xff]   ;;  %v16648_v61 = vld [vmem:[%s17708_s26 + $0x2a8] sm:$0xff]   ;;  %v16641_v62 = vld [vmem:[%s17708_s26 + $0x260] sm:$0xff]  }
  0x1f   : > { %14782 = vmatpush3.bf16.msra.mxu1 %v16612_v7  ;;  %1017 = vmatprep.mubr.bf16.mxu1 %v618_v37  ;;  %v16650_v63 = vld [vmem:[%s17708_s26 + $0x2f0] sm:$0xff]   ;;  %v16643_v0 = vld [vmem:[%s17708_s26 + $0x220] sm:$0xff]   ;;  %v16645_v2 = vld [vmem:[%s17708_s26 + $0x268] sm:$0xff]  }
  0x20   : > { %14783 = vmatprep.subr.bf16.mxu1 %v16613_v8  ;;  %14836 = vmatpush3.bf16.msra.mxu0 %v16636_v45  ;;  %v16652_v1 = vld [vmem:[%s17708_s26 + $0x2b0] sm:$0xff]   ;;  %v16654_v3 = vld [vmem:[%s17708_s26 + $0x2f8] sm:$0xff]   ;;  %v16647_v4 = vld [vmem:[%s17708_s26 + $0x228] sm:$0xff]  }
  0x21   : > { %14837 = vmatprep.subr.bf16.mxu0 %v16638_v49  ;;  %v16649_v5 = vld [vmem:[%s17708_s26 + $0x270] sm:$0xff]   ;;  %v16656_v6 = vld [vmem:[%s17708_s26 + $0x2b8] sm:$0xff]   ;;  %v342_v7 = vld [vmem:[%s17723_s30 + $0x8] sm:$0xff] }
  0x22   : > { %v17793_v8 = vld [vmem:[%s17723_s30 + $0x20] sm:$0xff]  ;;  %v17813_v22 = vld [vmem:[%s17723_s30 + $0x28] sm:$0xff]  ;;  %v16653_v39 = vld [vmem:[%s17708_s26 + $0x278] sm:$0xff]  }
  0x23   : > { %14784 = vmatpush3.bf16.msra.mxu1 %v16614_v9  ;;  %v17796_v9 = vld [vmem:[%s17723_s30 + $0x38] sm:$0xff]  ;;  %v17800_v11 = vcombine.low %v342_v7, %v17793_v8  ;;  %v17803_v14 = vcombine.high %v342_v7, %v17793_v8  ;;  %v17816_v23 = vld [vmem:[%s17723_s30 + $0x40] sm:$0xff]  ;;  %v16672_v7 = vld [vmem:[%s17708_s26 + $0x88] sm:$0xff]  }
  0x24   : > { %14785 = vmatprep.subr.bf16.mxu1 %v16615_v10  ;;  %14838 = vmatpush3.bf16.msra.mxu0 %v16640_v51  ;;  %v351_v10 = vld [vmem:[%s17723_s30 + $0x50] sm:$0x11]  ;;  %v16664_v34 = vld [vmem:[%s17708_s26 + $0xc0] sm:$0xff]   ;;  %v16655_v43 = vld [vmem:[%s17708_s26 + $0x238] sm:$0xff]  }
  0x25   : > { %14839 = vmatprep.subr.bf16.mxu0 %v16642_v54  ;;  %v17807_v20 = vcombine.low %v17796_v9, %v351_v10  ;;  %v17810_v21 = vcombine.high %v17796_v9, %v351_v10  ;;  %v632_v25 = vshrl.u32 %v17803_v14, 16  ;;  %v620_v27 = vshrl.u32 %v17800_v11, 16 }
  0x26   : > { %v622_v28 = vshll.u32 %v17800_v11, 16 }
  0x27   : > { %14786 = vmatpush3.bf16.msra.mxu1 %v16616_v19  ;;  %v343_v19 = vld [vmem:[%s17723_s30 + $0x10] sm:$0xff]  ;;  %v639_v30 = vshll.u32 %v17810_v21, 16  ;;  %v627_v31 = vshll.u32 %v17807_v20, 16  ;;  %v673_v10 = vshrl.u32 %v17807_v20, 16 }
  0x28   : > { %14787 = vmatprep.subr.bf16.mxu1 %v16617_v24  ;;  %14840 = vmatpush3.bf16.msra.mxu0 %v16644_v56  ;;  %v352_v24 = vld [vmem:[%s17723_s30 + $0x58] sm:$0x11]  ;;  %v17827_v32 = vcombine.high %v343_v19, %v17813_v22  ;;  %v17834_v37 = vcombine.low %v343_v19, %v17813_v22 }
  0x29   : > { %14841 = vmatprep.subr.bf16.mxu0 %v16646_v59  ;;  %v17830_v33 = vcombine.high %v17816_v23, %v352_v24  ;;  %v641_v40 = vrot.slane %v639_v30, 1  ;;  %v16678_v30 = vld [vmem:[%s17708_s26 + $0xd8] sm:$0xff]  }
  0x2a   : > { %v656_v41 = vshrl.u32 %v17827_v32, 16  ;;  %v658_v42 = vshll.u32 %v17827_v32, 16  ;;  %v646_v49 = vshll.u32 %v17834_v37, 16 }
  0x2b   : > { %14788 = vmatpush3.bf16.msra.mxu1 %v16618_v26  ;;  %v634_v26 = vshll.u32 %v17803_v14, 16  ;;  %v663_v45 = vshll.u32 %v17830_v33, 16 }
  0x2c   : > { %14789 = vmatprep.subr.bf16.mxu1 %v16619_v29  ;;  %14842 = vmatpush3.bf16.msra.mxu0 %v16648_v61  ;;  %v16651_v29 = vld [vmem:[%s17708_s26 + $0x230] sm:$0xff]   ;;  %v648_v56 = vrot.slane %v646_v49, 1  ;;  %v16668_v61 = vld [vmem:[%s17708_s26 + $0x80] sm:$0xff]   ;;  %v16693_v49 = vld [vmem:[%s17708_s26 + $0x78] sm:$0xff]  }
  0x2d   : > { %14843 = vmatprep.subr.bf16.mxu0 %v16650_v63  ;;  %v636_v35 = vrot.slane %v634_v26, 1  ;;  %v665_v54 = vrot.slane %v663_v45, 1  ;;  %v16675_v26 = vld [vmem:[%s17708_s26 + $0x10] sm:$0xff]   ;;  %v16688_v45 = vld [vmem:[%s17708_s26 + $0xa8] sm:$0xff]  }
  0x2f   : > { %14790 = vmatpush3.bf16.msra.mxu1 %v16620_v36  ;;  %v624_v36 = vrot.slane %v622_v28, 1 }
  0x30   : > { %14803 = vmatprep.subr.bf16.mxu1 %v16625_v38  ;;  %14844 = vmatpush3.bf16.msra.mxu0 %v16652_v1  ;;  %v17837_v38 = vcombine.low %v17816_v23, %v352_v24  ;;  %v16674_v24 = vld [vmem:[%s17708_s26 + $0xd0] sm:$0xff]  }
  0x31   : > { %14845 = vmatprep.subr.bf16.mxu0 %v16654_v3  ;;  %v625_v52 = vor.u32 %v624_v36, %v620_v27  ;;  %v16682_v36 = vld [vmem:[%s17708_s26 + $0xe0] sm:$0xff]  }
  0x32   : > { %1018 = vmatmul.mubr.bf16.vlgmr.msra.gmra.mrb[0].mxu1 %v606_v46  ;;  %v660_v46 = vrot.slane %v658_v42, 1  ;;  %v16686_v42 = vld [vmem:[%s17708_s26 + $0xe8] sm:$0xff]  }
  0x33   : > { %14804 = vmatpush3.bf16.msra.mxu1 %v16627_v44  ;;  %1025 = vmatprep.mubr.bf16.mxu1 %v672_v48  ;;  %v637_v44 = vor.u32 %v636_v35, %v632_v25  ;;  %v644_v48 = vshrl.u32 %v17834_v37, 16  ;;  %v16673_v25 = vld [vmem:[%s17708_s26 + $0x50] sm:$0xff]   ;;  %v16680_v35 = vld [vmem:[%s17708_s26 + $0x98] sm:$0xff]  }
  0x34   : > { %14805 = vmatprep.subr.bf16.mxu1 %v16629_v47  ;;  %14846 = vmatpush3.bf16.msra.mxu0 %v16656_v6  ;;  %v16663_v47 = vld [vmem:[%s17708_s26 + $0x40] sm:$0xff]   ;;  %v679_v6 = vshrl.u32 %v17837_v38, 16 }
  0x35   : > { %14887 = vmatprep.subr.bf16.mxu0 %v16664_v34  ;;  %v642_v51 = vsel %vm594_vm0, %v637_v44, %v641_v40  ;;  %v16679_v34 = vld [vmem:[%s17708_s26 + $0x18] sm:$0xff]   ;;  %v16687_v44 = vld [vmem:[%s17708_s26 + $0x28] sm:$0xff]  }
  0x37   : > { %14806 = vmatpush3.bf16.msra.mxu1 %v16631_v50  ;;  %v651_v50 = vshll.u32 %v17837_v38, 16 }
  0x38   : > { %14807 = vmatprep.subr.bf16.mxu1 %v16633_v53  ;;  %v629_v53 = vrot.slane %v627_v31, 1  ;;  %v16677_v31 = vld [vmem:[%s17708_s26 + $0x58] sm:$0xff]  }
  0x3a   : > { %1026 = vmatmul.mubr.bf16.gmra.mrb[4].mxu1 %v669_v57  ;;  %v653_v57 = vrot.slane %v651_v50, 1  ;;  %v630_v63 = vsel %vm594_vm0, %v625_v52, %v629_v53  ;;  %v675_v28 = vor.u32 %v673_v10, %v629_v53  ;;  %v16695_v50 = vld [vmem:[%s17708_s26 + $0x38] sm:$0xff]   ;;  %v16698_v52 = vld [vmem:[%s17708_s26 + $0x340] sm:$0xff]   ;;  %v16724_v10 = vld [vmem:[%s17708_s26 + $0x330] sm:$0xff]  }
  0x3b   : > { %14808 = vmatpush3.bf16.msra.mxu1 %v16635_v55  ;;  %1066 = vmatprep.mubr.bf16.mxu1 %v642_v51  ;;  %v661_v55 = vor.u32 %v660_v46, %v656_v41  ;;  %v16684_v41 = vld [vmem:[%s17708_s26 + $0xa0] sm:$0xff]   ;;  %v16691_v46 = vld [vmem:[%s17708_s26 + $0x30] sm:$0xff]   ;;  %v16696_v51 = vld [vmem:[%s17708_s26 + $0xb8] sm:$0xff]  }
  0x3c   : > { %14809 = vmatprep.subr.bf16.mxu1 %v16637_v58  ;;  %v16667_v58 = vld [vmem:[%s17708_s26] sm:$0xff]   ;;  %v681_v27 = vor.u32 %v679_v6, %v653_v57  ;;  %v16721_v6 = vld [vmem:[%s17708_s26 + $0x170] sm:$0xff]  }
  0x3d   : > { %v666_v59 = vsel %vm594_vm0, %v661_v55, %v665_v54  ;;  %v16697_v53 = vld [vmem:[%s17708_s26 + $0x140] sm:$0xff]  }
  0x3e   : > { %1115 = vmatprep.mubr.bf16.mxu0 %v666_v59  ;;  %v16700_v55 = vld [vmem:[%s17708_s26 + $0x300] sm:$0xff]   ;;  %v16704_v59 = vld [vmem:[%s17708_s26 + $0x308] sm:$0xff]  }
  0x3f   : > { %14810 = vmatpush3.bf16.msra.mxu1 %v16639_v60  ;;  %v649_v60 = vor.u32 %v648_v56, %v644_v48  ;;  %v16694_v48 = vld [vmem:[%s17708_s26 + $0xf8] sm:$0xff]   ;;  %v16702_v56 = vld [vmem:[%s17708_s26 + $0x348] sm:$0xff]  }
  0x40   : > { %14811 = vmatprep.subr.bf16.mxu1 %v16641_v62  ;;  %v676_v62 = vshrl.u32 %v17810_v21, 16 }
  0x41   : > { %v654_v1 = vsel %vm594_vm0, %v649_v60, %v653_v57  ;;  %v16701_v57 = vld [vmem:[%s17708_s26 + $0x148] sm:$0xff]   ;;  %v16706_v60 = vld [vmem:[%s17708_s26 + $0x350] sm:$0xff]  }
  0x42   : > { %v678_v3 = vor.u32 %v676_v62, %v641_v40  ;;  %1116 = vmatmul.mubr.bf16.vlgmr.msra.gmra.mrb[0].mxu0 %v654_v1  ;;  %v16683_v40 = vld [vmem:[%s17708_s26 + $0x20] sm:$0xff]   ;;  %v16708_v62 = vld [vmem:[%s17708_s26 + $0x310] sm:$0xff]  }
  0x43   : > { %14812 = vmatpush3.bf16.msra.mxu1 %v16643_v0  ;;  %v16670_v0 = vld [vmem:[%s17708_s26 + $0xc8] sm:$0xff]   ;;  %14888 = vmatpush3.bf16.msra.mxu0 %v16668_v61  ;;  %v16705_v61 = vld [vmem:[%s17708_s26 + $0x150] sm:$0xff]   ;;  %v16713_v1 = vld [vmem:[%s17708_s26 + $0x160] sm:$0xff]  }
  0x44   : > { %14813 = vmatprep.subr.bf16.mxu1 %v16645_v2  ;;  %v16669_v2 = vld [vmem:[%s17708_s26 + $0x48] sm:$0xff]   ;;  %14889 = vmatprep.subr.bf16.mxu0 %v16670_v0  ;;  %v16711_v0 = vld [vmem:[%s17708_s26 + $0x118] sm:$0xff]  }
  0x47   : > { %14814 = vmatpush3.bf16.msra.mxu1 %v16647_v4  ;;  %v682_v4 = vshrl.u32 %v17830_v33, 16  ;;  %14890 = vmatpush3.bf16.msra.mxu0 %v16672_v7  ;;  %v16723_v7 = vld [vmem:[%s17708_s26 + $0x130] sm:$0xff]  }
  0x48   : > { %14815 = vmatprep.subr.bf16.mxu1 %v16649_v5  ;;  %v16671_v5 = vld [vmem:[%s17708_s26 + $0x8] sm:$0xff]   ;;  %14891 = vmatprep.subr.bf16.mxu0 %v16674_v24  ;;  %v1579_v24 = vld [vmem:[%s17723_s30] sm:$0xee] }
  0x49   : > { %v684_v19 = vor.u32 %v682_v4, %v665_v54  ;;  %v16699_v54 = vld [vmem:[%s17708_s26 + $0x100] sm:$0xff]   ;;  %v16719_v4 = vld [vmem:[%s17708_s26 + $0x128] sm:$0xff]  }
  0x4b   : > { %14816 = vmatpush3.bf16.msra.mxu1 %v16651_v29  ;;  %1123 = vmatprep.mubr.bf16.mxu0 %v684_v19  ;;  %v16676_v29 = vld [vmem:[%s17708_s26 + $0x90] sm:$0xff]   ;;  %v16726_v19 = vld [vmem:[%s17708_s26 + $0x378] sm:$0xff]  }
  0x4c   : > { %14817 = vmatprep.subr.bf16.mxu1 %v16653_v39  ;;  %1124 = vmatmul.mubr.bf16.gmra.mrb[4].mxu0 %v681_v27  ;;  %v16681_v39 = vld [vmem:[%s17708_s26 + $0x60] sm:$0xff]   ;;  %v17928_v27 = vcombine.low %v1579_v24, %v17729_v12 }
  0x4d   : > { %14892 = vmatpush3.bf16.msra.mxu0 %v16676_v29  ;;  %1513 = vmatprep.mubr.bf16.mxu0 %v17803_v14  ;;  %v16689_v14 = vld [vmem:[%s17708_s26 + $0x70] sm:$0xff]  }
  0x4e   : > { %14893 = vmatprep.subr.bf16.mxu0 %v16678_v30 }
  0x4f   : > { %14818 = vmatpush3.bf16.msra.mxu1 %v16655_v43  ;;  %v16685_v43 = vld [vmem:[%s17708_s26 + $0x68] sm:$0xff]  }
  0x50   : > { %14859 = vmatprep.subr.bf16.mxu1 %v16663_v47  ;;  %v16692_v47 = vld [vmem:[%s17708_s26 + $0xb0] sm:$0xff]  }
  0x51   : > { %14894 = vmatpush3.bf16.msra.mxu0 %v16680_v35 }
  0x52   : > { %1067 = vmatmul.mubr.bf16.vlgmr.msra.gmra.mrb[8].mxu1 %v630_v63  ;;  %14895 = vmatprep.subr.bf16.mxu0 %v16682_v36  ;;  %v16709_v63 = vld [vmem:[%s17708_s26 + $0x158] sm:$0xff]  }
  0x53   : > { %14860 = vmatpush3.bf16.msra.mxu1 %v16667_v58  ;;  %1074 = vmatprep.mubr.bf16.mxu1 %v678_v3  ;;  %v16703_v58 = vld [vmem:[%s17708_s26 + $0x108] sm:$0xff]  }
  0x54   : > { %14861 = vmatprep.subr.bf16.mxu1 %v16669_v2  ;;  %v16715_v2 = vld [vmem:[%s17708_s26 + $0x120] sm:$0xff]   ;;  %v16717_v3 = vld [vmem:[%s17708_s26 + $0x168] sm:$0xff]  }
  0x55   : > { %14896 = vmatpush3.bf16.msra.mxu0 %v16684_v41  ;;  %v16733_v41 = vld [vmem:[%s17708_s26 + $0x3c0] sm:$0xff]  }
  0x56   : > { %14897 = vmatprep.subr.bf16.mxu0 %v16686_v42  ;;  %v16735_v42 = vld [vmem:[%s17708_s26 + $0x380] sm:$0xff]  }
  0x57   : > { %14862 = vmatpush3.bf16.msra.mxu1 %v16671_v5  ;;  %v16720_v5 = vld [vmem:[%s17708_s26 + $0x328] sm:$0xff]  }
  0x58   : > { %14863 = vmatprep.subr.bf16.mxu1 %v16673_v25  ;;  %v1582_v25 = vld [vmem:[%s17723_s30 + $0x48] sm:$0x33] }
  0x59   : > { %14898 = vmatpush3.bf16.msra.mxu0 %v16688_v45  ;;  %v17934_v29 = vcombine.low %v17732_v13, %v1582_v25  ;;  %v17937_v30 = vcombine.high %v17732_v13, %v1582_v25  ;;  %v16734_v13 = vld [vmem:[%s17708_s26 + $0x440] sm:$0xff]   ;;  %v16738_v45 = vld [vmem:[%s17708_s26 + $0x448] sm:$0xff]  }
  0x5a   : > { %1075 = vmatmul.mubr.bf16.gmra.mrb[12].mxu1 %v675_v28  ;;  %v17931_v28 = vcombine.high %v1579_v24, %v17729_v12  ;;  %v1713_v12 = vrot.slane %v17928_v27, 1 }
  0x5b   : > { %14864 = vmatpush3.bf16.msra.mxu1 %v16675_v26  ;;  %1464 = vmatprep.mubr.bf16.mxu1 %v17736_v15  ;;  %v16690_v15 = vld [vmem:[%s17708_s26 + $0xf0] sm:$0xff]   ;;  %v16725_v26 = vld [vmem:[%s17708_s26 + $0x178] sm:$0xff]   ;;  %v1717_v36 = vrot.slane %v17937_v30, 1 }
  0x5c   : > { %14865 = vmatprep.subr.bf16.mxu1 %v16677_v31  ;;  %14899 = vmatprep.subr.bf16.mxu0 %v16690_v15  ;;  %v16727_v31 = vld [vmem:[%s17708_s26 + $0x138] sm:$0xff]   ;;  %v1716_v35 = vrot.slane %v17931_v28, 1  ;;  %v16737_v15 = vld [vmem:[%s17708_s26 + $0x3c8] sm:$0xff]  }
  0x5d   : > { %14900 = vmatpush3.bf16.msra.mxu0 %v16692_v47  ;;  %v16742_v47 = vld [vmem:[%s17708_s26 + $0x450] sm:$0xff]  }
  0x5e   : > { %14901 = vmatprep.subr.bf16.mxu0 %v16694_v48  ;;  %v16741_v48 = vld [vmem:[%s17708_s26 + $0x3d0] sm:$0xff]  }
  0x5f   : > { %14866 = vmatpush3.bf16.msra.mxu1 %v16679_v34  ;;  %v16728_v34 = vld [vmem:[%s17708_s26 + $0x338] sm:$0xff]  }
  0x60   : > { %14867 = vmatprep.subr.bf16.mxu1 %v16681_v39  ;;  %v1714_v39 = vrot.slane %v17934_v29, 1 }
  0x61   : > { %14902 = vmatpush3.bf16.msra.mxu0 %v16696_v51  ;;  %v16745_v51 = vld [vmem:[%s17708_s26 + $0x3d8] sm:$0xff]  }
  0x62   : > { %14943 = vmatprep.subr.bf16.mxu0 %v16698_v52  ;;  %v16747_v52 = vld [vmem:[%s17708_s26 + $0x398] sm:$0xff]  }
  0x63   : > { %14868 = vmatpush3.bf16.msra.mxu1 %v16683_v40  ;;  %v1718_v40 = vsel %vm1712_vm1, %v1716_v35, %v1717_v36  ;;  %v16773_v35 = vld [vmem:[%s17708_s26 + $0x4c0] sm:$0xff]  }
  0x64   : > { %14869 = vmatprep.subr.bf16.mxu1 %v16685_v43  ;;  %1514 = vmatmul.mubr.bf16.vlgmr.msra.gmra.mrb[8].mxu0 %v17800_v11  ;;  %v16707_v11 = vld [vmem:[%s17708_s26 + $0x110] sm:$0xff]   ;;  %v1715_v43 = vsel %vm1712_vm1, %v1713_v12, %v1714_v39 }
  0x65   : > { %14944 = vmatpush3.bf16.msra.mxu0 %v16700_v55  ;;  %1521 = vmatprep.mubr.bf16.mxu0 %v17810_v21  ;;  %v16714_v21 = vld [vmem:[%s17708_s26 + $0x360] sm:$0xff]  }
  0x66   : > { %14945 = vmatprep.subr.bf16.mxu0 %v16702_v56  ;;  %v16751_v55 = vld [vmem:[%s17708_s26 + $0x3a0] sm:$0xff]  }
  0x67   : > { %14870 = vmatpush3.bf16.msra.mxu1 %v16687_v44  ;;  %v16736_v44 = vld [vmem:[%s17708_s26 + $0x400] sm:$0xff]  }
  0x68   : > { %14871 = vmatprep.subr.bf16.mxu1 %v16689_v14  ;;  %v16739_v14 = vld [vmem:[%s17708_s26 + $0x388] sm:$0xff]   ;;  %v16752_v56 = vld [vmem:[%s17708_s26 + $0x420] sm:$0xff]  }
  0x69   : > { %14946 = vmatpush3.bf16.msra.mxu0 %v16704_v59  ;;  %v2298_v59 = vshrl.u32 %v17931_v28, 16 }
  0x6a   : > { %14947 = vmatprep.subr.bf16.mxu0 %v16706_v60  ;;  %v16756_v60 = vld [vmem:[%s17708_s26 + $0x428] sm:$0xff]  }
  0x6b   : > { %14872 = vmatpush3.bf16.msra.mxu1 %v16691_v46  ;;  %v16740_v46 = vld [vmem:[%s17708_s26 + $0x408] sm:$0xff]  }
  0x6c   : > { %14873 = vmatprep.subr.bf16.mxu1 %v16693_v49  ;;  %1522 = vmatmul.mubr.bf16.gmra.mrb[12].mxu0 %v17807_v20  ;;  %v16716_v20 = vld [vmem:[%s17708_s26 + $0x320] sm:$0xff]   ;;  %v16743_v49 = vld [vmem:[%s17708_s26 + $0x390] sm:$0xff]  }
  0x6d   : > { %14948 = vmatpush3.bf16.msra.mxu0 %v16708_v62  ;;  %2063 = vmatprep.mubr.bf16.mxu0 %v1718_v40  ;;  %v16757_v62 = vld [vmem:[%s17708_s26 + $0x3f0] sm:$0xff]   ;;  %v16775_v40 = vld [vmem:[%s17708_s26 + $0x480] sm:$0xff]  }
  0x6f   : > { %14874 = vmatpush3.bf16.msra.mxu1 %v16695_v50  ;;  %v16744_v50 = vld [vmem:[%s17708_s26 + $0x410] sm:$0xff]  }
  0x70   : > { %14915 = vmatprep.subr.bf16.mxu1 %v16697_v53  ;;  %v16750_v53 = vld [vmem:[%s17708_s26 + $0x460] sm:$0xff]  }
  0x72   : > { %1465 = vmatmul.mubr.bf16.vlgmr.msra.gmra.mrb[16].mxu1 %v17739_v16  ;;  %v16710_v16 = vld [vmem:[%s17708_s26 + $0x358] sm:$0xff]  }
  0x73   : > { %14916 = vmatpush3.bf16.msra.mxu1 %v16699_v54  ;;  %1472 = vmatprep.mubr.bf16.mxu1 %v17742_v17  ;;  %v16712_v17 = vld [vmem:[%s17708_s26 + $0x318] sm:$0xff]   ;;  %v16749_v54 = vld [vmem:[%s17708_s26 + $0x3e0] sm:$0xff]  }
  0x74   : > { %14917 = vmatprep.subr.bf16.mxu1 %v16701_v57  ;;  %14949 = vmatprep.subr.bf16.mxu0 %v16710_v16  ;;  %v16754_v57 = vld [vmem:[%s17708_s26 + $0x468] sm:$0xff]   ;;  %v16759_v16 = vld [vmem:[%s17708_s26 + $0x3b0] sm:$0xff]  }
  0x75   : > { %14950 = vmatpush3.bf16.msra.mxu0 %v16712_v17 }
  0x76   : > { %14951 = vmatprep.subr.bf16.mxu0 %v16714_v21  ;;  %v16762_v21 = vld [vmem:[%s17708_s26 + $0x478] sm:$0xff]  }
  0x77   : > { %14918 = vmatpush3.bf16.msra.mxu1 %v16703_v58  ;;  %v16755_v58 = vld [vmem:[%s17708_s26 + $0x3a8] sm:$0xff]  }
  0x78   : > { %14919 = vmatprep.subr.bf16.mxu1 %v16705_v61  ;;  %v2301_v61 = vshll.u32 %v17931_v28, 16 }
  0x79   : > { %14952 = vmatpush3.bf16.msra.mxu0 %v16716_v20  ;;  %v1580_v20 = vld [vmem:[%s17723_s30 + $0x8] sm:$0xee] }
  0x7a   : > { %1473 = vmatmul.mubr.bf16.gmra.mrb[20].mxu1 %v17745_v18  ;;  %v16718_v18 = vld [vmem:[%s17708_s26 + $0x368] sm:$0xff]   ;;  %v17982_v17 = vrot.slane %v2301_v61, 2  ;;  %v16788_v61 = vld [vmem:[%s17708_s26 + $0x518] sm:$0xff]  }
  0x7b   : > { %14920 = vmatpush3.bf16.msra.mxu1 %v16707_v11  ;;  %1562 = vmatprep.mubr.bf16.mxu1 %v17827_v32  ;;  %v16722_v32 = vld [vmem:[%s17708_s26 + $0x370] sm:$0xff]  }
  0x7c   : > { %14921 = vmatprep.subr.bf16.mxu1 %v16709_v63  ;;  %14953 = vmatprep.subr.bf16.mxu0 %v16718_v18  ;;  %v16758_v11 = vld [vmem:[%s17708_s26 + $0x470] sm:$0xff]   ;;  %v17979_v63 = vrot.slane %v2298_v59, 1  ;;  %v2309_v18 = vshll.u32 %v17937_v30, 16 }
  0x7d   : > { %14954 = vmatpush3.bf16.msra.mxu0 %v16720_v5  ;;  %v17992_v5 = vcombine.low %v1580_v20, %v17793_v8 }
  0x7e   : > { %14955 = vmatprep.subr.bf16.mxu0 %v16722_v32  ;;  %v17995_v32 = vcombine.high %v1580_v20, %v17793_v8  ;;  %v16792_v20 = vld [vmem:[%s17708_s26 + $0x520] sm:$0xff]  }
  0x7f   : > { %14922 = vmatpush3.bf16.msra.mxu1 %v16711_v0  ;;  %v16760_v0 = vld [vmem:[%s17708_s26 + $0x430] sm:$0xff]   ;;  %v1719_v28 = vrot.slane %v17992_v5, 1 }
  0x80   : > { %14923 = vmatprep.subr.bf16.mxu1 %v16713_v1  ;;  %v2306_v1 = vshrl.u32 %v17937_v30, 16  ;;  %v1722_v8 = vrot.slane %v17995_v32, 1  ;;  %v2335_v59 = vshll.u32 %v17995_v32, 16 }
  0x81   : > { %14956 = vmatpush3.bf16.msra.mxu0 %v16724_v10  ;;  %v16764_v10 = vld [vmem:[%s17708_s26 + $0x438] sm:$0xff]  }
  0x82   : > { %14957 = vmatprep.subr.bf16.mxu0 %v16726_v19 }
  0x83   : > { %14924 = vmatpush3.bf16.msra.mxu1 %v16715_v2  ;;  %v16761_v2 = vld [vmem:[%s17708_s26 + $0x3f8] sm:$0xff]  }
  0x84   : > { %14925 = vmatprep.subr.bf16.mxu1 %v16717_v3  ;;  %v16763_v3 = vld [vmem:[%s17708_s26 + $0x3b8] sm:$0xff]  }
  0x85   : > { %14958 = vmatpush3.bf16.msra.mxu0 %v16728_v34 }
  0x86   : > { %14999 = vmatprep.subr.bf16.mxu0 %v16734_v13 }
  0x87   : > { %14926 = vmatpush3.bf16.msra.mxu1 %v16719_v4  ;;  %v1583_v4 = vld [vmem:[%s17723_s30 + $0x50] sm:$0x33] }
  0x88   : > { %14927 = vmatprep.subr.bf16.mxu1 %v16721_v6  ;;  %2064 = vmatmul.mubr.bf16.vlgmr.msra.gmra.mrb[16].mxu0 %v1715_v43  ;;  %v1581_v6 = vld [vmem:[%s17723_s30 + $0x10] sm:$0xee]  ;;  %v18001_v19 = vcombine.low %v17796_v9, %v1583_v4  ;;  %v18004_v24 = vcombine.high %v17796_v9, %v1583_v4  ;;  %v2315_v4 = vshrl.u32 %v17992_v5, 16 }
  0x89   : > { %15000 = vmatpush3.bf16.msra.mxu0 %v16736_v44  ;;  %2071 = vmatprep.mubr.bf16.mxu0 %v1717_v36  ;;  %v18007_v25 = vcombine.low %v1581_v6, %v17813_v22  ;;  %v16774_v36 = vld [vmem:[%s17708_s26 + $0x540] sm:$0xff]  }
  0x8a   : > { %15001 = vmatprep.subr.bf16.mxu0 %v16738_v45 }
  0x8b   : > { %14928 = vmatpush3.bf16.msra.mxu1 %v16723_v7  ;;  %v1584_v7 = vld [vmem:[%s17723_s30 + $0x58] sm:$0x33]  ;;  %v1725_v12 = vrot.slane %v18007_v25, 1 }
  0x8c   : > { %14929 = vmatprep.subr.bf16.mxu1 %v16725_v26  ;;  %v18010_v26 = vcombine.high %v1581_v6, %v17813_v22  ;;  %v18015_v30 = vcombine.low %v17816_v23, %v1584_v7  ;;  %v18018_v9 = vcombine.high %v17816_v23, %v1584_v7  ;;  %v1720_v22 = vrot.slane %v18001_v19, 1  ;;  %v16795_v7 = vld [vmem:[%s17708_s26 + $0x4a8] sm:$0xff]  }
  0x8d   : > { %15002 = vmatpush3.bf16.msra.mxu0 %v16740_v46  ;;  %v16778_v46 = vld [vmem:[%s17708_s26 + $0x548] sm:$0xff]   ;;  %v2318_v6 = vshll.u32 %v17992_v5, 16 }
  0x8e   : > { %15003 = vmatprep.subr.bf16.mxu0 %v16742_v47  ;;  %v1728_v34 = vrot.slane %v18010_v26, 1  ;;  %v1726_v13 = vrot.slane %v18015_v30, 1  ;;  %v1721_v43 = vsel %vm1712_vm1, %v1719_v28, %v1720_v22  ;;  %v2284_v47 = vshll.u32 %v17928_v27, 16  ;;  %v16797_v28 = vld [vmem:[%s17708_s26 + $0x4f0] sm:$0xff]  }
  0x8f   : > { %14930 = vmatpush3.bf16.msra.mxu1 %v16727_v31  ;;  %v1723_v31 = vrot.slane %v18004_v24, 1 }
  0x90   : > { %14971 = vmatprep.subr.bf16.mxu1 %v16733_v41  ;;  %2072 = vmatmul.mubr.bf16.gmra.mrb[20].mxu0 %v1714_v39  ;;  %v1729_v39 = vrot.slane %v18018_v9, 1  ;;  %v16776_v41 = vld [vmem:[%s17708_s26 + $0x500] sm:$0xff]   ;;  %v1727_v45 = vsel %vm1712_vm1, %v1725_v12, %v1726_v13 }
  0x91   : > { %15004 = vmatpush3.bf16.msra.mxu0 %v16744_v50  ;;  %v1724_v23 = vsel %vm1712_vm1, %v1722_v8, %v1723_v31  ;;  %v16780_v50 = vld [vmem:[%s17708_s26 + $0x508] sm:$0xff]   ;;  %v2326_v8 = vshll.u32 %v18001_v19, 16 }
  0x92   : > { %1563 = vmatmul.mubr.bf16.vlgmr.msra.gmra.mrb[24].mxu1 %v17834_v37  ;;  %v16746_v37 = vld [vmem:[%s17708_s26 + $0x458] sm:$0xff]   ;;  %v1730_v44 = vsel %vm1712_vm1, %v1728_v34, %v1729_v39  ;;  %v2320_v34 = vrot.slane %v2318_v6, 2  ;;  %v2349_v6 = vshrl.u32 %v18007_v25, 16 }
  0x93   : > { %14972 = vmatpush3.bf16.msra.mxu1 %v16735_v42  ;;  %1570 = vmatprep.mubr.bf16.mxu1 %v17830_v33  ;;  %v16748_v33 = vld [vmem:[%s17708_s26 + $0x418] sm:$0xff]   ;;  %v18031_v42 = vrot.slane %v2306_v1, 1  ;;  %v16791_v1 = vld [vmem:[%s17708_s26 + $0x4a0] sm:$0xff]   ;;  %v2328_v12 = vrot.slane %v2326_v8, 2  ;;  %v2357_v8 = vshrl.u32 %v18015_v30, 16 }
  0x94   : > { %14973 = vmatprep.subr.bf16.mxu1 %v16737_v15  ;;  %15005 = vmatprep.subr.bf16.mxu0 %v16746_v37  ;;  %v16777_v15 = vld [vmem:[%s17708_s26 + $0x4c8] sm:$0xff]   ;;  %v2289_v37 = vshrl.u32 %v17934_v29, 16 }
  0x95   : > { %15006 = vmatpush3.bf16.msra.mxu0 %v16748_v33  ;;  %2161 = vmatprep.mubr.bf16.mxu0 %v1730_v44  ;;  %v18049_v33 = vrot.slane %v2284_v47, 2  ;;  %v16803_v44 = vld [vmem:[%s17708_s26 + $0x4b8] sm:$0xff]   ;;  %v2369_v47 = vshll.u32 %v18010_v26, 16 }
  0x96   : > { %15007 = vmatprep.subr.bf16.mxu0 %v16750_v53  ;;  %v16783_v53 = vld [vmem:[%s17708_s26 + $0x490] sm:$0xff]  }
  0x97   : > { %14974 = vmatpush3.bf16.msra.mxu1 %v16739_v14  ;;  %v2281_v14 = vshrl.u32 %v17928_v27, 16  ;;  %v16782_v27 = vld [vmem:[%s17708_s26 + $0x550] sm:$0xff]  }
  0x98   : > { %14975 = vmatprep.subr.bf16.mxu1 %v16741_v48  ;;  %v16779_v48 = vld [vmem:[%s17708_s26 + $0x488] sm:$0xff]  }
  0x99   : > { %15008 = vmatpush3.bf16.msra.mxu0 %v16752_v56  ;;  %v18054_v56 = vrot.slane %v2289_v37, 1  ;;  %v2377_v37 = vshll.u32 %v18018_v9, 16 }
  0x9a   : > { %1571 = vmatmul.mubr.bf16.gmra.mrb[28].mxu1 %v17837_v38  ;;  %v16753_v38 = vld [vmem:[%s17708_s26 + $0x3e8] sm:$0xff]   ;;  %15009 = vmatprep.subr.bf16.mxu0 %v16754_v57  ;;  %v16785_v57 = vld [vmem:[%s17708_s26 + $0x4d8] sm:$0xff]  }
  0x9b   : > { %14976 = vmatpush3.bf16.msra.mxu1 %v16743_v49  ;;  %2112 = vmatprep.mubr.bf16.mxu1 %v1724_v23  ;;  %v18041_v49 = vrot.slane %v2309_v18, 2 }
  0x9c   : > { %14977 = vmatprep.subr.bf16.mxu1 %v16745_v51  ;;  %v16781_v51 = vld [vmem:[%s17708_s26 + $0x4d0] sm:$0xff]  }
  0x9d   : > { %15010 = vmatpush3.bf16.msra.mxu0 %v16756_v60  ;;  %v16787_v60 = vld [vmem:[%s17708_s26 + $0x498] sm:$0xff]   ;;  %v2312_v23 = vor.u32 %v18041_v49, %v18031_v42  ;;  %v16805_v49 = vld [vmem:[%s17708_s26 + $0x5c0] sm:$0xff]  }
  0x9e   : > { %15011 = vmatprep.subr.bf16.mxu0 %v16758_v11  ;;  %v2343_v11 = vshll.u32 %v18004_v24, 16 }
  0x9f   : > { %14978 = vmatpush3.bf16.msra.mxu1 %v16747_v52  ;;  %v18046_v52 = vrot.slane %v2281_v14, 1 }
  0xa0   : > { %14979 = vmatprep.subr.bf16.mxu1 %v16749_v54  ;;  %v2292_v54 = vshll.u32 %v17934_v29, 16  ;;  %v2340_v29 = vshrl.u32 %v18004_v24, 16  ;;  %v2345_v18 = vrot.slane %v2343_v11, 2  ;;  %v16796_v24 = vld [vmem:[%s17708_s26 + $0x528] sm:$0xff]   ;;  %v16815_v11 = vld [vmem:[%s17708_s26 + $0x590] sm:$0xff]  }
  0xa1   : > { %15012 = vmatpush3.bf16.msra.mxu0 %v16760_v0  ;;  %v16790_v0 = vld [vmem:[%s17708_s26 + $0x560] sm:$0xff]  }
  0xa2   : > { %15013 = vmatprep.subr.bf16.mxu0 %v16762_v21  ;;  %v2337_v21 = vrot.slane %v2335_v59, 2  ;;  %v16813_v59 = vld [vmem:[%s17708_s26 + $0x5d0] sm:$0xff]  }
  0xa3   : > { %14980 = vmatpush3.bf16.msra.mxu1 %v16751_v55  ;;  %v16784_v55 = vld [vmem:[%s17708_s26 + $0x510] sm:$0xff]  }
  0xa4   : > { %14981 = vmatprep.subr.bf16.mxu1 %v16753_v38  ;;  %v2332_v38 = vshrl.u32 %v17995_v32, 16  ;;  %v16794_v32 = vld [vmem:[%s17708_s26 + $0x568] sm:$0xff]  }
  0xa5   : > { %15014 = vmatpush3.bf16.msra.mxu0 %v16764_v10  ;;  %v2323_v10 = vshrl.u32 %v18001_v19, 16  ;;  %v16802_v19 = vld [vmem:[%s17708_s26 + $0x578] sm:$0xff]  }
  0xa6   : > { %15055 = vmatprep.subr.bf16.mxu0 %v16774_v36  ;;  %v16800_v36 = vld [vmem:[%s17708_s26 + $0x530] sm:$0xff]  }
  0xa7   : > { %14982 = vmatpush3.bf16.msra.mxu1 %v16755_v58  ;;  %v16786_v58 = vld [vmem:[%s17708_s26 + $0x558] sm:$0xff]   ;;  %v2325_v5 = vrot.slane %v2323_v10, 1  ;;  %v2352_v10 = vshll.u32 %v18007_v25, 16  ;;  %v16831_v25 = vld [vmem:[%s17708_s26 + $0x5b0] sm:$0xff]  }
  0xa8   : > { %14983 = vmatprep.subr.bf16.mxu1 %v16757_v62  ;;  %2162 = vmatmul.mubr.bf16.vlgmr.msra.gmra.mrb[24].mxu0 %v1727_v45  ;;  %v16789_v62 = vld [vmem:[%s17708_s26 + $0x4e0] sm:$0xff]   ;;  %v2366_v45 = vshrl.u32 %v18010_v26, 16 }
  0xa9   : > { %15056 = vmatpush3.bf16.msra.mxu0 %v16776_v41  ;;  %2169 = vmatprep.mubr.bf16.mxu0 %v1729_v39  ;;  %v16801_v39 = vld [vmem:[%s17708_s26 + $0x4f8] sm:$0xff]   ;;  %v16806_v26 = vld [vmem:[%s17708_s26 + $0x640] sm:$0xff]  }
  0xaa   : > { %15057 = vmatprep.subr.bf16.mxu0 %v16778_v46  ;;  %v2329_v46 = vor.u32 %v2328_v12, %v2325_v5  ;;  %v2354_v5 = vrot.slane %v2352_v10, 2  ;;  %v16832_v12 = vld [vmem:[%s17708_s26 + $0x630] sm:$0xff]   ;;  %v16862_v10 = vld [vmem:[%s17708_s26 + $0x768] sm:$0xff]  }
  0xab   : > { %14984 = vmatpush3.bf16.msra.mxu1 %v16759_v16  ;;  %v2334_v16 = vrot.slane %v2332_v38, 1  ;;  %v16811_v38 = vld [vmem:[%s17708_s26 + $0x588] sm:$0xff]  }
  0xac   : > { %14985 = vmatprep.subr.bf16.mxu1 %v16761_v2  ;;  %v2342_v2 = vrot.slane %v2340_v29, 1 }
  0xad   : > { %15058 = vmatpush3.bf16.msra.mxu0 %v16780_v50  ;;  %v2338_v41 = vor.u32 %v2337_v21, %v2334_v16  ;;  %v2374_v50 = vshrl.u32 %v18018_v9, 16  ;;  %v16810_v9 = vld [vmem:[%s17708_s26 + $0x648] sm:$0xff]   ;;  %v16817_v16 = vld [vmem:[%s17708_s26 + $0x5d8] sm:$0xff]  }
  0xae   : > { %15059 = vmatprep.subr.bf16.mxu0 %v16782_v27  ;;  %v2368_v27 = vrot.slane %v2366_v45, 1  ;;  %v17613_v45 = vld [vmem:[%s17723_s30 + $0x18] sm:$0xff] }
  0xaf   : > { %14986 = vmatpush3.bf16.msra.mxu1 %v16763_v3  ;;  %v16793_v3 = vld [vmem:[%s17708_s26 + $0x4e8] sm:$0xff]  }
  0xb0   : > { %15027 = vmatprep.subr.bf16.mxu1 %v16773_v35  ;;  %2170 = vmatmul.mubr.bf16.gmra.mrb[28].mxu0 %v1726_v13  ;;  %v16799_v35 = vld [vmem:[%s17708_s26 + $0x4b0] sm:$0xff]   ;;  %v2294_v13 = vrot.slane %v2292_v54, 2  ;;  %v2371_v54 = vrot.slane %v2369_v47, 2 }
  0xb1   : > { %15060 = vmatpush3.bf16.msra.mxu0 %v16784_v55  ;;  %v16809_v55 = vld [vmem:[%s17708_s26 + $0x5c8] sm:$0xff]  }
  0xb2   : > { %2113 = vmatmul.mubr.bf16.vlgmr.msra.gmra.mrb[32].mxu1 %v1721_v43  ;;  %15061 = vmatprep.subr.bf16.mxu0 %v16786_v58  ;;  %v2346_v43 = vor.u32 %v2345_v18, %v2342_v2  ;;  %v16812_v58 = vld [vmem:[%s17708_s26 + $0x608] sm:$0xff]   ;;  %v2372_v29 = vor.u32 %v2371_v54, %v2368_v27  ;;  %v16820_v2 = vld [vmem:[%s17708_s26 + $0x618] sm:$0xff]   ;;  %v16822_v18 = vld [vmem:[%s17708_s26 + $0x660] sm:$0xff]  }
  0xb3   : > { %15028 = vmatpush3.bf16.msra.mxu1 %v16775_v40  ;;  %2120 = vmatprep.mubr.bf16.mxu1 %v1723_v31  ;;  %v2317_v31 = vrot.slane %v2315_v4, 1  ;;  %v2304_v40 = vor.u32 %v17982_v17, %v17979_v63  ;;  %v2287_v63 = vor.u32 %v18049_v33, %v18046_v52  ;;  %v2295_v17 = vor.u32 %v2294_v13, %v18054_v56  ;;  %v16807_v52 = vld [vmem:[%s17708_s26 + $0x580] sm:$0xff]   ;;  %v16834_v13 = vld [vmem:[%s17708_s26 + $0x678] sm:$0xff]   ;;  %v16846_v54 = vld [vmem:[%s17708_s26 + $0x748] sm:$0xff]  }
  0xb4   : > { %15029 = vmatprep.subr.bf16.mxu1 %v16777_v15  ;;  %v16804_v15 = vld [vmem:[%s17708_s26 + $0x538] sm:$0xff]   ;;  %v2376_v56 = vrot.slane %v2374_v50, 1  ;;  %v16824_v4 = vld [vmem:[%s17708_s26 + $0x620] sm:$0xff]  }
  0xb5   : > { %15062 = vmatpush3.bf16.msra.mxu0 %v16788_v61  ;;  %v2321_v14 = vor.u32 %v2320_v34, %v2317_v31  ;;  %v2313_v42 = vsel %vm2279_vm2, %v2304_v40, %v2312_v23  ;;  %v2296_v33 = vsel %vm2279_vm2, %v2287_v63, %v2295_v17  ;;  %v2360_v31 = vshll.u32 %v18015_v30, 16  ;;  %v16833_v30 = vld [vmem:[%s17708_s26 + $0x5f8] sm:$0xff]  }
  0xb6   : > { %15063 = vmatprep.subr.bf16.mxu0 %v16790_v0  ;;  %v16818_v0 = vld [vmem:[%s17708_s26 + $0x658] sm:$0xff]   ;;  %v2351_v34 = vrot.slane %v2349_v6, 1  ;;  %v16861_v6 = vld [vmem:[%s17708_s26 + $0x6e8] sm:$0xff]  }
  0xb7   : > { %15030 = vmatpush3.bf16.msra.mxu1 %v16779_v48  ;;  %v2347_v48 = vsel %vm2279_vm2, %v2338_v41, %v2346_v43  ;;  %v16836_v40 = vld [vmem:[%s17708_s26 + $0x638] sm:$0xff]  }
  0xb8   : > { %15031 = vmatprep.subr.bf16.mxu1 %v16781_v51  ;;  %2763 = vmatprep.mubr.bf16.mxu0 %v2347_v48  ;;  %v2330_v51 = vsel %vm2279_vm2, %v2321_v14, %v2329_v46 }
  0xb9   : > { %15064 = vmatpush3.bf16.msra.mxu0 %v16792_v20  ;;  %v16821_v20 = vld [vmem:[%s17708_s26 + $0x5e0] sm:$0xff]  }
  0xba   : > { %2121 = vmatmul.mubr.bf16.gmra.mrb[36].mxu1 %v1720_v22  ;;  %15065 = vmatprep.subr.bf16.mxu0 %v16794_v32  ;;  %v16798_v22 = vld [vmem:[%s17708_s26 + $0x570] sm:$0xff]   ;;  %v16825_v32 = vld [vmem:[%s17708_s26 + $0x5e8] sm:$0xff]  }
  0xbb   : > { %15032 = vmatpush3.bf16.msra.mxu1 %v16783_v53  ;;  %2714 = vmatprep.mubr.bf16.mxu1 %v2313_v42  ;;  %v16808_v53 = vld [vmem:[%s17708_s26 + $0x600] sm:$0xff]  }
  0xbc   : > { %15033 = vmatprep.subr.bf16.mxu1 %v16785_v57  ;;  %v2379_v57 = vrot.slane %v2377_v37, 2  ;;  %v16842_v42 = vld [vmem:[%s17708_s26 + $0x740] sm:$0xff]  }
  0xbd   : > { %15066 = vmatpush3.bf16.msra.mxu0 %v16796_v24  ;;  %v16827_v24 = vld [vmem:[%s17708_s26 + $0x5a8] sm:$0xff]  }
  0xbe   : > { %15067 = vmatprep.subr.bf16.mxu0 %v16798_v22  ;;  %v18109_v61 = vor.u32 %v2379_v57, %v2376_v56  ;;  %v16829_v22 = vld [vmem:[%s17708_s26 + $0x5f0] sm:$0xff]   ;;  %v16848_v56 = vld [vmem:[%s17708_s26 + $0x708] sm:$0xff]  }
  0xbf   : > { %15034 = vmatpush3.bf16.msra.mxu1 %v16787_v60  ;;  %v16814_v60 = vld [vmem:[%s17708_s26 + $0x650] sm:$0xff]  }
  0xc0   : > { %15035 = vmatprep.subr.bf16.mxu1 %v16789_v62  ;;  %v16816_v62 = vld [vmem:[%s17708_s26 + $0x610] sm:$0xff]   ;;  %v2381_v21 = vsel %vm2279_vm2, %v2372_v29, %v18109_v61  ;;  %v16854_v29 = vld [vmem:[%s17708_s26 + $0x758] sm:$0xff]  }
  0xc1   : > { %15068 = vmatpush3.bf16.msra.mxu0 %v16800_v36  ;;  %v2359_v36 = vrot.slane %v2357_v8, 1  ;;  %v16850_v57 = vld [vmem:[%s17708_s26 + $0x750] sm:$0xff]   ;;  %v16863_v8 = vld [vmem:[%s17708_s26 + $0x6a8] sm:$0xff]  }
  0xc2   : > { %15069 = vmatprep.subr.bf16.mxu0 %v16802_v19  ;;  %v16835_v19 = vld [vmem:[%s17708_s26 + $0x5b8] sm:$0xff]  }
  0xc3   : > { %15036 = vmatpush3.bf16.msra.mxu1 %v16791_v1  ;;  %v16819_v1 = vld [vmem:[%s17708_s26 + $0x598] sm:$0xff]  }
  0xc4   : > { %15037 = vmatprep.subr.bf16.mxu1 %v16793_v3  ;;  %v16823_v3 = vld [vmem:[%s17708_s26 + $0x5a0] sm:$0xff]  }
  0xc5   : > { %15070 = vmatpush3.bf16.msra.mxu0 %v16804_v15 }
  0xc6   : > { %15111 = vmatprep.subr.bf16.mxu0 %v16806_v26 }
  0xc7   : > { %15038 = vmatpush3.bf16.msra.mxu1 %v16795_v7  ;;  %v16826_v7 = vld [vmem:[%s17708_s26 + $0x668] sm:$0xff]  }
  0xc8   : > { %15039 = vmatprep.subr.bf16.mxu1 %v16797_v28  ;;  %2764 = vmatmul.mubr.bf16.vlgmr.msra.gmra.mrb[32].mxu0 %v2330_v51  ;;  %v16828_v28 = vld [vmem:[%s17708_s26 + $0x628] sm:$0xff]   ;;  %v16843_v51 = vld [vmem:[%s17708_s26 + $0x680] sm:$0xff]  }
  0xc9   : > { %15112 = vmatpush3.bf16.msra.mxu0 %v16808_v53  ;;  %2771 = vmatprep.mubr.bf16.mxu0 %v2346_v43  ;;  %v2833_v43 = vld [vmem:[%s17723_s30] sm:$0xcc]  ;;  %v16845_v53 = vld [vmem:[%s17708_s26 + $0x6c8] sm:$0xff]  }
  0xca   : > { %15113 = vmatprep.subr.bf16.mxu0 %v16810_v9  ;;  %v18142_v15 = vcombine.low %v2833_v43, %v17613_v45  ;;  %v12874_v14 = vcombine.high %v2833_v43, %v17613_v45  ;;  %v16849_v9 = vld [vmem:[%s17708_s26 + $0x6d0] sm:$0xff]  }
  0xcb   : > { %15040 = vmatpush3.bf16.msra.mxu1 %v16799_v35  ;;  %v16830_v35 = vld [vmem:[%s17708_s26 + $0x670] sm:$0xff]  }
  0xcc   : > { %15041 = vmatprep.subr.bf16.mxu1 %v16801_v39  ;;  %v2362_v39 = vrot.slane %v2360_v31, 2  ;;  %v2970_v48 = vrot.slane %v12874_v14, 2  ;;  %v2967_v50 = vrot.slane %v18142_v15, 2  ;;  %v16864_v31 = vld [vmem:[%s17708_s26 + $0x728] sm:$0xff]  }
  0xcd   : > { %15114 = vmatpush3.bf16.msra.mxu0 %v16812_v58  ;;  %v16852_v58 = vld [vmem:[%s17708_s26 + $0x710] sm:$0xff]  }
  0xce   : > { %15115 = vmatprep.subr.bf16.mxu0 %v16814_v60  ;;  %v2363_v41 = vor.u32 %v2362_v39, %v2359_v36  ;;  %v3552_v60 = vshrl.u32 %v12874_v14, 16  ;;  %v16867_v39 = vld [vmem:[%s17708_s26 + $0x6b0] sm:$0xff]  }
  0xcf   : > { %15042 = vmatpush3.bf16.msra.mxu1 %v16803_v44  ;;  %v2836_v44 = vld [vmem:[%s17723_s30 + $0x48] sm:$0x77] }
  0xd0   : > { %15083 = vmatprep.subr.bf16.mxu1 %v16805_v49  ;;  %2772 = vmatmul.mubr.bf16.gmra.mrb[36].mxu0 %v2329_v46  ;;  %v17614_v46 = vld [vmem:[%s17723_s30 + $0x30] sm:$0xff] }
  0xd1   : > { %15116 = vmatpush3.bf16.msra.mxu0 %v16816_v62  ;;  %v18145_v47 = vcombine.low %v17614_v46, %v2836_v44  ;;  %v18147_v63 = vcombine.high %v17614_v46, %v2836_v44  ;;  %v16871_v44 = vld [vmem:[%s17708_s26 + $0x6b8] sm:$0xff]  }
  0xd2   : > { %2715 = vmatmul.mubr.bf16.vlgmr.msra.gmra.mrb[40].mxu1 %v2296_v33  ;;  %15117 = vmatprep.subr.bf16.mxu0 %v16818_v0  ;;  %v16844_v33 = vld [vmem:[%s17708_s26 + $0x700] sm:$0xff]  }
  0xd3   : > { %15084 = vmatpush3.bf16.msra.mxu1 %v16807_v52  ;;  %2722 = vmatprep.mubr.bf16.mxu1 %v2312_v23  ;;  %v2355_v23 = vor.u32 %v2354_v5, %v2351_v34  ;;  %v2971_v49 = vrot.slane %v18147_v63, 2  ;;  %v2968_v26 = vrot.slane %v18145_v47, 2  ;;  %v3560_v62 = vshrl.u32 %v18147_v63, 16 }
  0xd4   : > { %15085 = vmatprep.subr.bf16.mxu1 %v16809_v55  ;;  %v16847_v55 = vld [vmem:[%s17708_s26 + $0x688] sm:$0xff]   ;;  %v3563_v0 = vshll.u32 %v18147_v63, 16  ;;  %v17615_v63 = vld [vmem:[%s17723_s30 + $0x20] sm:$0xff] }
  0xd5   : > { %15118 = vmatpush3.bf16.msra.mxu0 %v16820_v2  ;;  %v2364_v37 = vsel %vm2279_vm2, %v2355_v23, %v2363_v41  ;;  %v2972_v52 = vsel %vm2966_vm3, %v2970_v48, %v2971_v49  ;;  %v2969_v27 = vsel %vm2966_vm3, %v2967_v50, %v2968_v26  ;;  %v16858_v2 = vld [vmem:[%s17708_s26 + $0x760] sm:$0xff]   ;;  %v2835_v48 = vld [vmem:[%s17723_s30 + $0x10] sm:$0xcc]  ;;  %v17616_v50 = vld [vmem:[%s17723_s30 + $0x38] sm:$0xff] }
  0xd6   : > { %15119 = vmatprep.subr.bf16.mxu0 %v16822_v18  ;;  %3317 = vmatprep.mubr.bf16.mxu0 %v2972_v52  ;;  %v16859_v18 = vld [vmem:[%s17708_s26 + $0x6a0] sm:$0xff]  }
  0xd7   : > { %15086 = vmatpush3.bf16.msra.mxu1 %v16811_v38  ;;  %v16851_v38 = vld [vmem:[%s17708_s26 + $0x690] sm:$0xff]  }
  0xd8   : > { %15087 = vmatprep.subr.bf16.mxu1 %v16813_v59  ;;  %v16853_v59 = vld [vmem:[%s17708_s26 + $0x6d8] sm:$0xff]  }
  0xd9   : > { %15120 = vmatpush3.bf16.msra.mxu0 %v16824_v4  ;;  %v16860_v4 = vld [vmem:[%s17708_s26 + $0x720] sm:$0xff]  }
  0xda   : > { %2723 = vmatmul.mubr.bf16.gmra.mrb[44].mxu1 %v2295_v17  ;;  %15121 = vmatprep.subr.bf16.mxu0 %v16826_v7  ;;  %v16841_v17 = vld [vmem:[%s17708_s26 + $0x6c0] sm:$0xff]   ;;  %v3535_v7 = vshrl.u32 %v18142_v15, 16 }
  0xdb   : > { %15088 = vmatpush3.bf16.msra.mxu1 %v16815_v11  ;;  %2812 = vmatprep.mubr.bf16.mxu1 %v2381_v21  ;;  %v16855_v11 = vld [vmem:[%s17708_s26 + $0x698] sm:$0xff]   ;;  %v16857_v21 = vld [vmem:[%s17708_s26 + $0x6e0] sm:$0xff]  }
  0xdc   : > { %15089 = vmatprep.subr.bf16.mxu1 %v16817_v16  ;;  %v16856_v16 = vld [vmem:[%s17708_s26 + $0x718] sm:$0xff]   ;;  %v18203_v23 = vrot.slane %v3535_v7, 2 }
  0xdd   : > { %15122 = vmatpush3.bf16.msra.mxu0 %v16828_v28  ;;  %v3543_v28 = vshrl.u32 %v18145_v47, 16 }
  0xde   : > { %15123 = vmatprep.subr.bf16.mxu0 %v16830_v35  ;;  %v16865_v35 = vld [vmem:[%s17708_s26 + $0x6f0] sm:$0xff]  }
  0xdf   : > { %15090 = vmatpush3.bf16.msra.mxu1 %v16819_v1  ;;  %v18175_v1 = vrot.slane %v3552_v60, 2  ;;  %v18209_v45 = vrot.slane %v3543_v28, 2  ;;  %v16882_v60 = vld [vmem:[%s17708_s26 + $0x840] sm:$0xff]   ;;  %v16887_v28 = vld [vmem:[%s17708_s26 + $0x788] sm:$0xff]  }
  0xe0   : > { %15091 = vmatprep.subr.bf16.mxu1 %v16821_v20 }
  0xe1   : > { %15124 = vmatpush3.bf16.msra.mxu0 %v16832_v12 }
  0xe2   : > { %15125 = vmatprep.subr.bf16.mxu0 %v16834_v13  ;;  %v16868_v13 = vld [vmem:[%s17708_s26 + $0x730] sm:$0xff]  }
  0xe3   : > { %15092 = vmatpush3.bf16.msra.mxu1 %v16823_v3  ;;  %v18181_v3 = vrot.slane %v3560_v62, 2 }
  0xe4   : > { %15093 = vmatprep.subr.bf16.mxu1 %v16825_v32  ;;  %v18184_v32 = vrot.slane %v3563_v0, 3 }
  0xe5   : > { %15126 = vmatpush3.bf16.msra.mxu0 %v16836_v40  ;;  %v16869_v40 = vld [vmem:[%s17708_s26 + $0x6f8] sm:$0xff]  }
  0xe6   : > { %15167 = vmatprep.subr.bf16.mxu0 %v16842_v42 }
  0xe7   : > { %15094 = vmatpush3.bf16.msra.mxu1 %v16827_v24  ;;  %v3538_v24 = vshll.u32 %v18142_v15, 16  ;;  %v16872_v15 = vld [vmem:[%s17708_s26 + $0x738] sm:$0xff]  }
  0xe8   : > { %15095 = vmatprep.subr.bf16.mxu1 %v16829_v22  ;;  %3318 = vmatmul.mubr.bf16.vlgmr.msra.gmra.mrb[40].mxu0 %v2969_v27  ;;  %v3546_v22 = vshll.u32 %v18145_v47, 16  ;;  %v2837_v47 = vld [vmem:[%s17723_s30 + $0x50] sm:$0x77] }
  0xe9   : > { %15168 = vmatpush3.bf16.msra.mxu0 %v16844_v33  ;;  %3325 = vmatprep.mubr.bf16.mxu0 %v2971_v49  ;;  %v18206_v43 = vrot.slane %v3538_v24, 3  ;;  %v2838_v49 = vld [vmem:[%s17723_s30 + $0x58] sm:$0x77]  ;;  %v16881_v33 = vld [vmem:[%s17708_s26 + $0x7c0] sm:$0xff]   ;;  %v16886_v24 = vld [vmem:[%s17708_s26 + $0x848] sm:$0xff]  }
  0xea   : > { %15169 = vmatprep.subr.bf16.mxu0 %v16846_v54  ;;  %v18213_v46 = vrot.slane %v3546_v22, 3 }
  0xeb   : > { %15096 = vmatpush3.bf16.msra.mxu1 %v16831_v25  ;;  %v16866_v25 = vld [vmem:[%s17708_s26 + $0x770] sm:$0xff]  }
  0xec   : > { %15097 = vmatprep.subr.bf16.mxu1 %v16833_v30 }
  0xed   : > { %15170 = vmatpush3.bf16.msra.mxu0 %v16848_v56  ;;  %v17618_v56 = vld [vmem:[%s17723_s30 + $0x40] sm:$0xff] }
  0xee   : > { %15171 = vmatprep.subr.bf16.mxu0 %v16850_v57  ;;  %v18236_v57 = vcombine.high %v17618_v56, %v2838_v49 }
  0xef   : > { %15098 = vmatpush3.bf16.msra.mxu1 %v16835_v19 }
  0xf0   : > { %15139 = vmatprep.subr.bf16.mxu1 %v16841_v17  ;;  %3326 = vmatmul.mubr.bf16.gmra.mrb[44].mxu0 %v2968_v26  ;;  %v18222_v26 = vcombine.low %v17616_v50, %v2837_v47 }
  0xf1   : > { %15172 = vmatpush3.bf16.msra.mxu0 %v16852_v58 }
  0xf2   : > { %2813 = vmatmul.mubr.bf16.vlgmr.msra.gmra.mrb[48].mxu1 %v2364_v37  ;;  %15173 = vmatprep.subr.bf16.mxu0 %v16854_v29  ;;  %v18224_v37 = vcombine.high %v17616_v50, %v2837_v47  ;;  %v2974_v58 = vrot.slane %v18222_v26, 2  ;;  %v16897_v50 = vld [vmem:[%s17708_s26 + $0x7e0] sm:$0xff]  }
  0xf3   : > { %15140 = vmatpush3.bf16.msra.mxu1 %v16843_v51  ;;  %2820 = vmatprep.mubr.bf16.mxu1 %v18109_v61  ;;  %v3555_v61 = vshll.u32 %v12874_v14, 16  ;;  %v2834_v14 = vld [vmem:[%s17723_s30 + $0x8] sm:$0xcc] }
  0xf4   : > { %15141 = vmatprep.subr.bf16.mxu1 %v16845_v53  ;;  %v18217_v17 = vcombine.low %v2834_v14, %v17615_v63  ;;  %v12876_v42 = vcombine.high %v2834_v14, %v17615_v63  ;;  %v17617_v51 = vld [vmem:[%s17723_s30 + $0x28] sm:$0xff]  ;;  %v16894_v14 = vld [vmem:[%s17708_s26 + $0x858] sm:$0xff]  }
  0xf5   : > { %v18178_v20 = vrot.slane %v3555_v61, 3  ;;  %15174 = vmatpush3.bf16.msra.mxu0 %v16856_v16  ;;  %v18227_v52 = vcombine.low %v2835_v48, %v17617_v51  ;;  %v18229_v27 = vcombine.high %v2835_v48, %v17617_v51  ;;  %v16883_v61 = vld [vmem:[%s17708_s26 + $0x780] sm:$0xff]   ;;  %v16895_v63 = vld [vmem:[%s17708_s26 + $0x798] sm:$0xff]  }
  0xf6   : > { %15175 = vmatprep.subr.bf16.mxu0 %v16858_v2  ;;  %v2976_v54 = vrot.slane %v12876_v42, 2  ;;  %v3586_v22 = vshrl.u32 %v12876_v42, 16  ;;  %v16896_v48 = vld [vmem:[%s17708_s26 + $0x818] sm:$0xff]   ;;  %v16898_v51 = vld [vmem:[%s17708_s26 + $0x860] sm:$0xff]  }
  0xf7   : > { %15142 = vmatpush3.bf16.msra.mxu1 %v16847_v55  ;;  %v2973_v55 = vrot.slane %v18217_v17, 2  ;;  %v2979_v29 = vrot.slane %v18227_v52, 2 }
  0xf8   : > { %15143 = vmatprep.subr.bf16.mxu1 %v16849_v9  ;;  %v18234_v9 = vcombine.low %v17618_v56, %v2838_v49  ;;  %v3572_v49 = vshll.u32 %v18217_v17, 16  ;;  %v3580_v56 = vshll.u32 %v18222_v26, 16 }
  0xf9   : > { %15176 = vmatpush3.bf16.msra.mxu0 %v16860_v4  ;;  %v2975_v0 = vsel %vm2966_vm3, %v2973_v55, %v2974_v58  ;;  %v16900_v55 = vld [vmem:[%s17708_s26 + $0x820] sm:$0xff]  }
  0xfa   : > { %2821 = vmatmul.mubr.bf16.gmra.mrb[52].mxu1 %v2363_v41  ;;  %15177 = vmatprep.subr.bf16.mxu0 %v16862_v10  ;;  %v16870_v41 = vld [vmem:[%s17708_s26 + $0x778] sm:$0xff]   ;;  %v2980_v62 = vrot.slane %v18234_v9, 2 }
  0xfb   : > { %15144 = vmatpush3.bf16.msra.mxu1 %v16851_v38  ;;  %v2977_v38 = vrot.slane %v18224_v37, 2 }
  0xfc   : > { %15145 = vmatprep.subr.bf16.mxu1 %v16853_v59  ;;  %v2982_v59 = vrot.slane %v18229_v27, 2  ;;  %v2981_v4 = vsel %vm2966_vm3, %v2979_v29, %v2980_v62  ;;  %v16903_v29 = vld [vmem:[%s17708_s26 + $0x7a8] sm:$0xff]  }
  0xfd   : > { %15178 = vmatpush3.bf16.msra.mxu0 %v16864_v31  ;;  %v2978_v16 = vsel %vm2966_vm3, %v2976_v54, %v2977_v38  ;;  %v3577_v54 = vshrl.u32 %v18222_v26, 16 }
  0xfe   : > { %15179 = vmatprep.subr.bf16.mxu0 %v16866_v25  ;;  %3366 = vmatprep.mubr.bf16.mxu1 %v2978_v16  ;;  %v18260_v25 = vrot.slane %v3586_v22, 2 }
  0xff   : > { %15146 = vmatpush3.bf16.msra.mxu1 %v16855_v11  ;;  %v2983_v11 = vrot.slane %v18236_v57, 2 }
 0x100   : > { %15147 = vmatprep.subr.bf16.mxu1 %v16857_v21  ;;  %v16884_v21 = vld [vmem:[%s17708_s26 + $0x800] sm:$0xff]  }
 0x101   : > { %15180 = vmatpush3.bf16.msra.mxu0 %v16868_v13  ;;  %v3594_v13 = vshrl.u32 %v18224_v37, 16 }
 0x102   : > { %15181 = vmatprep.subr.bf16.mxu0 %v16870_v41  ;;  %v3597_v41 = vshll.u32 %v18224_v37, 16 }
 0x103   : > { %15148 = vmatpush3.bf16.msra.mxu1 %v16859_v18  ;;  %v2984_v18 = vsel %vm2966_vm3, %v2982_v59, %v2983_v11 }
 0x104   : > { %15149 = vmatprep.subr.bf16.mxu1 %v16861_v6  ;;  %v16885_v6 = vld [vmem:[%s17708_s26 + $0x7c8] sm:$0xff]   ;;  %3415 = vmatprep.mubr.bf16.mxu0 %v2984_v18  ;;  %v3599_v47 = vrot.slane %v3597_v41, 3  ;;  %v16905_v18 = vld [vmem:[%s17708_s26 + $0x7f0] sm:$0xff]  }
 0x105   : > { %v14791_v34 = vpop.f32.mrb[0].mxu1  ;;  %15182 = vmatpush3.bf16.msra.mxu0 %v16872_v15  ;;  %v18270_v15 = vrot.slane %v3594_v13, 2  ;;  %v3566_v13 = vor.u32 %v18184_v32, %v18181_v3  ;;  %v16911_v3 = vld [vmem:[%s17708_s26 + $0x7b8] sm:$0xff]  }
 0x106   : > { %v14792_v5 = vpop.f32.mrb[1].mxu1  ;;  %15223 = vmatprep.subr.bf16.mxu0 %v16882_v60 }
 0x107   : > { %v18196_v36 = vadd.f32 %v14792_v5, %v14791_v34  ;;  %v14794_v12 = vpop.f32.mrb[2].mxu1  ;;  %15150 = vmatpush3.bf16.msra.mxu1 %v16863_v8  ;;  %v16888_v34 = vld [vmem:[%s17708_s26 + $0x808] sm:$0xff]   ;;  %v16889_v5 = vld [vmem:[%s17708_s26 + $0x7d0] sm:$0xff]   ;;  %v3600_v41 = vor.u32 %v3599_v47, %v18270_v15  ;;  %v16912_v47 = vld [vmem:[%s17708_s26 + $0x838] sm:$0xff]  }
 0x108   : > { %v14795_v30 = vpop.f32.mrb[3].mxu1  ;;  %15151 = vmatprep.subr.bf16.mxu1 %v16865_v35  ;;  %3416 = vmatmul.mubr.bf16.vlgmr.msra.gmra.mrb[48].mxu0 %v2981_v4  ;;  %v3589_v35 = vshll.u32 %v12876_v42, 16  ;;  %v3569_v42 = vshrl.u32 %v18217_v17, 16  ;;  %v16901_v17 = vld [vmem:[%s17708_s26 + $0x7e8] sm:$0xff]   ;;  %v16906_v4 = vld [vmem:[%s17708_s26 + $0x870] sm:$0xff]  }
 0x109   : > { %v18200_v19 = vadd.f32 %v14795_v30, %v14794_v12  ;;  %15224 = vmatpush3.bf16.msra.mxu0 %v16884_v21  ;;  %v16890_v12 = vld [vmem:[%s17708_s26 + $0x850] sm:$0xff]   ;;  %3423 = vmatprep.mubr.bf16.mxu0 %v2983_v11  ;;  %v16904_v11 = vld [vmem:[%s17708_s26 + $0x828] sm:$0xff]  }
 0x10a   : > { %15225 = vmatprep.subr.bf16.mxu0 %v16886_v24  ;;  %v16891_v30 = vld [vmem:[%s17708_s26 + $0x790] sm:$0xff]   ;;  %v18278_v37 = vrot.slane %v3569_v42, 2 }
 0x10b   : > { %15152 = vmatpush3.bf16.msra.mxu1 %v16867_v39  ;;  %v18263_v39 = vrot.slane %v3589_v35, 3  ;;  %v16908_v35 = vld [vmem:[%s17708_s26 + $0x830] sm:$0xff]  }
 0x10c   : > { %15153 = vmatprep.subr.bf16.mxu1 %v16869_v40  ;;  %v16892_v40 = vld [vmem:[%s17708_s26 + $0x810] sm:$0xff]  }
 0x10d   : > { %v14797_v53 = vpop.f32.mrb[4].mxu1  ;;  %15226 = vmatpush3.bf16.msra.mxu0 %v16888_v34 }
 0x10e   : > { %v14798_v2 = vpop.f32.mrb[5].mxu1  ;;  %15227 = vmatprep.subr.bf16.mxu0 %v16890_v12  ;;  %v16909_v12 = vld [vmem:[%s17708_s26 + $0x7f8] sm:$0xff]  }
 0x10f   : > { %15154 = vmatpush3.bf16.msra.mxu1 %v16871_v44  ;;  %v18252_v7 = vadd.f32 %v14798_v2, %v14797_v53  ;;  %v14800_v10 = vpop.f32.mrb[6].mxu1  ;;  %v16893_v44 = vld [vmem:[%s17708_s26 + $0x7d8] sm:$0xff]   ;;  %v16899_v53 = vld [vmem:[%s17708_s26 + $0x7a0] sm:$0xff]  }
 0x110   : > { %15195 = vmatprep.subr.bf16.mxu1 %v16881_v33  ;;  %v14801_v8 = vpop.f32.mrb[7].mxu1  ;;  %3424 = vmatmul.mubr.bf16.gmra.mrb[52].mxu0 %v2980_v62  ;;  %v18281_v33 = vrot.slane %v3572_v49, 3 }
 0x111   : > { %v18256_v31 = vadd.f32 %v14801_v8, %v14800_v10  ;;  %15228 = vmatpush3.bf16.msra.mxu0 %v16892_v40  ;;  %v16907_v8 = vld [vmem:[%s17708_s26 + $0x7b0] sm:$0xff]   ;;  %v3592_v40 = vor.u32 %v18263_v39, %v18260_v25 }
 0x112   : > { %3367 = vmatmul.mubr.bf16.vlgmr.msra.gmra.mrb[56].mxu1 %v2975_v0  ;;  %15229 = vmatprep.subr.bf16.mxu0 %v16894_v14  ;;  %v16910_v14 = vld [vmem:[%s17708_s26 + $0x878] sm:$0xff]   ;;  %v3575_v32 = vor.u32 %v18281_v33, %v18278_v37 }
 0x113   : > { %15196 = vmatpush3.bf16.msra.mxu1 %v16883_v61  ;;  %3374 = vmatprep.mubr.bf16.mxu1 %v2977_v38  ;;  %v3579_v38 = vrot.slane %v3577_v54, 2  ;;  %v3601_v49 = vsel %vm3533_vm4, %v3592_v40, %v3600_v41 }
 0x114   : > { %15197 = vmatprep.subr.bf16.mxu1 %v16885_v6  ;;  %4017 = vmatprep.mubr.bf16.mxu0 %v3601_v49 }
 0x115   : > { %15230 = vmatpush3.bf16.msra.mxu0 %v16896_v48  ;;  %v14847_v59 = vpop.f32.mrb[0].mxu0 }
 0x116   : > { %15231 = vmatprep.subr.bf16.mxu0 %v16898_v51  ;;  %v14848_v0 = vpop.f32.mrb[1].mxu0 }
 0x117   : > { %15198 = vmatpush3.bf16.msra.mxu1 %v16887_v28  ;;  %v14849_v21 = vadd.f32 %v14848_v0, %v14847_v59  ;;  %v14850_v2 = vpop.f32.mrb[2].mxu0  ;;  %v3623_v59 = vshll.u32 %v18229_v27, 16  ;;  %v3631_v0 = vshll.u32 %v18236_v57, 16 }
 0x118   : > { %15199 = vmatprep.subr.bf16.mxu1 %v16889_v5  ;;  %v14851_v24 = vpop.f32.mrb[3].mxu0  ;;  %v3582_v5 = vrot.slane %v3580_v56, 3  ;;  %v16915_v56 = vld [vmem:[%s17708_s26 + $0x880] sm:$0xff]  }
 0x119   : > { %15232 = vmatpush3.bf16.msra.mxu0 %v16900_v55  ;;  %v14852_v28 = vadd.f32 %v14851_v24, %v14850_v2  ;;  %v16922_v2 = vld [vmem:[%s17708_s26 + $0x950] sm:$0xff]  }
 0x11a   : > { %3375 = vmatmul.mubr.bf16.gmra.mrb[60].mxu1 %v2974_v58  ;;  %v16902_v58 = vld [vmem:[%s17708_s26 + $0x868] sm:$0xff]   ;;  %v18319_v25 = vor.u32 %v3582_v5, %v3579_v38  ;;  %v16927_v5 = vld [vmem:[%s17708_s26 + $0x898] sm:$0xff]  }
 0x11b   : > { %15200 = vmatpush3.bf16.msra.mxu1 %v16891_v30  ;;  %15233 = vmatprep.subr.bf16.mxu0 %v16902_v58  ;;  %v16916_v58 = vld [vmem:[%s17708_s26 + $0x900] sm:$0xff]  }
 0x11c   : > { %15201 = vmatprep.subr.bf16.mxu1 %v16893_v44  ;;  %v3584_v55 = vsel %vm3533_vm4, %v3575_v32, %v18319_v25  ;;  %v16934_v32 = vld [vmem:[%s17708_s26 + $0x968] sm:$0xff]  }
 0x11d   : > { %15234 = vmatpush3.bf16.msra.mxu0 %v16904_v11  ;;  %v16918_v11 = vld [vmem:[%s17708_s26 + $0x948] sm:$0xff]  }
 0x11e   : > { %15235 = vmatprep.subr.bf16.mxu0 %v16906_v4  ;;  %v3633_v4 = vrot.slane %v3631_v0, 3 }
 0x11f   : > { %15202 = vmatpush3.bf16.msra.mxu1 %v16895_v63  ;;  %v14853_v30 = vpop.f32.mrb[4].mxu0  ;;  %v3541_v63 = vor.u32 %v18206_v43, %v18203_v23  ;;  %v16913_v23 = vld [vmem:[%s17708_s26 + $0x8c0] sm:$0xff]  }
 0x120   : > { %15203 = vmatprep.subr.bf16.mxu1 %v16897_v50  ;;  %v14854_v42 = vpop.f32.mrb[5].mxu0 }
 0x121   : > { %15236 = vmatpush3.bf16.msra.mxu0 %v16908_v35  ;;  %v3606_v35 = vshll.u32 %v18227_v52, 16 }
 0x122   : > { %15237 = vmatprep.subr.bf16.mxu0 %v16910_v14 }
 0x123   : > { %15204 = vmatpush3.bf16.msra.mxu1 %v16899_v53  ;;  %v16914_v53 = vld [vmem:[%s17708_s26 + $0x940] sm:$0xff]  }
 0x124   : > { %15205 = vmatprep.subr.bf16.mxu1 %v16901_v17 }
 0x125   : > { %v14819_v60 = vpop.f32.mrb[8].mxu1  ;;  %15238 = vmatpush3.bf16.msra.mxu0 %v16912_v47 }
 0x126   : > { %v14820_v61 = vpop.f32.mrb[9].mxu1  ;;  %15279 = vmatprep.subr.bf16.mxu0 %v16914_v53 }
 0x127   : > { %v14821_v62 = vadd.f32 %v14820_v61, %v14819_v60  ;;  %v14822_v16 = vpop.f32.mrb[10].mxu1  ;;  %15206 = vmatpush3.bf16.msra.mxu1 %v16903_v29  ;;  %v16917_v60 = vld [vmem:[%s17708_s26 + $0x8c8] sm:$0xff]  }
 0x128   : > { %v14823_v26 = vpop.f32.mrb[11].mxu1  ;;  %15207 = vmatprep.subr.bf16.mxu1 %v16905_v18  ;;  %4018 = vmatmul.mubr.bf16.vlgmr.msra.gmra.mrb[56].mxu0 %v3584_v55  ;;  %v16939_v55 = vld [vmem:[%s17708_s26 + $0x8b0] sm:$0xff]  }
 0x129   : > { %v1069_v6 = vadd.f32 %v14821_v62, %v18196_v36  ;;  %v14824_v10 = vadd.f32 %v14823_v26, %v14822_v16  ;;  %v3558_v36 = vor.u32 %v18178_v20, %v18175_v1  ;;  %v18314_v1 = vor.u32 %v18213_v46, %v18209_v45  ;;  %v14856_v46 = vpop.f32.mrb[6].mxu0  ;;  %15280 = vmatpush3.bf16.msra.mxu0 %v16916_v58  ;;  %v16919_v62 = vld [vmem:[%s17708_s26 + $0x888] sm:$0xff]   ;;  %v16921_v26 = vld [vmem:[%s17708_s26 + $0x8d0] sm:$0xff]  }
 0x12a   : > { %v14855_v45 = vadd.f32 %v14854_v42, %v14853_v30  ;;  %v14857_v51 = vpop.f32.mrb[7].mxu0  ;;  %v3628_v16 = vshrl.u32 %v18236_v57, 16  ;;  %15281 = vmatprep.subr.bf16.mxu0 %v16918_v11  ;;  %4025 = vmatprep.mubr.bf16.mxu0 %v3600_v41  ;;  %v3603_v57 = vshrl.u32 %v18227_v52, 16  ;;  %v16928_v30 = vld [vmem:[%s17708_s26 + $0x918] sm:$0xff]   ;;  %v16930_v41 = vld [vmem:[%s17708_s26 + $0x960] sm:$0xff]   ;;  %v3608_v52 = vrot.slane %v3606_v35, 3 }
 0x12b   : > { %v1072_v22 = vadd.f32 %v14824_v10, %v18200_v19  ;;  %v18296_v34 = vadd.f32 %v14849_v21, %v1069_v6  ;;  %15208 = vmatpush3.bf16.msra.mxu1 %v16907_v8  ;;  %v3567_v48 = vsel %vm3533_vm4, %v3558_v36, %v3566_v13  ;;  %v3550_v33 = vsel %vm3533_vm4, %v3541_v63, %v18314_v1  ;;  %v16923_v6 = vld [vmem:[%s17708_s26 + $0x890] sm:$0xff]   ;;  %v16925_v8 = vld [vmem:[%s17708_s26 + $0x8d8] sm:$0xff]   ;;  %v16932_v63 = vld [vmem:[%s17708_s26 + $0x920] sm:$0xff]  }
 0x12c   : > { %15209 = vmatprep.subr.bf16.mxu1 %v16909_v12  ;;  %3968 = vmatprep.mubr.bf16.mxu1 %v3567_v48  ;;  %v14858_v54 = vadd.f32 %v14857_v51, %v14856_v46  ;;  %v3630_v21 = vrot.slane %v3628_v16, 2  ;;  %v16924_v10 = vld [vmem:[%s17708_s26 + $0x910] sm:$0xff]   ;;  %v3611_v12 = vshrl.u32 %v18234_v9, 16  ;;  %v3614_v36 = vshll.u32 %v18234_v9, 16  ;;  %v16936_v42 = vld [vmem:[%s17708_s26 + $0x928] sm:$0xff]   ;;  %v16944_v16 = vld [vmem:[%s17708_s26 + $0x938] sm:$0xff]  }
 0x12d   : > { %v18307_v19 = vadd.f32 %v14852_v28, %v1072_v22  ;;  %v14825_v44 = vpop.f32.mrb[12].mxu1  ;;  %v16926_v28 = vld [vmem:[%s17708_s26 + $0x958] sm:$0xff]   ;;  %v18365_v40 = vrot.slane %v3603_v57, 2  ;;  %v16938_v51 = vld [vmem:[%s17708_s26 + $0x970] sm:$0xff]  }
 0x12e   : > { %v14826_v20 = vpop.f32.mrb[13].mxu1  ;;  %v18350_v24 = vor.u32 %v3633_v4, %v3630_v21  ;;  %v3613_v14 = vrot.slane %v3611_v12, 2  ;;  %v4087_v21 = vld [vmem:[%s17723_s30] sm:$0x88] }
 0x12f   : > { %v14827_v39 = vadd.f32 %v14826_v20, %v14825_v44  ;;  %v14828_v15 = vpop.f32.mrb[14].mxu1  ;;  %15210 = vmatpush3.bf16.msra.mxu1 %v16911_v3  ;;  %v16931_v44 = vld [vmem:[%s17708_s26 + $0x8a0] sm:$0xff]   ;;  %v16933_v20 = vld [vmem:[%s17708_s26 + $0x8e8] sm:$0xff]  }
 0x130   : > { %v14829_v43 = vpop.f32.mrb[15].mxu1  ;;  %15251 = vmatprep.subr.bf16.mxu1 %v16913_v23  ;;  %4026 = vmatmul.mubr.bf16.gmra.mrb[60].mxu0 %v18319_v25 }
 0x131   : > { %v1077_v50 = vadd.f32 %v14827_v39, %v18252_v7  ;;  %v14830_v37 = vadd.f32 %v14829_v43, %v14828_v15  ;;  %v3620_v7 = vshrl.u32 %v18229_v27, 16  ;;  %v16920_v27 = vld [vmem:[%s17708_s26 + $0x908] sm:$0xff]  }
 0x132   : > { %3969 = vmatmul.mubr.bf16.vlgmr.msra.gmra.mrb[64].mxu1 %v3550_v33  ;;  %15282 = vmatpush3.bf16.msra.mxu0 %v16920_v27  ;;  %v16935_v39 = vld [vmem:[%s17708_s26 + $0x8a8] sm:$0xff]  }
 0x133   : > { %v1080_v17 = vadd.f32 %v14830_v37, %v18256_v31  ;;  %v18334_v38 = vadd.f32 %v14855_v45, %v1077_v50  ;;  %v3622_v29 = vrot.slane %v3620_v7, 2  ;;  %15252 = vmatpush3.bf16.msra.mxu1 %v16915_v56  ;;  %v3625_v31 = vrot.slane %v3623_v59, 3  ;;  %3976 = vmatprep.mubr.bf16.mxu1 %v3566_v13  ;;  %v16929_v13 = vld [vmem:[%s17708_s26 + $0x8e0] sm:$0xff]   ;;  %v16937_v50 = vld [vmem:[%s17708_s26 + $0x8f0] sm:$0xff]   ;;  %v16941_v59 = vld [vmem:[%s17708_s26 + $0x8f8] sm:$0xff]  }
 0x134   : > { %15253 = vmatprep.subr.bf16.mxu1 %v16917_v60  ;;  %15283 = vmatprep.subr.bf16.mxu0 %v16922_v2  ;;  %v3609_v7 = vor.u32 %v3608_v52, %v18365_v40  ;;  %v4090_v2 = vld [vmem:[%s17723_s30 + $0x48] sm:$0xff]  ;;  %v16951_v52 = vld [vmem:[%s17708_s26 + $0x980] sm:$0xff]  }
 0x135   : > { %v18339_v61 = vadd.f32 %v14858_v54, %v1080_v17  ;;  %v3626_v18 = vor.u32 %v3625_v31, %v3622_v29  ;;  %v16942_v29 = vld [vmem:[%s17708_s26 + $0x978] sm:$0xff]  }
 0x136   : > { %15284 = vmatpush3.bf16.msra.mxu0 %v16924_v10 }
 0x137   : > { %15254 = vmatpush3.bf16.msra.mxu1 %v16919_v62  ;;  %v3635_v22 = vsel %vm3533_vm4, %v3626_v18, %v18350_v24  ;;  %15285 = vmatprep.subr.bf16.mxu0 %v16926_v28  ;;  %v14903_v3 = vpop.f32.mrb[8].mxu0  ;;  %v16943_v62 = vld [vmem:[%s17708_s26 + $0x8b8] sm:$0xff]   ;;  %v16949_v28 = vld [vmem:[%s17708_s26 + $0x9c0] sm:$0xff]  }
 0x138   : > { %15255 = vmatprep.subr.bf16.mxu1 %v16921_v26  ;;  %v14904_v43 = vpop.f32.mrb[9].mxu0 }
 0x139   : > { %v14905_v48 = vadd.f32 %v14904_v43, %v14903_v3  ;;  %v14906_v49 = vpop.f32.mrb[10].mxu0 }
 0x13a   : > { %3977 = vmatmul.mubr.bf16.gmra.mrb[68].mxu1 %v18314_v1  ;;  %15286 = vmatpush3.bf16.msra.mxu0 %v16928_v30  ;;  %v3616_v1 = vrot.slane %v3614_v36, 3  ;;  %v14907_v37 = vpop.f32.mrb[11].mxu0  ;;  %v16950_v36 = vld [vmem:[%s17708_s26 + $0xa40] sm:$0xff]  }
 0x13b   : > { %15256 = vmatpush3.bf16.msra.mxu1 %v16923_v6  ;;  %4066 = vmatprep.mubr.bf16.mxu1 %v3635_v22  ;;  %v14908_v54 = vadd.f32 %v14907_v37, %v14906_v49 }
 0x13c   : > { %15257 = vmatprep.subr.bf16.mxu1 %v16925_v8  ;;  %15287 = vmatprep.subr.bf16.mxu0 %v16930_v41  ;;  %v18383_v17 = vor.u32 %v3616_v1, %v3613_v14  ;;  %v17619_v8 = vld [vmem:[%s17723_s30 + $0x18] sm:$0xff]  ;;  %v16952_v1 = vld [vmem:[%s17708_s26 + $0xa00] sm:$0xff]  }
 0x13d   : > { %v18397_v57 = vcombine.low %v4087_v21, %v17619_v8  ;;  %v13174_v35 = vcombine.high %v4087_v21, %v17619_v8  ;;  %v16970_v21 = vld [vmem:[%s17708_s26 + $0xa68] sm:$0xff]  }
 0x13e   : > { %15288 = vmatpush3.bf16.msra.mxu0 %v16932_v63  ;;  %v3618_v26 = vsel %vm3533_vm4, %v3609_v7, %v18383_v17  ;;  %v16964_v7 = vld [vmem:[%s17708_s26 + $0xa18] sm:$0xff]  }
 0x13f   : > { %15258 = vmatpush3.bf16.msra.mxu1 %v16927_v5  ;;  %15289 = vmatprep.subr.bf16.mxu0 %v16934_v32  ;;  %v14909_v56 = vpop.f32.mrb[12].mxu0  ;;  %v17620_v5 = vld [vmem:[%s17723_s30 + $0x30] sm:$0xff]  ;;  %v4221_v41 = vrot.slane %v18397_v57, 3  ;;  %v4806_v32 = vshrl.u32 %v13174_v35, 16 }
 0x140   : > { %15259 = vmatprep.subr.bf16.mxu1 %v16929_v13  ;;  %v14910_v0 = vpop.f32.mrb[13].mxu0  ;;  %v18401_v12 = vcombine.low %v17620_v5, %v4090_v2  ;;  %v13180_v30 = vcombine.high %v17620_v5, %v4090_v2 }
 0x141   : > { %v14911_v6 = vadd.f32 %v14910_v0, %v14909_v56  ;;  %v14912_v10 = vpop.f32.mrb[14].mxu0  ;;  %v16969_v0 = vld [vmem:[%s17708_s26 + $0x9e8] sm:$0xff]  }
 0x142   : > { %15290 = vmatpush3.bf16.msra.mxu0 %v16936_v42  ;;  %v14913_v22 = vpop.f32.mrb[15].mxu0  ;;  %v4225_v14 = vrot.slane %v13180_v30, 3  ;;  %v4222_v63 = vrot.slane %v18401_v12, 3  ;;  %v4814_v43 = vshrl.u32 %v13180_v30, 16 }
 0x143   : > { %15260 = vmatpush3.bf16.msra.mxu1 %v16931_v44  ;;  %15291 = vmatprep.subr.bf16.mxu0 %v16938_v51  ;;  %v14914_v40 = vadd.f32 %v14913_v22, %v14912_v10  ;;  %v4224_v44 = vrot.slane %v13174_v35, 3  ;;  %v16961_v51 = vld [vmem:[%s17708_s26 + $0x9d8] sm:$0xff]   ;;  %v16972_v10 = vld [vmem:[%s17708_s26 + $0xa28] sm:$0xff]  }
 0x144   : > { %15261 = vmatprep.subr.bf16.mxu1 %v16933_v20  ;;  %v4223_v3 = vsel %vm4220_vm5, %v4221_v41, %v4222_v63  ;;  %v18428_v49 = vrot.slane %v4814_v43, 3  ;;  %v16976_v41 = vld [vmem:[%s17708_s26 + $0xa30] sm:$0xff]   ;;  %v17621_v43 = vld [vmem:[%s17723_s30 + $0x20] sm:$0xff] }
 0x145   : > { %v14875_v9 = vpop.f32.mrb[16].mxu1 }
 0x146   : > { %v14876_v25 = vpop.f32.mrb[17].mxu1 }
 0x147   : > { %v14877_v15 = vadd.f32 %v14876_v25, %v14875_v9  ;;  %v14878_v47 = vpop.f32.mrb[18].mxu1  ;;  %15262 = vmatpush3.bf16.msra.mxu1 %v16935_v39  ;;  %v16953_v9 = vld [vmem:[%s17708_s26 + $0x9c8] sm:$0xff]   ;;  %v4809_v39 = vshll.u32 %v13174_v35, 16 }
 0x148   : > { %v14879_v23 = vpop.f32.mrb[19].mxu1  ;;  %15263 = vmatprep.subr.bf16.mxu1 %v16937_v50  ;;  %v16954_v25 = vld [vmem:[%s17708_s26 + $0xa48] sm:$0xff]   ;;  %v16960_v50 = vld [vmem:[%s17708_s26 + $0xa10] sm:$0xff]  }
 0x149   : > { %v1467_v45 = vadd.f32 %v14877_v15, %v18296_v34  ;;  %v14880_v46 = vadd.f32 %v14879_v23, %v14878_v47  ;;  %v16940_v34 = vld [vmem:[%s17708_s26 + $0x930] sm:$0xff]   ;;  %v16955_v15 = vld [vmem:[%s17708_s26 + $0x988] sm:$0xff]   ;;  %v18419_v47 = vrot.slane %v4806_v32, 3  ;;  %v18422_v42 = vrot.slane %v4809_v39, 4  ;;  %v16980_v32 = vld [vmem:[%s17708_s26 + $0xa38] sm:$0xff]  }
 0x14a   : > { %15292 = vmatpush3.bf16.msra.mxu0 %v16940_v34  ;;  %v16957_v23 = vld [vmem:[%s17708_s26 + $0x9d0] sm:$0xff]   ;;  %v16963_v34 = vld [vmem:[%s17708_s26 + $0x998] sm:$0xff]   ;;  %v4088_v39 = vld [vmem:[%s17723_s30 + $0x8] sm:$0x88] }
 0x14b   : > { %v1470_v33 = vadd.f32 %v14880_v46, %v18307_v19  ;;  %v18378_v53 = vadd.f32 %v14905_v48, %v1467_v45  ;;  %15264 = vmatpush3.bf16.msra.mxu1 %v16939_v55  ;;  %15293 = vmatprep.subr.bf16.mxu0 %v16942_v29  ;;  %v16958_v45 = vld [vmem:[%s17708_s26 + $0xa50] sm:$0xff]   ;;  %v4817_v46 = vshll.u32 %v13180_v30, 16  ;;  %v4792_v55 = vshll.u32 %v18397_v57, 16 }
 0x14c   : > { %15265 = vmatprep.subr.bf16.mxu1 %v16941_v59  ;;  %v16959_v48 = vld [vmem:[%s17708_s26 + $0x990] sm:$0xff]   ;;  %v4797_v59 = vshrl.u32 %v18401_v12, 16  ;;  %v4800_v29 = vshll.u32 %v18401_v12, 16  ;;  %v17006_v12 = vld [vmem:[%s17708_s26 + $0xb60] sm:$0xff]  }
 0x14d   : > { %v18385_v58 = vadd.f32 %v14908_v54, %v1470_v33  ;;  %v14881_v19 = vpop.f32.mrb[20].mxu1  ;;  %v18431_v37 = vrot.slane %v4817_v46, 4  ;;  %v4789_v33 = vshrl.u32 %v18397_v57, 16  ;;  %v16962_v54 = vld [vmem:[%s17708_s26 + $0xa58] sm:$0xff]   ;;  %v16974_v30 = vld [vmem:[%s17708_s26 + $0xa70] sm:$0xff]   ;;  %v13176_v46 = vcombine.high %v4088_v39, %v17621_v43 }
 0x14e   : > { %v14882_v60 = vpop.f32.mrb[21].mxu1  ;;  %15294 = vmatpush3.bf16.msra.mxu0 %v16944_v16 }
 0x14f   : > { %v14883_v11 = vadd.f32 %v14882_v60, %v14881_v19  ;;  %v14884_v31 = vpop.f32.mrb[22].mxu1  ;;  %15266 = vmatpush3.bf16.msra.mxu1 %v16943_v62  ;;  %15335 = vmatprep.subr.bf16.mxu0 %v16950_v36  ;;  %v18438_v56 = vrot.slane %v4789_v33, 3  ;;  %v16965_v19 = vld [vmem:[%s17708_s26 + $0x9e0] sm:$0xff]  }
 0x150   : > { %v14885_v27 = vpop.f32.mrb[23].mxu1  ;;  %15307 = vmatprep.subr.bf16.mxu1 %v16949_v28  ;;  %v16966_v60 = vld [vmem:[%s17708_s26 + $0xa60] sm:$0xff]   ;;  %v16973_v28 = vld [vmem:[%s17708_s26 + $0x9f0] sm:$0xff]  }
 0x151   : > { %v1475_v18 = vadd.f32 %v14883_v11, %v18334_v38  ;;  %v14886_v4 = vadd.f32 %v14885_v27, %v14884_v31  ;;  %v16967_v11 = vld [vmem:[%s17708_s26 + $0x9a0] sm:$0xff]  }
 0x152   : > { %4067 = vmatmul.mubr.bf16.vlgmr.msra.gmra.mrb[72].mxu1 %v3618_v26  ;;  %v16968_v62 = vld [vmem:[%s17708_s26 + $0xa20] sm:$0xff]  }
 0x153   : > { %v1478_v38 = vadd.f32 %v14886_v4, %v18339_v61  ;;  %v18405_v13 = vadd.f32 %v14911_v6, %v1475_v18  ;;  %15308 = vmatpush3.bf16.msra.mxu1 %v16951_v52  ;;  %4074 = vmatprep.mubr.bf16.mxu1 %v18350_v24  ;;  %v4226_v61 = vsel %vm4220_vm5, %v4224_v44, %v4225_v14  ;;  %v16956_v24 = vld [vmem:[%s17708_s26 + $0xa08] sm:$0xff]  }
 0x154   : > { %4571 = vmatprep.mubr.bf16.mxu0 %v4226_v61  ;;  %15309 = vmatprep.subr.bf16.mxu1 %v16953_v9  ;;  %v16971_v18 = vld [vmem:[%s17708_s26 + $0x9a8] sm:$0xff]   ;;  %v16979_v61 = vld [vmem:[%s17708_s26 + $0x9b8] sm:$0xff]  }
 0x155   : > { %v18411_v20 = vadd.f32 %v14914_v40, %v1478_v38  ;;  %4572 = vmatmul.mubr.bf16.vlgmr.msra.gmra.mrb[64].mxu0 %v4223_v3 }
 0x156   : > { %15336 = vmatpush3.bf16.msra.mxu0 %v16952_v1  ;;  %4579 = vmatprep.mubr.bf16.mxu0 %v4225_v14  ;;  %v16977_v14 = vld [vmem:[%s17708_s26 + $0x9f8] sm:$0xff]  }
 0x157   : > { %15337 = vmatprep.subr.bf16.mxu0 %v16954_v25  ;;  %15310 = vmatpush3.bf16.msra.mxu1 %v16955_v15  ;;  %v4091_v15 = vld [vmem:[%s17723_s30 + $0x50] sm:$0xff] }
 0x158   : > { %15311 = vmatprep.subr.bf16.mxu1 %v16957_v23  ;;  %v18476_v23 = vrot.slane %v4797_v59, 3  ;;  %v16989_v59 = vld [vmem:[%s17708_s26 + $0xac0] sm:$0xff]  }
 0x15a   : > { %4075 = vmatmul.mubr.bf16.gmra.mrb[76].mxu1 %v18383_v17  ;;  %15338 = vmatpush3.bf16.msra.mxu0 %v16956_v24  ;;  %v18441_v17 = vrot.slane %v4792_v55, 4 }
 0x15b   : > { %15339 = vmatprep.subr.bf16.mxu0 %v16958_v45  ;;  %15312 = vmatpush3.bf16.msra.mxu1 %v16959_v48  ;;  %v14959_v31 = vpop.f32.mrb[16].mxu0  ;;  %v18479_v45 = vcombine.low %v4088_v39, %v17621_v43  ;;  %v17622_v48 = vld [vmem:[%s17723_s30 + $0x38] sm:$0xff] }
 0x15c   : > { %15313 = vmatprep.subr.bf16.mxu1 %v16961_v51  ;;  %v14960_v57 = vpop.f32.mrb[17].mxu0  ;;  %v4092_v51 = vld [vmem:[%s17723_s30 + $0x58] sm:$0xff]  ;;  %v13182_v55 = vcombine.high %v17622_v48, %v4091_v15 }
 0x15d   : > { %4580 = vmatmul.mubr.bf16.gmra.mrb[68].mxu0 %v4222_v63  ;;  %v18457_v22 = vadd.f32 %v14960_v57, %v14959_v31  ;;  %v14962_v35 = vpop.f32.mrb[18].mxu0  ;;  %v16978_v63 = vld [vmem:[%s17708_s26 + $0xa78] sm:$0xff]   ;;  %v4227_v31 = vrot.slane %v18479_v45, 3 }
 0x15e   : > { %15340 = vmatpush3.bf16.msra.mxu0 %v16960_v50  ;;  %v14963_v36 = vpop.f32.mrb[19].mxu0  ;;  %v18482_v50 = vcombine.low %v17622_v48, %v4091_v15  ;;  %v4851_v39 = vshll.u32 %v13182_v55, 16  ;;  %v17000_v15 = vld [vmem:[%s17708_s26 + $0xb10] sm:$0xff]   ;;  %v17001_v43 = vld [vmem:[%s17708_s26 + $0xad8] sm:$0xff]  }
 0x15f   : > { %15341 = vmatprep.subr.bf16.mxu0 %v16962_v54  ;;  %15314 = vmatpush3.bf16.msra.mxu1 %v16963_v34  ;;  %v18464_v38 = vadd.f32 %v14963_v36, %v14962_v35  ;;  %v17623_v34 = vld [vmem:[%s17723_s30 + $0x28] sm:$0xff]  ;;  %v17002_v48 = vld [vmem:[%s17708_s26 + $0xb58] sm:$0xff]  }
 0x160   : > { %15315 = vmatprep.subr.bf16.mxu1 %v16965_v19  ;;  %v16993_v36 = vld [vmem:[%s17708_s26 + $0xac8] sm:$0xff]  }
 0x162   : > { %15342 = vmatpush3.bf16.msra.mxu0 %v16964_v7 }
 0x163   : > { %15343 = vmatprep.subr.bf16.mxu0 %v16966_v60  ;;  %15316 = vmatpush3.bf16.msra.mxu1 %v16967_v11  ;;  %v14965_v40 = vpop.f32.mrb[20].mxu0  ;;  %v4230_v11 = vrot.slane %v13176_v46, 3 }
 0x164   : > { %15317 = vmatprep.subr.bf16.mxu1 %v16969_v0  ;;  %v14966_v24 = vpop.f32.mrb[21].mxu0  ;;  %v4231_v0 = vrot.slane %v13182_v55, 3 }
 0x165   : > { %v14931_v16 = vpop.f32.mrb[24].mxu1  ;;  %v14968_v33 = vpop.f32.mrb[22].mxu0  ;;  %v18509_v57 = vadd.f32 %v14966_v24, %v14965_v40  ;;  %v16995_v40 = vld [vmem:[%s17708_s26 + $0xa88] sm:$0xff]  }
 0x166   : > { %v14932_v27 = vpop.f32.mrb[25].mxu1  ;;  %15344 = vmatpush3.bf16.msra.mxu0 %v16968_v62  ;;  %v14969_v60 = vpop.f32.mrb[23].mxu0  ;;  %v4228_v62 = vrot.slane %v18482_v50, 3  ;;  %v4232_v35 = vsel %vm4220_vm5, %v4230_v11, %v4231_v0 }
 0x167   : > { %v14933_v26 = vadd.f32 %v14932_v27, %v14931_v16  ;;  %v14934_v2 = vpop.f32.mrb[26].mxu1  ;;  %15345 = vmatprep.subr.bf16.mxu0 %v16970_v21  ;;  %15318 = vmatpush3.bf16.msra.mxu1 %v16971_v18  ;;  %v17624_v16 = vld [vmem:[%s17723_s30 + $0x40] sm:$0xff] }
 0x168   : > { %v14935_v4 = vpop.f32.mrb[27].mxu1  ;;  %15319 = vmatprep.subr.bf16.mxu1 %v16973_v28  ;;  %v18498_v27 = vcombine.low %v17624_v16, %v4092_v51  ;;  %v16991_v18 = vld [vmem:[%s17708_s26 + $0xa80] sm:$0xff]   ;;  %v18511_v28 = vadd.f32 %v14969_v60, %v14968_v33  ;;  %4620 = vmatprep.mubr.bf16.mxu1 %v4232_v35  ;;  %v4823_v33 = vshrl.u32 %v18479_v45, 16 }
 0x169   : > { %v18453_v6 = vadd.f32 %v14933_v26, %v18378_v53  ;;  %v14936_v8 = vadd.f32 %v14935_v4, %v14934_v2  ;;  %v16975_v53 = vld [vmem:[%s17708_s26 + $0x9b0] sm:$0xff]   ;;  %v18501_v26 = vcombine.high %v17624_v16, %v4092_v51  ;;  %v4229_v4 = vsel %vm4220_vm5, %v4227_v31, %v4228_v62  ;;  %v17003_v51 = vld [vmem:[%s17708_s26 + $0xa98] sm:$0xff]  }
 0x16a   : > { %15346 = vmatpush3.bf16.msra.mxu0 %v16972_v10  ;;  %v4234_v10 = vrot.slane %v18498_v27, 3 }
 0x16b   : > { %v18460_v5 = vadd.f32 %v14936_v8, %v18385_v58  ;;  %15347 = vmatprep.subr.bf16.mxu0 %v16974_v30  ;;  %15320 = vmatpush3.bf16.msra.mxu1 %v16975_v53  ;;  %v16992_v8 = vld [vmem:[%s17708_s26 + $0xb00] sm:$0xff]   ;;  %v4237_v30 = vrot.slane %v18501_v26, 3 }
 0x16c   : > { %15321 = vmatprep.subr.bf16.mxu1 %v16977_v14  ;;  %v4843_v14 = vshll.u32 %v13176_v46, 16 }
 0x16d   : > { %v14937_v52 = vpop.f32.mrb[28].mxu1 }
 0x16e   : > { %v14938_v44 = vpop.f32.mrb[29].mxu1  ;;  %15348 = vmatpush3.bf16.msra.mxu0 %v16976_v41 }
 0x16f   : > { %v14939_v58 = vadd.f32 %v14938_v44, %v14937_v52  ;;  %v14940_v1 = vpop.f32.mrb[30].mxu1  ;;  %15349 = vmatprep.subr.bf16.mxu0 %v16978_v63  ;;  %15322 = vmatpush3.bf16.msra.mxu1 %v16979_v61  ;;  %v16994_v52 = vld [vmem:[%s17708_s26 + $0xb48] sm:$0xff]   ;;  %v4840_v44 = vshrl.u32 %v13176_v46, 16  ;;  %v18524_v61 = vrot.slane %v4843_v14, 4  ;;  %v18532_v46 = vrot.slane %v4851_v39, 4  ;;  %v17014_v14 = vld [vmem:[%s17708_s26 + $0xb70] sm:$0xff]  }
 0x170   : > { %v14941_v3 = vpop.f32.mrb[31].mxu1  ;;  %15363 = vmatprep.subr.bf16.mxu1 %v16989_v59  ;;  %v17005_v59 = vld [vmem:[%s17708_s26 + $0xae0] sm:$0xff]  }
 0x171   : > { %v18471_v9 = vadd.f32 %v14939_v58, %v18405_v13  ;;  %v14942_v25 = vadd.f32 %v14941_v3, %v14940_v1  ;;  %v4089_v13 = vld [vmem:[%s17723_s30 + $0x10] sm:$0x88]  ;;  %v16996_v58 = vld [vmem:[%s17708_s26 + $0xb08] sm:$0xff]   ;;  %v18521_v63 = vrot.slane %v4840_v44, 3 }
 0x172   : > { %v18490_v7 = vcombine.low %v4089_v13, %v17623_v34  ;;  %v18492_v19 = vcombine.high %v4089_v13, %v17623_v34  ;;  %15350 = vmatpush3.bf16.msra.mxu0 %v16980_v32  ;;  %4621 = vmatmul.mubr.bf16.vlgmr.msra.gmra.mrb[80].mxu1 %v4229_v4  ;;  %v16997_v1 = vld [vmem:[%s17708_s26 + $0xad0] sm:$0xff]   ;;  %v4848_v32 = vshrl.u32 %v13182_v55, 16  ;;  %v18537_v13 = vrot.slane %v4800_v29, 4  ;;  %v17004_v55 = vld [vmem:[%s17708_s26 + $0xb18] sm:$0xff]   ;;  %v17007_v29 = vld [vmem:[%s17708_s26 + $0xaa0] sm:$0xff]  }
 0x173   : > { %v18487_v54 = vadd.f32 %v14942_v25, %v18411_v20  ;;  %v16990_v20 = vld [vmem:[%s17708_s26 + $0xb40] sm:$0xff]   ;;  %15364 = vmatpush3.bf16.msra.mxu1 %v16991_v18  ;;  %4628 = vmatprep.mubr.bf16.mxu1 %v4231_v0  ;;  %v16998_v3 = vld [vmem:[%s17708_s26 + $0xb50] sm:$0xff]   ;;  %v4826_v34 = vshll.u32 %v18479_v45, 16  ;;  %v17009_v0 = vld [vmem:[%s17708_s26 + $0xae8] sm:$0xff]  }
 0x174   : > { %v4236_v21 = vrot.slane %v18492_v19, 3  ;;  %v4233_v2 = vrot.slane %v18490_v7, 3  ;;  %15391 = vmatprep.subr.bf16.mxu0 %v16990_v20  ;;  %15365 = vmatprep.subr.bf16.mxu1 %v16993_v36  ;;  %v16999_v25 = vld [vmem:[%s17708_s26 + $0xa90] sm:$0xff]   ;;  %v18529_v24 = vrot.slane %v4848_v32, 3  ;;  %v17010_v18 = vld [vmem:[%s17708_s26 + $0xb68] sm:$0xff]  }
 0x175   : > { %v17012_v36 = vld [vmem:[%s17708_s26 + $0xb28] sm:$0xff]   ;;  %v17015_v32 = vld [vmem:[%s17708_s26 + $0xab0] sm:$0xff]  }
 0x176   : > { %v4235_v53 = vsel %vm4220_vm5, %v4233_v2, %v4234_v10  ;;  %v4238_v41 = vsel %vm4220_vm5, %v4236_v21, %v4237_v30 }
 0x177   : > { %4669 = vmatprep.mubr.bf16.mxu0 %v4238_v41  ;;  %15366 = vmatpush3.bf16.msra.mxu1 %v16995_v40  ;;  %v17013_v40 = vld [vmem:[%s17708_s26 + $0xaf0] sm:$0xff]  }
 0x178   : > { %4670 = vmatmul.mubr.bf16.vlgmr.msra.gmra.mrb[72].mxu0 %v4235_v53  ;;  %15367 = vmatprep.subr.bf16.mxu1 %v16997_v1 }
 0x179   : > { %15392 = vmatpush3.bf16.msra.mxu0 %v16992_v8  ;;  %4677 = vmatprep.mubr.bf16.mxu0 %v4237_v30  ;;  %v17011_v8 = vld [vmem:[%s17708_s26 + $0xaa8] sm:$0xff]  }
 0x17a   : > { %15393 = vmatprep.subr.bf16.mxu0 %v16994_v52  ;;  %4629 = vmatmul.mubr.bf16.gmra.mrb[84].mxu1 %v4228_v62  ;;  %v17008_v62 = vld [vmem:[%s17708_s26 + $0xb20] sm:$0xff]  }
 0x17b   : > { %15368 = vmatpush3.bf16.msra.mxu1 %v16999_v25  ;;  %v15015_v60 = vpop.f32.mrb[24].mxu0 }
 0x17c   : > { %15369 = vmatprep.subr.bf16.mxu1 %v17001_v43  ;;  %v4812_v43 = vor.u32 %v18422_v42, %v18419_v47  ;;  %v17018_v47 = vld [vmem:[%s17708_s26 + $0xb78] sm:$0xff]  }
 0x17d   : > { %15394 = vmatpush3.bf16.msra.mxu0 %v16996_v58 }
 0x17e   : > { %15395 = vmatprep.subr.bf16.mxu0 %v16998_v3 }
 0x17f   : > { %15370 = vmatpush3.bf16.msra.mxu1 %v17003_v51  ;;  %v17017_v51 = vld [vmem:[%s17708_s26 + $0xaf8] sm:$0xff]  }
 0x180   : > { %4678 = vmatmul.mubr.bf16.gmra.mrb[76].mxu0 %v4234_v10  ;;  %15371 = vmatprep.subr.bf16.mxu1 %v17005_v59  ;;  %v15016_v10 = vpop.f32.mrb[25].mxu0  ;;  %v4846_v59 = vor.u32 %v18524_v61, %v18521_v63  ;;  %v17020_v63 = vld [vmem:[%s17708_s26 + $0xb38] sm:$0xff]  }
 0x181   : > { %15396 = vmatpush3.bf16.msra.mxu0 %v17000_v15  ;;  %v15017_v35 = vadd.f32 %v15016_v10, %v15015_v60  ;;  %v15018_v30 = vpop.f32.mrb[26].mxu0  ;;  %v4854_v60 = vor.u32 %v18532_v46, %v18529_v24  ;;  %v4825_v24 = vrot.slane %v4823_v33, 3  ;;  %v4828_v46 = vrot.slane %v4826_v34, 4  ;;  %v17024_v10 = vld [vmem:[%s17708_s26 + $0xb88] sm:$0xff]  }
 0x182   : > { %15397 = vmatprep.subr.bf16.mxu0 %v17002_v48  ;;  %v15019_v41 = vpop.f32.mrb[27].mxu0 }
 0x183   : > { %15372 = vmatpush3.bf16.msra.mxu1 %v17007_v29  ;;  %v15020_v44 = vadd.f32 %v15019_v41, %v15018_v30  ;;  %v17025_v30 = vld [vmem:[%s17708_s26 + $0xbd0] sm:$0xff]  }
 0x184   : > { %15373 = vmatprep.subr.bf16.mxu1 %v17009_v0  ;;  %v4829_v0 = vor.u32 %v4828_v46, %v4825_v24  ;;  %v17034_v46 = vld [vmem:[%s17708_s26 + $0xbb0] sm:$0xff]  }
 0x185   : > { %v14987_v11 = vpop.f32.mrb[32].mxu1  ;;  %15398 = vmatpush3.bf16.msra.mxu0 %v17004_v55 }
 0x186   : > { %v14988_v31 = vpop.f32.mrb[33].mxu1  ;;  %15399 = vmatprep.subr.bf16.mxu0 %v17006_v12 }
 0x187   : > { %v14989_v16 = vadd.f32 %v14988_v31, %v14987_v11  ;;  %v14990_v20 = vpop.f32.mrb[34].mxu1  ;;  %15374 = vmatpush3.bf16.msra.mxu1 %v17011_v8  ;;  %v4877_v8 = vshll.u32 %v18492_v19, 16 }
 0x188   : > { %v14991_v21 = vpop.f32.mrb[35].mxu1  ;;  %15375 = vmatprep.subr.bf16.mxu1 %v17013_v40 }
 0x189   : > { %v2115_v2 = vadd.f32 %v14989_v16, %v18457_v22  ;;  %v14992_v4 = vadd.f32 %v14991_v21, %v14990_v20  ;;  %15400 = vmatpush3.bf16.msra.mxu0 %v17008_v62  ;;  %v15021_v22 = vpop.f32.mrb[28].mxu0  ;;  %v4834_v16 = vshll.u32 %v18482_v50, 16  ;;  %v17022_v20 = vld [vmem:[%s17708_s26 + $0xb80] sm:$0xff]   ;;  %v4879_v41 = vrot.slane %v4877_v8, 4 }
 0x18a   : > { %15401 = vmatprep.subr.bf16.mxu0 %v17010_v18  ;;  %v15022_v11 = vpop.f32.mrb[29].mxu0  ;;  %v17023_v18 = vld [vmem:[%s17708_s26 + $0xbc8] sm:$0xff]  }
 0x18b   : > { %v2118_v53 = vadd.f32 %v14992_v4, %v18464_v38  ;;  %v2164_v52 = vadd.f32 %v15017_v35, %v2115_v2  ;;  %v17016_v38 = vld [vmem:[%s17708_s26 + $0xb30] sm:$0xff]   ;;  %15376 = vmatpush3.bf16.msra.mxu1 %v17015_v32  ;;  %v15023_v29 = vadd.f32 %v15022_v11, %v15021_v22  ;;  %v15024_v31 = vpop.f32.mrb[30].mxu0  ;;  %v4836_v2 = vrot.slane %v4834_v16, 4 }
 0x18c   : > { %15377 = vmatprep.subr.bf16.mxu1 %v17017_v51  ;;  %v4874_v4 = vshrl.u32 %v18492_v19, 16  ;;  %v17027_v19 = vld [vmem:[%s17708_s26 + $0xbd8] sm:$0xff]   ;;  %v4860_v32 = vshll.u32 %v18490_v7, 16 }
 0x18d   : > { %v14993_v58 = vpop.f32.mrb[36].mxu1  ;;  %v18556_v1 = vadd.f32 %v2164_v52, %v18453_v6  ;;  %v2167_v3 = vadd.f32 %v15020_v44, %v2118_v53  ;;  %15402 = vmatpush3.bf16.msra.mxu0 %v17012_v36  ;;  %v4820_v6 = vor.u32 %v18431_v37, %v18428_v49  ;;  %v4795_v49 = vor.u32 %v18441_v17, %v18438_v56 }
 0x18e   : > { %v14994_v25 = vpop.f32.mrb[37].mxu1  ;;  %15403 = vmatprep.subr.bf16.mxu0 %v17014_v14  ;;  %v4803_v37 = vor.u32 %v18537_v13, %v18476_v23  ;;  %v4855_v17 = vsel %vm4787_vm6, %v4846_v59, %v4854_v60  ;;  %v17021_v13 = vld [vmem:[%s17708_s26 + $0xbc0] sm:$0xff]   ;;  %v4882_v36 = vshrl.u32 %v18501_v26, 16  ;;  %v4876_v53 = vrot.slane %v4874_v4, 3 }
 0x18f   : > { %v14995_v39 = vadd.f32 %v14994_v25, %v14993_v58  ;;  %v14996_v15 = vpop.f32.mrb[38].mxu1  ;;  %v18563_v48 = vadd.f32 %v2167_v3, %v18460_v5  ;;  %v17019_v5 = vld [vmem:[%s17708_s26 + $0xab8] sm:$0xff]   ;;  %v4821_v56 = vsel %vm4787_vm6, %v4812_v43, %v4820_v6  ;;  %5271 = vmatprep.mubr.bf16.mxu0 %v4855_v17  ;;  %v4885_v44 = vshll.u32 %v18501_v26, 16  ;;  %v17029_v25 = vld [vmem:[%s17708_s26 + $0xbe0] sm:$0xff]  }
 0x190   : > { %v14997_v55 = vpop.f32.mrb[39].mxu1  ;;  %5222 = vmatprep.mubr.bf16.mxu1 %v4821_v56  ;;  %15378 = vmatpush3.bf16.msra.mxu1 %v17019_v5  ;;  %v4804_v34 = vsel %vm4787_vm6, %v4795_v49, %v4803_v37  ;;  %v4884_v52 = vrot.slane %v4882_v36, 3  ;;  %v4880_v40 = vor.u32 %v4879_v41, %v4876_v53  ;;  %v4857_v14 = vshrl.u32 %v18490_v7, 16  ;;  %v17028_v58 = vld [vmem:[%s17708_s26 + $0xb98] sm:$0xff]  }
 0x191   : > { %v2123_v12 = vadd.f32 %v14995_v39, %v18509_v57  ;;  %v14998_v42 = vadd.f32 %v14997_v55, %v14996_v15  ;;  %v15025_v57 = vpop.f32.mrb[31].mxu0  ;;  %15404 = vmatpush3.bf16.msra.mxu0 %v17016_v38  ;;  %15419 = vmatprep.subr.bf16.mxu1 %v17021_v13  ;;  %v4887_v22 = vrot.slane %v4885_v44, 4  ;;  %v17030_v38 = vld [vmem:[%s17708_s26 + $0xba0] sm:$0xff]   ;;  %v4865_v15 = vshrl.u32 %v18498_v27, 16  ;;  %v17031_v55 = vld [vmem:[%s17708_s26 + $0xbe8] sm:$0xff]  }
 0x192   : > { %v15026_v23 = vadd.f32 %v15025_v57, %v15024_v31  ;;  %15405 = vmatprep.subr.bf16.mxu0 %v17018_v47  ;;  %v4868_v47 = vshll.u32 %v18498_v27, 16  ;;  %v17033_v57 = vld [vmem:[%s17708_s26 + $0xbf0] sm:$0xff]   ;;  %v17035_v27 = vld [vmem:[%s17708_s26 + $0xbf8] sm:$0xff]  }
 0x193   : > { %v2126_v61 = vadd.f32 %v14998_v42, %v18511_v28  ;;  %v2172_v62 = vadd.f32 %v15023_v29, %v2123_v12  ;;  %v4831_v28 = vshrl.u32 %v18482_v50, 16  ;;  %5223 = vmatmul.mubr.bf16.vlgmr.msra.gmra.mrb[88].mxu1 %v4804_v34  ;;  %v4888_v3 = vor.u32 %v4887_v22, %v4884_v52  ;;  %v17032_v29 = vld [vmem:[%s17708_s26 + $0xba8] sm:$0xff]  }
 0x194   : > { %15420 = vmatpush3.bf16.msra.mxu1 %v17022_v20  ;;  %5230 = vmatprep.mubr.bf16.mxu1 %v4820_v6  ;;  %v4859_v6 = vrot.slane %v4857_v14, 3  ;;  %v4862_v12 = vrot.slane %v4860_v32, 4 }
 0x195   : > { %v18591_v45 = vadd.f32 %v2172_v62, %v18471_v9  ;;  %v2175_v33 = vadd.f32 %v15026_v23, %v2126_v61  ;;  %v4833_v21 = vrot.slane %v4831_v28, 3  ;;  %15406 = vmatpush3.bf16.msra.mxu0 %v17020_v63  ;;  %15421 = vmatprep.subr.bf16.mxu1 %v17023_v18  ;;  %v4889_v26 = vsel %vm4787_vm6, %v4880_v40, %v4888_v3 }
 0x196   : > { %v4870_v62 = vrot.slane %v4868_v47, 4 }
 0x197   : > { %v18598_v50 = vadd.f32 %v2175_v33, %v18487_v54  ;;  %v4837_v9 = vor.u32 %v4836_v2, %v4833_v21  ;;  %v17026_v54 = vld [vmem:[%s17708_s26 + $0xb90] sm:$0xff]  }
 0x198   : > { %15422 = vmatpush3.bf16.msra.mxu1 %v17024_v10 }
 0x199   : > { %v4838_v35 = vsel %vm4787_vm6, %v4829_v0, %v4837_v9  ;;  %15423 = vmatprep.subr.bf16.mxu1 %v17025_v30  ;;  %v17036_v0 = vld [vmem:[%s17708_s26 + $0xbb8] sm:$0xff]  }
 0x19a   : > { %5272 = vmatmul.mubr.bf16.vlgmr.msra.gmra.mrb[80].mxu0 %v4838_v35 }
 0x19b   : > { %5279 = vmatprep.mubr.bf16.mxu0 %v4854_v60  ;;  %5231 = vmatmul.mubr.bf16.gmra.mrb[92].mxu1 %v4803_v37  ;;  %v15071_v39 = vpop.f32.mrb[32].mxu0  ;;  %v4867_v37 = vrot.slane %v4865_v15, 3 }
 0x19c   : > { %15424 = vmatpush3.bf16.msra.mxu1 %v17026_v54  ;;  %v15072_v51 = vpop.f32.mrb[33].mxu0  ;;  %5320 = vmatprep.mubr.bf16.mxu1 %v4889_v26 }
 0x19d   : > { %15425 = vmatprep.subr.bf16.mxu1 %v17027_v19  ;;  %v15073_v60 = vadd.f32 %v15072_v51, %v15071_v39  ;;  %v15074_v7 = vpop.f32.mrb[34].mxu0  ;;  %v4871_v10 = vor.u32 %v4870_v62, %v4867_v37 }
 0x19e   : > { %v15075_v5 = vpop.f32.mrb[35].mxu0 }
 0x19f   : > { %v15076_v49 = vadd.f32 %v15075_v5, %v15074_v7 }
 0x1a0   : > { %15426 = vmatpush3.bf16.msra.mxu1 %v17028_v58 }
 0x1a1   : > { %15427 = vmatprep.subr.bf16.mxu1 %v17029_v25 }
 0x1a2   : > { %5280 = vmatmul.mubr.bf16.gmra.mrb[84].mxu0 %v4837_v9  ;;  %v4863_v9 = vor.u32 %v4862_v12, %v4859_v6 }
 0x1a3   : > { %v15077_v56 = vpop.f32.mrb[36].mxu0 }
 0x1a4   : > { %15428 = vmatpush3.bf16.msra.mxu1 %v17030_v38  ;;  %v15078_v23 = vpop.f32.mrb[37].mxu0  ;;  %v4872_v35 = vsel %vm4787_vm6, %v4863_v9, %v4871_v10 }
 0x1a5   : > { %v15043_v43 = vpop.f32.mrb[40].mxu1  ;;  %15429 = vmatprep.subr.bf16.mxu1 %v17031_v55  ;;  %v15079_v28 = vadd.f32 %v15078_v23, %v15077_v56  ;;  %v15080_v16 = vpop.f32.mrb[38].mxu0 }
 0x1a6   : > { %v15044_v59 = vpop.f32.mrb[41].mxu1  ;;  %v15081_v20 = vpop.f32.mrb[39].mxu0 }
 0x1a7   : > { %v15045_v42 = vadd.f32 %v15044_v59, %v15043_v43  ;;  %v15046_v11 = vpop.f32.mrb[42].mxu1  ;;  %v15082_v2 = vadd.f32 %v15081_v20, %v15080_v16 }
 0x1a8   : > { %v15047_v31 = vpop.f32.mrb[43].mxu1  ;;  %15430 = vmatpush3.bf16.msra.mxu1 %v17032_v29 }
 0x1a9   : > { %v2766_v63 = vadd.f32 %v15073_v60, %v15045_v42  ;;  %v15048_v61 = vadd.f32 %v15047_v31, %v15046_v11  ;;  %15431 = vmatprep.subr.bf16.mxu1 %v17033_v57 }
 0x1ab   : > { %v2769_v24 = vadd.f32 %v15076_v49, %v15048_v61 }
 0x1ac   : > { %15432 = vmatpush3.bf16.msra.mxu1 %v17034_v46 }
 0x1ad   : > { %v15049_v17 = vpop.f32.mrb[44].mxu1  ;;  %15433 = vmatprep.subr.bf16.mxu1 %v17035_v27 }
 0x1ae   : > { %v15050_v13 = vpop.f32.mrb[45].mxu1 }
 0x1af   : > { %v15051_v33 = vadd.f32 %v15050_v13, %v15049_v17  ;;  %v15052_v34 = vpop.f32.mrb[46].mxu1 }
 0x1b0   : > { %v15053_v21 = vpop.f32.mrb[47].mxu1  ;;  %15434 = vmatpush3.bf16.msra.mxu1 %v17036_v0 }
 0x1b1   : > { %v2774_v18 = vadd.f32 %v15079_v28, %v15051_v33  ;;  %v15054_v4 = vadd.f32 %v15053_v21, %v15052_v34 }
 0x1b3   : > { %v2777_v8 = vadd.f32 %v15082_v2, %v15054_v4  ;;  %5321 = vmatmul.mubr.bf16.vlgmr.msra.gmra.mrb[96].mxu1 %v4872_v35 }
 0x1b4   : > { %5328 = vmatprep.mubr.bf16.mxu1 %v4888_v3 }
 0x1bb   : > { %5329 = vmatmul.mubr.bf16.gmra.mrb[100].mxu1 %v4871_v10  ;;  %v15127_v36 = vpop.f32.mrb[40].mxu0 }
 0x1bc   : > { %v15128_v41 = vpop.f32.mrb[41].mxu0 }
 0x1bd   : > { %v15129_v44 = vadd.f32 %v15128_v41, %v15127_v36  ;;  %v15130_v19 = vpop.f32.mrb[42].mxu0  ;;  %v20347_v36 = vmov 0.0  }
 0x1be   : > { %v15131_v22 = vpop.f32.mrb[43].mxu0  ;;  %16283 = vmatprep.subr.bf16.mxu1 %v20347_v36  ;;  %16263 = vmatprep.subr.bf16.mxu0 %v20347_v36 }
 0x1bf   : > { %v15132_v32 = vadd.f32 %v15131_v22, %v15130_v19  ;;  %v17039_v19 = vld [vmem:[%s18638_s10 + $0x8] sm:$0xff]   ;;  %v17041_v22 = vld [vmem:[%s18638_s10 + $0x10] sm:$0xff]   ;;  %16299 = vmatprep.mubr.msk.bf16.mxu1 %vm17656_vm7, %v20347_v36  ;;  %16279 = vmatprep.mubr.msk.bf16.mxu0 %vm17656_vm7, %v20347_v36 }
 0x1c3   : > { %v15133_v26 = vpop.f32.mrb[44].mxu0 }
 0x1c4   : > { %v15134_v43 = vpop.f32.mrb[45].mxu0 }
 0x1c5   : > { %v15099_v30 = vpop.f32.mrb[48].mxu1  ;;  %v15135_v6 = vadd.f32 %v15134_v43, %v15133_v26  ;;  %v15136_v59 = vpop.f32.mrb[46].mxu0 }
 0x1c6   : > { %v15100_v53 = vpop.f32.mrb[49].mxu1  ;;  %v15137_v7 = vpop.f32.mrb[47].mxu0 }
 0x1c7   : > { %v15101_v54 = vadd.f32 %v15100_v53, %v15099_v30  ;;  %v15102_v52 = vpop.f32.mrb[50].mxu1  ;;  %v15138_v42 = vadd.f32 %v15137_v7, %v15136_v59 }
 0x1c8   : > { %v15103_v40 = vpop.f32.mrb[51].mxu1 }
 0x1c9   : > { %v2815_v14 = vadd.f32 %v15101_v54, %v2766_v63  ;;  %v15104_v58 = vadd.f32 %v15103_v40, %v15102_v52  ;;  %v17037_v54 = vld [vmem:[%s18638_s10] sm:$0xff]   ;;  %v17040_v40 = vld [vmem:[%s18638_s10 + $0x48] sm:$0xff]  }
 0x1ca   : > { %v17038_v52 = vld [vmem:[%s18638_s10 + $0x40] sm:$0xff]   ;;  %16284 = vmatpush3.bf16.msra.mxu1 %v17037_v54 }
 0x1cb   : > { %v2829_v25 = vadd.f32 %v2815_v14, %v18556_v1  ;;  %v2818_v38 = vadd.f32 %v15104_v58, %v2769_v24  ;;  %16264 = vmatpush3.bf16.msra.mxu0 %v17038_v52  ;;  %16285 = vmatprep.subr.bf16.mxu1 %v20347_v36  ;;  %v17042_v14 = vld [vmem:[%s18638_s10 + $0x50] sm:$0xff]   ;;  %v17043_v58 = vld [vmem:[%s18638_s10 + $0x18] sm:$0xff]  }
 0x1cc   : > { %16265 = vmatprep.subr.bf16.mxu0 %v20347_v36 }
 0x1cd   : > { %v2830_v39 = vadd.f32 %v2818_v38, %v18563_v48  ;;  %v15105_v3 = vpop.f32.mrb[52].mxu1 }
 0x1ce   : > { %v15106_v15 = vpop.f32.mrb[53].mxu1  ;;  %16286 = vmatpush3.bf16.msra.mxu1 %v17039_v19 }
 0x1cf   : > { %v15107_v51 = vadd.f32 %v15106_v15, %v15105_v3  ;;  %v15108_v55 = vpop.f32.mrb[54].mxu1  ;;  %16266 = vmatpush3.bf16.msra.mxu0 %v17040_v40  ;;  %16287 = vmatprep.subr.bf16.mxu1 %v20347_v36 }
 0x1d0   : > { %v15109_v60 = vpop.f32.mrb[55].mxu1  ;;  %16267 = vmatprep.subr.bf16.mxu0 %v20347_v36 }
 0x1d1   : > { %v2823_v12 = vadd.f32 %v15107_v51, %v2774_v18  ;;  %v15110_v47 = vadd.f32 %v15109_v60, %v15108_v55 }
 0x1d2   : > { %16288 = vmatpush3.bf16.msra.mxu1 %v17041_v22 }
 0x1d3   : > { %v2831_v11 = vadd.f32 %v2823_v12, %v18591_v45  ;;  %v2826_v5 = vadd.f32 %v15110_v47, %v2777_v8  ;;  %16268 = vmatpush3.bf16.msra.mxu0 %v17042_v14  ;;  %16289 = vmatprep.subr.bf16.mxu1 %v20347_v36  ;;  %v17045_v12 = vld [vmem:[%s18638_s10 + $0x20] sm:$0xff]  }
 0x1d4   : > { %16269 = vmatprep.subr.bf16.mxu0 %v20347_v36 }
 0x1d5   : > { %v2832_v1 = vadd.f32 %v2826_v5, %v18598_v50 }
 0x1d6   : > { %16290 = vmatpush3.bf16.msra.mxu1 %v17043_v58 }
 0x1d7   : > { %16291 = vmatprep.subr.bf16.mxu1 %v20347_v36 }
 0x1da   : > { %16292 = vmatpush3.bf16.msra.mxu1 %v17045_v12 }
 0x1db   : > { %v15183_v31 = vpop.f32.mrb[48].mxu0  ;;  %16293 = vmatprep.subr.bf16.mxu1 %v20347_v36 }
 0x1dc   : > { %v15184_v63 = vpop.f32.mrb[49].mxu0 }
 0x1dd   : > { %v15185_v57 = vadd.f32 %v15184_v63, %v15183_v31  ;;  %v15186_v24 = vpop.f32.mrb[50].mxu0 }
 0x1de   : > { %v15187_v56 = vpop.f32.mrb[51].mxu0 }
 0x1df   : > { %v15188_v27 = vadd.f32 %v15187_v56, %v15186_v24 }
 0x1e3   : > { %v15189_v16 = vpop.f32.mrb[52].mxu0 }
 0x1e4   : > { %v15190_v0 = vpop.f32.mrb[53].mxu0 }
 0x1e5   : > { %v15155_v29 = vpop.f32.mrb[56].mxu1  ;;  %v15191_v2 = vadd.f32 %v15190_v0, %v15189_v16  ;;  %v15192_v18 = vpop.f32.mrb[54].mxu0 }
 0x1e6   : > { %v15156_v48 = vpop.f32.mrb[57].mxu1  ;;  %v15193_v10 = vpop.f32.mrb[55].mxu0 }
 0x1e7   : > { %v15157_v49 = vadd.f32 %v15156_v48, %v15155_v29  ;;  %v15158_v37 = vpop.f32.mrb[58].mxu1  ;;  %v15194_v8 = vadd.f32 %v15193_v10, %v15192_v18 }
 0x1e8   : > { %v15159_v61 = vpop.f32.mrb[59].mxu1 }
 0x1e9   : > { %v3369_v46 = vadd.f32 %v15157_v49, %v15129_v44  ;;  %v15160_v62 = vadd.f32 %v15159_v61, %v15158_v37  ;;  %v17047_v49 = vld [vmem:[%s18638_s10 + $0x28] sm:$0xff]  }
 0x1ea   : > { %16294 = vmatpush3.bf16.msra.mxu1 %v17047_v49 }
 0x1eb   : > { %v3372_v17 = vadd.f32 %v15160_v62, %v15132_v32  ;;  %v3418_v23 = vadd.f32 %v15185_v57, %v3369_v46  ;;  %v17044_v32 = vld [vmem:[%s18638_s10 + $0x58] sm:$0xff]   ;;  %v17048_v46 = vld [vmem:[%s18638_s10 + $0x68] sm:$0xff]   ;;  %16295 = vmatprep.subr.bf16.mxu1 %v20347_v36 }
 0x1ec   : > { %16270 = vmatpush3.bf16.msra.mxu0 %v17044_v32 }
 0x1ed   : > { %v18627_v13 = vadd.f32 %v3418_v23, %v2829_v25  ;;  %v3421_v45 = vadd.f32 %v15188_v27, %v3372_v17  ;;  %v15161_v28 = vpop.f32.mrb[60].mxu1  ;;  %16271 = vmatprep.subr.bf16.mxu0 %v20347_v36  ;;  %v17049_v27 = vld [vmem:[%s18638_s10 + $0x30] sm:$0xff]  }
 0x1ee   : > { %v15162_v50 = vpop.f32.mrb[61].mxu1  ;;  %16296 = vmatpush3.bf16.msra.mxu1 %v17049_v27  ;;  %v17050_v23 = vld [vmem:[%s18638_s10 + $0x70] sm:$0xff]  }
 0x1ef   : > { %v18629_v33 = vadd.f32 %v3421_v45, %v2830_v39  ;;  %v15163_v34 = vadd.f32 %v15162_v50, %v15161_v28  ;;  %v15164_v20 = vpop.f32.mrb[62].mxu1  ;;  %16297 = vmatprep.subr.bf16.mxu1 %v20347_v36  ;;  %v17051_v45 = vld [vmem:[%s18638_s10 + $0x38] sm:$0xff]  }
 0x1f0   : > { %v15165_v21 = vpop.f32.mrb[63].mxu1  ;;  %v17052_v28 = vld [vmem:[%s18638_s10 + $0x78] sm:$0xff]  }
 0x1f1   : > { %v3377_v4 = vadd.f32 %v15163_v34, %v15135_v6  ;;  %v15166_v9 = vadd.f32 %v15165_v21, %v15164_v20 }
 0x1f2   : > { %16298 = vmatpush3.bf16.msra.mxu1 %v17051_v45 }
 0x1f3   : > { %v3380_v35 = vadd.f32 %v15166_v9, %v15138_v42  ;;  %v3426_v30 = vadd.f32 %v15191_v2, %v3377_v4  ;;  %16323 = vmatprep.subr.bf16.mxu1 %v20347_v36 }
 0x1f5   : > { %v18641_v53 = vadd.f32 %v3426_v30, %v2831_v11  ;;  %v3429_v41 = vadd.f32 %v15194_v8, %v3380_v35  ;;  %v17046_v11 = vld [vmem:[%s18638_s10 + $0x60] sm:$0xff]  }
 0x1f6   : > { %16272 = vmatpush3.bf16.msra.mxu0 %v17046_v11 }
 0x1f7   : > { %v18645_v44 = vadd.f32 %v3429_v41, %v2832_v1  ;;  %16273 = vmatprep.subr.bf16.mxu0 %v20347_v36 }
 0x1fa   : > { %16274 = vmatpush3.bf16.msra.mxu0 %v17048_v46 }
 0x1fb   : > { %v15239_v38 = vpop.f32.mrb[56].mxu0  ;;  %16275 = vmatprep.subr.bf16.mxu0 %v20347_v36 }
 0x1fc   : > { %v15240_v26 = vpop.f32.mrb[57].mxu0 }
 0x1fd   : > { %v15241_v43 = vadd.f32 %v15240_v26, %v15239_v38  ;;  %v15242_v51 = vpop.f32.mrb[58].mxu0 }
 0x1fe   : > { %v15243_v59 = vpop.f32.mrb[59].mxu0  ;;  %16276 = vmatpush3.bf16.msra.mxu0 %v17050_v23 }
 0x1ff   : > { %v15244_v7 = vadd.f32 %v15243_v59, %v15242_v51  ;;  %16277 = vmatprep.subr.bf16.mxu0 %v20347_v36 }
 0x202   : > { %16278 = vmatpush3.bf16.msra.mxu0 %v17052_v28 }
 0x203   : > { %v15245_v5 = vpop.f32.mrb[60].mxu0  ;;  %16303 = vmatprep.subr.bf16.mxu0 %v20347_v36 }
 0x204   : > { %v15246_v48 = vpop.f32.mrb[61].mxu0 }
 0x205   : > { %v15211_v25 = vpop.f32.mrb[64].mxu1  ;;  %v15247_v37 = vadd.f32 %v15246_v48, %v15245_v5  ;;  %v15248_v63 = vpop.f32.mrb[62].mxu0 }
 0x206   : > { %v15212_v39 = vpop.f32.mrb[65].mxu1  ;;  %v15249_v24 = vpop.f32.mrb[63].mxu0 }
 0x207   : > { %v15213_v3 = vadd.f32 %v15212_v39, %v15211_v25  ;;  %v15214_v15 = vpop.f32.mrb[66].mxu1  ;;  %v15250_v56 = vadd.f32 %v15249_v24, %v15248_v63 }
 0x208   : > { %v15215_v55 = vpop.f32.mrb[67].mxu1 }
 0x209   : > { %v15216_v6 = vadd.f32 %v15215_v55, %v15214_v15  ;;  %v4020_v60 = vadd.f32 %v15241_v43, %v15213_v3 }
 0x20b   : > { %v4023_v47 = vadd.f32 %v15244_v7, %v15216_v6 }
 0x20d   : > { %v15217_v42 = vpop.f32.mrb[68].mxu1 }
 0x20e   : > { %v15218_v1 = vpop.f32.mrb[69].mxu1 }
 0x20f   : > { %v15219_v29 = vadd.f32 %v15218_v1, %v15217_v42  ;;  %v15220_v31 = vpop.f32.mrb[70].mxu1 }
 0x210   : > { %v15221_v61 = vpop.f32.mrb[71].mxu1 }
 0x211   : > { %v15222_v57 = vadd.f32 %v15221_v61, %v15220_v31  ;;  %v4028_v62 = vadd.f32 %v15247_v37, %v15219_v29 }
 0x213   : > { %v4031_v17 = vadd.f32 %v15250_v56, %v15222_v57 }
 0x225   : > { %v15267_v50 = vpop.f32.mrb[72].mxu1 }
 0x226   : > { %v15268_v16 = vpop.f32.mrb[73].mxu1 }
 0x227   : > { %v15269_v34 = vadd.f32 %v15268_v16, %v15267_v50  ;;  %v15270_v20 = vpop.f32.mrb[74].mxu1 }
 0x228   : > { %v15271_v0 = vpop.f32.mrb[75].mxu1  ;;  %v15295_v18 = vpop.f32.mrb[64].mxu0 }
 0x229   : > { %v4069_v21 = vadd.f32 %v15269_v34, %v4020_v60  ;;  %v15272_v2 = vadd.f32 %v15271_v0, %v15270_v20  ;;  %v15296_v4 = vpop.f32.mrb[65].mxu0 }
 0x22a   : > { %v15297_v8 = vadd.f32 %v15296_v4, %v15295_v18  ;;  %v15298_v35 = vpop.f32.mrb[66].mxu0 }
 0x22b   : > { %v4083_v9 = vadd.f32 %v4069_v21, %v18627_v13  ;;  %v4072_v10 = vadd.f32 %v15272_v2, %v4023_v47  ;;  %v15299_v30 = vpop.f32.mrb[67].mxu0 }
 0x22c   : > { %v15300_v52 = vadd.f32 %v15299_v30, %v15298_v35 }
 0x22d   : > { %v4084_v41 = vadd.f32 %v4072_v10, %v18629_v33  ;;  %v15273_v54 = vpop.f32.mrb[76].mxu1 }
 0x22e   : > { %v15274_v19 = vpop.f32.mrb[77].mxu1 }
 0x22f   : > { %v15275_v40 = vadd.f32 %v15274_v19, %v15273_v54  ;;  %v15276_v22 = vpop.f32.mrb[78].mxu1 }
 0x230   : > { %v15277_v14 = vpop.f32.mrb[79].mxu1  ;;  %v15301_v25 = vpop.f32.mrb[68].mxu0 }
 0x231   : > { %v4077_v58 = vadd.f32 %v15275_v40, %v4028_v62  ;;  %v15278_v32 = vadd.f32 %v15277_v14, %v15276_v22  ;;  %v15302_v38 = vpop.f32.mrb[69].mxu0 }
 0x232   : > { %v15303_v13 = vadd.f32 %v15302_v38, %v15301_v25  ;;  %v15304_v26 = vpop.f32.mrb[70].mxu0 }
 0x233   : > { %v4085_v39 = vadd.f32 %v4077_v58, %v18641_v53  ;;  %v4080_v3 = vadd.f32 %v15278_v32, %v4031_v17  ;;  %v15305_v15 = vpop.f32.mrb[71].mxu0 }
 0x234   : > { %v15306_v51 = vadd.f32 %v15305_v15, %v15304_v26 }
 0x235   : > { %v4086_v43 = vadd.f32 %v4080_v3, %v18645_v44 }
 0x245   : > { %v15323_v33 = vpop.f32.mrb[80].mxu1 }
 0x246   : > { %v15324_v55 = vpop.f32.mrb[81].mxu1 }
 0x247   : > { %v15325_v6 = vadd.f32 %v15324_v55, %v15323_v33  ;;  %v15326_v59 = vpop.f32.mrb[82].mxu1 }
 0x248   : > { %v15327_v7 = vpop.f32.mrb[83].mxu1 }
 0x249   : > { %v4623_v47 = vadd.f32 %v15325_v6, %v15297_v8  ;;  %v15328_v42 = vadd.f32 %v15327_v7, %v15326_v59  ;;  %v13377_v7 = vld [vmem:[%s18689_s13] ss:$0 sm:$0xff] }
 0x24b   : > { %v15351_v60 = vpop.f32.mrb[72].mxu0  ;;  %v4626_v53 = vadd.f32 %v15328_v42, %v15300_v52 }
 0x24c   : > { %v15352_v12 = vpop.f32.mrb[73].mxu0 }
 0x24d   : > { %v15353_v11 = vadd.f32 %v15352_v12, %v15351_v60  ;;  %v15354_v5 = vpop.f32.mrb[74].mxu0  ;;  %v15329_v37 = vpop.f32.mrb[84].mxu1 }
 0x24e   : > { %v15355_v1 = vpop.f32.mrb[75].mxu0  ;;  %v15330_v44 = vpop.f32.mrb[85].mxu1 }
 0x24f   : > { %v4672_v29 = vadd.f32 %v15353_v11, %v4623_v47  ;;  %v15356_v48 = vadd.f32 %v15355_v1, %v15354_v5  ;;  %v15331_v61 = vadd.f32 %v15330_v44, %v15329_v37  ;;  %v15332_v57 = vpop.f32.mrb[86].mxu1 }
 0x250   : > { %v15333_v46 = vpop.f32.mrb[87].mxu1 }
 0x251   : > { %v4686_v31 = vadd.f32 %v4672_v29, %v4083_v9  ;;  %v4675_v49 = vadd.f32 %v15356_v48, %v4626_v53  ;;  %v4631_v56 = vadd.f32 %v15331_v61, %v15303_v13  ;;  %v15334_v27 = vadd.f32 %v15333_v46, %v15332_v57  ;;  %v18693_v57 = vld [vmem:[%s18638_s10 + $0xc0] sm:$0xff]  }
 0x253   : > { %v4687_v63 = vadd.f32 %v4675_v49, %v4084_v41  ;;  %v15357_v24 = vpop.f32.mrb[76].mxu0  ;;  %v4634_v28 = vadd.f32 %v15334_v27, %v15306_v51  ;;  %v18696_v27 = vld [vmem:[%s18638_s10 + $0x80] sm:$0xff]  }
 0x254   : > { %v15358_v62 = vpop.f32.mrb[77].mxu0 }
 0x255   : > { %v15359_v17 = vadd.f32 %v15358_v62, %v15357_v24  ;;  %v15360_v23 = vpop.f32.mrb[78].mxu0 }
 0x256   : > { %v15361_v45 = vpop.f32.mrb[79].mxu0 }
 0x257   : > { %v4680_v50 = vadd.f32 %v15359_v17, %v4631_v56  ;;  %v15362_v16 = vadd.f32 %v15361_v45, %v15360_v23 }
 0x259   : > { %v4688_v34 = vadd.f32 %v4680_v50, %v4085_v39  ;;  %v4683_v20 = vadd.f32 %v15362_v16, %v4634_v28  ;;  %v18704_v50 = vld [vmem:[%s18638_s10 + $0xc8] sm:$0xff]  }
 0x25b   : > { %v4689_v0 = vadd.f32 %v4683_v20, %v4086_v43  ;;  %v18714_v20 = vld [vmem:[%s18638_s10 + $0xd0] sm:$0xff]  }
 0x266   : > { %v15379_v21 = vpop.f32.mrb[88].mxu1 }
 0x267   : > { %v15380_v2 = vpop.f32.mrb[89].mxu1 }
 0x268   : > { %v15381_v18 = vadd.f32 %v15380_v2, %v15379_v21  ;;  %v15382_v4 = vpop.f32.mrb[90].mxu1  ;;  %v18721_v2 = vld [vmem:[%s18638_s10 + $0x90] sm:$0xff]  }
 0x269   : > { %v15383_v10 = vpop.f32.mrb[91].mxu1 }
 0x26a   : > { %v15384_v35 = vadd.f32 %v15383_v10, %v15382_v4  ;;  %v18728_v4 = vld [vmem:[%s18638_s10 + $0xd8] sm:$0xff]  }
 0x26d   : > { %v15407_v9 = vpop.f32.mrb[80].mxu0 }
 0x26e   : > { %v15408_v8 = vpop.f32.mrb[81].mxu0  ;;  %v15385_v40 = vpop.f32.mrb[92].mxu1 }
 0x26f   : > { %v15409_v30 = vadd.f32 %v15408_v8, %v15407_v9  ;;  %v15410_v41 = vpop.f32.mrb[82].mxu0  ;;  %v15386_v14 = vpop.f32.mrb[93].mxu1  ;;  %v18735_v8 = vld [vmem:[%s18638_s10 + $0x98] sm:$0xff]  }
 0x270   : > { %v15411_v54 = vpop.f32.mrb[83].mxu0  ;;  %v15387_v58 = vadd.f32 %v15386_v14, %v15385_v40  ;;  %v15388_v32 = vpop.f32.mrb[94].mxu1  ;;  %v18770_v40 = vld [vmem:[%s18638_s10 + $0xf8] sm:$0xff]   ;;  %v17625_v14 = vld [vmem:[%s18638_s10] sm:$0xff]  }
 0x271   : > { %v5274_v52 = vadd.f32 %v15409_v30, %v15381_v18  ;;  %v15412_v19 = vadd.f32 %v15411_v54, %v15410_v41  ;;  %v15389_v38 = vpop.f32.mrb[95].mxu1  ;;  %v18745_v30 = vld [vmem:[%s18638_s10 + $0xa0] sm:$0xff]   ;;  %v18750_v41 = vld [vmem:[%s18638_s10 + $0xe8] sm:$0xff]  }
 0x272   : > { %v15390_v3 = vadd.f32 %v15389_v38, %v15388_v32  ;;  %v18755_v54 = vld [vmem:[%s18638_s10 + $0xa8] sm:$0xff]   ;;  %v17629_v38 = vld [vmem:[%s18638_s10 + $0x10] sm:$0xff]  }
 0x273   : > { %v5277_v22 = vadd.f32 %v15412_v19, %v15384_v35  ;;  %v18740_v35 = vld [vmem:[%s18638_s10 + $0xe0] sm:$0xff]   ;;  %v18765_v19 = vld [vmem:[%s18638_s10 + $0xb0] sm:$0xff]   ;;  %v17627_v32 = vld [vmem:[%s18638_s10 + $0x8] sm:$0xff]  }
 0x275   : > { %v15413_v25 = vpop.f32.mrb[84].mxu0 }
 0x276   : > { %v15414_v39 = vpop.f32.mrb[85].mxu0 }
 0x277   : > { %v15415_v13 = vadd.f32 %v15414_v39, %v15413_v25  ;;  %v15416_v26 = vpop.f32.mrb[86].mxu0  ;;  %v17628_v25 = vld [vmem:[%s18638_s10 + $0x48] sm:$0xff]   ;;  %v17630_v39 = vld [vmem:[%s18638_s10 + $0x50] sm:$0xff]  }
 0x278   : > { %v15417_v15 = vpop.f32.mrb[87].mxu0 }
 0x279   : > { %v5282_v43 = vadd.f32 %v15415_v13, %v15387_v58  ;;  %v15418_v51 = vadd.f32 %v15417_v15, %v15416_v26  ;;  %v17626_v58 = vld [vmem:[%s18638_s10 + $0x40] sm:$0xff]   ;;  %v17632_v13 = vld [vmem:[%s18638_s10 + $0x58] sm:$0xff]  }
 0x27a   : > { %v17633_v26 = vld [vmem:[%s18638_s10 + $0x20] sm:$0xff]  }
 0x27b   : > { %v5285_v33 = vadd.f32 %v15418_v51, %v15390_v3  ;;  %v17631_v3 = vld [vmem:[%s18638_s10 + $0x18] sm:$0xff]   ;;  %v17634_v15 = vld [vmem:[%s18638_s10 + $0x60] sm:$0xff]   ;;  %v17636_v51 = vld [vmem:[%s18638_s10 + $0x68] sm:$0xff]  }
 0x286   : > { %v15435_v55 = vpop.f32.mrb[96].mxu1 }
 0x287   : > { %v15436_v6 = vpop.f32.mrb[97].mxu1 }
 0x288   : > { %v15437_v59 = vadd.f32 %v15436_v6, %v15435_v55  ;;  %v15438_v60 = vpop.f32.mrb[98].mxu1  ;;  %v17638_v55 = vld [vmem:[%s18638_s10 + $0x70] sm:$0xff]   ;;  %v17639_v6 = vld [vmem:[%s18638_s10 + $0x38] sm:$0xff]  }
 0x289   : > { %v15439_v12 = vpop.f32.mrb[99].mxu1 }
 0x28a   : > { %v5323_v47 = vadd.f32 %v15437_v59, %v5274_v52  ;;  %v15440_v42 = vadd.f32 %v15439_v12, %v15438_v60  ;;  %v18760_v52 = vld [vmem:[%s18638_s10 + $0xf0] sm:$0xff]   ;;  %v17640_v59 = vld [vmem:[%s18638_s10 + $0x78] sm:$0xff]   ;;  %v17070_v12 = vld [vmem:[%s17708_s26 + $0x180] sm:$0xff]  }
 0x28c   : > { %v5337_v11 = vadd.f32 %v5323_v47, %v4686_v31  ;;  %v5326_v5 = vadd.f32 %v15440_v42, %v5277_v22  ;;  %v18775_v22 = vld [vmem:[%s18638_s10 + $0xb8] sm:$0xff]   ;;  %v17071_v47 = vld [vmem:[%s17708_s26 + $0x1c8] sm:$0xff]  }
 0x28d   : > { %v17072_v42 = vld [vmem:[%s17708_s26 + $0x188] sm:$0xff]  }
 0x28e   : > { %v5348_v1 = vadd.f32 %v13377_v7, %v5337_v11  ;;  %v5338_v53 = vadd.f32 %v5326_v5, %v4687_v63  ;;  %v15441_v29 = vpop.f32.mrb[100].mxu1  ;;  %v17073_v11 = vld [vmem:[%s17708_s26 + $0x1d0] sm:$0xff]  }
 0x28f   : > { %v15442_v48 = vpop.f32.mrb[101].mxu1  ;;  %v17074_v5 = vld [vmem:[%s17708_s26 + $0x190] sm:$0xff]  }
 0x290   : > { %v5349_v49 = vadd.f32 %v13377_v7, %v5338_v53  ;;  %v15443_v37 = vadd.f32 %v15442_v48, %v15441_v29  ;;  %v15444_v44 = vpop.f32.mrb[102].mxu1  ;;  %v5352_v24 = vmax.f32 %v5348_v1, 0.0  ;;  %v17075_v1 = vld [vmem:[%s17708_s26 + $0x1d8] sm:$0xff]   ;;  %v17077_v29 = vld [vmem:[%s17708_s26 + $0x1e0] sm:$0xff]  }
 0x291   : > { %v15445_v61 = vpop.f32.mrb[103].mxu1  ;;  %v17076_v53 = vld [vmem:[%s17708_s26 + $0x198] sm:$0xff]   ;;  %v17078_v48 = vld [vmem:[%s17708_s26 + $0x1a0] sm:$0xff]  }
 0x292   : > { %v5353_v46 = vmax.f32 %v5349_v49, 0.0  ;;  %v5331_v62 = vadd.f32 %v15443_v37, %v5282_v43  ;;  %v15446_v56 = vadd.f32 %v15445_v61, %v15444_v44  ;;  %v17635_v43 = vld [vmem:[%s18638_s10 + $0x28] sm:$0xff]   ;;  %v17081_v44 = vld [vmem:[%s17708_s26 + $0x1f0] sm:$0xff]   ;;  %v13506_v61 = vld [vmem:[%s17723_s30 + $0x60] sm:$0xff] }
 0x293   : > { %v17079_v49 = vld [vmem:[%s17708_s26 + $0x1e8] sm:$0xff]  }
 0x294   : > { %v18698_v31 = vpack.c.bf16 %v5353_v46, %v5352_v24  ;;  %v5339_v63 = vadd.f32 %v5331_v62, %v4688_v34  ;;  %v5334_v17 = vadd.f32 %v15446_v56, %v5285_v33  ;;  %v18710_v34 = vld [vmem:[%s18638_s10 + $0x88] sm:$0xff]   ;;  %v17637_v33 = vld [vmem:[%s18638_s10 + $0x30] sm:$0xff]   ;;  %v17083_v46 = vld [vmem:[%s17708_s26 + $0x1f8] sm:$0xff]  }
 0x295   : > { %v17080_v37 = vld [vmem:[%s17708_s26 + $0x1a8] sm:$0xff]   ;;  %v17082_v24 = vld [vmem:[%s17708_s26 + $0x1b0] sm:$0xff]   ;;  %v17084_v62 = vld [vmem:[%s17708_s26 + $0x1b8] sm:$0xff]  }
 0x296   : > { %v5350_v23 = vadd.f32 %v13377_v7, %v5339_v63  ;;  %v5340_v45 = vadd.f32 %v5334_v17, %v4689_v0  ;;  %16300 = vmatmul.mubr.bf16.vlgmr.msra.gmra.mrb[104].mxu1 %v18698_v31  ;;  %v5392_v28 = vrot.slane %v18698_v31, 2  ;;  %v5695_v9 = vrot.slane %v18698_v31, 6  ;;  %v17087_v63 = vld [vmem:[%s18889_s16 + $0x84] ss:$8 sps:$4 sm:$0xff]   ;;  %v18900_v17 = vld [vmem:[%s17723_s30 + $0x90] sm:$0xff] }
 0x297   : > { %16324 = vmatpush3.bf16.msra.mxu1 %v18693_v57  ;;  %16339 = vmatprep.mubr.msk.bf16.mxu1 %vm17656_vm7, %v20347_v36  ;;  %v5587_v10 = vrot.slane %v18698_v31, 4  ;;  %v17085_v31 = vld [vmem:[%s18889_s16 + $0x80] ss:$8 sps:$4 sm:$0xff]  }
 0x298   : > { %v5351_v16 = vadd.f32 %v13377_v7, %v5340_v45  ;;  %16280 = vmatmul.mubr.bf16.vlgmr.msra.gmra.mrb[88].mxu0 %v5392_v28  ;;  %16325 = vmatprep.subr.bf16.mxu1 %v20347_v36  ;;  %v5354_v0 = vmax.f32 %v5350_v23, 0.0  ;;  %v17069_v7 = vld [vmem:[%s17708_s26 + $0x1c0] sm:$0xff]   ;;  %v13515_v23 = vld [vmem:[%s17723_s30 + $0xa8] sm:$0x11] }
 0x299   : > { %16304 = vmatpush3.bf16.msra.mxu0 %v18696_v27  ;;  %16319 = vmatprep.mubr.msk.bf16.mxu0 %vm17656_vm7, %v20347_v36  ;;  %v18904_v45 = vcombine.high %v18900_v17, %v13515_v23 }
 0x29a   : > { %v5355_v21 = vmax.f32 %v5351_v16, 0.0  ;;  %16305 = vmatprep.subr.bf16.mxu0 %v20347_v36  ;;  %v17090_v16 = vld [vmem:[%s17708_s26 + $0x240] sm:$0xff]  }
 0x29b   : > { %16326 = vmatpush3.bf16.msra.mxu1 %v18704_v50 }
 0x29c   : > { %v18723_v18 = vpack.c.bf16 %v5355_v21, %v5354_v0  ;;  %16327 = vmatprep.subr.bf16.mxu1 %v20347_v36  ;;  %v17096_v21 = vld [vmem:[%s18889_s16 + $0x94] ss:$8 sps:$4 sm:$0xff]  }
 0x29d   : > { %16306 = vmatpush3.bf16.msra.mxu0 %v18710_v34 }
 0x29e   : > { %16307 = vmatprep.subr.bf16.mxu0 %v20347_v36  ;;  %v5928_v60 = vrot.slane %v18723_v18, 2 }
 0x29f   : > { %16328 = vmatpush3.bf16.msra.mxu1 %v18714_v20 }
 0x2a0   : > { %16329 = vmatprep.subr.bf16.mxu1 %v20347_v36 }
 0x2a1   : > { %16308 = vmatpush3.bf16.msra.mxu0 %v18721_v2 }
 0x2a2   : > { %16309 = vmatprep.subr.bf16.mxu0 %v20347_v36 }
 0x2a3   : > { %16330 = vmatpush3.bf16.msra.mxu1 %v18728_v4 }
 0x2a4   : > { %16331 = vmatprep.subr.bf16.mxu1 %v20347_v36 }
 0x2a5   : > { %16310 = vmatpush3.bf16.msra.mxu0 %v18735_v8 }
 0x2a6   : > { %16311 = vmatprep.subr.bf16.mxu0 %v20347_v36 }
 0x2a7   : > { %16332 = vmatpush3.bf16.msra.mxu1 %v18740_v35 }
 0x2a8   : > { %16333 = vmatprep.subr.bf16.mxu1 %v20347_v36 }
 0x2a9   : > { %16312 = vmatpush3.bf16.msra.mxu0 %v18745_v30 }
 0x2aa   : > { %16313 = vmatprep.subr.bf16.mxu0 %v20347_v36 }
 0x2ab   : > { %16334 = vmatpush3.bf16.msra.mxu1 %v18750_v41 }
 0x2ac   : > { %16335 = vmatprep.subr.bf16.mxu1 %v20347_v36 }
 0x2ad   : > { %16314 = vmatpush3.bf16.msra.mxu0 %v18755_v54 }
 0x2ae   : > { %16315 = vmatprep.subr.bf16.mxu0 %v20347_v36 }
 0x2af   : > { %16336 = vmatpush3.bf16.msra.mxu1 %v18760_v52 }
 0x2b0   : > { %16337 = vmatprep.subr.bf16.mxu1 %v20347_v36 }
 0x2b1   : > { %16316 = vmatpush3.bf16.msra.mxu0 %v18765_v19 }
 0x2b2   : > { %16317 = vmatprep.subr.bf16.mxu0 %v20347_v36 }
 0x2b3   : > { %16338 = vmatpush3.bf16.msra.mxu1 %v18770_v40 }
 0x2b4   : > { %16363 = vmatprep.subr.bf16.mxu1 %v20347_v36 }
 0x2b5   : > { %16318 = vmatpush3.bf16.msra.mxu0 %v18775_v22 }
 0x2b6   : > { %16340 = vmatmul.mubr.bf16.vlgmr.msra.gmra.mrb[108].mxu1 %v5695_v9  ;;  %16343 = vmatprep.subr.bf16.mxu0 %v20347_v36 }
 0x2b7   : > { %16364 = vmatpush3.bf16.msra.mxu1 %v17625_v14  ;;  %16379 = vmatprep.mubr.msk.bf16.mxu1 %vm17656_vm7, %v20347_v36 }
 0x2b8   : > { %16320 = vmatmul.mubr.bf16.vlgmr.msra.gmra.mrb[92].mxu0 %v5587_v10  ;;  %16365 = vmatprep.subr.bf16.mxu1 %v20347_v36 }
 0x2b9   : > { %16344 = vmatpush3.bf16.msra.mxu0 %v17626_v58  ;;  %16359 = vmatprep.mubr.msk.bf16.mxu0 %vm17656_vm7, %v20347_v36  ;;  %v17098_v58 = vld [vmem:[%s17708_s26 + $0x208] sm:$0xff]  }
 0x2ba   : > { %16345 = vmatprep.subr.bf16.mxu0 %v20347_v36 }
 0x2bb   : > { %16366 = vmatpush3.bf16.msra.mxu1 %v17627_v32  ;;  %v17106_v32 = vld [vmem:[%s18889_s16 + $0xb4] ss:$8 sps:$4 sm:$0xff]  }
 0x2bc   : > { %16367 = vmatprep.subr.bf16.mxu1 %v20347_v36 }
 0x2bd   : > { %16346 = vmatpush3.bf16.msra.mxu0 %v17628_v25  ;;  %v17102_v25 = vld [vmem:[%s17708_s26 + $0x250] sm:$0xff]  }
 0x2be   : > { %16347 = vmatprep.subr.bf16.mxu0 %v20347_v36 }
 0x2bf   : > { %16368 = vmatpush3.bf16.msra.mxu1 %v17629_v38  ;;  %v17104_v38 = vld [vmem:[%s18889_s16 + $0xb0] ss:$8 sps:$4 sm:$0xff]  }
 0x2c0   : > { %16369 = vmatprep.subr.bf16.mxu1 %v20347_v36 }
 0x2c1   : > { %16348 = vmatpush3.bf16.msra.mxu0 %v17630_v39  ;;  %v17111_v39 = vld [vmem:[%s18889_s16 + $0xc4] ss:$8 sps:$4 sm:$0xff]  }
 0x2c2   : > { %16349 = vmatprep.subr.bf16.mxu0 %v20347_v36 }
 0x2c3   : > { %16370 = vmatpush3.bf16.msra.mxu1 %v17631_v3  ;;  %v17103_v3 = vld [vmem:[%s17708_s26 + $0x210] sm:$0xff]  }
 0x2c4   : > { %16371 = vmatprep.subr.bf16.mxu1 %v20347_v36 }
 0x2c5   : > { %16350 = vmatpush3.bf16.msra.mxu0 %v17632_v13  ;;  %v17107_v13 = vld [vmem:[%s17708_s26 + $0x258] sm:$0xff]  }
 0x2c6   : > { %16351 = vmatprep.subr.bf16.mxu0 %v20347_v36 }
 0x2c7   : > { %16372 = vmatpush3.bf16.msra.mxu1 %v17633_v26  ;;  %v17109_v26 = vld [vmem:[%s18889_s16 + $0xc0] ss:$8 sps:$4 sm:$0xff]  }
 0x2c8   : > { %16373 = vmatprep.subr.bf16.mxu1 %v20347_v36 }
 0x2c9   : > { %16352 = vmatpush3.bf16.msra.mxu0 %v17634_v15  ;;  %v17108_v15 = vld [vmem:[%s17708_s26 + $0x218] sm:$0xff]  }
 0x2ca   : > { %16353 = vmatprep.subr.bf16.mxu0 %v20347_v36 }
 0x2cb   : > { %16374 = vmatpush3.bf16.msra.mxu1 %v17635_v43  ;;  %v17112_v43 = vld [vmem:[%s17708_s26 + $0x260] sm:$0xff]  }
 0x2cc   : > { %16375 = vmatprep.subr.bf16.mxu1 %v20347_v36 }
 0x2cd   : > { %16354 = vmatpush3.bf16.msra.mxu0 %v17636_v51  ;;  %v17113_v51 = vld [vmem:[%s17708_s26 + $0x220] sm:$0xff]  }
 0x2ce   : > { %16355 = vmatprep.subr.bf16.mxu0 %v20347_v36 }
 0x2cf   : > { %16376 = vmatpush3.bf16.msra.mxu1 %v17637_v33  ;;  %v17114_v33 = vld [vmem:[%s18889_s16 + $0xd0] ss:$8 sps:$4 sm:$0xff]  }
 0x2d0   : > { %16377 = vmatprep.subr.bf16.mxu1 %v20347_v36 }
 0x2d1   : > { %16356 = vmatpush3.bf16.msra.mxu0 %v17638_v55  ;;  %v17116_v55 = vld [vmem:[%s18889_s16 + $0xd4] ss:$8 sps:$4 sm:$0xff]  }
 0x2d2   : > { %16357 = vmatprep.subr.bf16.mxu0 %v20347_v36 }
 0x2d3   : > { %16378 = vmatpush3.bf16.msra.mxu1 %v17639_v6  ;;  %v17117_v6 = vld [vmem:[%s17708_s26 + $0x268] sm:$0xff]  }
 0x2d4   : > { %16403 = vmatprep.subr.bf16.mxu1 %v20347_v36 }
 0x2d5   : > { %16358 = vmatpush3.bf16.msra.mxu0 %v17640_v59  ;;  %v17118_v59 = vld [vmem:[%s17708_s26 + $0x228] sm:$0xff]  }
 0x2d6   : > { %16380 = vmatmul.mubr.bf16.vlgmr.msra.gmra.mrb[112].mxu1 %v5587_v10  ;;  %16383 = vmatprep.subr.bf16.mxu0 %v20347_v36 }
 0x2d7   : > { %16404 = vmatpush3.bf16.msra.mxu1 %v18693_v57  ;;  %16419 = vmatprep.mubr.msk.bf16.mxu1 %vm17656_vm7, %v20347_v36  ;;  %v18879_v57 = vld [vmem:[%s17723_s30 + $0x78] sm:$0xff] }
 0x2d8   : > { %16360 = vmatmul.mubr.bf16.vlgmr.msra.gmra.mrb[96].mxu0 %v5695_v9  ;;  %16405 = vmatprep.subr.bf16.mxu1 %v20347_v36  ;;  %v18892_v56 = vcombine.high %v13506_v61, %v18879_v57  ;;  %v17094_v9 = vld [vmem:[%s18889_s16 + $0x90] ss:$8 sps:$4 sm:$0xff]  }
 0x2d9   : > { %16384 = vmatpush3.bf16.msra.mxu0 %v18696_v27  ;;  %16399 = vmatprep.mubr.msk.bf16.mxu0 %vm17656_vm7, %v20347_v36  ;;  %v18895_v27 = vcombine.low %v13506_v61, %v18879_v57 }
 0x2da   : > { %16385 = vmatprep.subr.bf16.mxu0 %v20347_v36  ;;  %v6522_v28 = vshrl.u32 %v18892_v56, 16 }
 0x2db   : > { %16406 = vmatpush3.bf16.msra.mxu1 %v18704_v50  ;;  %v6524_v50 = vshll.u32 %v18892_v56, 16  ;;  %v6512_v0 = vshll.u32 %v18895_v27, 16 }
 0x2dc   : > { %16407 = vmatprep.subr.bf16.mxu1 %v20347_v36 }
 0x2dd   : > { %16386 = vmatpush3.bf16.msra.mxu0 %v18710_v34  ;;  %v18910_v34 = vcombine.low %v18900_v17, %v13515_v23  ;;  %v6514_v10 = vrot.slane %v6512_v0, 1 }
 0x2de   : > { %16387 = vmatprep.subr.bf16.mxu0 %v20347_v36 }
 0x2df   : > { %16408 = vmatpush3.bf16.msra.mxu1 %v18714_v20  ;;  %v6510_v20 = vshrl.u32 %v18895_v27, 16 }
 0x2e0   : > { %16409 = vmatprep.subr.bf16.mxu1 %v20347_v36 }
 0x2e1   : > { %16388 = vmatpush3.bf16.msra.mxu0 %v18721_v2  ;;  %v6526_v2 = vrot.slane %v6524_v50, 1  ;;  %v17124_v50 = vld [vmem:[%s18889_s16 + $0xf0] ss:$8 sps:$4 sm:$0xff]  }
 0x2e2   : > { %16389 = vmatprep.subr.bf16.mxu0 %v20347_v36 }
 0x2e3   : > { %16410 = vmatpush3.bf16.msra.mxu1 %v18728_v4  ;;  %v6517_v4 = vshll.u32 %v18910_v34, 16 }
 0x2e4   : > { %16411 = vmatprep.subr.bf16.mxu1 %v20347_v36 }
 0x2e5   : > { %16390 = vmatpush3.bf16.msra.mxu0 %v18735_v8  ;;  %v17101_v8 = vld [vmem:[%s18889_s16 + $0xa4] ss:$8 sps:$4 sm:$0xff]  }
 0x2e6   : > { %16391 = vmatprep.subr.bf16.mxu0 %v20347_v36 }
 0x2e7   : > { %16412 = vmatpush3.bf16.msra.mxu1 %v18740_v35  ;;  %v6527_v35 = vor.u32 %v6526_v2, %v6522_v28 }
 0x2e8   : > { %16413 = vmatprep.subr.bf16.mxu1 %v20347_v36 }
 0x2e9   : > { %16392 = vmatpush3.bf16.msra.mxu0 %v18745_v30 }
 0x2ea   : > { %16393 = vmatprep.subr.bf16.mxu0 %v20347_v36 }
 0x2eb   : > { %16414 = vmatpush3.bf16.msra.mxu1 %v18750_v41  ;;  %v6519_v41 = vrot.slane %v6517_v4, 1 }
 0x2ec   : > { %16415 = vmatprep.subr.bf16.mxu1 %v20347_v36 }
 0x2ed   : > { %16394 = vmatpush3.bf16.msra.mxu0 %v18755_v54  ;;  %v6515_v54 = vor.u32 %v6514_v10, %v6510_v20 }
 0x2ee   : > { %16395 = vmatprep.subr.bf16.mxu0 %v20347_v36 }
 0x2ef   : > { %16416 = vmatpush3.bf16.msra.mxu1 %v18760_v52  ;;  %v17093_v52 = vld [vmem:[%s17708_s26 + $0x200] sm:$0xff]   ;;  %v6520_v14 = vsel %vm594_vm0, %v6515_v54, %v6519_v41 }
 0x2f0   : > { %16417 = vmatprep.subr.bf16.mxu1 %v20347_v36 }
 0x2f1   : > { %16396 = vmatpush3.bf16.msra.mxu0 %v18765_v19 }
 0x2f2   : > { %16397 = vmatprep.subr.bf16.mxu0 %v20347_v36 }
 0x2f3   : > { %16418 = vmatpush3.bf16.msra.mxu1 %v18770_v40  ;;  %v17097_v40 = vld [vmem:[%s17708_s26 + $0x248] sm:$0xff]  }
 0x2f4   : > { %15519 = vmatprep.subr.bf16.mxu1 %v17069_v7  ;;  %v6581_v7 = vshrl.u32 %v18910_v34, 16 }
 0x2f5   : > { %16398 = vmatpush3.bf16.msra.mxu0 %v18775_v22  ;;  %v17099_v22 = vld [vmem:[%s18889_s16 + $0xa0] ss:$8 sps:$4 sm:$0xff]  }
 0x2f6   : > { %16420 = vmatmul.mubr.bf16.vlgmr.msra.gmra.mrb[116].mxu1 %v5928_v60  ;;  %6071 = vmatprep.subr.bf16.mxu0 %v17087_v63  ;;  %v6584_v60 = vshrl.u32 %v18904_v45, 16  ;;  %v17127_v63 = vld [vmem:[%s17708_s26 + $0x278] sm:$0xff]  }
 0x2f7   : > { %15520 = vmatpush3.bf16.msra.mxu1 %v17070_v12 }
 0x2f8   : > { %16400 = vmatmul.mubr.bf16.vlgmr.msra.gmra.mrb[100].mxu0 %v18723_v18  ;;  %15521 = vmatprep.subr.bf16.mxu1 %v17071_v47  ;;  %v6529_v18 = vshll.u32 %v18904_v45, 16  ;;  %v13507_v47 = vld [vmem:[%s17723_s30 + $0x68] sm:$0xff] }
 0x2f9   : > { %6072 = vmatpush1.bf16.msra.mxu0 %v17085_v31  ;;  %v17126_v31 = vld [vmem:[%s18889_s16 + $0xf4] ss:$8 sps:$4 sm:$0xff]  }
 0x2fa   : > { %6073 = vmatprep.subr.bf16.mxu0 %v17096_v21  ;;  %v6531_v30 = vrot.slane %v6529_v18, 1 }
 0x2fb   : > { %15522 = vmatpush3.bf16.msra.mxu1 %v17072_v42  ;;  %v18943_v42 = vld [vmem:[%s17723_s30 + $0x80] sm:$0xff] }
 0x2fc   : > { %15523 = vmatprep.subr.bf16.mxu1 %v17073_v11  ;;  %v6532_v19 = vsel %vm594_vm0, %v6527_v35, %v6531_v30  ;;  %v6586_v12 = vor.u32 %v6584_v60, %v6531_v30  ;;  %v17121_v11 = vld [vmem:[%s18889_s16 + $0xe4] ss:$8 sps:$4 sm:$0xff]  }
 0x2fd   : > { %6074 = vmatpush1.bf16.msra.mxu0 %v17094_v9  ;;  %6931 = vmatprep.mubr.bf16.mxu1 %v6532_v19  ;;  %v17135_v9 = vld [vmem:[%s18889_s16 + $0x4] ss:$8 sps:$4 sm:$0xff]  }
 0x2fe   : > { %6075 = vmatprep.subr.bf16.mxu0 %v17101_v8  ;;  %v20341_v8 = vmov 0   ;;  %v17175_v60 = vld [vmem:[%s17708_s26 + $0x20] sm:$0xff]  }
 0x2ff   : > { %15524 = vmatpush3.bf16.msra.mxu1 %v17074_v5  ;;  %v6583_v5 = vor.u32 %v6581_v7, %v6519_v41  ;;  %6103 = vmatprep.mubr.bf16.mxu0 %v20341_v8  ;;  %v17177_v7 = vld [vmem:[%s17708_s26 + $0x68] sm:$0xff]  }
 0x300   : > { %15525 = vmatprep.subr.bf16.mxu1 %v17075_v1  ;;  %v17122_v1 = vld [vmem:[%s17708_s26 + $0x270] sm:$0xff]  }
 0x301   : > { %6076 = vmatpush1.bf16.msra.mxu0 %v17099_v22 }
 0x302   : > { %6077 = vmatprep.subr.bf16.mxu0 %v17106_v32 }
 0x303   : > { %15526 = vmatpush3.bf16.msra.mxu1 %v17076_v53  ;;  %v18948_v53 = vcombine.high %v13507_v47, %v18943_v42 }
 0x304   : > { %15527 = vmatprep.subr.bf16.mxu1 %v17077_v29  ;;  %v17119_v29 = vld [vmem:[%s18889_s16 + $0xe0] ss:$8 sps:$4 sm:$0xff]  }
 0x305   : > { %6078 = vmatpush1.bf16.msra.mxu0 %v17104_v38  ;;  %v6548_v61 = vshll.u32 %v18948_v53, 16  ;;  %v6546_v23 = vshrl.u32 %v18948_v53, 16 }
 0x306   : > { %6079 = vmatprep.subr.bf16.mxu0 %v17111_v39 }
 0x307   : > { %15528 = vmatpush3.bf16.msra.mxu1 %v17078_v48  ;;  %v17123_v48 = vld [vmem:[%s17708_s26 + $0x230] sm:$0xff]   ;;  %v6550_v28 = vrot.slane %v6548_v61, 1 }
 0x308   : > { %15529 = vmatprep.subr.bf16.mxu1 %v17079_v49  ;;  %v18953_v49 = vld [vmem:[%s17723_s30 + $0x98] sm:$0xff] }
 0x309   : > { %6080 = vmatpush1.bf16.msra.mxu0 %v17109_v26  ;;  %v6551_v2 = vor.u32 %v6550_v28, %v6546_v23  ;;  %v17157_v26 = vld [vmem:[%s17708_s26 + $0x40] sm:$0xff]   ;;  %v18998_v23 = vld [vmem:[%s17723_s30 + $0x88] sm:$0xff] }
 0x30a   : > { %6081 = vmatprep.subr.bf16.mxu0 %v17116_v55  ;;  %v17167_v55 = vld [vmem:[%s17708_s26 + $0x10] sm:$0xff]  }
 0x30b   : > { %15530 = vmatpush3.bf16.msra.mxu1 %v17080_v37  ;;  %v18956_v37 = vcombine.low %v13507_v47, %v18943_v42 }
 0x30c   : > { %15531 = vmatprep.subr.bf16.mxu1 %v17081_v44  ;;  %v13516_v44 = vld [vmem:[%s17723_s30 + $0xb0] sm:$0x11] }
 0x30d   : > { %6082 = vmatpush1.bf16.msra.mxu0 %v17114_v33  ;;  %v6534_v0 = vshrl.u32 %v18956_v37, 16  ;;  %v17165_v33 = vld [vmem:[%s17708_s26 + $0x50] sm:$0xff]  }
 0x30e   : > { %6083 = vmatprep.subr.bf16.mxu0 %v17121_v11 }
 0x30f   : > { %15532 = vmatpush3.bf16.msra.mxu1 %v17082_v24  ;;  %v18961_v24 = vcombine.low %v18953_v49, %v13516_v44 }
 0x310   : > { %15533 = vmatprep.subr.bf16.mxu1 %v17083_v46  ;;  %v18964_v46 = vcombine.high %v18953_v49, %v13516_v44 }
 0x311   : > { %6084 = vmatpush1.bf16.msra.mxu0 %v17119_v29  ;;  %v6541_v18 = vshll.u32 %v18961_v24, 16  ;;  %v6587_v38 = vshrl.u32 %v18961_v24, 16  ;;  %v17181_v29 = vld [vmem:[%s17708_s26 + $0x70] sm:$0xff]  }
 0x312   : > { %v6553_v20 = vshll.u32 %v18964_v46, 16  ;;  %6085 = vmatprep.subr.bf16.mxu0 %v17126_v31  ;;  %v6590_v19 = vshrl.u32 %v18964_v46, 16  ;;  %v13508_v31 = vld [vmem:[%s17723_s30 + $0x70] sm:$0xff] }
 0x313   : > { %15534 = vmatpush3.bf16.msra.mxu1 %v17084_v62  ;;  %v6536_v62 = vshll.u32 %v18956_v37, 16  ;;  %v6543_v35 = vrot.slane %v6541_v18, 1 }
 0x314   : > { %15547 = vmatprep.subr.bf16.mxu1 %v17090_v16  ;;  %v17128_v16 = vld [vmem:[%s17708_s26 + $0x238] sm:$0xff]   ;;  %v6555_v4 = vrot.slane %v6553_v20, 1 }
 0x315   : > { %v6538_v21 = vrot.slane %v6536_v62, 1  ;;  %6086 = vmatpush1.bf16.msra.mxu0 %v17124_v50  ;;  %v17183_v62 = vld [vmem:[%s17708_s26 + $0x30] sm:$0xff]   ;;  %v13517_v20 = vld [vmem:[%s17723_s30 + $0xb8] sm:$0x11] }
 0x316   : > { %6932 = vmatmul.mubr.bf16.vlgmr.msra.gmra.mrb[120].mxu1 %v6520_v14  ;;  %v6556_v30 = vsel %vm594_vm0, %v6551_v2, %v6555_v4  ;;  %6192 = vmatprep.subr.bf16.mxu0 %v17135_v9  ;;  %v17187_v2 = vld [vmem:[%s17708_s26 + $0x38] sm:$0xff]  }
 0x317   : > { %15548 = vmatpush3.bf16.msra.mxu1 %v17093_v52  ;;  %6939 = vmatprep.mubr.bf16.mxu1 %v6586_v12  ;;  %v6539_v10 = vor.u32 %v6538_v21, %v6534_v0  ;;  %v17179_v12 = vld [vmem:[%s17708_s26 + $0x28] sm:$0xff]   ;;  %v19007_v0 = vcombine.low %v13508_v31, %v18998_v23  ;;  %v17185_v21 = vld [vmem:[%s17708_s26 + $0x78] sm:$0xff]  }
 0x318   : > { %15549 = vmatprep.subr.bf16.mxu1 %v17097_v40 }
 0x319   : > { %v6544_v41 = vsel %vm594_vm0, %v6539_v10, %v6543_v35  ;;  %v6558_v9 = vshrl.u32 %v19007_v0, 16 }
 0x31b   : > { %15550 = vmatpush3.bf16.msra.mxu1 %v17098_v58 }
 0x31c   : > { %15551 = vmatprep.subr.bf16.mxu1 %v17102_v25  ;;  %v6592_v25 = vor.u32 %v6590_v19, %v6555_v4  ;;  %v6560_v4 = vshll.u32 %v19007_v0, 16 }
 0x31e   : > { %6940 = vmatmul.mubr.bf16.gmra.mrb[124].mxu1 %v6583_v5  ;;  %v6562_v10 = vrot.slane %v6560_v4, 1  ;;  %v17249_v4 = vld [vmem:[%s17708_s26 + $0x3f0] sm:$0xff]  }
 0x31f   : > { %15552 = vmatpush3.bf16.msra.mxu1 %v17103_v3  ;;  %6980 = vmatprep.mubr.bf16.mxu1 %v6556_v30 }
 0x320   : > { %15553 = vmatprep.subr.bf16.mxu1 %v17107_v13  ;;  %v6589_v13 = vor.u32 %v6587_v38, %v6543_v35  ;;  %v17191_v35 = vld [vmem:[%s17708_s26 + $0x140] sm:$0xff]  }
 0x321   : > { %v17211_v38 = vld [vmem:[%s17708_s26 + $0x120] sm:$0xff]  }
 0x323   : > { %15554 = vmatpush3.bf16.msra.mxu1 %v17108_v15  ;;  %v17159_v15 = vld [vmem:[%s17708_s26] sm:$0xff]  }
 0x324   : > { %15555 = vmatprep.subr.bf16.mxu1 %v17112_v43  ;;  %v17161_v43 = vld [vmem:[%s17708_s26 + $0x48] sm:$0xff]  }
 0x327   : > { %15556 = vmatpush3.bf16.msra.mxu1 %v17113_v51  ;;  %v17163_v51 = vld [vmem:[%s17708_s26 + $0x8] sm:$0xff]  }
 0x328   : > { %15557 = vmatprep.subr.bf16.mxu1 %v17117_v6  ;;  %v17169_v6 = vld [vmem:[%s17708_s26 + $0x58] sm:$0xff]  }
 0x32b   : > { %15558 = vmatpush3.bf16.msra.mxu1 %v17118_v59  ;;  %v17171_v59 = vld [vmem:[%s17708_s26 + $0x18] sm:$0xff]  }
 0x32c   : > { %15559 = vmatprep.subr.bf16.mxu1 %v17122_v1 }
 0x32f   : > { %15560 = vmatpush3.bf16.msra.mxu1 %v17123_v48 }
 0x330   : > { %15561 = vmatprep.subr.bf16.mxu1 %v17127_v63 }
 0x333   : > { %15562 = vmatpush3.bf16.msra.mxu1 %v17128_v16  ;;  %v19003_v16 = vld [vmem:[%s17723_s30 + $0xa0] sm:$0xff] }
 0x334   : > { %15603 = vmatprep.subr.bf16.mxu1 %v17157_v26  ;;  %v19012_v18 = vcombine.low %v19003_v16, %v13517_v20 }
 0x336   : > { %6981 = vmatmul.mubr.bf16.vlgmr.msra.gmra.mrb[128].mxu1 %v6544_v41  ;;  %v6565_v30 = vshll.u32 %v19012_v18, 16  ;;  %v6563_v41 = vor.u32 %v6562_v10, %v6558_v9 }
 0x337   : > { %6988 = vmatprep.mubr.bf16.mxu1 %v6592_v25  ;;  %15604 = vmatpush3.bf16.msra.mxu1 %v17159_v15  ;;  %v17209_v25 = vld [vmem:[%s17708_s26 + $0x160] sm:$0xff]  }
 0x338   : > { %15605 = vmatprep.subr.bf16.mxu1 %v17161_v43  ;;  %v17217_v43 = vld [vmem:[%s17708_s26 + $0x170] sm:$0xff]  }
 0x33b   : > { %15606 = vmatpush3.bf16.msra.mxu1 %v17163_v51 }
 0x33c   : > { %15607 = vmatprep.subr.bf16.mxu1 %v17165_v33 }
 0x33e   : > { %6989 = vmatmul.mubr.bf16.gmra.mrb[132].mxu1 %v6589_v13 }
 0x33f   : > { %7378 = vmatprep.mubr.bf16.mxu1 %v18892_v56  ;;  %15608 = vmatpush3.bf16.msra.mxu1 %v17167_v55  ;;  %v17173_v56 = vld [vmem:[%s17708_s26 + $0x60] sm:$0xff]  }
 0x340   : > { %15609 = vmatprep.subr.bf16.mxu1 %v17169_v6  ;;  %v17219_v6 = vld [vmem:[%s17708_s26 + $0x130] sm:$0xff]  }
 0x343   : > { %15610 = vmatpush3.bf16.msra.mxu1 %v17171_v59 }
 0x344   : > { %15611 = vmatprep.subr.bf16.mxu1 %v17173_v56 }
 0x347   : > { %15612 = vmatpush3.bf16.msra.mxu1 %v17175_v60  ;;  %v17221_v60 = vld [vmem:[%s17708_s26 + $0x178] sm:$0xff]  }
 0x348   : > { %15613 = vmatprep.subr.bf16.mxu1 %v17177_v7  ;;  %v17223_v7 = vld [vmem:[%s17708_s26 + $0x138] sm:$0xff]  }
 0x34b   : > { %15614 = vmatpush3.bf16.msra.mxu1 %v17179_v12  ;;  %v17225_v12 = vld [vmem:[%s17708_s26 + $0x3c0] sm:$0xff]  }
 0x34c   : > { %15615 = vmatprep.subr.bf16.mxu1 %v17181_v29  ;;  %v17233_v29 = vld [vmem:[%s17708_s26 + $0x3d0] sm:$0xff]  }
 0x34f   : > { %15616 = vmatpush3.bf16.msra.mxu1 %v17183_v62  ;;  %v17241_v62 = vld [vmem:[%s17708_s26 + $0x3e0] sm:$0xff]  }
 0x350   : > { %15617 = vmatprep.subr.bf16.mxu1 %v17185_v21 }
 0x353   : > { %15618 = vmatpush3.bf16.msra.mxu1 %v17187_v2 }
 0x354   : > { %15659 = vmatprep.subr.bf16.mxu1 %v17191_v35 }
 0x356   : > { %7379 = vmatmul.mubr.bf16.vlgmr.msra.gmra.mrb[136].mxu1 %v18895_v27  ;;  %v17203_v27 = vld [vmem:[%s17708_s26 + $0x110] sm:$0xff]  }
 0x357   : > { %7386 = vmatprep.mubr.bf16.mxu1 %v18904_v45  ;;  %v17207_v45 = vld [vmem:[%s17708_s26 + $0x118] sm:$0xff]  }
 0x35e   : > { %7387 = vmatmul.mubr.bf16.gmra.mrb[140].mxu1 %v18910_v34 }
 0x369   : > { %v5564_v54 = vpop.f32.mrb[104].mxu1 }
 0x36a   : > { %v16301_v52 = vpop.f32.mrb[105].mxu1 }
 0x36b   : > { %v5476_v40 = vpop.f32.mrb[88].mxu0  ;;  %v5567_v22 = vpop.f32.mrb[106].mxu1  ;;  %v17195_v52 = vld [vmem:[%s17708_s26 + $0x100] sm:$0xff]  }
 0x36c   : > { %v5565_v14 = vadd.f32 %v5564_v54, %v5476_v40  ;;  %v16281_v58 = vpop.f32.mrb[89].mxu0  ;;  %v16302_v32 = vpop.f32.mrb[107].mxu1  ;;  %v19018_v54 = vrot.slane %v6565_v30, 1  ;;  %15660 = vmatpush3.bf16.msra.mxu1 %v17195_v52  ;;  %v17197_v40 = vld [vmem:[%s17708_s26 + $0x148] sm:$0xff]   ;;  %v17251_v30 = vld [vmem:[%s17708_s26 + $0x3b0] sm:$0xff]  }
 0x36d   : > { %v5479_v39 = vpop.f32.mrb[90].mxu0  ;;  %v17199_v22 = vld [vmem:[%s17708_s26 + $0x108] sm:$0xff]   ;;  %15661 = vmatprep.subr.bf16.mxu1 %v17197_v40  ;;  %v19031_v58 = vcombine.high %v13508_v31, %v18998_v23  ;;  %v17205_v32 = vld [vmem:[%s17708_s26 + $0x158] sm:$0xff]   ;;  %v17243_v31 = vld [vmem:[%s17708_s26 + $0x3a0] sm:$0xff]  }
 0x36e   : > { %v16282_v3 = vpop.f32.mrb[91].mxu0  ;;  %v19024_v19 = vsel %vm594_vm0, %v6563_v41, %v19018_v54  ;;  %v17213_v39 = vld [vmem:[%s17708_s26 + $0x168] sm:$0xff]  }
 0x36f   : > { %7476 = vmatprep.mubr.bf16.mxu1 %v19031_v58  ;;  %v17215_v3 = vld [vmem:[%s17708_s26 + $0x128] sm:$0xff]  }
 0x370   : > { %15662 = vmatpush3.bf16.msra.mxu1 %v17199_v22  ;;  %v19073_v22 = vld [vmem:[%s19069_s19] sm:$0x1] }
 0x389   : > { %v5779_v47 = vpop.f32.mrb[108].mxu1 }
 0x38a   : > { %v16341_v11 = vpop.f32.mrb[109].mxu1 }
 0x38b   : > { %v5671_v5 = vpop.f32.mrb[92].mxu0  ;;  %v5782_v1 = vpop.f32.mrb[110].mxu1  ;;  %v17227_v11 = vld [vmem:[%s17708_s26 + $0x380] sm:$0xff]  }
 0x38c   : > { %v5677_v48 = vadd.f32 %v5671_v5, %v5565_v14  ;;  %v16321_v44 = vpop.f32.mrb[93].mxu0  ;;  %v16342_v61 = vpop.f32.mrb[111].mxu1  ;;  %v17201_v14 = vld [vmem:[%s17708_s26 + $0x150] sm:$0xff]   ;;  %v17229_v5 = vld [vmem:[%s17708_s26 + $0x3c8] sm:$0xff]  }
 0x38d   : > { %v5674_v63 = vpop.f32.mrb[94].mxu0  ;;  %15663 = vmatprep.subr.bf16.mxu1 %v17201_v14  ;;  %v17231_v1 = vld [vmem:[%s17708_s26 + $0x388] sm:$0xff]   ;;  %v17237_v44 = vld [vmem:[%s17708_s26 + $0x3d8] sm:$0xff]  }
 0x38e   : > { %v19000_v28 = vadd.f32 %v5779_v47, %v5677_v48  ;;  %v16322_v50 = vpop.f32.mrb[95].mxu0  ;;  %15664 = vmatpush3.bf16.msra.mxu1 %v17203_v27  ;;  %v19048_v47 = vcombine.high %v19003_v16, %v13517_v20  ;;  %v17235_v48 = vld [vmem:[%s17708_s26 + $0x390] sm:$0xff]   ;;  %v17239_v61 = vld [vmem:[%s17708_s26 + $0x398] sm:$0xff]   ;;  %v17245_v63 = vld [vmem:[%s17708_s26 + $0x3e8] sm:$0xff]  }
 0x38f   : > { %15665 = vmatprep.subr.bf16.mxu1 %v17205_v32  ;;  %v17247_v50 = vld [vmem:[%s17708_s26 + $0x3a8] sm:$0xff]   ;;  %v17253_v14 = vld [vmem:[%s17708_s26 + $0x3f8] sm:$0xff]  }
 0x390   : > { %v17255_v32 = vld [vmem:[%s17708_s26 + $0x3b8] sm:$0xff]  }
 0x392   : > { %15666 = vmatpush3.bf16.msra.mxu1 %v17207_v45  ;;  %v13722_v45 = vld [vmem:[%s17723_s30 + $0x60] sm:$0xee] }
 0x393   : > { %15667 = vmatprep.subr.bf16.mxu1 %v17209_v25  ;;  %v13725_v25 = vld [vmem:[%s17723_s30 + $0xa8] sm:$0x33] }
 0x396   : > { %15668 = vmatpush3.bf16.msra.mxu1 %v17211_v38  ;;  %v19081_v38 = vcombine.high %v13722_v45, %v18879_v57 }
 0x397   : > { %15669 = vmatprep.subr.bf16.mxu1 %v17213_v39  ;;  %v13723_v39 = vld [vmem:[%s17723_s30 + $0x68] sm:$0xee] }
 0x39a   : > { %15670 = vmatpush3.bf16.msra.mxu1 %v17215_v3  ;;  %v13726_v3 = vld [vmem:[%s17723_s30 + $0xb0] sm:$0x33] }
 0x39b   : > { %15671 = vmatprep.subr.bf16.mxu1 %v17217_v43  ;;  %v17133_v43 = vld [vmem:[%s18889_s16] ss:$8 sps:$4 sm:$0xff]  }
 0x39e   : > { %15672 = vmatpush3.bf16.msra.mxu1 %v17219_v6  ;;  %v19103_v6 = vcombine.low %v18953_v49, %v13726_v3 }
 0x39f   : > { %15673 = vmatprep.subr.bf16.mxu1 %v17221_v60  ;;  %v19109_v60 = vcombine.high %v18953_v49, %v13726_v3  ;;  %v6577_v3 = vshll.u32 %v19048_v47, 16 }
 0x3a2   : > { %15674 = vmatpush3.bf16.msra.mxu1 %v17223_v7 }
 0x3a3   : > { %15715 = vmatprep.subr.bf16.mxu1 %v17225_v12 }
 0x3a5   : > { %7477 = vmatmul.mubr.bf16.vlgmr.msra.gmra.mrb[144].mxu1 %v19007_v0 }
 0x3a6   : > { %15716 = vmatpush3.bf16.msra.mxu1 %v17227_v11  ;;  %7484 = vmatprep.mubr.bf16.mxu1 %v19048_v47 }
 0x3a7   : > { %15717 = vmatprep.subr.bf16.mxu1 %v17229_v5  ;;  %v7632_v5 = vrot.slane %v19103_v6, 1 }
 0x3a9   : > { %v5880_v13 = vpop.f32.mrb[112].mxu1 }
 0x3aa   : > { %v16381_v34 = vpop.f32.mrb[113].mxu1  ;;  %15718 = vmatpush3.bf16.msra.mxu1 %v17231_v1  ;;  %v7635_v1 = vrot.slane %v19109_v60, 1 }
 0x3ab   : > { %v5840_v26 = vpop.f32.mrb[96].mxu0  ;;  %v5883_v15 = vpop.f32.mrb[114].mxu1  ;;  %15719 = vmatprep.subr.bf16.mxu1 %v17233_v29  ;;  %v19086_v34 = vcombine.low %v13722_v45, %v18879_v57  ;;  %v17265_v57 = vld [vmem:[%s17708_s26 + $0x4c0] sm:$0xff]   ;;  %v17136_v29 = vld [vmem:[%s18889_s16 + $0x10] ss:$8 sps:$4 sm:$0xff]  }
 0x3ac   : > { %v5881_v51 = vadd.f32 %v5880_v13, %v5840_v26  ;;  %v16361_v33 = vpop.f32.mrb[97].mxu0  ;;  %v16382_v55 = vpop.f32.mrb[115].mxu1  ;;  %v19089_v26 = vcombine.low %v18900_v17, %v13725_v25  ;;  %v19092_v15 = vcombine.high %v18900_v17, %v13725_v25  ;;  %v17153_v45 = vld [vmem:[%s18889_s16 + $0x64] ss:$8 sps:$4 sm:$0xff]   ;;  %v6570_v25 = vshrl.u32 %v19031_v58, 16 }
 0x3ad   : > { %v5843_v59 = vpop.f32.mrb[98].mxu0  ;;  %7485 = vmatmul.mubr.bf16.gmra.mrb[148].mxu1 %v19012_v18  ;;  %v19097_v33 = vcombine.low %v13723_v39, %v18943_v42  ;;  %v19100_v55 = vcombine.high %v13723_v39, %v18943_v42  ;;  %v7625_v7 = vrot.slane %v19086_v34, 1 }
 0x3ae   : > { %v16362_v56 = vpop.f32.mrb[99].mxu0  ;;  %15720 = vmatpush3.bf16.msra.mxu1 %v17235_v48  ;;  %v7629_v17 = vrot.slane %v19092_v15, 1  ;;  %v7626_v42 = vrot.slane %v19089_v26, 1 }
 0x3af   : > { %15721 = vmatprep.subr.bf16.mxu1 %v17237_v44  ;;  %v17138_v56 = vld [vmem:[%s18889_s16 + $0x14] ss:$8 sps:$4 sm:$0xff]   ;;  %v7634_v12 = vrot.slane %v19100_v55, 1  ;;  %v7631_v11 = vrot.slane %v19097_v33, 1 }
 0x3b0   : > { %v19127_v48 = vsel %vm1712_vm1, %v7625_v7, %v7626_v42  ;;  %v17291_v7 = vld [vmem:[%s17708_s26 + $0x4b0] sm:$0xff]  }
 0x3b1   : > { %v7633_v44 = vsel %vm1712_vm1, %v7631_v11, %v7632_v5  ;;  %v8211_v11 = vshll.u32 %v19081_v38, 16 }
 0x3b2   : > { %15722 = vmatpush3.bf16.msra.mxu1 %v17239_v61  ;;  %v17267_v61 = vld [vmem:[%s17708_s26 + $0x480] sm:$0xff]  }
 0x3b3   : > { %15723 = vmatprep.subr.bf16.mxu1 %v17241_v62  ;;  %v17141_v62 = vld [vmem:[%s18889_s16 + $0x24] ss:$8 sps:$4 sm:$0xff]  }
 0x3b6   : > { %15724 = vmatpush3.bf16.msra.mxu1 %v17243_v31  ;;  %v7636_v31 = vsel %vm1712_vm1, %v7634_v12, %v7635_v1  ;;  %v8208_v12 = vshrl.u32 %v19081_v38, 16 }
 0x3b7   : > { %15725 = vmatprep.subr.bf16.mxu1 %v17245_v63  ;;  %v17269_v63 = vld [vmem:[%s17708_s26 + $0x4c8] sm:$0xff]   ;;  %8024 = vmatprep.mubr.bf16.mxu1 %v7636_v31  ;;  %v13724_v31 = vld [vmem:[%s17723_s30 + $0x70] sm:$0xee] }
 0x3ba   : > { %15726 = vmatpush3.bf16.msra.mxu1 %v17247_v50  ;;  %v17139_v50 = vld [vmem:[%s18889_s16 + $0x20] ss:$8 sps:$4 sm:$0xff]  }
 0x3bb   : > { %15727 = vmatprep.subr.bf16.mxu1 %v17249_v4  ;;  %v17275_v4 = vld [vmem:[%s17708_s26 + $0x490] sm:$0xff]  }
 0x3be   : > { %15728 = vmatpush3.bf16.msra.mxu1 %v17251_v30  ;;  %v17279_v30 = vld [vmem:[%s17708_s26 + $0x498] sm:$0xff]  }
 0x3bf   : > { %15729 = vmatprep.subr.bf16.mxu1 %v17253_v14  ;;  %v17148_v14 = vld [vmem:[%s18889_s16 + $0x50] ss:$8 sps:$4 sm:$0xff]  }
 0x3c2   : > { %15730 = vmatpush3.bf16.msra.mxu1 %v17255_v32  ;;  %v5787_v32 = vadd.f32 %v19073_v22, %v19000_v28  ;;  %v17156_v28 = vld [vmem:[%s18889_s16 + $0x74] ss:$8 sps:$4 sm:$0xff]  }
 0x3c3   : > { %15771 = vmatprep.subr.bf16.mxu1 %v17265_v57 }
 0x3c4   : > { %v5788_v57 = vmax.f32 %v5787_v32, 0.0 }
 0x3c5   : > { %8025 = vmatmul.mubr.bf16.vlgmr.msra.gmra.mrb[152].mxu1 %v7633_v44  ;;  %v17158_v44 = vld [vmem:[%s17708_s26 + $0x2c0] sm:$0xff]  }
 0x3c6   : > { %15772 = vmatpush3.bf16.msra.mxu1 %v17267_v61  ;;  %8032 = vmatprep.mubr.bf16.mxu1 %v7635_v1  ;;  %v8219_v1 = vshll.u32 %v19092_v15, 16 }
 0x3c7   : > { %15773 = vmatprep.subr.bf16.mxu1 %v17269_v63  ;;  %v8191_v63 = vshrl.u32 %v19086_v34, 16 }
 0x3c9   : > { %v5964_v20 = vpop.f32.mrb[116].mxu1 }
 0x3ca   : > { %v16421_v0 = vpop.f32.mrb[117].mxu1 }
 0x3cb   : > { %v5920_v21 = vpop.f32.mrb[100].mxu0  ;;  %v5967_v2 = vpop.f32.mrb[118].mxu1  ;;  %v17144_v0 = vld [vmem:[%s18889_s16 + $0x34] ss:$8 sps:$4 sm:$0xff]  }
 0x3cc   : > { %v5926_v9 = vadd.f32 %v5920_v21, %v5881_v51  ;;  %v16401_v10 = vpop.f32.mrb[101].mxu0  ;;  %v16422_v35 = vpop.f32.mrb[119].mxu1  ;;  %v7628_v51 = vrot.slane %v19081_v38, 1  ;;  %v17273_v21 = vld [vmem:[%s17708_s26 + $0x4d0] sm:$0xff]   ;;  %v19176_v38 = vcombine.high %v13724_v31, %v18998_v23 }
 0x3cd   : > { %v5923_v41 = vpop.f32.mrb[102].mxu0  ;;  %v17142_v2 = vld [vmem:[%s18889_s16 + $0x30] ss:$8 sps:$4 sm:$0xff]   ;;  %8033 = vmatmul.mubr.bf16.gmra.mrb[156].mxu1 %v7632_v5  ;;  %v17145_v35 = vld [vmem:[%s18889_s16 + $0x40] ss:$8 sps:$4 sm:$0xff]   ;;  %v8216_v5 = vshrl.u32 %v19092_v15, 16 }
 0x3ce   : > { %v5970_v52 = vadd.f32 %v5964_v20, %v5926_v9  ;;  %v16402_v40 = vpop.f32.mrb[103].mxu0  ;;  %v19119_v49 = vsel %vm1712_vm1, %v7628_v51, %v7629_v17  ;;  %v17271_v20 = vld [vmem:[%s17708_s26 + $0x488] sm:$0xff]   ;;  %v17277_v10 = vld [vmem:[%s17708_s26 + $0x4d8] sm:$0xff]  }
 0x3cf   : > { %15774 = vmatpush3.bf16.msra.mxu1 %v17271_v20  ;;  %v17147_v9 = vld [vmem:[%s18889_s16 + $0x44] ss:$8 sps:$4 sm:$0xff]   ;;  %v17150_v41 = vld [vmem:[%s18889_s16 + $0x54] ss:$8 sps:$4 sm:$0xff]  }
 0x3d0   : > { %v5971_v27 = vadd.f32 %v5970_v52, %v19073_v22  ;;  %15775 = vmatprep.subr.bf16.mxu1 %v17273_v21  ;;  %v6572_v52 = vshll.u32 %v19031_v58, 16  ;;  %v17281_v40 = vld [vmem:[%s17708_s26 + $0x4e0] sm:$0xff]   ;;  %v17287_v51 = vld [vmem:[%s17708_s26 + $0x4a8] sm:$0xff]   ;;  %v17289_v58 = vld [vmem:[%s17708_s26 + $0x4f0] sm:$0xff]   ;;  %v8213_v21 = vrot.slane %v8211_v11, 2 }
 0x3d1   : > { %v13727_v20 = vld [vmem:[%s17723_s30 + $0xb8] sm:$0x33]  ;;  %v17305_v11 = vld [vmem:[%s17708_s26 + $0x5c8] sm:$0xff]  }
 0x3d2   : > { %v5972_v13 = vmax.f32 %v5971_v27, 0.0  ;;  %v17283_v27 = vld [vmem:[%s17708_s26 + $0x4a0] sm:$0xff]   ;;  %v6574_v39 = vrot.slane %v6572_v52, 1  ;;  %v8193_v52 = vrot.slane %v8191_v63, 1  ;;  %v17311_v63 = vld [vmem:[%s17708_s26 + $0x590] sm:$0xff]   ;;  %v17278_v15 = vld [vmem:[%s17708_s26 + $0x458] sm:$0xff]  }
 0x3d3   : > { %15776 = vmatpush3.bf16.msra.mxu1 %v17275_v4  ;;  %v19179_v4 = vcombine.low %v13724_v31, %v18998_v23  ;;  %v17162_v23 = vld [vmem:[%s17708_s26 + $0x2c8] sm:$0xff]   ;;  %v17174_v31 = vld [vmem:[%s17708_s26 + $0x2e0] sm:$0xff]  }
 0x3d4   : > { %v5973_v59 = vpack.c.bf16 %v5972_v13, %v5972_v13  ;;  %15777 = vmatprep.subr.bf16.mxu1 %v17277_v10  ;;  %v17285_v13 = vld [vmem:[%s17708_s26 + $0x4e8] sm:$0xff]   ;;  %v6575_v22 = vor.u32 %v6574_v39, %v6570_v25  ;;  %v19185_v10 = vcombine.high %v19003_v16, %v13727_v20  ;;  %v17301_v25 = vld [vmem:[%s17708_s26 + $0x5c0] sm:$0xff]   ;;  %v8199_v39 = vshrl.u32 %v19089_v26, 16 }
 0x3d6   : > { %6104 = vmatmul.mubr.bf16.vlgmr.msra.gmra.mrb[104].mxu0 %v5973_v59  ;;  %v19158_v59 = vrot.slane %v6577_v3, 1  ;;  %v8202_v3 = vshll.u32 %v19089_v26, 16  ;;  %v17413_v26 = vld [vmem:[%s17708_s26 + $0x8d0] sm:$0xff]  }
 0x3d7   : > { %6193 = vmatpush1.bf16.msra.mxu0 %v17133_v43  ;;  %6224 = vmatprep.mubr.bf16.mxu0 %v20341_v8  ;;  %v17151_v43 = vld [vmem:[%s18889_s16 + $0x60] ss:$8 sps:$4 sm:$0xff]  }
 0x3d8   : > { %6194 = vmatprep.subr.bf16.mxu0 %v17138_v56  ;;  %15778 = vmatpush3.bf16.msra.mxu1 %v17279_v30  ;;  %v17154_v56 = vld [vmem:[%s18889_s16 + $0x70] ss:$8 sps:$4 sm:$0xff]   ;;  %v6580_v61 = vsel %vm594_vm0, %v6575_v22, %v19158_v59  ;;  %v7640_v30 = vrot.slane %v19176_v38, 1  ;;  %v8201_v22 = vrot.slane %v8199_v39, 1 }
 0x3d9   : > { %15779 = vmatprep.subr.bf16.mxu1 %v17281_v40  ;;  %v17188_v39 = vld [vmem:[%s17708_s26 + $0x2b8] sm:$0xff]  }
 0x3db   : > { %6195 = vmatpush1.bf16.msra.mxu0 %v17136_v29  ;;  %v5789_v29 = vpack.c.bf16 %v5788_v57, %v5788_v57  ;;  %v17164_v57 = vld [vmem:[%s17708_s26 + $0x288] sm:$0xff]  }
 0x3dc   : > { %6196 = vmatprep.subr.bf16.mxu0 %v17141_v62  ;;  %15780 = vmatpush3.bf16.msra.mxu1 %v17283_v27  ;;  %v17293_v62 = vld [vmem:[%s17708_s26 + $0x4f8] sm:$0xff]   ;;  %v7641_v27 = vrot.slane %v19185_v10, 1 }
 0x3dd   : > { %15781 = vmatprep.subr.bf16.mxu1 %v17285_v13 }
 0x3de   : > { %v19200_v13 = vsel %vm1712_vm1, %v7640_v30, %v7641_v27  ;;  %v17319_v30 = vld [vmem:[%s17708_s26 + $0x5a0] sm:$0xff]  }
 0x3df   : > { %6197 = vmatpush1.bf16.msra.mxu0 %v17139_v50  ;;  %v8194_v50 = vshll.u32 %v19086_v34, 16  ;;  %v17160_v34 = vld [vmem:[%s17708_s26 + $0x280] sm:$0xff]  }
 0x3e0   : > { %6198 = vmatprep.subr.bf16.mxu0 %v17144_v0  ;;  %15782 = vmatpush3.bf16.msra.mxu1 %v17287_v51  ;;  %v8210_v0 = vrot.slane %v8208_v12, 1  ;;  %v17303_v12 = vld [vmem:[%s17708_s26 + $0x580] sm:$0xff]  }
 0x3e1   : > { %15783 = vmatprep.subr.bf16.mxu1 %v17289_v58  ;;  %v8196_v40 = vrot.slane %v8194_v50, 2  ;;  %v8204_v58 = vrot.slane %v8202_v3, 2  ;;  %v17313_v50 = vld [vmem:[%s17708_s26 + $0x5d8] sm:$0xff]   ;;  %v8245_v3 = vshll.u32 %v19100_v55, 16 }
 0x3e3   : > { %6199 = vmatpush1.bf16.msra.mxu0 %v17142_v2  ;;  %v8218_v2 = vrot.slane %v8216_v5, 1  ;;  %v17168_v5 = vld [vmem:[%s17708_s26 + $0x290] sm:$0xff]  }
 0x3e4   : > { %6200 = vmatprep.subr.bf16.mxu0 %v17147_v9  ;;  %v19182_v9 = vcombine.low %v19003_v16, %v13727_v20  ;;  %15784 = vmatpush3.bf16.msra.mxu1 %v17291_v7  ;;  %v7637_v16 = vrot.slane %v19179_v4, 1  ;;  %v8205_v7 = vor.u32 %v8204_v58, %v8201_v22  ;;  %v17176_v20 = vld [vmem:[%s17708_s26 + $0x2a0] sm:$0xff]   ;;  %v8279_v22 = vshll.u32 %v19176_v38, 16 }
 0x3e5   : > { %15785 = vmatprep.subr.bf16.mxu1 %v17293_v62  ;;  %v17172_v62 = vld [vmem:[%s17708_s26 + $0x298] sm:$0xff]   ;;  %v8284_v58 = vshrl.u32 %v19185_v10, 16 }
 0x3e7   : > { %6201 = vmatpush1.bf16.msra.mxu0 %v17145_v35  ;;  %v8221_v35 = vrot.slane %v8219_v1, 2 }
 0x3e8   : > { %6202 = vmatprep.subr.bf16.mxu0 %v17150_v41  ;;  %v8214_v41 = vor.u32 %v8213_v21, %v8210_v0  ;;  %v17178_v0 = vld [vmem:[%s17708_s26 + $0x2e8] sm:$0xff]   ;;  %v17315_v21 = vld [vmem:[%s17708_s26 + $0x598] sm:$0xff]  }
 0x3e9   : > { %v8222_v32 = vor.u32 %v8221_v35, %v8218_v2  ;;  %v17317_v2 = vld [vmem:[%s17708_s26 + $0x5e0] sm:$0xff]   ;;  %v17180_v35 = vld [vmem:[%s17708_s26 + $0x2a8] sm:$0xff]  }
 0x3eb   : > { %6203 = vmatpush1.bf16.msra.mxu0 %v17148_v14  ;;  %v17295_v14 = vld [vmem:[%s17708_s26 + $0x4b8] sm:$0xff]  }
 0x3ec   : > { %6204 = vmatprep.subr.bf16.mxu0 %v17153_v45  ;;  %v7638_v45 = vrot.slane %v19182_v9, 1  ;;  %15786 = vmatpush3.bf16.msra.mxu1 %v17295_v14  ;;  %v17323_v14 = vld [vmem:[%s17708_s26 + $0x5a8] sm:$0xff]  }
 0x3ed   : > { %15827 = vmatprep.subr.bf16.mxu1 %v17301_v25  ;;  %v17325_v25 = vld [vmem:[%s17708_s26 + $0x5f0] sm:$0xff]  }
 0x3ee   : > { %v19206_v51 = vsel %vm1712_vm1, %v7637_v16, %v7638_v45  ;;  %v6593_v16 = vshrl.u32 %v19012_v18, 16  ;;  %v17337_v18 = vld [vmem:[%s17708_s26 + $0x6c8] sm:$0xff]  }
 0x3ef   : > { %6205 = vmatpush1.bf16.msra.mxu0 %v17151_v43  ;;  %v8223_v43 = vsel %vm2279_vm2, %v8214_v41, %v8222_v32  ;;  %v6596_v41 = vshrl.u32 %v19048_v47, 16  ;;  %v8242_v47 = vshrl.u32 %v19100_v55, 16  ;;  %v8247_v55 = vrot.slane %v8245_v3, 2 }
 0x3f0   : > { %6206 = vmatprep.subr.bf16.mxu0 %v17156_v28  ;;  %v8197_v28 = vor.u32 %v8196_v40, %v8193_v52  ;;  %8624 = vmatprep.mubr.bf16.mxu1 %v8223_v43  ;;  %v17321_v52 = vld [vmem:[%s17708_s26 + $0x5e8] sm:$0xff]   ;;  %v17184_v40 = vld [vmem:[%s17708_s26 + $0x2b0] sm:$0xff]   ;;  %v8250_v43 = vshrl.u32 %v19109_v60, 16 }
 0x3f2   : > { %v8206_v1 = vsel %vm2279_vm2, %v8197_v28, %v8205_v7  ;;  %v17194_v28 = vld [vmem:[%s17708_s26 + $0xc0] sm:$0xff]  }
 0x3f3   : > { %6207 = vmatpush1.bf16.msra.mxu0 %v17154_v56  ;;  %v17166_v56 = vld [vmem:[%s17708_s26 + $0x2d0] sm:$0xff]   ;;  %8625 = vmatmul.mubr.bf16.vlgmr.msra.gmra.mrb[160].mxu1 %v8206_v1 }
 0x3f4   : > { %15575 = vmatprep.subr.bf16.mxu0 %v17158_v44  ;;  %15828 = vmatpush3.bf16.msra.mxu1 %v17303_v12  ;;  %v17307_v44 = vld [vmem:[%s17708_s26 + $0x588] sm:$0xff]   ;;  %v8244_v12 = vrot.slane %v8242_v47, 1 }
 0x3f5   : > { %8632 = vmatprep.mubr.bf16.mxu1 %v8222_v32  ;;  %15829 = vmatprep.subr.bf16.mxu1 %v17305_v11  ;;  %v6598_v32 = vor.u32 %v6596_v41, %v19158_v59  ;;  %v8276_v59 = vshrl.u32 %v19176_v38, 16  ;;  %v8252_v11 = vrot.slane %v8250_v43, 1  ;;  %v17196_v38 = vld [vmem:[%s17708_s26 + $0x80] sm:$0xff]   ;;  %v8267_v43 = vshrl.u32 %v19182_v9, 16 }
 0x3f6   : > { %6225 = vmatmul.mubr.bf16.vlgmr.msra.gmra.mrb[104].mxu0 %v5789_v29  ;;  %v17170_v29 = vld [vmem:[%s17708_s26 + $0x2d8] sm:$0xff]  }
 0x3f7   : > { %15576 = vmatpush3.bf16.msra.mxu0 %v17160_v34  ;;  %7029 = vmatprep.mubr.bf16.mxu0 %v6580_v61  ;;  %v17309_v61 = vld [vmem:[%s17708_s26 + $0x5d0] sm:$0xff]   ;;  %v8278_v1 = vrot.slane %v8276_v59, 1 }
 0x3f8   : > { %15577 = vmatprep.subr.bf16.mxu0 %v17162_v23  ;;  %15830 = vmatpush3.bf16.msra.mxu1 %v17307_v44  ;;  %v17182_v34 = vld [vmem:[%s17708_s26 + $0x2f0] sm:$0xff]   ;;  %v17186_v23 = vld [vmem:[%s17708_s26 + $0x2f8] sm:$0xff]   ;;  %v8286_v44 = vrot.slane %v8284_v58, 1 }
 0x3f9   : > { %15831 = vmatprep.subr.bf16.mxu1 %v17309_v61 }
 0x3fb   : > { %15578 = vmatpush3.bf16.msra.mxu0 %v17164_v57  ;;  %8633 = vmatmul.mubr.bf16.gmra.mrb[164].mxu1 %v8205_v7  ;;  %v8253_v57 = vshll.u32 %v19109_v60, 16  ;;  %v17327_v7 = vld [vmem:[%s17708_s26 + $0x5b0] sm:$0xff]   ;;  %v17329_v60 = vld [vmem:[%s17708_s26 + $0x5f8] sm:$0xff]  }
 0x3fc   : > { %15579 = vmatprep.subr.bf16.mxu0 %v17166_v56  ;;  %15832 = vmatpush3.bf16.msra.mxu1 %v17311_v63  ;;  %v8287_v56 = vshll.u32 %v19185_v10, 16  ;;  %v8225_v63 = vshrl.u32 %v19097_v33, 16 }
 0x3fd   : > { %15833 = vmatprep.subr.bf16.mxu1 %v17313_v50  ;;  %v8228_v50 = vshll.u32 %v19097_v33, 16  ;;  %v8259_v33 = vshrl.u32 %v19179_v4, 16 }
 0x3fe   : > { %v8289_v61 = vrot.slane %v8287_v56, 2  ;;  %v8227_v41 = vrot.slane %v8225_v63, 1 }
 0x3ff   : > { %15580 = vmatpush3.bf16.msra.mxu0 %v17168_v5  ;;  %v8255_v5 = vrot.slane %v8253_v57, 2  ;;  %v8261_v3 = vrot.slane %v8259_v33, 1  ;;  %v8270_v57 = vshll.u32 %v19182_v9, 16  ;;  %v17218_v33 = vld [vmem:[%s17708_s26 + $0xf0] sm:$0xff]   ;;  %v17443_v9 = vld [vmem:[%s17708_s26 + $0x988] sm:$0xff]  }
 0x400   : > { %15581 = vmatprep.subr.bf16.mxu0 %v17170_v29  ;;  %15834 = vmatpush3.bf16.msra.mxu1 %v17315_v21  ;;  %v8281_v29 = vrot.slane %v8279_v22, 2  ;;  %v8290_v21 = vor.u32 %v8289_v61, %v8286_v44  ;;  %v17341_v44 = vld [vmem:[%s17708_s26 + $0x6d0] sm:$0xff]  }
 0x401   : > { %15835 = vmatprep.subr.bf16.mxu1 %v17317_v2  ;;  %v8233_v2 = vshrl.u32 %v19103_v6, 16  ;;  %v8272_v22 = vrot.slane %v8270_v57, 2 }
 0x403   : > { %15582 = vmatpush3.bf16.msra.mxu0 %v17172_v62  ;;  %v8248_v62 = vor.u32 %v8247_v55, %v8244_v12  ;;  %v17206_v55 = vld [vmem:[%s17708_s26 + $0xd8] sm:$0xff]  }
 0x404   : > { %15583 = vmatprep.subr.bf16.mxu0 %v17174_v31  ;;  %15836 = vmatpush3.bf16.msra.mxu1 %v17319_v30  ;;  %v19249_v31 = vor.u32 %v8255_v5, %v8252_v11  ;;  %v17335_v11 = vld [vmem:[%s17708_s26 + $0x680] sm:$0xff]  }
 0x405   : > { %15837 = vmatprep.subr.bf16.mxu1 %v17321_v52  ;;  %v8230_v52 = vrot.slane %v8228_v50, 2  ;;  %v17343_v50 = vld [vmem:[%s17708_s26 + $0x690] sm:$0xff]  }
 0x406   : > { %v19259_v30 = vsel %vm2279_vm2, %v8248_v62, %v19249_v31  ;;  %v17212_v62 = vld [vmem:[%s17708_s26 + $0xa0] sm:$0xff]  }
 0x407   : > { %15584 = vmatpush3.bf16.msra.mxu0 %v17176_v20  ;;  %v17198_v20 = vld [vmem:[%s17708_s26 + $0xc8] sm:$0xff]   ;;  %v8231_v47 = vor.u32 %v8230_v52, %v8227_v41 }
 0x408   : > { %15585 = vmatprep.subr.bf16.mxu0 %v17178_v0  ;;  %15838 = vmatpush3.bf16.msra.mxu1 %v17323_v14  ;;  %v8282_v0 = vor.u32 %v8281_v29, %v8278_v1  ;;  %v8235_v14 = vrot.slane %v8233_v2, 1  ;;  %v17339_v1 = vld [vmem:[%s17708_s26 + $0x688] sm:$0xff]   ;;  %v17345_v2 = vld [vmem:[%s17708_s26 + $0x6d8] sm:$0xff]  }
 0x409   : > { %15839 = vmatprep.subr.bf16.mxu1 %v17325_v25  ;;  %v17216_v41 = vld [vmem:[%s17708_s26 + $0xa8] sm:$0xff]  }
 0x40b   : > { %15586 = vmatpush3.bf16.msra.mxu0 %v17180_v35  ;;  %v8236_v35 = vshll.u32 %v19103_v6, 16  ;;  %v8262_v6 = vshll.u32 %v19179_v4, 16  ;;  %v8269_v4 = vrot.slane %v8267_v43, 1 }
 0x40c   : > { %15587 = vmatprep.subr.bf16.mxu0 %v17182_v34  ;;  %15840 = vmatpush3.bf16.msra.mxu1 %v17327_v7  ;;  %v17331_v34 = vld [vmem:[%s17708_s26 + $0x5b8] sm:$0xff]   ;;  %v17204_v7 = vld [vmem:[%s17708_s26 + $0x90] sm:$0xff]  }
 0x40d   : > { %15841 = vmatprep.subr.bf16.mxu1 %v17329_v60  ;;  %v8238_v25 = vrot.slane %v8236_v35, 2  ;;  %v8264_v59 = vrot.slane %v8262_v6, 2  ;;  %v8273_v12 = vor.u32 %v8272_v22, %v8269_v4  ;;  %v17210_v60 = vld [vmem:[%s17708_s26 + $0xe0] sm:$0xff]   ;;  %v17222_v6 = vld [vmem:[%s17708_s26 + $0xf8] sm:$0xff]  }
 0x40e   : > { %v17226_v4 = vld [vmem:[%s17708_s26 + $0x340] sm:$0xff]  }
 0x40f   : > { %15588 = vmatpush3.bf16.msra.mxu0 %v17184_v40  ;;  %v8291_v40 = vsel %vm2279_vm2, %v8282_v0, %v8290_v21  ;;  %v8265_v56 = vor.u32 %v8264_v59, %v8261_v3  ;;  %v17353_v3 = vld [vmem:[%s17708_s26 + $0x6e8] sm:$0xff]   ;;  %v17224_v59 = vld [vmem:[%s17708_s26 + $0xb8] sm:$0xff]  }
 0x410   : > { %15589 = vmatprep.subr.bf16.mxu0 %v17186_v23  ;;  %v17333_v23 = vld [vmem:[%s17708_s26 + $0x6c0] sm:$0xff]   ;;  %8722 = vmatprep.mubr.bf16.mxu1 %v8291_v40  ;;  %v17347_v40 = vld [vmem:[%s17708_s26 + $0x698] sm:$0xff]  }
 0x411   : > { %15842 = vmatpush3.bf16.msra.mxu1 %v17331_v34  ;;  %v8274_v5 = vsel %vm2279_vm2, %v8265_v56, %v8273_v12  ;;  %v17355_v56 = vld [vmem:[%s17708_s26 + $0x6a8] sm:$0xff]  }
 0x412   : > { %15883 = vmatprep.subr.bf16.mxu1 %v17333_v23 }
 0x413   : > { %15590 = vmatpush3.bf16.msra.mxu0 %v17188_v39  ;;  %v17200_v39 = vld [vmem:[%s17708_s26 + $0x88] sm:$0xff]  }
 0x414   : > { %15631 = vmatprep.subr.bf16.mxu0 %v17194_v28  ;;  %v19270_v28 = vor.u32 %v8238_v25, %v8235_v14  ;;  %8723 = vmatmul.mubr.bf16.vlgmr.msra.gmra.mrb[168].mxu1 %v8274_v5  ;;  %v17349_v14 = vld [vmem:[%s17708_s26 + $0x6e0] sm:$0xff]   ;;  %v17220_v25 = vld [vmem:[%s17708_s26 + $0xb0] sm:$0xff]   ;;  %v19314_v5 = vld [vmem:[%s17723_s30 + $0x78] sm:$0xff] }
 0x415   : > { %15884 = vmatpush3.bf16.msra.mxu1 %v17335_v11  ;;  %8730 = vmatprep.mubr.bf16.mxu1 %v8290_v21  ;;  %v14031_v11 = vld [vmem:[%s17723_s30 + $0xa8] sm:$0x77] }
 0x416   : > { %7030 = vmatmul.mubr.bf16.vlgmr.msra.gmra.mrb[108].mxu0 %v19024_v19  ;;  %v17202_v19 = vld [vmem:[%s17708_s26 + $0xd0] sm:$0xff]   ;;  %v19277_v58 = vsel %vm2279_vm2, %v8231_v47, %v19270_v28  ;;  %15885 = vmatprep.subr.bf16.mxu1 %v17337_v18 }
 0x417   : > { %15632 = vmatpush3.bf16.msra.mxu0 %v17196_v38  ;;  %7037 = vmatprep.mubr.bf16.mxu0 %v6598_v32  ;;  %v6595_v32 = vor.u32 %v6593_v16, %v19018_v54  ;;  %v17208_v54 = vld [vmem:[%s17708_s26 + $0x98] sm:$0xff]   ;;  %v15535_v16 = vpop.f32.mrb[120].mxu1 }
 0x418   : > { %15633 = vmatprep.subr.bf16.mxu0 %v17198_v20  ;;  %v15536_v29 = vpop.f32.mrb[121].mxu1 }
 0x419   : > { %v15537_v61 = vadd.f32 %v15536_v29, %v15535_v16  ;;  %v15538_v38 = vpop.f32.mrb[122].mxu1  ;;  %15886 = vmatpush3.bf16.msra.mxu1 %v17339_v1  ;;  %v14032_v16 = vld [vmem:[%s17723_s30 + $0xb0] sm:$0x77] }
 0x41a   : > { %v15539_v63 = vpop.f32.mrb[123].mxu1  ;;  %15887 = vmatprep.subr.bf16.mxu1 %v17341_v44  ;;  %v19327_v29 = vld [vmem:[%s17723_s30 + $0x90] sm:$0xff] }
 0x41b   : > { %15634 = vmatpush3.bf16.msra.mxu0 %v17200_v39  ;;  %v15540_v20 = vadd.f32 %v15539_v63, %v15538_v38  ;;  %v15541_v0 = vpop.f32.mrb[124].mxu1  ;;  %v17351_v39 = vld [vmem:[%s17708_s26 + $0x6a0] sm:$0xff]   ;;  %v19330_v44 = vcombine.low %v19327_v29, %v14031_v11 }
 0x41c   : > { %15635 = vmatprep.subr.bf16.mxu0 %v17202_v19  ;;  %v15542_v35 = vpop.f32.mrb[125].mxu1  ;;  %8731 = vmatmul.mubr.bf16.gmra.mrb[172].mxu1 %v8273_v12  ;;  %v17357_v12 = vld [vmem:[%s17708_s26 + $0x6f0] sm:$0xff]   ;;  %v17228_v38 = vld [vmem:[%s17708_s26 + $0x300] sm:$0xff]  }
 0x41d   : > { %v19293_v21 = vadd.f32 %v15542_v35, %v15541_v0  ;;  %v15544_v34 = vpop.f32.mrb[126].mxu1  ;;  %15888 = vmatpush3.bf16.msra.mxu1 %v17343_v50  ;;  %v19338_v63 = vld [vmem:[%s17723_s30 + $0x80] sm:$0xff]  ;;  %v17230_v50 = vld [vmem:[%s17708_s26 + $0x348] sm:$0xff]  }
 0x41e   : > { %7038 = vmatmul.mubr.bf16.gmra.mrb[112].mxu0 %v6595_v32  ;;  %v15545_v52 = vpop.f32.mrb[127].mxu1  ;;  %15889 = vmatprep.subr.bf16.mxu1 %v17345_v2  ;;  %v19347_v2 = vld [vmem:[%s17723_s30 + $0x98] sm:$0xff] }
 0x41f   : > { %15636 = vmatpush3.bf16.msra.mxu0 %v17204_v7  ;;  %7427 = vmatprep.mubr.bf16.mxu0 %v18948_v53  ;;  %v17214_v53 = vld [vmem:[%s17708_s26 + $0xe8] sm:$0xff]   ;;  %v19298_v23 = vadd.f32 %v15545_v52, %v15544_v34  ;;  %v15563_v47 = vpop.f32.mrb[128].mxu1  ;;  %v19350_v35 = vcombine.high %v19347_v2, %v14032_v16  ;;  %v17361_v52 = vld [vmem:[%s17708_s26 + $0x6f8] sm:$0xff]  }
 0x420   : > { %15637 = vmatprep.subr.bf16.mxu0 %v17206_v55  ;;  %v15564_v43 = vpop.f32.mrb[129].mxu1  ;;  %v14028_v55 = vld [vmem:[%s17723_s30 + $0x60] sm:$0xcc] }
 0x421   : > { %15890 = vmatpush3.bf16.msra.mxu1 %v17347_v40  ;;  %v15565_v57 = vadd.f32 %v15564_v43, %v15563_v47  ;;  %v15566_v19 = vpop.f32.mrb[130].mxu1  ;;  %v19317_v18 = vcombine.high %v14028_v55, %v19314_v5  ;;  %v19324_v1 = vcombine.low %v14028_v55, %v19314_v5  ;;  %v19359_v40 = vcombine.low %v19347_v2, %v14032_v16  ;;  %v17232_v47 = vld [vmem:[%s17708_s26 + $0x308] sm:$0xff]   ;;  %v17242_v55 = vld [vmem:[%s17708_s26 + $0x360] sm:$0xff]  }
 0x422   : > { %15891 = vmatprep.subr.bf16.mxu1 %v17349_v14  ;;  %v15567_v22 = vpop.f32.mrb[131].mxu1  ;;  %v17244_v16 = vld [vmem:[%s17708_s26 + $0x320] sm:$0xff]  }
 0x423   : > { %15638 = vmatpush3.bf16.msra.mxu0 %v17208_v54  ;;  %v19307_v32 = vadd.f32 %v15565_v57, %v15537_v61  ;;  %v15568_v7 = vadd.f32 %v15567_v22, %v15566_v19  ;;  %v14029_v54 = vld [vmem:[%s17723_s30 + $0x68] sm:$0xcc]  ;;  %v19333_v61 = vcombine.high %v19327_v29, %v14031_v11  ;;  %v8875_v34 = vrot.slane %v19324_v1, 2  ;;  %v17373_v57 = vld [vmem:[%s17708_s26 + $0x7c0] sm:$0xff]  }
 0x424   : > { %15639 = vmatprep.subr.bf16.mxu0 %v17210_v60  ;;  %v17379_v11 = vld [vmem:[%s17708_s26 + $0x788] sm:$0xff]  }
 0x425   : > { %15892 = vmatpush3.bf16.msra.mxu1 %v17351_v39  ;;  %v19321_v60 = vadd.f32 %v15568_v7, %v15540_v20  ;;  %v17359_v20 = vld [vmem:[%s17708_s26 + $0x6b0] sm:$0xff]   ;;  %v8879_v0 = vrot.slane %v19333_v61, 2  ;;  %v17377_v7 = vld [vmem:[%s17708_s26 + $0x7c8] sm:$0xff]  }
 0x426   : > { %15893 = vmatprep.subr.bf16.mxu1 %v17353_v3  ;;  %v17363_v3 = vld [vmem:[%s17708_s26 + $0x6b8] sm:$0xff]  }
 0x427   : > { %15640 = vmatpush3.bf16.msra.mxu0 %v17212_v62  ;;  %v8878_v62 = vrot.slane %v19317_v18, 2 }
 0x428   : > { %15641 = vmatprep.subr.bf16.mxu0 %v17214_v53  ;;  %v19341_v53 = vcombine.high %v14029_v54, %v19338_v63 }
 0x429   : > { %15894 = vmatpush3.bf16.msra.mxu1 %v17355_v56  ;;  %v17375_v56 = vld [vmem:[%s17708_s26 + $0x780] sm:$0xff]  }
 0x42a   : > { %15895 = vmatprep.subr.bf16.mxu1 %v17357_v12  ;;  %v8884_v14 = vrot.slane %v19341_v53, 2  ;;  %v17240_v12 = vld [vmem:[%s17708_s26 + $0x318] sm:$0xff]  }
 0x42b   : > { %15642 = vmatpush3.bf16.msra.mxu0 %v17216_v41  ;;  %v8876_v41 = vrot.slane %v19330_v44, 2 }
 0x42c   : > { %15643 = vmatprep.subr.bf16.mxu0 %v17218_v33  ;;  %v19356_v33 = vcombine.low %v14029_v54, %v19338_v63  ;;  %v17381_v54 = vld [vmem:[%s17708_s26 + $0x7d0] sm:$0xff]  }
 0x42d   : > { %v19372_v39 = vsel %vm2966_vm3, %v8875_v34, %v8876_v41  ;;  %15896 = vmatpush3.bf16.msra.mxu1 %v17359_v20  ;;  %v17385_v34 = vld [vmem:[%s17708_s26 + $0x7d8] sm:$0xff]  }
 0x42e   : > { %15897 = vmatprep.subr.bf16.mxu1 %v17361_v52  ;;  %v8881_v19 = vrot.slane %v19356_v33, 2 }
 0x42f   : > { %15644 = vmatpush3.bf16.msra.mxu0 %v17220_v25  ;;  %v19366_v25 = vsel %vm2966_vm3, %v8878_v62, %v8879_v0 }
 0x430   : > { %15645 = vmatprep.subr.bf16.mxu0 %v17222_v6  ;;  %v8885_v6 = vrot.slane %v19350_v35, 2 }
 0x431   : > { %15898 = vmatpush3.bf16.msra.mxu1 %v17363_v3  ;;  %v17387_v3 = vld [vmem:[%s17708_s26 + $0x798] sm:$0xff]  }
 0x432   : > { %v8886_v43 = vsel %vm2966_vm3, %v8884_v14, %v8885_v6  ;;  %15939 = vmatprep.subr.bf16.mxu1 %v17373_v57  ;;  %v17248_v14 = vld [vmem:[%s17708_s26 + $0x328] sm:$0xff]   ;;  %v17389_v57 = vld [vmem:[%s17708_s26 + $0x7e0] sm:$0xff]  }
 0x433   : > { %15646 = vmatpush3.bf16.msra.mxu0 %v17224_v59  ;;  %9274 = vmatprep.mubr.bf16.mxu1 %v8886_v43  ;;  %v8882_v59 = vrot.slane %v19359_v40, 2 }
 0x434   : > { %15687 = vmatprep.subr.bf16.mxu0 %v17226_v4  ;;  %v17236_v4 = vld [vmem:[%s17708_s26 + $0x310] sm:$0xff]  }
 0x435   : > { %v8883_v22 = vsel %vm2966_vm3, %v8881_v19, %v8882_v59  ;;  %v17252_v19 = vld [vmem:[%s17708_s26 + $0x330] sm:$0xff]  }
 0x436   : > { %7428 = vmatmul.mubr.bf16.vlgmr.msra.gmra.mrb[116].mxu0 %v18956_v37  ;;  %v17234_v37 = vld [vmem:[%s17708_s26 + $0x350] sm:$0xff]   ;;  %9275 = vmatmul.mubr.bf16.vlgmr.msra.gmra.mrb[176].mxu1 %v8883_v22  ;;  %v9461_v22 = vshll.u32 %v19317_v18, 16 }
 0x437   : > { %15688 = vmatpush3.bf16.msra.mxu0 %v17228_v38  ;;  %7435 = vmatprep.mubr.bf16.mxu0 %v18964_v46  ;;  %v17238_v46 = vld [vmem:[%s17708_s26 + $0x358] sm:$0xff]   ;;  %v17246_v38 = vld [vmem:[%s17708_s26 + $0x368] sm:$0xff]  }
 0x438   : > { %15689 = vmatprep.subr.bf16.mxu0 %v17230_v50  ;;  %15940 = vmatpush3.bf16.msra.mxu1 %v17375_v56  ;;  %v9466_v56 = vshrl.u32 %v19333_v61, 16 }
 0x439   : > { %9282 = vmatprep.mubr.bf16.mxu1 %v8885_v6  ;;  %15941 = vmatprep.subr.bf16.mxu1 %v17377_v7  ;;  %v17266_v7 = vld [vmem:[%s17708_s26 + $0x440] sm:$0xff]  }
 0x43b   : > { %15690 = vmatpush3.bf16.msra.mxu0 %v17232_v47 }
 0x43c   : > { %15691 = vmatprep.subr.bf16.mxu0 %v17234_v37  ;;  %15942 = vmatpush3.bf16.msra.mxu1 %v17379_v11  ;;  %v17250_v37 = vld [vmem:[%s17708_s26 + $0x370] sm:$0xff]   ;;  %v9469_v11 = vshll.u32 %v19333_v61, 16 }
 0x43d   : > { %15943 = vmatprep.subr.bf16.mxu1 %v17381_v54  ;;  %v17395_v54 = vld [vmem:[%s17708_s26 + $0x7a8] sm:$0xff]   ;;  %v17384_v61 = vld [vmem:[%s17708_s26 + $0x710] sm:$0xff]  }
 0x43e   : > { %7436 = vmatmul.mubr.bf16.gmra.mrb[120].mxu0 %v18961_v24  ;;  %v15569_v24 = vpop.f32.mrb[132].mxu1  ;;  %9283 = vmatmul.mubr.bf16.gmra.mrb[180].mxu1 %v8882_v59  ;;  %v17393_v59 = vld [vmem:[%s17708_s26 + $0x7e8] sm:$0xff]  }
 0x43f   : > { %15692 = vmatpush3.bf16.msra.mxu0 %v17236_v4  ;;  %7975 = vmatprep.mubr.bf16.mxu0 %v19119_v49  ;;  %v15570_v62 = vpop.f32.mrb[133].mxu1  ;;  %v17383_v49 = vld [vmem:[%s17708_s26 + $0x790] sm:$0xff]   ;;  %v17391_v4 = vld [vmem:[%s17708_s26 + $0x7a0] sm:$0xff]  }
 0x440   : > { %15693 = vmatprep.subr.bf16.mxu0 %v17238_v46  ;;  %v15571_v50 = vadd.f32 %v15570_v62, %v15569_v24  ;;  %v15572_v20 = vpop.f32.mrb[134].mxu1  ;;  %15944 = vmatpush3.bf16.msra.mxu1 %v17383_v49  ;;  %v17256_v46 = vld [vmem:[%s17708_s26 + $0x338] sm:$0xff]   ;;  %v9463_v49 = vrot.slane %v9461_v22, 3  ;;  %v9444_v22 = vshll.u32 %v19324_v1, 16 }
 0x441   : > { %v15573_v52 = vpop.f32.mrb[135].mxu1  ;;  %15945 = vmatprep.subr.bf16.mxu1 %v17385_v34 }
 0x442   : > { %v19399_v6 = vadd.f32 %v15571_v50, %v19293_v21  ;;  %v15574_v47 = vadd.f32 %v15573_v52, %v15572_v20  ;;  %v17254_v21 = vld [vmem:[%s17708_s26 + $0x378] sm:$0xff]   ;;  %v17397_v50 = vld [vmem:[%s17708_s26 + $0x7f0] sm:$0xff]   ;;  %v9468_v52 = vrot.slane %v9466_v56, 2 }
 0x443   : > { %15694 = vmatpush3.bf16.msra.mxu0 %v17240_v12  ;;  %v14030_v12 = vld [vmem:[%s17723_s30 + $0x70] sm:$0xcc] }
 0x444   : > { %15695 = vmatprep.subr.bf16.mxu0 %v17242_v55  ;;  %v19404_v43 = vadd.f32 %v15574_v47, %v19298_v23  ;;  %15946 = vmatpush3.bf16.msra.mxu1 %v17387_v3  ;;  %v9458_v23 = vshrl.u32 %v19317_v18, 16  ;;  %v14033_v55 = vld [vmem:[%s17723_s30 + $0xb8] sm:$0x77]  ;;  %v17268_v47 = vld [vmem:[%s17708_s26 + $0x400] sm:$0xff]  }
 0x445   : > { %15947 = vmatprep.subr.bf16.mxu1 %v17389_v57 }
 0x446   : > { %v9460_v62 = vrot.slane %v9458_v23, 2 }
 0x447   : > { %15696 = vmatpush3.bf16.msra.mxu0 %v17244_v16  ;;  %v19421_v16 = vld [vmem:[%s17723_s30 + $0x88] sm:$0xff] }
 0x448   : > { %15697 = vmatprep.subr.bf16.mxu0 %v17246_v38  ;;  %15948 = vmatpush3.bf16.msra.mxu1 %v17391_v4  ;;  %v19424_v24 = vcombine.high %v14030_v12, %v19421_v16  ;;  %v19427_v38 = vld [vmem:[%s17723_s30 + $0xa0] sm:$0xff]  ;;  %v19434_v20 = vcombine.low %v14030_v12, %v19421_v16  ;;  %v9464_v57 = vor.u32 %v9463_v49, %v9460_v62  ;;  %v9446_v62 = vrot.slane %v9444_v22, 3  ;;  %v17272_v49 = vld [vmem:[%s17708_s26 + $0x408] sm:$0xff]   ;;  %v17280_v22 = vld [vmem:[%s17708_s26 + $0x418] sm:$0xff]  }
 0x449   : > { %v19430_v18 = vcombine.high %v19427_v38, %v14033_v55  ;;  %15949 = vmatprep.subr.bf16.mxu1 %v17393_v59  ;;  %v19437_v34 = vcombine.low %v19427_v38, %v14033_v55  ;;  %v9452_v55 = vshll.u32 %v19330_v44, 16 }
 0x44a   : > { %v8887_v59 = vrot.slane %v19434_v20, 2 }
 0x44b   : > { %15698 = vmatpush3.bf16.msra.mxu0 %v17248_v14  ;;  %v9471_v14 = vrot.slane %v9469_v11, 3  ;;  %v8891_v3 = vrot.slane %v19430_v18, 2  ;;  %v20349_v23 = vrot.slane %v19437_v34, 2  ;;  %v17401_v11 = vld [vmem:[%s17708_s26 + $0x7f8] sm:$0xff]   ;;  %v9520_v10 = vshll.u32 %v19437_v34, 16 }
 0x44c   : > { %15699 = vmatprep.subr.bf16.mxu0 %v17250_v37  ;;  %v8890_v37 = vrot.slane %v19424_v24, 2  ;;  %15950 = vmatpush3.bf16.msra.mxu1 %v17395_v54 }
 0x44d   : > { %v9472_v4 = vor.u32 %v9471_v14, %v9468_v52  ;;  %15951 = vmatprep.subr.bf16.mxu1 %v17397_v50  ;;  %v19461_v54 = vsel %vm2966_vm3, %v8887_v59, %v20349_v23  ;;  %v17274_v50 = vld [vmem:[%s17708_s26 + $0x450] sm:$0xff]   ;;  %v17403_v14 = vld [vmem:[%s17708_s26 + $0x7b8] sm:$0xff]   ;;  %v17409_v59 = vld [vmem:[%s17708_s26 + $0x8c8] sm:$0xff]  }
 0x44e   : > { %v19451_v56 = vsel %vm2966_vm3, %v8890_v37, %v8891_v3  ;;  %v17525_v23 = vld [vmem:[%s17708_s26 + $0xbf0] sm:$0xff]  }
 0x44f   : > { %15700 = vmatpush3.bf16.msra.mxu0 %v17252_v19  ;;  %v9441_v19 = vshrl.u32 %v19324_v1, 16  ;;  %v9473_v1 = vsel %vm3533_vm4, %v9464_v57, %v9472_v4 }
 0x450   : > { %15701 = vmatprep.subr.bf16.mxu0 %v17254_v21  ;;  %v17270_v21 = vld [vmem:[%s17708_s26 + $0x448] sm:$0xff]   ;;  %9874 = vmatprep.mubr.bf16.mxu1 %v9473_v1  ;;  %v17290_v1 = vld [vmem:[%s17708_s26 + $0x470] sm:$0xff]  }
 0x451   : > { %v9443_v12 = vrot.slane %v9441_v19, 2  ;;  %v17276_v19 = vld [vmem:[%s17708_s26 + $0x410] sm:$0xff]  }
 0x453   : > { %15702 = vmatpush3.bf16.msra.mxu0 %v17256_v46  ;;  %v17399_v46 = vld [vmem:[%s17708_s26 + $0x7b0] sm:$0xff]   ;;  %v9447_v37 = vor.u32 %v9446_v62, %v9443_v12  ;;  %v17411_v12 = vld [vmem:[%s17708_s26 + $0x888] sm:$0xff]   ;;  %v15619_v62 = vpop.f32.mrb[136].mxu1 }
 0x454   : > { %15743 = vmatprep.subr.bf16.mxu0 %v17266_v7  ;;  %v9449_v7 = vshrl.u32 %v19330_v44, 16  ;;  %15952 = vmatpush3.bf16.msra.mxu1 %v17399_v46  ;;  %v17282_v46 = vld [vmem:[%s17708_s26 + $0x460] sm:$0xff]   ;;  %v17658_v44 = vmov 1966171168  }
 0x455   : > { %15953 = vmatprep.subr.bf16.mxu1 %v17401_v11  ;;  %v17288_v11 = vld [vmem:[%s17708_s26 + $0x428] sm:$0xff]  }
 0x456   : > { %7976 = vmatmul.mubr.bf16.vlgmr.msra.gmra.mrb[124].mxu0 %v19127_v48  ;;  %v9451_v52 = vrot.slane %v9449_v7, 2  ;;  %v9454_v48 = vrot.slane %v9452_v55, 3  ;;  %v17286_v7 = vld [vmem:[%s17708_s26 + $0x468] sm:$0xff]   ;;  %v17417_v55 = vld [vmem:[%s17708_s26 + $0x8d8] sm:$0xff]  }
 0x457   : > { %15744 = vmatpush3.bf16.msra.mxu0 %v17268_v47  ;;  %7983 = vmatprep.mubr.bf16.mxu0 %v7629_v17  ;;  %v17405_v47 = vld [vmem:[%s17708_s26 + $0x8c0] sm:$0xff]  }
 0x458   : > { %15745 = vmatprep.subr.bf16.mxu0 %v17270_v21  ;;  %v9455_v57 = vor.u32 %v9454_v48, %v9451_v52  ;;  %15954 = vmatpush3.bf16.msra.mxu1 %v17403_v14  ;;  %v17407_v21 = vld [vmem:[%s17708_s26 + $0x880] sm:$0xff]   ;;  %v17292_v52 = vld [vmem:[%s17708_s26 + $0x430] sm:$0xff]   ;;  %v15620_v48 = vpop.f32.mrb[137].mxu1 }
 0x459   : > { %15995 = vmatprep.subr.bf16.mxu1 %v17405_v47  ;;  %v15622_v14 = vpop.f32.mrb[138].mxu1  ;;  %v19492_v47 = vadd.f32 %v15620_v48, %v15619_v62 }
 0x45a   : > { %v9456_v17 = vsel %vm3533_vm4, %v9447_v37, %v9455_v57  ;;  %v17423_v37 = vld [vmem:[%s17708_s26 + $0x8a0] sm:$0xff]  }
 0x45b   : > { %15746 = vmatpush3.bf16.msra.mxu0 %v17272_v49  ;;  %9875 = vmatmul.mubr.bf16.vlgmr.msra.gmra.mrb[184].mxu1 %v9456_v17  ;;  %v17421_v49 = vld [vmem:[%s17708_s26 + $0x8e0] sm:$0xff]   ;;  %v17296_v17 = vld [vmem:[%s17708_s26 + $0x438] sm:$0xff]  }
 0x45c   : > { %15747 = vmatprep.subr.bf16.mxu0 %v17274_v50  ;;  %15996 = vmatpush3.bf16.msra.mxu1 %v17407_v21  ;;  %v17294_v50 = vld [vmem:[%s17708_s26 + $0x478] sm:$0xff]   ;;  %v9492_v21 = vshrl.u32 %v19341_v53, 16 }
 0x45d   : > { %9882 = vmatprep.mubr.bf16.mxu1 %v9472_v4  ;;  %15997 = vmatprep.subr.bf16.mxu1 %v17409_v59  ;;  %v17419_v4 = vld [vmem:[%s17708_s26 + $0x898] sm:$0xff]   ;;  %v9495_v59 = vshll.u32 %v19341_v53, 16 }
 0x45e   : > { %7984 = vmatmul.mubr.bf16.gmra.mrb[128].mxu0 %v7626_v42  ;;  %v17284_v42 = vld [vmem:[%s17708_s26 + $0x420] sm:$0xff]  }
 0x45f   : > { %15748 = vmatpush3.bf16.msra.mxu0 %v17276_v19  ;;  %8073 = vmatprep.mubr.bf16.mxu0 %v19200_v13  ;;  %v17415_v13 = vld [vmem:[%s17708_s26 + $0x890] sm:$0xff]   ;;  %v15623_v19 = vpop.f32.mrb[139].mxu1  ;;  %v9497_v53 = vrot.slane %v9495_v59, 3 }
 0x460   : > { %15749 = vmatprep.subr.bf16.mxu0 %v17278_v15  ;;  %15998 = vmatpush3.bf16.msra.mxu1 %v17411_v12  ;;  %v19495_v15 = vadd.f32 %v15623_v19, %v15622_v14  ;;  %v17302_v12 = vld [vmem:[%s17708_s26 + $0x540] sm:$0xff]   ;;  %v9478_v19 = vshll.u32 %v19356_v33, 16  ;;  %v15625_v59 = vpop.f32.mrb[140].mxu1 }
 0x461   : > { %15999 = vmatprep.subr.bf16.mxu1 %v17413_v26  ;;  %v9526_v26 = vshrl.u32 %v19424_v24, 16 }
 0x463   : > { %15750 = vmatpush3.bf16.msra.mxu0 %v17280_v22  ;;  %9883 = vmatmul.mubr.bf16.gmra.mrb[188].mxu1 %v9455_v57  ;;  %v17425_v57 = vld [vmem:[%s17708_s26 + $0x8e8] sm:$0xff]   ;;  %v9500_v22 = vshrl.u32 %v19350_v35, 16  ;;  %v9528_v62 = vrot.slane %v9526_v26, 2  ;;  %v9486_v26 = vshll.u32 %v19359_v40, 16 }
 0x464   : > { %15751 = vmatprep.subr.bf16.mxu0 %v17282_v46  ;;  %16000 = vmatpush3.bf16.msra.mxu1 %v17415_v13  ;;  %v9503_v46 = vshll.u32 %v19350_v35, 16  ;;  %v9537_v13 = vshll.u32 %v19430_v18, 16  ;;  %v17429_v35 = vld [vmem:[%s17708_s26 + $0x8f0] sm:$0xff]  }
 0x465   : > { %16001 = vmatprep.subr.bf16.mxu1 %v17417_v55  ;;  %v17427_v55 = vld [vmem:[%s17708_s26 + $0x8a8] sm:$0xff]  }
 0x466   : > { %v9539_v48 = vrot.slane %v9537_v13, 3 }
 0x467   : > { %15752 = vmatpush3.bf16.msra.mxu0 %v17284_v42  ;;  %v9529_v42 = vshll.u32 %v19424_v24, 16  ;;  %v17304_v24 = vld [vmem:[%s17708_s26 + $0x500] sm:$0xff]  }
 0x468   : > { %15753 = vmatprep.subr.bf16.mxu0 %v17286_v7  ;;  %16002 = vmatpush3.bf16.msra.mxu1 %v17419_v4  ;;  %v9534_v7 = vshrl.u32 %v19430_v18, 16  ;;  %v9505_v4 = vrot.slane %v9503_v46, 3  ;;  %v9483_v46 = vshrl.u32 %v19359_v40, 16 }
 0x469   : > { %16003 = vmatprep.subr.bf16.mxu1 %v17421_v49  ;;  %v9531_v49 = vrot.slane %v9529_v42, 3  ;;  %v15626_v42 = vpop.f32.mrb[141].mxu1 }
 0x46a   : > { %v15628_v40 = vpop.f32.mrb[142].mxu1 }
 0x46b   : > { %15754 = vmatpush3.bf16.msra.mxu0 %v17288_v11  ;;  %v9494_v11 = vrot.slane %v9492_v21, 2  ;;  %v17306_v21 = vld [vmem:[%s17708_s26 + $0x548] sm:$0xff]  }
 0x46c   : > { %15755 = vmatprep.subr.bf16.mxu0 %v17290_v1  ;;  %16004 = vmatpush3.bf16.msra.mxu1 %v17423_v37  ;;  %v9502_v1 = vrot.slane %v9500_v22, 2  ;;  %v9475_v37 = vshrl.u32 %v19356_v33, 16  ;;  %v9480_v33 = vrot.slane %v9478_v19, 3 }
 0x46d   : > { %16005 = vmatprep.subr.bf16.mxu1 %v17425_v57  ;;  %v9532_v57 = vor.u32 %v9531_v49, %v9528_v62  ;;  %v17308_v62 = vld [vmem:[%s17708_s26 + $0x508] sm:$0xff]   ;;  %v15629_v49 = vpop.f32.mrb[143].mxu1 }
 0x46e   : > { %v19510_v14 = vor.u32 %v9505_v4, %v9502_v1  ;;  %v9477_v13 = vrot.slane %v9475_v37, 2  ;;  %v9485_v1 = vrot.slane %v9483_v46, 2  ;;  %v9488_v4 = vrot.slane %v9486_v26, 3  ;;  %v17312_v46 = vld [vmem:[%s17708_s26 + $0x510] sm:$0xff]  }
 0x46f   : > { %15756 = vmatpush3.bf16.msra.mxu0 %v17292_v52  ;;  %v9536_v52 = vrot.slane %v9534_v7, 2  ;;  %v19534_v37 = vadd.f32 %v15629_v49, %v15628_v40  ;;  %v17318_v40 = vld [vmem:[%s17708_s26 + $0x560] sm:$0xff]   ;;  %v17326_v49 = vld [vmem:[%s17708_s26 + $0x570] sm:$0xff]  }
 0x470   : > { %15757 = vmatprep.subr.bf16.mxu0 %v17294_v50  ;;  %v9498_v50 = vor.u32 %v9497_v53, %v9494_v11  ;;  %16006 = vmatpush3.bf16.msra.mxu1 %v17427_v55  ;;  %v17433_v11 = vld [vmem:[%s17708_s26 + $0x8f8] sm:$0xff]   ;;  %v19525_v53 = vadd.f32 %v15626_v42, %v15625_v59 }
 0x471   : > { %v9540_v22 = vor.u32 %v9539_v48, %v9536_v52  ;;  %16007 = vmatprep.subr.bf16.mxu1 %v17429_v35  ;;  %v9481_v52 = vor.u32 %v9480_v33, %v9477_v13  ;;  %v9512_v35 = vshll.u32 %v19434_v20, 16  ;;  %v9517_v48 = vshrl.u32 %v19437_v34, 16  ;;  %v17314_v42 = vld [vmem:[%s17708_s26 + $0x558] sm:$0xff]   ;;  %v17439_v13 = vld [vmem:[%s17708_s26 + $0x980] sm:$0xff]  }
 0x472   : > { %v19520_v7 = vsel %vm3533_vm4, %v9498_v50, %v19510_v14  ;;  %v17310_v50 = vld [vmem:[%s17708_s26 + $0x550] sm:$0xff]  }
 0x473   : > { %15758 = vmatpush3.bf16.msra.mxu0 %v17296_v17  ;;  %v17431_v17 = vld [vmem:[%s17708_s26 + $0x8b0] sm:$0xff]   ;;  %v9541_v55 = vsel %vm3533_vm4, %v9532_v57, %v9540_v22  ;;  %v9514_v19 = vrot.slane %v9512_v35, 3  ;;  %v9519_v59 = vrot.slane %v9517_v48, 2  ;;  %v9522_v57 = vrot.slane %v9520_v10, 3 }
 0x474   : > { %15799 = vmatprep.subr.bf16.mxu0 %v17302_v12  ;;  %v9509_v12 = vshrl.u32 %v19434_v20, 16  ;;  %9972 = vmatprep.mubr.bf16.mxu1 %v9541_v55  ;;  %v17437_v20 = vld [vmem:[%s17708_s26 + $0x9c0] sm:$0xff]   ;;  %v17328_v35 = vld [vmem:[%s17708_s26 + $0x530] sm:$0xff]  }
 0x475   : > { %16008 = vmatpush3.bf16.msra.mxu1 %v17431_v17  ;;  %v9523_v17 = vor.u32 %v9522_v57, %v9519_v59  ;;  %v17320_v55 = vld [vmem:[%s17708_s26 + $0x520] sm:$0xff]  }
 0x476   : > { %8074 = vmatmul.mubr.bf16.vlgmr.msra.gmra.mrb[132].mxu0 %v19206_v51  ;;  %v9511_v51 = vrot.slane %v9509_v12, 2  ;;  %16009 = vmatprep.subr.bf16.mxu1 %v17433_v11  ;;  %v17441_v12 = vld [vmem:[%s17708_s26 + $0x9c8] sm:$0xff]   ;;  %v17316_v11 = vld [vmem:[%s17708_s26 + $0x518] sm:$0xff]  }
 0x477   : > { %15800 = vmatpush3.bf16.msra.mxu0 %v17304_v24  ;;  %8081 = vmatprep.mubr.bf16.mxu0 %v7641_v27  ;;  %v19536_v24 = vor.u32 %v9488_v4, %v9485_v1  ;;  %v17435_v27 = vld [vmem:[%s17708_s26 + $0x8b8] sm:$0xff]   ;;  %v17322_v1 = vld [vmem:[%s17708_s26 + $0x568] sm:$0xff]  }
 0x478   : > { %15801 = vmatprep.subr.bf16.mxu0 %v17306_v21  ;;  %v9515_v26 = vor.u32 %v9514_v19, %v9511_v51  ;;  %v17449_v4 = vld [vmem:[%s17708_s26 + $0x9d8] sm:$0xff]   ;;  %v17453_v51 = vld [vmem:[%s17708_s26 + $0x9e0] sm:$0xff]  }
 0x479   : > { %v19543_v21 = vsel %vm3533_vm4, %v9481_v52, %v19536_v24  ;;  %16010 = vmatpush3.bf16.msra.mxu1 %v17435_v27  ;;  %v15675_v52 = vpop.f32.mrb[144].mxu1  ;;  %v17455_v27 = vld [vmem:[%s17708_s26 + $0x9a0] sm:$0xff]  }
 0x47a   : > { %16051 = vmatprep.subr.bf16.mxu1 %v17437_v20  ;;  %v9524_v33 = vsel %vm3533_vm4, %v9515_v26, %v9523_v17  ;;  %v15676_v48 = vpop.f32.mrb[145].mxu1  ;;  %v17457_v20 = vld [vmem:[%s17708_s26 + $0x9e8] sm:$0xff]   ;;  %v17334_v26 = vld [vmem:[%s17708_s26 + $0x640] sm:$0xff]  }
 0x47b   : > { %15802 = vmatpush3.bf16.msra.mxu0 %v17308_v62  ;;  %v17324_v62 = vld [vmem:[%s17708_s26 + $0x528] sm:$0xff]   ;;  %v15678_v10 = vpop.f32.mrb[146].mxu1  ;;  %v19568_v19 = vadd.f32 %v15676_v48, %v15675_v52 }
 0x47c   : > { %15803 = vmatprep.subr.bf16.mxu0 %v17310_v50  ;;  %9973 = vmatmul.mubr.bf16.vlgmr.msra.gmra.mrb[192].mxu1 %v9524_v33  ;;  %v17330_v50 = vld [vmem:[%s17708_s26 + $0x578] sm:$0xff]   ;;  %v15679_v59 = vpop.f32.mrb[147].mxu1 }
 0x47d   : > { %16052 = vmatpush3.bf16.msra.mxu1 %v17439_v13  ;;  %9980 = vmatprep.mubr.bf16.mxu1 %v9540_v22  ;;  %v17451_v22 = vld [vmem:[%s17708_s26 + $0x998] sm:$0xff]   ;;  %v19571_v57 = vadd.f32 %v15679_v59, %v15678_v10  ;;  %v17459_v13 = vld [vmem:[%s17708_s26 + $0x9a8] sm:$0xff]  }
 0x47e   : > { %8082 = vmatmul.mubr.bf16.gmra.mrb[136].mxu0 %v7638_v45  ;;  %16053 = vmatprep.subr.bf16.mxu1 %v17441_v12  ;;  %v17445_v45 = vld [vmem:[%s17708_s26 + $0x9d0] sm:$0xff]  }
 0x47f   : > { %15804 = vmatpush3.bf16.msra.mxu0 %v17312_v46  ;;  %8673 = vmatprep.mubr.bf16.mxu0 %v19259_v30  ;;  %v17447_v30 = vld [vmem:[%s17708_s26 + $0x990] sm:$0xff]   ;;  %v17332_v46 = vld [vmem:[%s17708_s26 + $0x538] sm:$0xff]  }
 0x480   : > { %15805 = vmatprep.subr.bf16.mxu0 %v17314_v42  ;;  %v14334_v42 = vld [vmem:[%s17723_s30 + $0x60] sm:$0x88] }
 0x481   : > { %16054 = vmatpush3.bf16.msra.mxu1 %v17443_v9  ;;  %v19579_v33 = vcombine.high %v14334_v42, %v19314_v5  ;;  %v19587_v9 = vcombine.low %v14334_v42, %v19314_v5  ;;  %v17338_v5 = vld [vmem:[%s17708_s26 + $0x648] sm:$0xff]  }
 0x482   : > { %16055 = vmatprep.subr.bf16.mxu1 %v17445_v45 }
 0x483   : > { %15806 = vmatpush3.bf16.msra.mxu0 %v17316_v11  ;;  %v14335_v11 = vld [vmem:[%s17723_s30 + $0x68] sm:$0x88]  ;;  %v10125_v52 = vrot.slane %v19587_v9, 3 }
 0x484   : > { %15807 = vmatprep.subr.bf16.mxu0 %v17318_v40  ;;  %9981 = vmatmul.mubr.bf16.gmra.mrb[196].mxu1 %v9523_v17  ;;  %v14337_v17 = vld [vmem:[%s17723_s30 + $0xa8] sm:$0xff]  ;;  %v17461_v40 = vld [vmem:[%s17708_s26 + $0x9f0] sm:$0xff]   ;;  %v19613_v10 = vcombine.low %v14335_v11, %v19338_v63 }
 0x485   : > { %16056 = vmatpush3.bf16.msra.mxu1 %v17447_v30  ;;  %v19582_v12 = vcombine.high %v19327_v29, %v14337_v17  ;;  %v19590_v45 = vcombine.low %v19327_v29, %v14337_v17  ;;  %v17336_v30 = vld [vmem:[%s17708_s26 + $0x600] sm:$0xff]   ;;  %v17342_v17 = vld [vmem:[%s17708_s26 + $0x650] sm:$0xff]  }
 0x486   : > { %16057 = vmatprep.subr.bf16.mxu1 %v17449_v4  ;;  %v10128_v4 = vrot.slane %v19579_v33, 3 }
 0x487   : > { %15808 = vmatpush3.bf16.msra.mxu0 %v17320_v55  ;;  %v14338_v55 = vld [vmem:[%s17723_s30 + $0xb0] sm:$0xff] }
 0x488   : > { %15809 = vmatprep.subr.bf16.mxu0 %v17322_v1  ;;  %v19594_v1 = vcombine.high %v14335_v11, %v19338_v63  ;;  %v17340_v63 = vld [vmem:[%s17708_s26 + $0x608] sm:$0xff]   ;;  %v17467_v11 = vld [vmem:[%s17708_s26 + $0x9b8] sm:$0xff]  }
 0x489   : > { %16058 = vmatpush3.bf16.msra.mxu1 %v17451_v22  ;;  %v15681_v22 = vpop.f32.mrb[148].mxu1 }
 0x48a   : > { %16059 = vmatprep.subr.bf16.mxu1 %v17453_v51  ;;  %v10134_v29 = vrot.slane %v19594_v1, 3  ;;  %v20343_v51 = vrot.slane %v19590_v45, 3  ;;  %v15682_v48 = vpop.f32.mrb[149].mxu1 }
 0x48b   : > { %15810 = vmatpush3.bf16.msra.mxu0 %v17324_v62  ;;  %v20346_v62 = vrot.slane %v19582_v12, 3 }
 0x48c   : > { %15811 = vmatprep.subr.bf16.mxu0 %v17326_v49  ;;  %v19600_v49 = vcombine.high %v19347_v2, %v14338_v55  ;;  %v19626_v42 = vsel %vm4220_vm5, %v10125_v52, %v20343_v51  ;;  %v17348_v52 = vld [vmem:[%s17708_s26 + $0x618] sm:$0xff]  }
 0x48d   : > { %16060 = vmatpush3.bf16.msra.mxu1 %v17455_v27  ;;  %v19616_v27 = vcombine.low %v19347_v2, %v14338_v55 }
 0x48e   : > { %16061 = vmatprep.subr.bf16.mxu1 %v17457_v20  ;;  %v10135_v59 = vrot.slane %v19600_v49, 3  ;;  %v17465_v20 = vld [vmem:[%s17708_s26 + $0x9f8] sm:$0xff]  }
 0x48f   : > { %15812 = vmatpush3.bf16.msra.mxu0 %v17328_v35  ;;  %v17463_v35 = vld [vmem:[%s17708_s26 + $0x9b0] sm:$0xff]   ;;  %v10132_v55 = vrot.slane %v19616_v27, 3 }
 0x490   : > { %15813 = vmatprep.subr.bf16.mxu0 %v17330_v50  ;;  %v19610_v50 = vsel %vm4220_vm5, %v10128_v4, %v20346_v62  ;;  %v17346_v4 = vld [vmem:[%s17708_s26 + $0x658] sm:$0xff]  }
 0x491   : > { %16062 = vmatpush3.bf16.msra.mxu1 %v17459_v13 }
 0x492   : > { %16063 = vmatprep.subr.bf16.mxu1 %v17461_v40  ;;  %v10131_v40 = vrot.slane %v19613_v10, 3 }
 0x493   : > { %15814 = vmatpush3.bf16.msra.mxu0 %v17332_v46  ;;  %v19621_v46 = vadd.f32 %v15682_v48, %v15681_v22  ;;  %v17471_v22 = vld [vmem:[%s17708_s26 + $0xa80] sm:$0xff]   ;;  %v17475_v48 = vld [vmem:[%s17708_s26 + $0xa88] sm:$0xff]  }
 0x494   : > { %15855 = vmatprep.subr.bf16.mxu0 %v17334_v26  ;;  %v15684_v26 = vpop.f32.mrb[150].mxu1 }
 0x495   : > { %v15685_v2 = vpop.f32.mrb[151].mxu1  ;;  %16064 = vmatpush3.bf16.msra.mxu1 %v17463_v35  ;;  %v17350_v35 = vld [vmem:[%s17708_s26 + $0x660] sm:$0xff]  }
 0x496   : > { %8674 = vmatmul.mubr.bf16.vlgmr.msra.gmra.mrb[140].mxu0 %v19277_v58  ;;  %v10136_v58 = vsel %vm4220_vm5, %v10134_v29, %v10135_v59  ;;  %v19632_v13 = vadd.f32 %v15685_v2, %v15684_v26  ;;  %16065 = vmatprep.subr.bf16.mxu1 %v17465_v20  ;;  %v17473_v29 = vld [vmem:[%s17708_s26 + $0xac8] sm:$0xff]   ;;  %v17352_v20 = vld [vmem:[%s17708_s26 + $0x620] sm:$0xff]   ;;  %v17483_v2 = vld [vmem:[%s17708_s26 + $0xa98] sm:$0xff]  }
 0x497   : > { %15856 = vmatpush3.bf16.msra.mxu0 %v17336_v30  ;;  %8681 = vmatprep.mubr.bf16.mxu0 %v19249_v31  ;;  %v17469_v31 = vld [vmem:[%s17708_s26 + $0xac0] sm:$0xff]   ;;  %v17344_v30 = vld [vmem:[%s17708_s26 + $0x610] sm:$0xff]   ;;  %v17354_v26 = vld [vmem:[%s17708_s26 + $0x668] sm:$0xff]  }
 0x498   : > { %15857 = vmatprep.subr.bf16.mxu0 %v17338_v5  ;;  %10524 = vmatprep.mubr.bf16.mxu1 %v10136_v58  ;;  %v10133_v5 = vsel %vm4220_vm5, %v10131_v40, %v10132_v55  ;;  %v17356_v58 = vld [vmem:[%s17708_s26 + $0x628] sm:$0xff]   ;;  %v17362_v40 = vld [vmem:[%s17708_s26 + $0x678] sm:$0xff]  }
 0x499   : > { %16066 = vmatpush3.bf16.msra.mxu1 %v17467_v11  ;;  %v17360_v11 = vld [vmem:[%s17708_s26 + $0x630] sm:$0xff]  }
 0x49a   : > { %16107 = vmatprep.subr.bf16.mxu1 %v17469_v31  ;;  %v17487_v31 = vld [vmem:[%s17708_s26 + $0xaa0] sm:$0xff]  }
 0x49b   : > { %15858 = vmatpush3.bf16.msra.mxu0 %v17340_v63  ;;  %v17481_v63 = vld [vmem:[%s17708_s26 + $0xad8] sm:$0xff]  }
 0x49c   : > { %15859 = vmatprep.subr.bf16.mxu0 %v17342_v17  ;;  %10525 = vmatmul.mubr.bf16.vlgmr.msra.gmra.mrb[200].mxu1 %v10133_v5  ;;  %v17485_v17 = vld [vmem:[%s17708_s26 + $0xae0] sm:$0xff]  }
 0x49d   : > { %16108 = vmatpush3.bf16.msra.mxu1 %v17471_v22  ;;  %10532 = vmatprep.mubr.bf16.mxu1 %v10135_v59  ;;  %v17358_v59 = vld [vmem:[%s17708_s26 + $0x670] sm:$0xff]  }
 0x49e   : > { %8682 = vmatmul.mubr.bf16.gmra.mrb[144].mxu0 %v19270_v28  ;;  %16109 = vmatprep.subr.bf16.mxu1 %v17473_v29  ;;  %v17477_v28 = vld [vmem:[%s17708_s26 + $0xad0] sm:$0xff]  }
 0x49f   : > { %15860 = vmatpush3.bf16.msra.mxu0 %v17344_v30  ;;  %9225 = vmatprep.mubr.bf16.mxu0 %v19366_v25  ;;  %v17479_v25 = vld [vmem:[%s17708_s26 + $0xa90] sm:$0xff]   ;;  %v15731_v30 = vpop.f32.mrb[152].mxu1 }
 0x4a0   : > { %15861 = vmatprep.subr.bf16.mxu0 %v17346_v4  ;;  %v17489_v4 = vld [vmem:[%s17708_s26 + $0xae8] sm:$0xff]   ;;  %v15732_v5 = vpop.f32.mrb[153].mxu1 }
 0x4a1   : > { %16110 = vmatpush3.bf16.msra.mxu1 %v17475_v48  ;;  %v19662_v22 = vadd.f32 %v15732_v5, %v15731_v30  ;;  %v15734_v29 = vpop.f32.mrb[154].mxu1  ;;  %v10716_v48 = vshrl.u32 %v19582_v12, 16 }
 0x4a2   : > { %16111 = vmatprep.subr.bf16.mxu1 %v17477_v28  ;;  %v17374_v28 = vld [vmem:[%s17708_s26 + $0x740] sm:$0xff]  }
 0x4a3   : > { %15862 = vmatpush3.bf16.msra.mxu0 %v17348_v52  ;;  %v10708_v52 = vshrl.u32 %v19579_v33, 16  ;;  %v10718_v5 = vrot.slane %v10716_v48, 3  ;;  %v10694_v48 = vshll.u32 %v19587_v9, 16 }
 0x4a4   : > { %15863 = vmatprep.subr.bf16.mxu0 %v17350_v35  ;;  %10533 = vmatmul.mubr.bf16.gmra.mrb[204].mxu1 %v10132_v55  ;;  %v17364_v55 = vld [vmem:[%s17708_s26 + $0x638] sm:$0xff]   ;;  %v10711_v35 = vshll.u32 %v19579_v33, 16 }
 0x4a5   : > { %16112 = vmatpush3.bf16.msra.mxu1 %v17479_v25  ;;  %v10719_v25 = vshll.u32 %v19582_v12, 16 }
 0x4a6   : > { %16113 = vmatprep.subr.bf16.mxu1 %v17481_v63  ;;  %v17491_v63 = vld [vmem:[%s17708_s26 + $0xaa8] sm:$0xff]   ;;  %v10713_v33 = vrot.slane %v10711_v35, 4 }
 0x4a7   : > { %15864 = vmatpush3.bf16.msra.mxu0 %v17352_v20  ;;  %v15735_v20 = vpop.f32.mrb[155].mxu1 }
 0x4a8   : > { %15865 = vmatprep.subr.bf16.mxu0 %v17354_v26  ;;  %v14336_v26 = vld [vmem:[%s17723_s30 + $0x70] sm:$0x88] }
 0x4a9   : > { %16114 = vmatpush3.bf16.msra.mxu1 %v17483_v2  ;;  %v19675_v2 = vcombine.high %v14336_v26, %v19421_v16 }
 0x4aa   : > { %16115 = vmatprep.subr.bf16.mxu1 %v17485_v17  ;;  %v10710_v17 = vrot.slane %v10708_v52, 3  ;;  %v10721_v52 = vrot.slane %v10719_v25, 4  ;;  %v10699_v25 = vshrl.u32 %v19590_v45, 16 }
 0x4ab   : > { %15866 = vmatpush3.bf16.msra.mxu0 %v17356_v58  ;;  %v19671_v58 = vadd.f32 %v15735_v20, %v15734_v29  ;;  %v17376_v29 = vld [vmem:[%s17708_s26 + $0x700] sm:$0xff]   ;;  %v10140_v20 = vrot.slane %v19675_v2, 3 }
 0x4ac   : > { %15867 = vmatprep.subr.bf16.mxu0 %v17358_v59  ;;  %v14339_v59 = vld [vmem:[%s17723_s30 + $0xb8] sm:$0xff]  ;;  %v10714_v8 = vor.u32 %v10713_v33, %v10710_v17  ;;  %v10702_v17 = vshll.u32 %v19590_v45, 16 }
 0x4ad   : > { %16116 = vmatpush3.bf16.msra.mxu1 %v17487_v31  ;;  %v19682_v30 = vcombine.low %v19427_v38, %v14339_v59  ;;  %v19685_v31 = vcombine.high %v19427_v38, %v14339_v59  ;;  %v10722_v59 = vor.u32 %v10721_v52, %v10718_v5  ;;  %v17380_v5 = vld [vmem:[%s17708_s26 + $0x708] sm:$0xff]  }
 0x4ae   : > { %16117 = vmatprep.subr.bf16.mxu1 %v17489_v4  ;;  %v10691_v4 = vshrl.u32 %v19587_v9, 16  ;;  %v10704_v52 = vrot.slane %v10702_v17, 4 }
 0x4af   : > { %15868 = vmatpush3.bf16.msra.mxu0 %v17360_v11  ;;  %v17493_v11 = vld [vmem:[%s17708_s26 + $0xaf0] sm:$0xff]   ;;  %v20345_v35 = vrot.slane %v19685_v31, 3  ;;  %v20344_v38 = vrot.slane %v19682_v30, 3 }
 0x4b0   : > { %15869 = vmatprep.subr.bf16.mxu0 %v17362_v40  ;;  %v19679_v40 = vcombine.low %v14336_v26, %v19421_v16  ;;  %v17378_v16 = vld [vmem:[%s17708_s26 + $0x748] sm:$0xff]   ;;  %v10693_v51 = vrot.slane %v10691_v4, 3  ;;  %v17499_v4 = vld [vmem:[%s17708_s26 + $0xab8] sm:$0xff]  }
 0x4b1   : > { %16118 = vmatpush3.bf16.msra.mxu1 %v17491_v63  ;;  %v19703_v33 = vsel %vm4220_vm5, %v10140_v20, %v20345_v35  ;;  %v10696_v63 = vrot.slane %v10694_v48, 4  ;;  %v17382_v20 = vld [vmem:[%s17708_s26 + $0x750] sm:$0xff]   ;;  %v17501_v48 = vld [vmem:[%s17708_s26 + $0xbc0] sm:$0xff]  }
 0x4b2   : > { %v10137_v26 = vrot.slane %v19679_v40, 3  ;;  %16119 = vmatprep.subr.bf16.mxu1 %v17493_v11  ;;  %v10701_v11 = vrot.slane %v10699_v25, 3  ;;  %v17503_v25 = vld [vmem:[%s17708_s26 + $0xb80] sm:$0xff]  }
 0x4b3   : > { %15870 = vmatpush3.bf16.msra.mxu0 %v17364_v55  ;;  %v17495_v55 = vld [vmem:[%s17708_s26 + $0xab0] sm:$0xff]  }
 0x4b4   : > { %15911 = vmatprep.subr.bf16.mxu0 %v17374_v28  ;;  %v17497_v28 = vld [vmem:[%s17708_s26 + $0xaf8] sm:$0xff]   ;;  %v19708_v9 = vsel %vm4220_vm5, %v10137_v26, %v20344_v38  ;;  %v10697_v26 = vor.u32 %v10696_v63, %v10693_v51  ;;  %v15737_v51 = vpop.f32.mrb[156].mxu1 }
 0x4b5   : > { %16120 = vmatpush3.bf16.msra.mxu1 %v17495_v55  ;;  %v17388_v55 = vld [vmem:[%s17708_s26 + $0x718] sm:$0xff]   ;;  %v15738_v17 = vpop.f32.mrb[157].mxu1 }
 0x4b6   : > { %9226 = vmatmul.mubr.bf16.vlgmr.msra.gmra.mrb[148].mxu0 %v19372_v39  ;;  %v10723_v39 = vsel %vm4787_vm6, %v10714_v8, %v10722_v59  ;;  %16121 = vmatprep.subr.bf16.mxu1 %v17497_v28  ;;  %v17390_v28 = vld [vmem:[%s17708_s26 + $0x760] sm:$0xff]   ;;  %v19727_v63 = vadd.f32 %v15738_v17, %v15737_v51 }
 0x4b7   : > { %15912 = vmatpush3.bf16.msra.mxu0 %v17376_v29  ;;  %9233 = vmatprep.mubr.bf16.mxu0 %v8879_v0  ;;  %v10705_v29 = vor.u32 %v10704_v52, %v10701_v11  ;;  %v17386_v0 = vld [vmem:[%s17708_s26 + $0x758] sm:$0xff]   ;;  %v17507_v11 = vld [vmem:[%s17708_s26 + $0xb88] sm:$0xff]  }
 0x4b8   : > { %15913 = vmatprep.subr.bf16.mxu0 %v17378_v16  ;;  %11124 = vmatprep.mubr.bf16.mxu1 %v10723_v39  ;;  %v17505_v16 = vld [vmem:[%s17708_s26 + $0xbc8] sm:$0xff]   ;;  %v6239_v39 = vlaneseq }
 0x4b9   : > { %16122 = vmatpush3.bf16.msra.mxu1 %v17499_v4  ;;  %v10706_v8 = vsel %vm4787_vm6, %v10697_v26, %v10705_v29  ;;  %v17392_v4 = vld [vmem:[%s17708_s26 + $0x720] sm:$0xff]   ;;  %v17394_v26 = vld [vmem:[%s17708_s26 + $0x768] sm:$0xff]  }
 0x4ba   : > { %16163 = vmatprep.subr.bf16.mxu1 %v17501_v48  ;;  %vm19747_vm8 = vcmp.lt.s32.totalorder %v6239_v39, 256 }
 0x4bb   : > { %15914 = vmatpush3.bf16.msra.mxu0 %v17380_v5  ;;  %v15740_v5 = vpop.f32.mrb[158].mxu1 }
 0x4bc   : > { %15915 = vmatprep.subr.bf16.mxu0 %v17382_v20  ;;  %11125 = vmatmul.mubr.bf16.vlgmr.msra.gmra.mrb[208].mxu1 %v10706_v8  ;;  %v15741_v52 = vpop.f32.mrb[159].mxu1  ;;  %v17513_v8 = vld [vmem:[%s17708_s26 + $0xbd8] sm:$0xff]  }
 0x4bd   : > { %16164 = vmatpush3.bf16.msra.mxu1 %v17503_v25  ;;  %11132 = vmatprep.mubr.bf16.mxu1 %v10722_v59  ;;  %v19731_v20 = vadd.f32 %v15741_v52, %v15740_v5  ;;  %v17396_v59 = vld [vmem:[%s17708_s26 + $0x728] sm:$0xff]   ;;  %v17398_v25 = vld [vmem:[%s17708_s26 + $0x770] sm:$0xff]   ;;  %v17402_v52 = vld [vmem:[%s17708_s26 + $0x778] sm:$0xff]  }
 0x4be   : > { %9234 = vmatmul.mubr.bf16.gmra.mrb[152].mxu0 %v8876_v41  ;;  %v6237_v41 = vunpack.c.l.s4 %v17658_v44  ;;  %16165 = vmatprep.subr.bf16.mxu1 %v17505_v16 }
 0x4bf   : > { %15916 = vmatpush3.bf16.msra.mxu0 %v17384_v61  ;;  %9323 = vmatprep.mubr.bf16.mxu0 %v19451_v56  ;;  %v17509_v56 = vld [vmem:[%s17708_s26 + $0xbd0] sm:$0xff]   ;;  %v6240_v61 = vshrl.u32 %v6239_v39, 7  ;;  %v10787_v39 = vshll.u32 %v19685_v31, 16 }
 0x4c0   : > { %15917 = vmatprep.subr.bf16.mxu0 %v17386_v0  ;;  %v6238_v48 = vunpack.c.0.s8 %v6237_v41  ;;  %v17511_v0 = vld [vmem:[%s17708_s26 + $0xb90] sm:$0xff]  }
 0x4c1   : > { %16166 = vmatpush3.bf16.msra.mxu1 %v17507_v11  ;;  %v17400_v41 = vld [vmem:[%s17708_s26 + $0x730] sm:$0xff]   ;;  %v10789_v38 = vrot.slane %v10787_v39, 4  ;;  %v10759_v39 = vshrl.u32 %v19679_v40, 16 }
 0x4c2   : > { %16167 = vmatprep.subr.bf16.mxu1 %v17509_v56  ;;  %v19739_v51 = vsub.s32 %v6238_v48, %v6240_v61  ;;  %v10776_v48 = vshrl.u32 %v19675_v2, 16  ;;  %v10779_v61 = vshll.u32 %v19675_v2, 16 }
 0x4c3   : > { %15918 = vmatpush3.bf16.msra.mxu0 %v17388_v55  ;;  %v17515_v55 = vld [vmem:[%s17708_s26 + $0xb98] sm:$0xff]  }
 0x4c4   : > { %15919 = vmatprep.subr.bf16.mxu0 %v17390_v28  ;;  %11133 = vmatmul.mubr.bf16.gmra.mrb[212].mxu1 %v10705_v29  ;;  %v17517_v28 = vld [vmem:[%s17708_s26 + $0xbe0] sm:$0xff]  }
 0x4c5   : > { %16168 = vmatpush3.bf16.msra.mxu1 %v17511_v0  ;;  %v10784_v0 = vshrl.u32 %v19685_v31, 16 }
 0x4c6   : > { %16169 = vmatprep.subr.bf16.mxu1 %v17513_v8 }
 0x4c7   : > { %15920 = vmatpush3.bf16.msra.mxu0 %v17392_v4  ;;  %v17519_v4 = vld [vmem:[%s17708_s26 + $0xba0] sm:$0xff]  }
 0x4c8   : > { %15921 = vmatprep.subr.bf16.mxu0 %v17394_v26  ;;  %v17521_v26 = vld [vmem:[%s17708_s26 + $0xbe8] sm:$0xff]  }
 0x4c9   : > { %v6226_v16 = vpop.f32.mrb[104].mxu0  ;;  %16170 = vmatpush3.bf16.msra.mxu1 %v17515_v55  ;;  %v10745_v55 = vshll.u32 %v19594_v1, 16 }
 0x4ca   : > { %v6228_v17 = vpop.f32.mrb[105].mxu0  ;;  %16171 = vmatprep.subr.bf16.mxu1 %v17517_v28  ;;  %v17406_v28 = vld [vmem:[%s17708_s26 + $0x840] sm:$0xff]  }
 0x4cb   : > { %v6235_v5 = vcombine.low %v6226_v16, %v6228_v17  ;;  %v6230_v44 = vpop.f32.mrb[106].mxu0  ;;  %15922 = vmatpush3.bf16.msra.mxu0 %v17396_v59  ;;  %v17404_v59 = vld [vmem:[%s17708_s26 + $0x738] sm:$0xff]   ;;  %v10742_v16 = vshrl.u32 %v19594_v1, 16  ;;  %v10750_v17 = vshrl.u32 %v19600_v49, 16  ;;  %v10747_v62 = vrot.slane %v10745_v55, 4 }
 0x4cc   : > { %v6231_v11 = vpop.f32.mrb[107].mxu0  ;;  %15923 = vmatprep.subr.bf16.mxu0 %v17398_v25  ;;  %v15787_v25 = vpop.f32.mrb[160].mxu1  ;;  %v10781_v44 = vrot.slane %v10779_v61, 4 }
 0x4cd   : > { %v6242_v29 = vrot.slane %v6235_v5, %v19739_v51  ;;  %v15788_v2 = vpop.f32.mrb[161].mxu1  ;;  %v10778_v5 = vrot.slane %v10776_v48, 3  ;;  %v10786_v11 = vrot.slane %v10784_v0, 3  ;;  %16172 = vmatpush3.bf16.msra.mxu1 %v17519_v4  ;;  %v10744_v1 = vrot.slane %v10742_v16, 3  ;;  %v17408_v4 = vld [vmem:[%s17708_s26 + $0x800] sm:$0xff]  }
 0x4ce   : > { %v15790_v35 = vpop.f32.mrb[162].mxu1  ;;  %16173 = vmatprep.subr.bf16.mxu1 %v17521_v26  ;;  %v10753_v0 = vshll.u32 %v19600_v49, 16  ;;  %v10767_v16 = vshrl.u32 %v19682_v30, 16  ;;  %v17410_v26 = vld [vmem:[%s17708_s26 + $0x848] sm:$0xff]   ;;  %v10770_v49 = vshll.u32 %v19682_v30, 16 }
 0x4cf   : > { %v6249_v8 = vrot.slane %v6242_v29, %v19739_v51  ;;  %15924 = vmatpush3.bf16.msra.mxu0 %v17400_v41  ;;  %v19771_v41 = vadd.f32 %v15788_v2, %v15787_v25  ;;  %v17523_v29 = vld [vmem:[%s17708_s26 + $0xba8] sm:$0xff]   ;;  %v15791_v36 = vpop.f32.mrb[163].mxu1  ;;  %v10782_v48 = vor.u32 %v10781_v44, %v10778_v5  ;;  %v10790_v61 = vor.u32 %v10789_v38, %v10786_v11  ;;  %v17414_v44 = vld [vmem:[%s17708_s26 + $0x850] sm:$0xff]  }
 0x4d0   : > { %15925 = vmatprep.subr.bf16.mxu0 %v17402_v52  ;;  %v10752_v52 = vrot.slane %v10750_v17, 3  ;;  %v10762_v25 = vshll.u32 %v19679_v40, 16  ;;  %v10748_v17 = vor.u32 %v10747_v62, %v10744_v1  ;;  %v10755_v38 = vrot.slane %v10753_v0, 4  ;;  %v17412_v5 = vld [vmem:[%s17708_s26 + $0x808] sm:$0xff]   ;;  %v17416_v1 = vld [vmem:[%s17708_s26 + $0x810] sm:$0xff]  }
 0x4d1   : > { %6255 = vst.msk [vmem:[%s19755_s22] ss:$2 sm:$0x3] %vm19747_vm8, %v6249_v8  ;;  %v19778_v8 = vadd.f32 %v15791_v36, %v15790_v35  ;;  %v10791_v55 = vsel %vm4787_vm6, %v10782_v48, %v10790_v61  ;;  %16174 = vmatpush3.bf16.msra.mxu1 %v17523_v29  ;;  %v10761_v36 = vrot.slane %v10759_v39, 3  ;;  %v10769_v40 = vrot.slane %v10767_v16, 3  ;;  %v15793_v48 = vpop.f32.mrb[164].mxu1 }
 0x4d2   : > { %11222 = vmatprep.mubr.bf16.mxu1 %v10791_v55  ;;  %v10764_v35 = vrot.slane %v10762_v25, 4  ;;  %16175 = vmatprep.subr.bf16.mxu1 %v17525_v23  ;;  %v19788_v2 = vor.u32 %v10755_v38, %v10752_v52  ;;  %v10772_v62 = vrot.slane %v10770_v49, 4  ;;  %v17531_v23 = vld [vmem:[%s17708_s26 + $0xbb8] sm:$0xff]   ;;  %v20353_v0 = vmov 0.0   ;;  %v17422_v25 = vld [vmem:[%s17708_s26 + $0x860] sm:$0xff]   ;;  %v17426_v38 = vld [vmem:[%s17708_s26 + $0x868] sm:$0xff]  }
 0x4d3   : > { %15926 = vmatpush3.bf16.msra.mxu0 %v17404_v59  ;;  %v17527_v59 = vld [vmem:[%s17708_s26 + $0xbb0] sm:$0xff]   ;;  %v17418_v52 = vld [vmem:[%s17708_s26 + $0x858] sm:$0xff]  }
 0x4d4   : > { %15967 = vmatprep.subr.bf16.mxu0 %v17406_v28  ;;  %v17529_v28 = vld [vmem:[%s17708_s26 + $0xbf8] sm:$0xff]   ;;  %v19796_v11 = vsel %vm4787_vm6, %v10748_v17, %v19788_v2  ;;  %v10773_v29 = vor.u32 %v10772_v62, %v10769_v40  ;;  %v17424_v17 = vld [vmem:[%s17708_s26 + $0x820] sm:$0xff]   ;;  %v17430_v49 = vld [vmem:[%s17708_s26 + $0x870] sm:$0xff]  }
 0x4d5   : > { %16176 = vmatpush3.bf16.msra.mxu1 %v17527_v59  ;;  %v17420_v39 = vld [vmem:[%s17708_s26 + $0x818] sm:$0xff]   ;;  %v17432_v40 = vld [vmem:[%s17708_s26 + $0x830] sm:$0xff]  }
 0x4d6   : > { %9324 = vmatmul.mubr.bf16.vlgmr.msra.gmra.mrb[156].mxu0 %v19461_v54  ;;  %v10765_v54 = vor.u32 %v10764_v35, %v10761_v36  ;;  %16177 = vmatprep.subr.bf16.mxu1 %v17529_v28  ;;  %v17434_v62 = vld [vmem:[%s17708_s26 + $0x878] sm:$0xff]  }
 0x4d7   : > { %15968 = vmatpush3.bf16.msra.mxu0 %v17408_v4  ;;  %9331 = vmatprep.mubr.bf16.mxu0 %v8891_v3  ;;  %v20352_v3 = vrot.slane %v19437_v34, 2  ;;  %v15794_v4 = vpop.f32.mrb[165].mxu1 }
 0x4d8   : > { %15969 = vmatprep.subr.bf16.mxu0 %v17410_v26  ;;  %v10774_v18 = vsel %vm4787_vm6, %v10765_v54, %v10773_v29  ;;  %v19808_v16 = vadd.f32 %v15794_v4, %v15793_v48  ;;  %v15796_v26 = vpop.f32.mrb[166].mxu1 }
 0x4d9   : > { %16178 = vmatpush3.bf16.msra.mxu1 %v17531_v23  ;;  %v15797_v34 = vpop.f32.mrb[167].mxu1 }
 0x4da   : > { %16443 = vmatprep.subr.bf16.mxu1 %v20353_v0  ;;  %v19810_v55 = vadd.f32 %v15797_v34, %v15796_v26  ;;  %v17442_v34 = vld [vmem:[%s17708_s26 + $0x948] sm:$0xff]  }
 0x4db   : > { %15970 = vmatpush3.bf16.msra.mxu0 %v17412_v5 }
 0x4dc   : > { %15971 = vmatprep.subr.bf16.mxu0 %v17414_v44  ;;  %11223 = vmatmul.mubr.bf16.vlgmr.msra.gmra.mrb[216].mxu1 %v10774_v18 }
 0x4dd   : > { %11230 = vmatprep.mubr.bf16.mxu1 %v10790_v61 }
 0x4de   : > { %9332 = vmatmul.mubr.bf16.gmra.mrb[160].mxu0 %v20352_v3 }
 0x4df   : > { %15972 = vmatpush3.bf16.msra.mxu0 %v17416_v1  ;;  %9923 = vmatprep.mubr.bf16.mxu0 %v19520_v7  ;;  %v17428_v7 = vld [vmem:[%s17708_s26 + $0x828] sm:$0xff]   ;;  %v17438_v1 = vld [vmem:[%s17708_s26 + $0x940] sm:$0xff]  }
 0x4e0   : > { %15973 = vmatprep.subr.bf16.mxu0 %v17418_v52 }
 0x4e3   : > { %15974 = vmatpush3.bf16.msra.mxu0 %v17420_v39 }
 0x4e4   : > { %15975 = vmatprep.subr.bf16.mxu0 %v17422_v25  ;;  %11231 = vmatmul.mubr.bf16.gmra.mrb[220].mxu1 %v10773_v29  ;;  %v17436_v29 = vld [vmem:[%s17708_s26 + $0x838] sm:$0xff]  }
 0x4e5   : > { %16459 = vmatprep.mubr.msk.bf16.mxu1 %vm17656_vm7, %v20353_v0 }
 0x4e7   : > { %15976 = vmatpush3.bf16.msra.mxu0 %v17424_v17  ;;  %v15843_v3 = vpop.f32.mrb[168].mxu1 }
 0x4e8   : > { %15977 = vmatprep.subr.bf16.mxu0 %v17426_v38  ;;  %v15844_v39 = vpop.f32.mrb[169].mxu1 }
 0x4e9   : > { %v15591_v59 = vpop.f32.mrb[108].mxu0  ;;  %v19831_v25 = vadd.f32 %v15844_v39, %v15843_v3 }
 0x4ea   : > { %v15592_v61 = vpop.f32.mrb[109].mxu0 }
 0x4eb   : > { %v15593_v36 = vadd.f32 %v15592_v61, %v15591_v59  ;;  %v15594_v35 = vpop.f32.mrb[110].mxu0  ;;  %15978 = vmatpush3.bf16.msra.mxu0 %v17428_v7  ;;  %v17444_v61 = vld [vmem:[%s17708_s26 + $0x908] sm:$0xff]  }
 0x4ec   : > { %v15595_v28 = vpop.f32.mrb[111].mxu0  ;;  %15979 = vmatprep.subr.bf16.mxu0 %v17430_v49 }
 0x4ed   : > { %v7032_v5 = vadd.f32 %v15593_v36, %v19307_v32  ;;  %v15596_v44 = vadd.f32 %v15595_v28, %v15594_v35  ;;  %v17446_v36 = vld [vmem:[%s17708_s26 + $0x950] sm:$0xff]  }
 0x4ef   : > { %v19822_v23 = vadd.f32 %v19492_v47, %v7032_v5  ;;  %v7035_v54 = vadd.f32 %v15596_v44, %v19321_v60  ;;  %15980 = vmatpush3.bf16.msra.mxu0 %v17432_v40  ;;  %v17440_v47 = vld [vmem:[%s17708_s26 + $0x900] sm:$0xff]   ;;  %v15846_v60 = vpop.f32.mrb[170].mxu1 }
 0x4f0   : > { %15981 = vmatprep.subr.bf16.mxu0 %v17434_v62  ;;  %v15847_v17 = vpop.f32.mrb[171].mxu1  ;;  %v17454_v5 = vld [vmem:[%s17708_s26 + $0x960] sm:$0xff]  }
 0x4f1   : > { %v19828_v52 = vadd.f32 %v19495_v15, %v7035_v54  ;;  %v15597_v18 = vpop.f32.mrb[112].mxu0  ;;  %v19835_v7 = vadd.f32 %v15847_v17, %v15846_v60  ;;  %v17456_v44 = vld [vmem:[%s17708_s26 + $0x920] sm:$0xff]   ;;  %v17458_v54 = vld [vmem:[%s17708_s26 + $0x968] sm:$0xff]  }
 0x4f2   : > { %v15598_v48 = vpop.f32.mrb[113].mxu0  ;;  %v17470_v17 = vld [vmem:[%s17708_s26 + $0xa40] sm:$0xff]  }
 0x4f3   : > { %v15599_v32 = vadd.f32 %v15598_v48, %v15597_v18  ;;  %v15600_v4 = vpop.f32.mrb[114].mxu0  ;;  %15982 = vmatpush3.bf16.msra.mxu0 %v17436_v29  ;;  %v17460_v29 = vld [vmem:[%s17708_s26 + $0x928] sm:$0xff]  }
 0x4f4   : > { %v15601_v26 = vpop.f32.mrb[115].mxu0  ;;  %16023 = vmatprep.subr.bf16.mxu0 %v17438_v1  ;;  %v17462_v1 = vld [vmem:[%s17708_s26 + $0x970] sm:$0xff]  }
 0x4f5   : > { %v7040_v15 = vadd.f32 %v15599_v32, %v19399_v6  ;;  %v15602_v38 = vadd.f32 %v15601_v26, %v15600_v4  ;;  %v15849_v6 = vpop.f32.mrb[172].mxu1  ;;  %v17466_v32 = vld [vmem:[%s17708_s26 + $0x978] sm:$0xff]  }
 0x4f6   : > { %9924 = vmatmul.mubr.bf16.vlgmr.msra.gmra.mrb[164].mxu0 %v19543_v21  ;;  %v15850_v40 = vpop.f32.mrb[173].mxu1  ;;  %v17448_v21 = vld [vmem:[%s17708_s26 + $0x910] sm:$0xff]  }
 0x4f7   : > { %v7043_v49 = vadd.f32 %v15602_v38, %v19404_v43  ;;  %v7389_v59 = vadd.f32 %v19525_v53, %v7040_v15  ;;  %16024 = vmatpush3.bf16.msra.mxu0 %v17440_v47  ;;  %9931 = vmatprep.mubr.bf16.mxu0 %v19510_v14  ;;  %v19845_v28 = vadd.f32 %v15850_v40, %v15849_v6  ;;  %v15852_v43 = vpop.f32.mrb[174].mxu1  ;;  %v17450_v53 = vld [vmem:[%s17708_s26 + $0x958] sm:$0xff]   ;;  %v17474_v40 = vld [vmem:[%s17708_s26 + $0xa48] sm:$0xff]  }
 0x4f8   : > { %16025 = vmatprep.subr.bf16.mxu0 %v17442_v34  ;;  %v15853_v14 = vpop.f32.mrb[175].mxu1  ;;  %v17468_v34 = vld [vmem:[%s17708_s26 + $0x938] sm:$0xff]  }
 0x4f9   : > { %v7392_v35 = vadd.f32 %v19534_v37, %v7043_v49  ;;  %v19848_v62 = vadd.f32 %v15853_v14, %v15852_v43  ;;  %v17452_v37 = vld [vmem:[%s17708_s26 + $0x918] sm:$0xff]  }
 0x4fb   : > { %16026 = vmatpush3.bf16.msra.mxu0 %v17444_v61 }
 0x4fc   : > { %16027 = vmatprep.subr.bf16.mxu0 %v17446_v36 }
 0x4fe   : > { %9932 = vmatmul.mubr.bf16.gmra.mrb[168].mxu0 %v19536_v24 }
 0x4ff   : > { %16028 = vmatpush3.bf16.msra.mxu0 %v17448_v21  ;;  %10475 = vmatprep.mubr.bf16.mxu0 %v19610_v50  ;;  %v17464_v50 = vld [vmem:[%s17708_s26 + $0x930] sm:$0xff]  }
 0x500   : > { %16029 = vmatprep.subr.bf16.mxu0 %v17450_v53 }
 0x503   : > { %16030 = vmatpush3.bf16.msra.mxu0 %v17452_v37 }
 0x504   : > { %16031 = vmatprep.subr.bf16.mxu0 %v17454_v5 }
 0x507   : > { %16032 = vmatpush3.bf16.msra.mxu0 %v17456_v44  ;;  %v17476_v44 = vld [vmem:[%s17708_s26 + $0xa08] sm:$0xff]  }
 0x508   : > { %16033 = vmatprep.subr.bf16.mxu0 %v17458_v54  ;;  %v20354_v54 = vrot.slane %v19582_v12, 3 }
 0x509   : > { %v15647_v18 = vpop.f32.mrb[116].mxu0  ;;  %v15899_v6 = vpop.f32.mrb[176].mxu1 }
 0x50a   : > { %v15648_v24 = vpop.f32.mrb[117].mxu0 }
 0x50b   : > { %v15649_v3 = vadd.f32 %v15648_v24, %v15647_v18  ;;  %v15650_v48 = vpop.f32.mrb[118].mxu0  ;;  %16034 = vmatpush3.bf16.msra.mxu0 %v17460_v29  ;;  %v17478_v29 = vld [vmem:[%s17708_s26 + $0xa50] sm:$0xff]  }
 0x50c   : > { %v15651_v39 = vpop.f32.mrb[119].mxu0  ;;  %16035 = vmatprep.subr.bf16.mxu0 %v17462_v1 }
 0x50d   : > { %v7430_v4 = vadd.f32 %v15649_v3, %v19822_v23  ;;  %v15652_v47 = vadd.f32 %v15651_v39, %v15650_v48  ;;  %v17472_v23 = vld [vmem:[%s17708_s26 + $0xa00] sm:$0xff]   ;;  %v20355_v3 = vrot.slane %v19590_v45, 3  ;;  %v17494_v45 = vld [vmem:[%s17708_s26 + $0xa70] sm:$0xff]  }
 0x50e   : > { %v17486_v39 = vld [vmem:[%s17708_s26 + $0xa60] sm:$0xff]  }
 0x50f   : > { %v19862_v60 = vadd.f32 %v19568_v19, %v7430_v4  ;;  %v7433_v26 = vadd.f32 %v15652_v47, %v19828_v52  ;;  %16036 = vmatpush3.bf16.msra.mxu0 %v17464_v50  ;;  %v15900_v52 = vpop.f32.mrb[177].mxu1  ;;  %v17490_v4 = vld [vmem:[%s17708_s26 + $0xa68] sm:$0xff]  }
 0x510   : > { %16037 = vmatprep.subr.bf16.mxu0 %v17466_v32  ;;  %v19872_v53 = vadd.f32 %v15900_v52, %v15899_v6  ;;  %v17488_v32 = vld [vmem:[%s17708_s26 + $0xa20] sm:$0xff]   ;;  %v17492_v47 = vld [vmem:[%s17708_s26 + $0xa28] sm:$0xff]  }
 0x511   : > { %v19868_v15 = vadd.f32 %v19571_v57, %v7433_v26  ;;  %v15653_v38 = vpop.f32.mrb[120].mxu0  ;;  %v15902_v57 = vpop.f32.mrb[178].mxu1 }
 0x512   : > { %v15654_v49 = vpop.f32.mrb[121].mxu0  ;;  %v15903_v14 = vpop.f32.mrb[179].mxu1 }
 0x513   : > { %v15655_v61 = vadd.f32 %v15654_v49, %v15653_v38  ;;  %v15656_v36 = vpop.f32.mrb[122].mxu0  ;;  %16038 = vmatpush3.bf16.msra.mxu0 %v17468_v34  ;;  %v17496_v38 = vld [vmem:[%s17708_s26 + $0xa30] sm:$0xff]  }
 0x514   : > { %v15657_v19 = vpop.f32.mrb[123].mxu0  ;;  %16079 = vmatprep.subr.bf16.mxu0 %v17470_v17 }
 0x515   : > { %v7438_v21 = vadd.f32 %v15655_v61, %v7389_v59  ;;  %v15658_v43 = vadd.f32 %v15657_v19, %v15656_v36  ;;  %v19881_v59 = vadd.f32 %v15903_v14, %v15902_v57  ;;  %v17498_v61 = vld [vmem:[%s17708_s26 + $0xa78] sm:$0xff]  }
 0x516   : > { %10476 = vmatmul.mubr.bf16.vlgmr.msra.gmra.mrb[172].mxu0 %v19626_v42  ;;  %v17480_v42 = vld [vmem:[%s17708_s26 + $0xa10] sm:$0xff]   ;;  %v17500_v19 = vld [vmem:[%s17708_s26 + $0xa38] sm:$0xff]  }
 0x517   : > { %v7441_v37 = vadd.f32 %v15658_v43, %v7392_v35  ;;  %v19876_v5 = vadd.f32 %v19621_v46, %v7438_v21  ;;  %16080 = vmatpush3.bf16.msra.mxu0 %v17472_v23  ;;  %10483 = vmatprep.mubr.bf16.mxu0 %v20354_v54  ;;  %v15905_v35 = vpop.f32.mrb[180].mxu1  ;;  %v17482_v46 = vld [vmem:[%s17708_s26 + $0xa58] sm:$0xff]   ;;  %v17504_v43 = vld [vmem:[%s17708_s26 + $0xb00] sm:$0xff]  }
 0x518   : > { %16081 = vmatprep.subr.bf16.mxu0 %v17474_v40  ;;  %v15906_v18 = vpop.f32.mrb[181].mxu1  ;;  %v17502_v40 = vld [vmem:[%s17708_s26 + $0xb40] sm:$0xff]  }
 0x519   : > { %v19885_v1 = vadd.f32 %v19632_v13, %v7441_v37  ;;  %v19889_v12 = vadd.f32 %v15906_v18, %v15905_v35  ;;  %v15908_v24 = vpop.f32.mrb[182].mxu1  ;;  %v17484_v13 = vld [vmem:[%s17708_s26 + $0xa18] sm:$0xff]   ;;  %v17508_v18 = vld [vmem:[%s17708_s26 + $0xb08] sm:$0xff]  }
 0x51a   : > { %v15909_v48 = vpop.f32.mrb[183].mxu1 }
 0x51b   : > { %16082 = vmatpush3.bf16.msra.mxu0 %v17476_v44  ;;  %v19895_v50 = vadd.f32 %v15909_v48, %v15908_v24  ;;  %v20356_v24 = vrot.slane %v19685_v31, 3 }
 0x51c   : > { %16083 = vmatprep.subr.bf16.mxu0 %v17478_v29 }
 0x51e   : > { %10484 = vmatmul.mubr.bf16.gmra.mrb[176].mxu0 %v20355_v3 }
 0x51f   : > { %16084 = vmatpush3.bf16.msra.mxu0 %v17480_v42  ;;  %10573 = vmatprep.mubr.bf16.mxu0 %v19703_v33 }
 0x520   : > { %16085 = vmatprep.subr.bf16.mxu0 %v17482_v46 }
 0x523   : > { %16086 = vmatpush3.bf16.msra.mxu0 %v17484_v13  ;;  %v17512_v13 = vld [vmem:[%s17708_s26 + $0xb10] sm:$0xff]  }
 0x524   : > { %16087 = vmatprep.subr.bf16.mxu0 %v17486_v39 }
 0x527   : > { %16088 = vmatpush3.bf16.msra.mxu0 %v17488_v32 }
 0x528   : > { %16089 = vmatprep.subr.bf16.mxu0 %v17490_v4 }
 0x529   : > { %v15703_v26 = vpop.f32.mrb[124].mxu0 }
 0x52a   : > { %v15704_v34 = vpop.f32.mrb[125].mxu0 }
 0x52b   : > { %v15705_v17 = vadd.f32 %v15704_v34, %v15703_v26  ;;  %v15706_v33 = vpop.f32.mrb[126].mxu0  ;;  %16090 = vmatpush3.bf16.msra.mxu0 %v17492_v47  ;;  %v17518_v34 = vld [vmem:[%s17708_s26 + $0xb60] sm:$0xff]  }
 0x52c   : > { %v15707_v49 = vpop.f32.mrb[127].mxu0  ;;  %16091 = vmatprep.subr.bf16.mxu0 %v17494_v45  ;;  %v17516_v45 = vld [vmem:[%s17708_s26 + $0xb18] sm:$0xff]  }
 0x52d   : > { %v19905_v36 = vadd.f32 %v19662_v22, %v15705_v17  ;;  %v15708_v23 = vadd.f32 %v15707_v49, %v15706_v33  ;;  %v17506_v22 = vld [vmem:[%s17708_s26 + $0xb48] sm:$0xff]   ;;  %v17520_v17 = vld [vmem:[%s17708_s26 + $0xb20] sm:$0xff]   ;;  %v10728_v49 = vshll.u32 %v19613_v10, 16 }
 0x52e   : > { %v15955_v37 = vpop.f32.mrb[184].mxu1  ;;  %v17522_v33 = vld [vmem:[%s17708_s26 + $0xb68] sm:$0xff]  }
 0x52f   : > { %v19908_v6 = vadd.f32 %v19671_v58, %v15708_v23  ;;  %16092 = vmatpush3.bf16.msra.mxu0 %v17496_v38  ;;  %v15956_v54 = vpop.f32.mrb[185].mxu1  ;;  %v10725_v38 = vshrl.u32 %v19613_v10, 16  ;;  %v17526_v23 = vld [vmem:[%s17708_s26 + $0xb70] sm:$0xff]   ;;  %v17530_v10 = vld [vmem:[%s17708_s26 + $0xb78] sm:$0xff]  }
 0x530   : > { %16093 = vmatprep.subr.bf16.mxu0 %v17498_v61  ;;  %v19917_v42 = vadd.f32 %v15956_v54, %v15955_v37  ;;  %v15958_v35 = vpop.f32.mrb[186].mxu1  ;;  %v10733_v61 = vshrl.u32 %v19616_v27, 16 }
 0x531   : > { %v15709_v52 = vpop.f32.mrb[128].mxu0  ;;  %v15959_v46 = vpop.f32.mrb[187].mxu1 }
 0x532   : > { %v15710_v21 = vpop.f32.mrb[129].mxu0  ;;  %v19926_v48 = vadd.f32 %v15959_v46, %v15958_v35  ;;  %v10735_v37 = vrot.slane %v10733_v61, 3  ;;  %v17532_v46 = vld [vmem:[%s17708_s26 + $0xb38] sm:$0xff]  }
 0x533   : > { %16094 = vmatpush3.bf16.msra.mxu0 %v17500_v19  ;;  %v15711_v57 = vadd.f32 %v15710_v21, %v15709_v52  ;;  %v15712_v14 = vpop.f32.mrb[130].mxu0  ;;  %v10727_v52 = vrot.slane %v10725_v38, 3 }
 0x534   : > { %16135 = vmatprep.subr.bf16.mxu0 %v17502_v40  ;;  %v15713_v44 = vpop.f32.mrb[131].mxu0 }
 0x535   : > { %v19915_v58 = vadd.f32 %v19727_v63, %v15711_v57  ;;  %v15714_v29 = vadd.f32 %v15713_v44, %v15712_v14  ;;  %v17510_v63 = vld [vmem:[%s17708_s26 + $0xb50] sm:$0xff]   ;;  %v10730_v14 = vrot.slane %v10728_v49, 4 }
 0x536   : > { %10574 = vmatmul.mubr.bf16.vlgmr.msra.gmra.mrb[180].mxu0 %v19708_v9  ;;  %v15961_v39 = vpop.f32.mrb[188].mxu1  ;;  %v17514_v9 = vld [vmem:[%s17708_s26 + $0xb58] sm:$0xff]   ;;  %v17528_v57 = vld [vmem:[%s17708_s26 + $0xb30] sm:$0xff]  }
 0x537   : > { %16136 = vmatpush3.bf16.msra.mxu0 %v17504_v43  ;;  %10581 = vmatprep.mubr.bf16.mxu0 %v20356_v24  ;;  %v19924_v3 = vadd.f32 %v19731_v20, %v15714_v29  ;;  %v15962_v32 = vpop.f32.mrb[189].mxu1  ;;  %v20357_v20 = vrot.slane %v19682_v30, 3  ;;  %v17524_v30 = vld [vmem:[%s17708_s26 + $0xb28] sm:$0xff]  }
 0x538   : > { %16137 = vmatprep.subr.bf16.mxu0 %v17506_v22  ;;  %v19931_v4 = vadd.f32 %v15962_v32, %v15961_v39  ;;  %v15964_v31 = vpop.f32.mrb[190].mxu1 }
 0x539   : > { %v15965_v47 = vpop.f32.mrb[191].mxu1 }
 0x53a   : > { %v19937_v26 = vadd.f32 %v15965_v47, %v15964_v31 }
 0x53b   : > { %16138 = vmatpush3.bf16.msra.mxu0 %v17508_v18  ;;  %v10731_v18 = vor.u32 %v10730_v14, %v10727_v52 }
 0x53c   : > { %16139 = vmatprep.subr.bf16.mxu0 %v17510_v63 }
 0x53e   : > { %10582 = vmatmul.mubr.bf16.gmra.mrb[184].mxu0 %v20357_v20 }
 0x53f   : > { %16140 = vmatpush3.bf16.msra.mxu0 %v17512_v13  ;;  %11173 = vmatprep.mubr.bf16.mxu0 %v19796_v11  ;;  %v10736_v11 = vshll.u32 %v19616_v27, 16 }
 0x540   : > { %16141 = vmatprep.subr.bf16.mxu0 %v17514_v9 }
 0x541   : > { %v10738_v22 = vrot.slane %v10736_v11, 4 }
 0x543   : > { %16142 = vmatpush3.bf16.msra.mxu0 %v17516_v45  ;;  %v10739_v24 = vor.u32 %v10738_v22, %v10735_v37 }
 0x544   : > { %16143 = vmatprep.subr.bf16.mxu0 %v17518_v34 }
 0x545   : > { %v10740_v31 = vsel %vm4787_vm6, %v10731_v18, %v10739_v24 }
 0x547   : > { %16144 = vmatpush3.bf16.msra.mxu0 %v17520_v17 }
 0x548   : > { %16145 = vmatprep.subr.bf16.mxu0 %v17522_v33 }
 0x549   : > { %v15759_v19 = vpop.f32.mrb[132].mxu0 }
 0x54a   : > { %v15760_v40 = vpop.f32.mrb[133].mxu0 }
 0x54b   : > { %v15761_v21 = vadd.f32 %v15760_v40, %v15759_v19  ;;  %v15762_v43 = vpop.f32.mrb[134].mxu0  ;;  %16146 = vmatpush3.bf16.msra.mxu0 %v17524_v30 }
 0x54c   : > { %v15763_v44 = vpop.f32.mrb[135].mxu0  ;;  %16147 = vmatprep.subr.bf16.mxu0 %v17526_v23 }
 0x54d   : > { %v8076_v54 = vadd.f32 %v15761_v21, %v19905_v36  ;;  %v15764_v29 = vadd.f32 %v15763_v44, %v15762_v43 }
 0x54f   : > { %v8090_v27 = vadd.f32 %v8076_v54, %v19862_v60  ;;  %v8079_v35 = vadd.f32 %v15764_v29, %v19908_v6  ;;  %16148 = vmatpush3.bf16.msra.mxu0 %v17528_v57  ;;  %v16011_v36 = vpop.f32.mrb[192].mxu1 }
 0x550   : > { %16149 = vmatprep.subr.bf16.mxu0 %v17530_v10  ;;  %v16012_v47 = vpop.f32.mrb[193].mxu1 }
 0x551   : > { %v8091_v63 = vadd.f32 %v8079_v35, %v19868_v15  ;;  %v15765_v13 = vpop.f32.mrb[136].mxu0  ;;  %v19958_v45 = vadd.f32 %v16012_v47, %v16011_v36  ;;  %v16014_v34 = vpop.f32.mrb[194].mxu1 }
 0x552   : > { %v15766_v39 = vpop.f32.mrb[137].mxu0  ;;  %v16015_v15 = vpop.f32.mrb[195].mxu1 }
 0x553   : > { %v15767_v9 = vadd.f32 %v15766_v39, %v15765_v13  ;;  %v15768_v32 = vpop.f32.mrb[138].mxu0  ;;  %16150 = vmatpush3.bf16.msra.mxu0 %v17532_v46  ;;  %v19963_v38 = vadd.f32 %v16015_v15, %v16014_v34 }
 0x554   : > { %v15769_v20 = vpop.f32.mrb[139].mxu0  ;;  %16423 = vmatprep.subr.bf16.mxu0 %v20353_v0 }
 0x555   : > { %v8084_v60 = vadd.f32 %v15767_v9, %v19915_v58  ;;  %v15770_v6 = vadd.f32 %v15769_v20, %v15768_v32 }
 0x556   : > { %11174 = vmatmul.mubr.bf16.vlgmr.msra.gmra.mrb[188].mxu0 %v10740_v31 }
 0x557   : > { %v8092_v17 = vadd.f32 %v8084_v60, %v19876_v5  ;;  %v8087_v33 = vadd.f32 %v15770_v6, %v19924_v3  ;;  %11181 = vmatprep.mubr.bf16.mxu0 %v19788_v2  ;;  %v16017_v49 = vpop.f32.mrb[196].mxu1 }
 0x558   : > { %v16018_v61 = vpop.f32.mrb[197].mxu1 }
 0x559   : > { %v8093_v30 = vadd.f32 %v8087_v33, %v19885_v1  ;;  %v19966_v11 = vadd.f32 %v16018_v61, %v16017_v49  ;;  %v16020_v58 = vpop.f32.mrb[198].mxu1 }
 0x55a   : > { %v16021_v23 = vpop.f32.mrb[199].mxu1 }
 0x55b   : > { %v19968_v19 = vadd.f32 %v16021_v23, %v16020_v58 }
 0x55e   : > { %11182 = vmatmul.mubr.bf16.gmra.mrb[192].mxu0 %v10739_v24 }
 0x55f   : > { %16439 = vmatprep.mubr.msk.bf16.mxu0 %vm17656_vm7, %v20353_v0 }
 0x569   : > { %v15815_v5 = vpop.f32.mrb[140].mxu0 }
 0x56a   : > { %v15816_v3 = vpop.f32.mrb[141].mxu0 }
 0x56b   : > { %v15817_v40 = vadd.f32 %v15816_v3, %v15815_v5  ;;  %v15818_v2 = vpop.f32.mrb[142].mxu0 }
 0x56c   : > { %v15819_v52 = vpop.f32.mrb[143].mxu0 }
 0x56d   : > { %v8676_v21 = vadd.f32 %v15817_v40, %v19771_v41  ;;  %v15820_v1 = vadd.f32 %v15819_v52, %v15818_v2 }
 0x56f   : > { %v8725_v43 = vadd.f32 %v19831_v25, %v8676_v21  ;;  %v8679_v57 = vadd.f32 %v15820_v1, %v19778_v8  ;;  %v16067_v35 = vpop.f32.mrb[200].mxu1 }
 0x570   : > { %v16068_v18 = vpop.f32.mrb[201].mxu1 }
 0x571   : > { %v19975_v14 = vadd.f32 %v8725_v43, %v8090_v27  ;;  %v8728_v37 = vadd.f32 %v19835_v7, %v8679_v57  ;;  %v15821_v22 = vpop.f32.mrb[144].mxu0  ;;  %v19981_v13 = vadd.f32 %v16068_v18, %v16067_v35  ;;  %v16070_v25 = vpop.f32.mrb[202].mxu1  ;;  %v20009_v43 = vld [vmem:[%s18638_s10] sm:$0xff]   ;;  %v20034_v18 = vld [vmem:[%s18638_s10 + $0x50] sm:$0xff]  }
 0x572   : > { %v15822_v44 = vpop.f32.mrb[145].mxu0  ;;  %v16071_v8 = vpop.f32.mrb[203].mxu1  ;;  %v20012_v57 = vld [vmem:[%s18638_s10 + $0x40] sm:$0xff]   ;;  %16444 = vmatpush3.bf16.msra.mxu1 %v20009_v43 }
 0x573   : > { %v19978_v10 = vadd.f32 %v8728_v37, %v8091_v63  ;;  %v15823_v54 = vadd.f32 %v15822_v44, %v15821_v22  ;;  %v15824_v29 = vpop.f32.mrb[146].mxu0  ;;  %v19985_v39 = vadd.f32 %v16071_v8, %v16070_v25  ;;  %16424 = vmatpush3.bf16.msra.mxu0 %v20012_v57  ;;  %v20020_v22 = vld [vmem:[%s18638_s10 + $0x48] sm:$0xff]   ;;  %16445 = vmatprep.subr.bf16.mxu1 %v20353_v0 }
 0x574   : > { %v15825_v46 = vpop.f32.mrb[147].mxu0  ;;  %16425 = vmatprep.subr.bf16.mxu0 %v20353_v0 }
 0x575   : > { %v8684_v41 = vadd.f32 %v15823_v54, %v19808_v16  ;;  %v15826_v24 = vadd.f32 %v15825_v46, %v15824_v29  ;;  %v20031_v46 = vld [vmem:[%s18638_s10 + $0x10] sm:$0xff]  }
 0x577   : > { %v8687_v27 = vadd.f32 %v15826_v24, %v19810_v55  ;;  %v8733_v7 = vadd.f32 %v19845_v28, %v8684_v41  ;;  %v16073_v31 = vpop.f32.mrb[204].mxu1  ;;  %16426 = vmatpush3.bf16.msra.mxu0 %v20020_v22  ;;  %v20041_v41 = vld [vmem:[%s18638_s10 + $0x18] sm:$0xff]  }
 0x578   : > { %v16074_v36 = vpop.f32.mrb[205].mxu1  ;;  %16427 = vmatprep.subr.bf16.mxu0 %v20353_v0  ;;  %v20047_v24 = vld [vmem:[%s18638_s10 + $0x58] sm:$0xff]  }
 0x579   : > { %v19987_v63 = vadd.f32 %v8733_v7, %v8092_v17  ;;  %v8736_v9 = vadd.f32 %v19848_v62, %v8687_v27  ;;  %v19992_v16 = vadd.f32 %v16074_v36, %v16073_v31  ;;  %v16076_v20 = vpop.f32.mrb[206].mxu1  ;;  %v20052_v27 = vld [vmem:[%s18638_s10 + $0x20] sm:$0xff]  }
 0x57a   : > { %v16077_v47 = vpop.f32.mrb[207].mxu1  ;;  %v20057_v36 = vld [vmem:[%s18638_s10 + $0x60] sm:$0xff]  }
 0x57b   : > { %v19990_v32 = vadd.f32 %v8736_v9, %v8093_v30  ;;  %v19994_v60 = vadd.f32 %v16077_v47, %v16076_v20  ;;  %16428 = vmatpush3.bf16.msra.mxu0 %v20034_v18 }
 0x57c   : > { %16429 = vmatprep.subr.bf16.mxu0 %v20353_v0 }
 0x57f   : > { %16430 = vmatpush3.bf16.msra.mxu0 %v20047_v24 }
 0x580   : > { %16431 = vmatprep.subr.bf16.mxu0 %v20353_v0 }
 0x583   : > { %16432 = vmatpush3.bf16.msra.mxu0 %v20057_v36 }
 0x584   : > { %16433 = vmatprep.subr.bf16.mxu0 %v20353_v0 }
 0x589   : > { %v15871_v6 = vpop.f32.mrb[148].mxu0 }
 0x58a   : > { %v15872_v55 = vpop.f32.mrb[149].mxu0 }
 0x58b   : > { %v15873_v34 = vadd.f32 %v15872_v55, %v15871_v6  ;;  %v15874_v28 = vpop.f32.mrb[150].mxu0  ;;  %v20062_v6 = vld [vmem:[%s18638_s10 + $0x28] sm:$0xff]  }
 0x58c   : > { %v15875_v15 = vpop.f32.mrb[151].mxu0 }
 0x58d   : > { %v9277_v17 = vadd.f32 %v19872_v53, %v15873_v34  ;;  %v15876_v33 = vadd.f32 %v15875_v15, %v15874_v28  ;;  %v20068_v28 = vld [vmem:[%s18638_s10 + $0x68] sm:$0xff]  }
 0x58e   : > { %16434 = vmatpush3.bf16.msra.mxu0 %v20068_v28 }
 0x58f   : > { %v9280_v62 = vadd.f32 %v19881_v59, %v15876_v33  ;;  %v16123_v23 = vpop.f32.mrb[208].mxu1  ;;  %16435 = vmatprep.subr.bf16.mxu0 %v20353_v0 }
 0x590   : > { %v16124_v3 = vpop.f32.mrb[209].mxu1 }
 0x591   : > { %v15877_v30 = vpop.f32.mrb[152].mxu0  ;;  %v20001_v52 = vadd.f32 %v16124_v3, %v16123_v23  ;;  %v16126_v53 = vpop.f32.mrb[210].mxu1 }
 0x592   : > { %v15878_v49 = vpop.f32.mrb[153].mxu0  ;;  %v16127_v21 = vpop.f32.mrb[211].mxu1 }
 0x593   : > { %v15879_v61 = vadd.f32 %v15878_v49, %v15877_v30  ;;  %v15880_v58 = vpop.f32.mrb[154].mxu0  ;;  %v20006_v1 = vadd.f32 %v16127_v21, %v16126_v53  ;;  %v20074_v30 = vld [vmem:[%s18638_s10 + $0x30] sm:$0xff]   ;;  %v20087_v21 = vld [vmem:[%s18638_s10 + $0x38] sm:$0xff]  }
 0x594   : > { %v15881_v5 = vpop.f32.mrb[155].mxu0 }
 0x595   : > { %v19999_v40 = vadd.f32 %v19889_v12, %v15879_v61  ;;  %v15882_v2 = vadd.f32 %v15881_v5, %v15880_v58  ;;  %v20017_v12 = vld [vmem:[%s18638_s10 + $0x8] sm:$0xff]  }
 0x596   : > { %16446 = vmatpush3.bf16.msra.mxu1 %v20017_v12 }
 0x597   : > { %v20004_v59 = vadd.f32 %v19895_v50, %v15882_v2  ;;  %v16129_v37 = vpop.f32.mrb[212].mxu1  ;;  %16447 = vmatprep.subr.bf16.mxu1 %v20353_v0 }
 0x598   : > { %v16130_v50 = vpop.f32.mrb[213].mxu1 }
 0x599   : > { %v20024_v44 = vadd.f32 %v16130_v50, %v16129_v37  ;;  %v16132_v54 = vpop.f32.mrb[214].mxu1 }
 0x59a   : > { %v16133_v29 = vpop.f32.mrb[215].mxu1  ;;  %16448 = vmatpush3.bf16.msra.mxu1 %v20031_v46 }
 0x59b   : > { %v20028_v35 = vadd.f32 %v16133_v29, %v16132_v54  ;;  %16449 = vmatprep.subr.bf16.mxu1 %v20353_v0 }
 0x59e   : > { %16450 = vmatpush3.bf16.msra.mxu1 %v20041_v41 }
 0x59f   : > { %16451 = vmatprep.subr.bf16.mxu1 %v20353_v0 }
 0x5a2   : > { %16452 = vmatpush3.bf16.msra.mxu1 %v20052_v27 }
 0x5a3   : > { %16453 = vmatprep.subr.bf16.mxu1 %v20353_v0 }
 0x5a6   : > { %16454 = vmatpush3.bf16.msra.mxu1 %v20062_v6 }
 0x5a7   : > { %16455 = vmatprep.subr.bf16.mxu1 %v20353_v0 }
 0x5a9   : > { %v15927_v25 = vpop.f32.mrb[156].mxu0 }
 0x5aa   : > { %v15928_v8 = vpop.f32.mrb[157].mxu0  ;;  %16456 = vmatpush3.bf16.msra.mxu1 %v20074_v30 }
 0x5ab   : > { %v15929_v7 = vadd.f32 %v15928_v8, %v15927_v25  ;;  %v15930_v9 = vpop.f32.mrb[158].mxu0  ;;  %16457 = vmatprep.subr.bf16.mxu1 %v20353_v0 }
 0x5ac   : > { %v15931_v31 = vpop.f32.mrb[159].mxu0 }
 0x5ad   : > { %v9326_v20 = vadd.f32 %v15929_v7, %v9277_v17  ;;  %v15932_v47 = vadd.f32 %v15931_v31, %v15930_v9 }
 0x5ae   : > { %16458 = vmatpush3.bf16.msra.mxu1 %v20087_v21 }
 0x5af   : > { %v9340_v55 = vadd.f32 %v9326_v20, %v19975_v14  ;;  %v9329_v34 = vadd.f32 %v15932_v47, %v9280_v62  ;;  %v16179_v49 = vpop.f32.mrb[216].mxu1  ;;  %16483 = vmatprep.subr.bf16.mxu1 %v20353_v0 }
 0x5b0   : > { %v16180_v58 = vpop.f32.mrb[217].mxu1 }
 0x5b1   : > { %v9341_v15 = vadd.f32 %v9329_v34, %v19978_v10  ;;  %v15933_v17 = vpop.f32.mrb[160].mxu0  ;;  %v20079_v10 = vld [vmem:[%s18638_s10 + $0x70] sm:$0xff]   ;;  %v20082_v3 = vadd.f32 %v16180_v58, %v16179_v49  ;;  %v16182_v2 = vpop.f32.mrb[218].mxu1 }
 0x5b2   : > { %v15934_v33 = vpop.f32.mrb[161].mxu0  ;;  %v16183_v53 = vpop.f32.mrb[219].mxu1  ;;  %16436 = vmatpush3.bf16.msra.mxu0 %v20079_v10 }
 0x5b3   : > { %v15935_v14 = vadd.f32 %v15934_v33, %v15933_v17  ;;  %v15936_v62 = vpop.f32.mrb[162].mxu0  ;;  %v20091_v54 = vadd.f32 %v16183_v53, %v16182_v2  ;;  %16437 = vmatprep.subr.bf16.mxu0 %v20353_v0 }
 0x5b4   : > { %v15937_v61 = vpop.f32.mrb[163].mxu0 }
 0x5b5   : > { %v9334_v23 = vadd.f32 %v15935_v14, %v19999_v40  ;;  %v15938_v5 = vadd.f32 %v15937_v61, %v15936_v62  ;;  %v20096_v40 = vld [vmem:[%s18638_s10 + $0x78] sm:$0xff]  }
 0x5b6   : > { %16438 = vmatpush3.bf16.msra.mxu0 %v20096_v40 }
 0x5b7   : > { %v9342_v37 = vadd.f32 %v9334_v23, %v19987_v63  ;;  %v9337_v50 = vadd.f32 %v15938_v5, %v20004_v59  ;;  %v16185_v25 = vpop.f32.mrb[220].mxu1  ;;  %16463 = vmatprep.subr.bf16.mxu0 %v20353_v0 }
 0x5b8   : > { %v16186_v63 = vpop.f32.mrb[221].mxu1 }
 0x5b9   : > { %v9343_v29 = vadd.f32 %v9337_v50, %v19990_v32  ;;  %v20102_v8 = vadd.f32 %v16186_v63, %v16185_v25  ;;  %v16188_v59 = vpop.f32.mrb[222].mxu1 }
 0x5ba   : > { %v16189_v7 = vpop.f32.mrb[223].mxu1 }
 0x5bb   : > { %v20104_v9 = vadd.f32 %v16189_v7, %v16188_v59 }
 0x5c9   : > { %v15983_v31 = vpop.f32.mrb[164].mxu0 }
 0x5ca   : > { %v15984_v20 = vpop.f32.mrb[165].mxu0 }
 0x5cb   : > { %v15985_v47 = vadd.f32 %v15984_v20, %v15983_v31  ;;  %v15986_v34 = vpop.f32.mrb[166].mxu0 }
 0x5cc   : > { %v15987_v17 = vpop.f32.mrb[167].mxu0 }
 0x5cd   : > { %v9926_v32 = vadd.f32 %v15985_v47, %v19917_v42  ;;  %v15988_v33 = vadd.f32 %v15987_v17, %v15986_v34 }
 0x5cf   : > { %v9975_v14 = vadd.f32 %v19958_v45, %v9926_v32  ;;  %v9929_v62 = vadd.f32 %v15988_v33, %v19926_v48 }
 0x5d1   : > { %v9989_v49 = vadd.f32 %v9975_v14, %v9340_v55  ;;  %v9978_v61 = vadd.f32 %v19963_v38, %v9929_v62  ;;  %v15989_v58 = vpop.f32.mrb[168].mxu0 }
 0x5d2   : > { %v15990_v23 = vpop.f32.mrb[169].mxu0 }
 0x5d3   : > { %v9990_v5 = vadd.f32 %v9978_v61, %v9341_v15  ;;  %v15991_v2 = vadd.f32 %v15990_v23, %v15989_v58  ;;  %v15992_v53 = vpop.f32.mrb[170].mxu0 }
 0x5d4   : > { %v15993_v50 = vpop.f32.mrb[171].mxu0 }
 0x5d5   : > { %v9934_v25 = vadd.f32 %v15991_v2, %v19931_v4  ;;  %v15994_v63 = vadd.f32 %v15993_v50, %v15992_v53 }
 0x5d7   : > { %v9937_v59 = vadd.f32 %v15994_v63, %v19937_v26  ;;  %v9983_v42 = vadd.f32 %v19966_v11, %v9934_v25 }
 0x5d9   : > { %v9991_v7 = vadd.f32 %v9983_v42, %v9342_v37  ;;  %v9986_v45 = vadd.f32 %v19968_v19, %v9937_v59 }
 0x5db   : > { %v9992_v48 = vadd.f32 %v9986_v45, %v9343_v29 }
 0x5e9   : > { %v16039_v55 = vpop.f32.mrb[172].mxu0 }
 0x5ea   : > { %v16040_v31 = vpop.f32.mrb[173].mxu0 }
 0x5eb   : > { %v16041_v38 = vadd.f32 %v16040_v31, %v16039_v55  ;;  %v16042_v20 = vpop.f32.mrb[174].mxu0 }
 0x5ec   : > { %v16043_v47 = vpop.f32.mrb[175].mxu0 }
 0x5ed   : > { %v10527_v15 = vadd.f32 %v19981_v13, %v16041_v38  ;;  %v16044_v34 = vadd.f32 %v16043_v47, %v16042_v20 }
 0x5ef   : > { %v10530_v17 = vadd.f32 %v19985_v39, %v16044_v34 }
 0x5f1   : > { %v16045_v4 = vpop.f32.mrb[176].mxu0 }
 0x5f2   : > { %v16046_v32 = vpop.f32.mrb[177].mxu0 }
 0x5f3   : > { %v16047_v33 = vadd.f32 %v16046_v32, %v16045_v4  ;;  %v16048_v26 = vpop.f32.mrb[178].mxu0 }
 0x5f4   : > { %v16049_v14 = vpop.f32.mrb[179].mxu0 }
 0x5f5   : > { %v10535_v11 = vadd.f32 %v19992_v16, %v16047_v33  ;;  %v16050_v37 = vadd.f32 %v16049_v14, %v16048_v26  ;;  %v14640_v33 = vld [vmem:[%s18689_s13] ss:$0 sm:$0xff] }
 0x5f7   : > { %v10538_v19 = vadd.f32 %v19994_v60, %v16050_v37 }
 0x609   : > { %v16095_v29 = vpop.f32.mrb[180].mxu0 }
 0x60a   : > { %v16096_v62 = vpop.f32.mrb[181].mxu0 }
 0x60b   : > { %v16097_v61 = vadd.f32 %v16096_v62, %v16095_v29  ;;  %v16098_v58 = vpop.f32.mrb[182].mxu0 }
 0x60c   : > { %v16099_v23 = vpop.f32.mrb[183].mxu0 }
 0x60d   : > { %v10576_v2 = vadd.f32 %v16097_v61, %v10527_v15  ;;  %v16100_v13 = vadd.f32 %v16099_v23, %v16098_v58 }
 0x60f   : > { %v10590_v53 = vadd.f32 %v10576_v2, %v9989_v49  ;;  %v10579_v50 = vadd.f32 %v16100_v13, %v10530_v17 }
 0x611   : > { %v10591_v39 = vadd.f32 %v10579_v50, %v9990_v5  ;;  %v16101_v25 = vpop.f32.mrb[184].mxu0 }
 0x612   : > { %v16102_v63 = vpop.f32.mrb[185].mxu0 }
 0x613   : > { %v16103_v59 = vadd.f32 %v16102_v63, %v16101_v25  ;;  %v16104_v42 = vpop.f32.mrb[186].mxu0 }
 0x614   : > { %v16105_v45 = vpop.f32.mrb[187].mxu0 }
 0x615   : > { %v10584_v16 = vadd.f32 %v16103_v59, %v10535_v11  ;;  %v16106_v55 = vadd.f32 %v16105_v45, %v16104_v42  ;;  %v20153_v45 = vld [vmem:[%s18638_s10 + $0xd0] sm:$0xff]  }
 0x617   : > { %v10592_v31 = vadd.f32 %v10584_v16, %v9991_v7  ;;  %v10587_v60 = vadd.f32 %v16106_v55, %v10538_v19  ;;  %v20160_v55 = vld [vmem:[%s18638_s10 + $0x90] sm:$0xff]  }
 0x619   : > { %v10593_v38 = vadd.f32 %v10587_v60, %v9992_v48  ;;  %v20170_v60 = vld [vmem:[%s18638_s10 + $0x98] sm:$0xff]  }
 0x629   : > { %v16151_v20 = vpop.f32.mrb[188].mxu0 }
 0x62a   : > { %v16152_v47 = vpop.f32.mrb[189].mxu0 }
 0x62b   : > { %v16153_v34 = vadd.f32 %v16152_v47, %v16151_v20  ;;  %v16154_v4 = vpop.f32.mrb[190].mxu0  ;;  %v20180_v20 = vld [vmem:[%s18638_s10 + $0xa0] sm:$0xff]   ;;  %v20185_v47 = vld [vmem:[%s18638_s10 + $0xe8] sm:$0xff]  }
 0x62c   : > { %v16155_v15 = vpop.f32.mrb[191].mxu0 }
 0x62d   : > { %v11176_v49 = vadd.f32 %v16153_v34, %v20001_v52  ;;  %v16156_v17 = vadd.f32 %v16155_v15, %v16154_v4  ;;  %v20190_v34 = vld [vmem:[%s18638_s10 + $0xa8] sm:$0xff]   ;;  %v20195_v4 = vld [vmem:[%s18638_s10 + $0xf0] sm:$0xff]  }
 0x62e   : > { %v20200_v15 = vld [vmem:[%s18638_s10 + $0xb0] sm:$0xff]  }
 0x62f   : > { %v11225_v5 = vadd.f32 %v20082_v3, %v11176_v49  ;;  %v11179_v32 = vadd.f32 %v16156_v17, %v20006_v1  ;;  %v20205_v49 = vld [vmem:[%s18638_s10 + $0xf8] sm:$0xff]  }
 0x630   : > { %v20210_v17 = vld [vmem:[%s18638_s10 + $0xb8] sm:$0xff]  }
 0x631   : > { %v11239_v26 = vadd.f32 %v11225_v5, %v10590_v53  ;;  %v11228_v14 = vadd.f32 %v20091_v54, %v11179_v32  ;;  %v16157_v7 = vpop.f32.mrb[192].mxu0  ;;  %v20127_v54 = vld [vmem:[%s18638_s10 + $0xc0] sm:$0xff]  }
 0x632   : > { %v16158_v11 = vpop.f32.mrb[193].mxu0 }
 0x633   : > { %v11250_v48 = vadd.f32 %v14640_v33, %v11239_v26  ;;  %v11240_v37 = vadd.f32 %v11228_v14, %v10591_v39  ;;  %v16159_v19 = vadd.f32 %v16158_v11, %v16157_v7  ;;  %v16160_v29 = vpop.f32.mrb[194].mxu0  ;;  %v20133_v39 = vld [vmem:[%s18638_s10 + $0x80] sm:$0xff]  }
 0x634   : > { %v16161_v62 = vpop.f32.mrb[195].mxu0  ;;  %v17591_v26 = vld [vmem:[%s18889_s16 + $0x4] ss:$8 sps:$4 sm:$0xff]  }
 0x635   : > { %v11251_v61 = vadd.f32 %v14640_v33, %v11240_v37  ;;  %v11184_v52 = vadd.f32 %v16159_v19, %v20024_v44  ;;  %v16162_v3 = vadd.f32 %v16161_v62, %v16160_v29  ;;  %v11254_v58 = vmax.f32 %v11250_v48, 0.0 }
 0x637   : > { %v11255_v1 = vmax.f32 %v11251_v61, 0.0  ;;  %v11187_v23 = vadd.f32 %v16162_v3, %v20028_v35  ;;  %v11233_v2 = vadd.f32 %v20102_v8, %v11184_v52  ;;  %v20139_v35 = vld [vmem:[%s18638_s10 + $0xc8] sm:$0xff]  }
 0x639   : > { %v20129_v13 = vpack.c.bf16 %v11255_v1, %v11254_v58  ;;  %v11241_v53 = vadd.f32 %v11233_v2, %v10592_v31  ;;  %v11236_v50 = vadd.f32 %v20104_v9, %v11187_v23  ;;  %v20146_v9 = vld [vmem:[%s18638_s10 + $0x88] sm:$0xff]   ;;  %v20165_v31 = vld [vmem:[%s18638_s10 + $0xd8] sm:$0xff]  }
 0x63b   : > { %v11252_v25 = vadd.f32 %v14640_v33, %v11241_v53  ;;  %v11242_v44 = vadd.f32 %v11236_v50, %v10593_v38  ;;  %16460 = vmatmul.mubr.bf16.vlgmr.msra.gmra.mrb[224].mxu1 %v20129_v13  ;;  %v11293_v63 = vrot.slane %v20129_v13, 2  ;;  %v20175_v38 = vld [vmem:[%s18638_s10 + $0xe0] sm:$0xff]   ;;  %v11594_v5 = vrot.slane %v20129_v13, 6 }
 0x63c   : > { %16484 = vmatpush3.bf16.msra.mxu1 %v20127_v54  ;;  %16499 = vmatprep.mubr.msk.bf16.mxu1 %vm17656_vm7, %v20353_v0  ;;  %v11487_v32 = vrot.slane %v20129_v13, 4 }
 0x63d   : > { %v11253_v8 = vadd.f32 %v14640_v33, %v11242_v44  ;;  %16440 = vmatmul.mubr.bf16.vlgmr.msra.gmra.mrb[196].mxu0 %v11293_v63  ;;  %16485 = vmatprep.subr.bf16.mxu1 %v20353_v0  ;;  %v11256_v59 = vmax.f32 %v11252_v25, 0.0  ;;  %v17586_v33 = vld [vmem:[%s18889_s16 + $0xf0] ss:$8 sps:$4 sm:$0xff]  }
 0x63e   : > { %16464 = vmatpush3.bf16.msra.mxu0 %v20133_v39  ;;  %16479 = vmatprep.mubr.msk.bf16.mxu0 %vm17656_vm7, %v20353_v0 }
 0x63f   : > { %v11257_v42 = vmax.f32 %v11253_v8, 0.0  ;;  %16465 = vmatprep.subr.bf16.mxu0 %v20353_v0 }
 0x640   : > { %16486 = vmatpush3.bf16.msra.mxu1 %v20139_v35 }
 0x641   : > { %v20155_v16 = vpack.c.bf16 %v11257_v42, %v11256_v59  ;;  %16487 = vmatprep.subr.bf16.mxu1 %v20353_v0 }
 0x642   : > { %16466 = vmatpush3.bf16.msra.mxu0 %v20146_v9 }
 0x643   : > { %16467 = vmatprep.subr.bf16.mxu0 %v20353_v0 }
 0x644   : > { %16488 = vmatpush3.bf16.msra.mxu1 %v20153_v45 }
 0x645   : > { %16489 = vmatprep.subr.bf16.mxu1 %v20353_v0 }
 0x646   : > { %16468 = vmatpush3.bf16.msra.mxu0 %v20160_v55 }
 0x647   : > { %16469 = vmatprep.subr.bf16.mxu0 %v20353_v0 }
 0x648   : > { %16490 = vmatpush3.bf16.msra.mxu1 %v20165_v31 }
 0x649   : > { %16491 = vmatprep.subr.bf16.mxu1 %v20353_v0 }
 0x64a   : > { %16470 = vmatpush3.bf16.msra.mxu0 %v20170_v60 }
 0x64b   : > { %16471 = vmatprep.subr.bf16.mxu0 %v20353_v0 }
 0x64c   : > { %16492 = vmatpush3.bf16.msra.mxu1 %v20175_v38 }
 0x64d   : > { %16493 = vmatprep.subr.bf16.mxu1 %v20353_v0 }
 0x64e   : > { %16472 = vmatpush3.bf16.msra.mxu0 %v20180_v20 }
 0x64f   : > { %16473 = vmatprep.subr.bf16.mxu0 %v20353_v0 }
 0x650   : > { %16494 = vmatpush3.bf16.msra.mxu1 %v20185_v47 }
 0x651   : > { %16495 = vmatprep.subr.bf16.mxu1 %v20353_v0 }
 0x652   : > { %16474 = vmatpush3.bf16.msra.mxu0 %v20190_v34 }
 0x653   : > { %16475 = vmatprep.subr.bf16.mxu0 %v20353_v0 }
 0x654   : > { %16496 = vmatpush3.bf16.msra.mxu1 %v20195_v4 }
 0x655   : > { %16497 = vmatprep.subr.bf16.mxu1 %v20353_v0 }
 0x656   : > { %16476 = vmatpush3.bf16.msra.mxu0 %v20200_v15 }
 0x657   : > { %16477 = vmatprep.subr.bf16.mxu0 %v20353_v0 }
 0x658   : > { %16498 = vmatpush3.bf16.msra.mxu1 %v20205_v49 }
 0x659   : > { %16523 = vmatprep.subr.bf16.mxu1 %v20353_v0 }
 0x65a   : > { %16478 = vmatpush3.bf16.msra.mxu0 %v20210_v17 }
 0x65b   : > { %16500 = vmatmul.mubr.bf16.vlgmr.msra.gmra.mrb[228].mxu1 %v11594_v5  ;;  %16503 = vmatprep.subr.bf16.mxu0 %v20353_v0 }
 0x65c   : > { %16524 = vmatpush3.bf16.msra.mxu1 %v20009_v43  ;;  %16539 = vmatprep.mubr.msk.bf16.mxu1 %vm17656_vm7, %v20353_v0  ;;  %v11827_v43 = vrot.slane %v20155_v16, 2 }
 0x65d   : > { %16480 = vmatmul.mubr.bf16.vlgmr.msra.gmra.mrb[200].mxu0 %v11487_v32  ;;  %16525 = vmatprep.subr.bf16.mxu1 %v20353_v0 }
 0x65e   : > { %16504 = vmatpush3.bf16.msra.mxu0 %v20012_v57  ;;  %16519 = vmatprep.mubr.msk.bf16.mxu0 %vm17656_vm7, %v20353_v0  ;;  %v20358_v57 = vmov 0  }
 0x65f   : > { %16505 = vmatprep.subr.bf16.mxu0 %v20353_v0 }
 0x660   : > { %16526 = vmatpush3.bf16.msra.mxu1 %v20017_v12  ;;  %v17565_v12 = vld [vmem:[%s18889_s16 + $0x80] ss:$8 sps:$4 sm:$0xff]  }
 0x661   : > { %16527 = vmatprep.subr.bf16.mxu1 %v20353_v0 }
 0x662   : > { %16506 = vmatpush3.bf16.msra.mxu0 %v20020_v22  ;;  %v17567_v22 = vld [vmem:[%s18889_s16 + $0x84] ss:$8 sps:$4 sm:$0xff]  }
 0x663   : > { %16507 = vmatprep.subr.bf16.mxu0 %v20353_v0 }
 0x664   : > { %16528 = vmatpush3.bf16.msra.mxu1 %v20031_v46  ;;  %v17570_v46 = vld [vmem:[%s18889_s16 + $0x94] ss:$8 sps:$4 sm:$0xff]  }
 0x665   : > { %16529 = vmatprep.subr.bf16.mxu1 %v20353_v0 }
 0x666   : > { %16508 = vmatpush3.bf16.msra.mxu0 %v20034_v18  ;;  %v17573_v18 = vld [vmem:[%s18889_s16 + $0xa4] ss:$8 sps:$4 sm:$0xff]  }
 0x667   : > { %16509 = vmatprep.subr.bf16.mxu0 %v20353_v0 }
 0x668   : > { %16530 = vmatpush3.bf16.msra.mxu1 %v20041_v41  ;;  %v17571_v41 = vld [vmem:[%s18889_s16 + $0xa0] ss:$8 sps:$4 sm:$0xff]  }
 0x669   : > { %16531 = vmatprep.subr.bf16.mxu1 %v20353_v0 }
 0x66a   : > { %16510 = vmatpush3.bf16.msra.mxu0 %v20047_v24  ;;  %v17576_v24 = vld [vmem:[%s18889_s16 + $0xb4] ss:$8 sps:$4 sm:$0xff]  }
 0x66b   : > { %16511 = vmatprep.subr.bf16.mxu0 %v20353_v0 }
 0x66c   : > { %16532 = vmatpush3.bf16.msra.mxu1 %v20052_v27  ;;  %v17574_v27 = vld [vmem:[%s18889_s16 + $0xb0] ss:$8 sps:$4 sm:$0xff]  }
 0x66d   : > { %16533 = vmatprep.subr.bf16.mxu1 %v20353_v0 }
 0x66e   : > { %16512 = vmatpush3.bf16.msra.mxu0 %v20057_v36  ;;  %v17579_v36 = vld [vmem:[%s18889_s16 + $0xc4] ss:$8 sps:$4 sm:$0xff]  }
 0x66f   : > { %16513 = vmatprep.subr.bf16.mxu0 %v20353_v0 }
 0x670   : > { %16534 = vmatpush3.bf16.msra.mxu1 %v20062_v6  ;;  %v17577_v6 = vld [vmem:[%s18889_s16 + $0xc0] ss:$8 sps:$4 sm:$0xff]  }
 0x671   : > { %16535 = vmatprep.subr.bf16.mxu1 %v20353_v0 }
 0x672   : > { %16514 = vmatpush3.bf16.msra.mxu0 %v20068_v28  ;;  %v17582_v28 = vld [vmem:[%s18889_s16 + $0xd4] ss:$8 sps:$4 sm:$0xff]  }
 0x673   : > { %16515 = vmatprep.subr.bf16.mxu0 %v20353_v0 }
 0x674   : > { %16536 = vmatpush3.bf16.msra.mxu1 %v20074_v30  ;;  %v17580_v30 = vld [vmem:[%s18889_s16 + $0xd0] ss:$8 sps:$4 sm:$0xff]  }
 0x675   : > { %16537 = vmatprep.subr.bf16.mxu1 %v20353_v0 }
 0x676   : > { %16516 = vmatpush3.bf16.msra.mxu0 %v20079_v10  ;;  %v17585_v10 = vld [vmem:[%s18889_s16 + $0xe4] ss:$8 sps:$4 sm:$0xff]  }
 0x677   : > { %16517 = vmatprep.subr.bf16.mxu0 %v20353_v0 }
 0x678   : > { %16538 = vmatpush3.bf16.msra.mxu1 %v20087_v21  ;;  %v17583_v21 = vld [vmem:[%s18889_s16 + $0xe0] ss:$8 sps:$4 sm:$0xff]  }
 0x679   : > { %16563 = vmatprep.subr.bf16.mxu1 %v20353_v0 }
 0x67a   : > { %16518 = vmatpush3.bf16.msra.mxu0 %v20096_v40  ;;  %v17588_v40 = vld [vmem:[%s18889_s16 + $0xf4] ss:$8 sps:$4 sm:$0xff]  }
 0x67b   : > { %16540 = vmatmul.mubr.bf16.vlgmr.msra.gmra.mrb[232].mxu1 %v11487_v32  ;;  %16543 = vmatprep.subr.bf16.mxu0 %v20353_v0 }
 0x67c   : > { %16564 = vmatpush3.bf16.msra.mxu1 %v20127_v54  ;;  %16579 = vmatprep.mubr.msk.bf16.mxu1 %vm17656_vm7, %v20353_v0 }
 0x67d   : > { %16520 = vmatmul.mubr.bf16.vlgmr.msra.gmra.mrb[204].mxu0 %v11594_v5  ;;  %16565 = vmatprep.subr.bf16.mxu1 %v20353_v0  ;;  %v17589_v5 = vld [vmem:[%s18889_s16] ss:$8 sps:$4 sm:$0xff]  }
 0x67e   : > { %16544 = vmatpush3.bf16.msra.mxu0 %v20133_v39  ;;  %16559 = vmatprep.mubr.msk.bf16.mxu0 %vm17656_vm7, %v20353_v0 }
 0x67f   : > { %16545 = vmatprep.subr.bf16.mxu0 %v20353_v0 }
 0x680   : > { %16566 = vmatpush3.bf16.msra.mxu1 %v20139_v35 }
 0x681   : > { %16567 = vmatprep.subr.bf16.mxu1 %v20353_v0 }
 0x682   : > { %16546 = vmatpush3.bf16.msra.mxu0 %v20146_v9 }
 0x683   : > { %16547 = vmatprep.subr.bf16.mxu0 %v20353_v0 }
 0x684   : > { %16568 = vmatpush3.bf16.msra.mxu1 %v20153_v45 }
 0x685   : > { %16569 = vmatprep.subr.bf16.mxu1 %v20353_v0 }
 0x686   : > { %16548 = vmatpush3.bf16.msra.mxu0 %v20160_v55 }
 0x687   : > { %16549 = vmatprep.subr.bf16.mxu0 %v20353_v0 }
 0x688   : > { %16570 = vmatpush3.bf16.msra.mxu1 %v20165_v31 }
 0x689   : > { %16571 = vmatprep.subr.bf16.mxu1 %v20353_v0 }
 0x68a   : > { %16550 = vmatpush3.bf16.msra.mxu0 %v20170_v60 }
 0x68b   : > { %16551 = vmatprep.subr.bf16.mxu0 %v20353_v0 }
 0x68c   : > { %16572 = vmatpush3.bf16.msra.mxu1 %v20175_v38 }
 0x68d   : > { %16573 = vmatprep.subr.bf16.mxu1 %v20353_v0 }
 0x68e   : > { %16552 = vmatpush3.bf16.msra.mxu0 %v20180_v20 }
 0x68f   : > { %16553 = vmatprep.subr.bf16.mxu0 %v20353_v0 }
 0x690   : > { %16574 = vmatpush3.bf16.msra.mxu1 %v20185_v47 }
 0x691   : > { %16575 = vmatprep.subr.bf16.mxu1 %v20353_v0 }
 0x692   : > { %16554 = vmatpush3.bf16.msra.mxu0 %v20190_v34 }
 0x693   : > { %16555 = vmatprep.subr.bf16.mxu0 %v20353_v0 }
 0x694   : > { %16576 = vmatpush3.bf16.msra.mxu1 %v20195_v4 }
 0x695   : > { %16577 = vmatprep.subr.bf16.mxu1 %v20353_v0 }
 0x696   : > { %16556 = vmatpush3.bf16.msra.mxu0 %v20200_v15  ;;  %v11685_v15 = vld [vmem:[%s19069_s19] sm:$0x1] }
 0x697   : > { %16557 = vmatprep.subr.bf16.mxu0 %v20353_v0  ;;  %v17568_v0 = vld [vmem:[%s18889_s16 + $0x90] ss:$8 sps:$4 sm:$0xff]  }
 0x698   : > { %16578 = vmatpush3.bf16.msra.mxu1 %v20205_v49 }
 0x69a   : > { %16558 = vmatpush3.bf16.msra.mxu0 %v20210_v17 }
 0x69b   : > { %16580 = vmatmul.mubr.bf16.vlgmr.msra.gmra.mrb[236].mxu1 %v11827_v43  ;;  %11969 = vmatprep.subr.bf16.mxu0 %v17567_v22  ;;  %v17594_v43 = vld [vmem:[%s18889_s16 + $0x14] ss:$8 sps:$4 sm:$0xff]   ;;  %v17597_v22 = vld [vmem:[%s18889_s16 + $0x24] ss:$8 sps:$4 sm:$0xff]  }
 0x69d   : > { %16560 = vmatmul.mubr.bf16.vlgmr.msra.gmra.mrb[208].mxu0 %v20155_v16 }
 0x69e   : > { %12001 = vmatprep.mubr.bf16.mxu0 %v20358_v57  ;;  %11970 = vmatpush1.bf16.msra.mxu0 %v17565_v12  ;;  %v17592_v12 = vld [vmem:[%s18889_s16 + $0x10] ss:$8 sps:$4 sm:$0xff]  }
 0x69f   : > { %11971 = vmatprep.subr.bf16.mxu0 %v17570_v46  ;;  %v17595_v46 = vld [vmem:[%s18889_s16 + $0x20] ss:$8 sps:$4 sm:$0xff]  }
 0x6a2   : > { %11972 = vmatpush1.bf16.msra.mxu0 %v17568_v0  ;;  %v17600_v0 = vld [vmem:[%s18889_s16 + $0x34] ss:$8 sps:$4 sm:$0xff]  }
 0x6a3   : > { %11973 = vmatprep.subr.bf16.mxu0 %v17573_v18  ;;  %v17598_v18 = vld [vmem:[%s18889_s16 + $0x30] ss:$8 sps:$4 sm:$0xff]  }
 0x6a6   : > { %11974 = vmatpush1.bf16.msra.mxu0 %v17571_v41  ;;  %v17603_v41 = vld [vmem:[%s18889_s16 + $0x44] ss:$8 sps:$4 sm:$0xff]  }
 0x6a7   : > { %11975 = vmatprep.subr.bf16.mxu0 %v17576_v24  ;;  %v17601_v24 = vld [vmem:[%s18889_s16 + $0x40] ss:$8 sps:$4 sm:$0xff]  }
 0x6aa   : > { %11976 = vmatpush1.bf16.msra.mxu0 %v17574_v27  ;;  %v17606_v27 = vld [vmem:[%s18889_s16 + $0x54] ss:$8 sps:$4 sm:$0xff]  }
 0x6ab   : > { %11977 = vmatprep.subr.bf16.mxu0 %v17579_v36  ;;  %v17609_v36 = vld [vmem:[%s18889_s16 + $0x64] ss:$8 sps:$4 sm:$0xff]  }
 0x6ae   : > { %11978 = vmatpush1.bf16.msra.mxu0 %v17577_v6  ;;  %v17607_v6 = vld [vmem:[%s18889_s16 + $0x60] ss:$8 sps:$4 sm:$0xff]  }
 0x6af   : > { %11979 = vmatprep.subr.bf16.mxu0 %v17582_v28 }
 0x6b2   : > { %11980 = vmatpush1.bf16.msra.mxu0 %v17580_v30  ;;  %v17612_v30 = vld [vmem:[%s18889_s16 + $0x74] ss:$8 sps:$4 sm:$0xff]  }
 0x6b3   : > { %11981 = vmatprep.subr.bf16.mxu0 %v17585_v10  ;;  %v17610_v10 = vld [vmem:[%s18889_s16 + $0x70] ss:$8 sps:$4 sm:$0xff]  }
 0x6b6   : > { %11982 = vmatpush1.bf16.msra.mxu0 %v17583_v21 }
 0x6b7   : > { %11983 = vmatprep.subr.bf16.mxu0 %v17588_v40 }
 0x6ba   : > { %11984 = vmatpush1.bf16.msra.mxu0 %v17586_v33 }
 0x6bb   : > { %12090 = vmatprep.subr.bf16.mxu0 %v17591_v26 }
 0x70e   : > { %v11465_v14 = vpop.f32.mrb[224].mxu1 }
 0x70f   : > { %v16461_v7 = vpop.f32.mrb[225].mxu1 }
 0x710   : > { %v11377_v11 = vpop.f32.mrb[196].mxu0  ;;  %v11468_v48 = vpop.f32.mrb[226].mxu1 }
 0x711   : > { %v11466_v37 = vadd.f32 %v11465_v14, %v11377_v11  ;;  %v16441_v19 = vpop.f32.mrb[197].mxu0  ;;  %v16462_v29 = vpop.f32.mrb[227].mxu1 }
 0x712   : > { %v11380_v62 = vpop.f32.mrb[198].mxu0 }
 0x713   : > { %v16442_v61 = vpop.f32.mrb[199].mxu0 }
 0x72e   : > { %v11678_v52 = vpop.f32.mrb[228].mxu1 }
 0x72f   : > { %v16501_v3 = vpop.f32.mrb[229].mxu1 }
 0x730   : > { %v11571_v58 = vpop.f32.mrb[200].mxu0  ;;  %v11681_v1 = vpop.f32.mrb[230].mxu1 }
 0x731   : > { %v11577_v23 = vadd.f32 %v11571_v58, %v11466_v37  ;;  %v16481_v2 = vpop.f32.mrb[201].mxu0  ;;  %v16502_v54 = vpop.f32.mrb[231].mxu1 }
 0x732   : > { %v11574_v13 = vpop.f32.mrb[202].mxu0 }
 0x733   : > { %v11684_v53 = vadd.f32 %v11678_v52, %v11577_v23  ;;  %v16482_v50 = vpop.f32.mrb[203].mxu0 }
 0x735   : > { %v11686_v28 = vadd.f32 %v11685_v15, %v11684_v53 }
 0x737   : > { %v11687_v21 = vmax.f32 %v11686_v28, 0.0 }
 0x739   : > { %v11688_v40 = vpack.c.bf16 %v11687_v21, %v11687_v21 }
 0x74e   : > { %v11779_v39 = vpop.f32.mrb[232].mxu1 }
 0x74f   : > { %v16541_v25 = vpop.f32.mrb[233].mxu1 }
 0x750   : > { %v11739_v44 = vpop.f32.mrb[204].mxu0  ;;  %v11782_v63 = vpop.f32.mrb[234].mxu1 }
 0x751   : > { %v11780_v35 = vadd.f32 %v11779_v39, %v11739_v44  ;;  %v16521_v8 = vpop.f32.mrb[205].mxu0  ;;  %v16542_v9 = vpop.f32.mrb[235].mxu1 }
 0x752   : > { %v11742_v59 = vpop.f32.mrb[206].mxu0 }
 0x753   : > { %v16522_v42 = vpop.f32.mrb[207].mxu0 }
 0x76e   : > { %v11863_v45 = vpop.f32.mrb[236].mxu1 }
 0x76f   : > { %v16581_v16 = vpop.f32.mrb[237].mxu1 }
 0x770   : > { %v11819_v55 = vpop.f32.mrb[208].mxu0  ;;  %v11866_v31 = vpop.f32.mrb[238].mxu1 }
 0x771   : > { %v11825_v60 = vadd.f32 %v11819_v55, %v11780_v35  ;;  %v16561_v38 = vpop.f32.mrb[209].mxu0  ;;  %v16582_v20 = vpop.f32.mrb[239].mxu1 }
 0x772   : > { %v11822_v47 = vpop.f32.mrb[210].mxu0 }
 0x773   : > { %v11869_v34 = vadd.f32 %v11863_v45, %v11825_v60  ;;  %v16562_v4 = vpop.f32.mrb[211].mxu0 }
 0x775   : > { %v11870_v49 = vadd.f32 %v11869_v34, %v11685_v15 }
 0x777   : > { %v11871_v17 = vmax.f32 %v11870_v49, 0.0 }
 0x779   : > { %v11872_v32 = vpack.c.bf16 %v11871_v17, %v11871_v17 }
 0x77b   : > { %12002 = vmatmul.mubr.bf16.vlgmr.msra.gmra.mrb[212].mxu0 %v11872_v32 }
 0x77c   : > { %12091 = vmatpush1.bf16.msra.mxu0 %v17589_v5  ;;  %12122 = vmatprep.mubr.bf16.mxu0 %v20358_v57  ;;  %v17604_v57 = vld [vmem:[%s18889_s16 + $0x50] ss:$8 sps:$4 sm:$0xff]  }
 0x77d   : > { %12092 = vmatprep.subr.bf16.mxu0 %v17594_v43 }
 0x780   : > { %12093 = vmatpush1.bf16.msra.mxu0 %v17592_v12 }
 0x781   : > { %12094 = vmatprep.subr.bf16.mxu0 %v17597_v22 }
 0x784   : > { %12095 = vmatpush1.bf16.msra.mxu0 %v17595_v46 }
 0x785   : > { %12096 = vmatprep.subr.bf16.mxu0 %v17600_v0 }
 0x788   : > { %12097 = vmatpush1.bf16.msra.mxu0 %v17598_v18 }
 0x789   : > { %12098 = vmatprep.subr.bf16.mxu0 %v17603_v41 }
 0x78c   : > { %12099 = vmatpush1.bf16.msra.mxu0 %v17601_v24 }
 0x78d   : > { %12100 = vmatprep.subr.bf16.mxu0 %v17606_v27 }
 0x790   : > { %12101 = vmatpush1.bf16.msra.mxu0 %v17604_v57 }
 0x791   : > { %12102 = vmatprep.subr.bf16.mxu0 %v17609_v36 }
 0x794   : > { %12103 = vmatpush1.bf16.msra.mxu0 %v17607_v6 }
 0x795   : > { %12104 = vmatprep.subr.bf16.mxu0 %v17612_v30 }
 0x798   : > { %12105 = vmatpush1.bf16.msra.mxu0 %v17610_v10 }
 0x79b   : > { %12123 = vmatmul.mubr.bf16.vlgmr.msra.gmra.mrb[212].mxu0 %v11688_v40 }
 0x86e   : > { %v12124_v33 = vpop.f32.mrb[212].mxu0 }
 0x86f   : > { %v12126_v26 = vpop.f32.mrb[213].mxu0 }
 0x870   : > { %v12133_v14 = vcombine.low %v12124_v33, %v12126_v26  ;;  %v12128_v7 = vpop.f32.mrb[214].mxu0 }
 0x871   : > { %v12129_v11 = vpop.f32.mrb[215].mxu0 }
 0x872   : > { %v12140_v48 = vrot.slane %v12133_v14, %v19739_v51 }
 0x874   : > { %v12147_v37 = vrot.slane %v12140_v48, %v19739_v51 }
 0x876   : > { %14769 = vst.msk [vmem:[%s19755_s22 + $0x1] ss:$2 sm:$0x3] %vm19747_vm8, %v12147_v37 }
 0x877 PF: > { %s16_s21 = sadd.s32 1, %s17653_s21  }
 0x878   : > { %p13_p4 = scmp.ge.s32.totalorder %s16_s21, 4  }
 0x87a   :  { %15 = sbr.rel (!%p13_p4) target bundleno = 1 (0x1), region = 102 }

</bundles_post_ra>
